<compile_context>
chip_gen: v7x
topology: tpu7x:2x2x1
jax: 0.10.0
libtpu: 0.0.40
codegen_flags: <defaults>
</compile_context>

<pallas_src>
import functools

import jax
import jax.numpy as jnp
from jax.experimental import pallas as pl
from jax.experimental.pallas import tpu as pltpu


def _round_up(x, m):
    return (x + m - 1) // m * m


_VMEM_LIMIT = 64 * 1024 * 1024      # <= physical VMEM on v5e/v6e/v7x
_BLOCK_BUDGET = 4 * 1024 * 1024     # per-block byte budget (leaves room for 2x buffering)


def _pick_tm(M, row_bytes, tm_max):
    """Biggest M tile <= tm_max that fits the per-block budget and keeps at
    least 2 grid blocks when M is large enough (v7x has 2 TensorCores)."""
    cap = max(8, (_BLOCK_BUDGET // max(row_bytes, 1)) // 8 * 8)
    half = max(8, _round_up(pl.cdiv(M, 2), 8))
    return max(8, min(tm_max, cap, half))


# --------------------------------------------------------------------------
# Pallas kernel 1: resident-weight matmul with fused scale/shift (+ReLU)
# epilogue — handles conv (im2col), conv+BN+ReLU fusion, and the classifier.
# --------------------------------------------------------------------------
def _matmul_fused_kernel(a_ref, b_ref, s_ref, h_ref, o_ref, *, relu):
    acc = jnp.dot(a_ref[...], b_ref[...], preferred_element_type=jnp.float32)
    y = acc * s_ref[...] + h_ref[...]
    if relu:
        y = jnp.maximum(y, 0.0)
    o_ref[...] = y.astype(o_ref.dtype)


def pallas_matmul_fused(a, b, scale=None, shift=None, relu=False,
                        out_dtype=jnp.bfloat16, tm=512):
    """out[M,N] = epilogue(A[M,K] @ B[K,N]); epilogue = (.*scale + shift) [+ReLU].

    A/B are fed to the MXU in bf16; accumulation and the epilogue are f32.
    B (and scale/shift) use a single block -> VMEM-resident for the call.
    """
    M, K = a.shape
    K2, N = b.shape
    assert K == K2
    Kp, Np = _round_up(K, 128), _round_up(N, 128)

    if scale is None:
        scale = jnp.ones((N,), jnp.float32)
    if shift is None:
        shift = jnp.zeros((N,), jnp.float32)

    row_bytes = 2 * (Kp + Np)            # bf16 A row + bf16 out row
    tm_eff = _pick_tm(M, row_bytes, tm)
    Mp = _round_up(M, tm_eff)

    ap = jnp.pad(a.astype(jnp.bfloat16), ((0, Mp - M), (0, Kp - K)))
    bp = jnp.pad(b.astype(jnp.bfloat16), ((0, Kp - K), (0, Np - N)))
    sp = jnp.pad(scale.reshape(1, N).astype(jnp.float32), ((0, 0), (0, Np - N)))
    hp = jnp.pad(shift.reshape(1, N).astype(jnp.float32), ((0, 0), (0, Np - N)))

    out = pl.pallas_call(
        functools.partial(_matmul_fused_kernel, relu=relu),
        out_shape=jax.ShapeDtypeStruct((Mp, Np), out_dtype),
        grid=(Mp // tm_eff,),
        in_specs=[
            pl.BlockSpec((tm_eff, Kp), lambda i: (i, 0)),   # streamed A tiles
            pl.BlockSpec((Kp, Np), lambda i: (0, 0)),       # resident weights
            pl.BlockSpec((1, Np), lambda i: (0, 0)),        # resident scale
            pl.BlockSpec((1, Np), lambda i: (0, 0)),        # resident shift
        ],
        out_specs=pl.BlockSpec((tm_eff, Np), lambda i: (i, 0)),
        compiler_params=pltpu.CompilerParams(
            dimension_semantics=("parallel",),
            vmem_limit_bytes=_VMEM_LIMIT),
    )(ap, bp, sp, hp)
    return out[:M, :N]


# --------------------------------------------------------------------------
# Pallas kernel 2: standalone fused BatchNorm(eval) + ReLU (lane-dense view).
# --------------------------------------------------------------------------
def _bn_relu_kernel(x_ref, s_ref, b_ref, o_ref):
    x = x_ref[...].astype(jnp.float32)
    o_ref[...] = jnp.maximum(x * s_ref[...] + b_ref[...], 0.0).astype(o_ref.dtype)


def pallas_bn_relu_2d(x2d, scale, shift, tm=1024):
    M, C = x2d.shape
    Cp = _round_up(C, 128)
    row_bytes = 4 * Cp                   # bf16 in + bf16 out (+ f32 compute slack)
    tm_eff = _pick_tm(M, row_bytes, tm)
    Mp = _round_up(M, tm_eff)

    xp = jnp.pad(x2d, ((0, Mp - M), (0, Cp - C)))
    sp = jnp.pad(scale.reshape(1, C).astype(jnp.float32), ((0, 0), (0, Cp - C)))
    bp = jnp.pad(shift.reshape(1, C).astype(jnp.float32), ((0, 0), (0, Cp - C)))

    out = pl.pallas_call(
        _bn_relu_kernel,
        out_shape=jax.ShapeDtypeStruct((Mp, Cp), x2d.dtype),
        grid=(Mp // tm_eff,),
        in_specs=[
            pl.BlockSpec((tm_eff, Cp), lambda i: (i, 0)),
            pl.BlockSpec((1, Cp), lambda i: (0, 0)),
            pl.BlockSpec((1, Cp), lambda i: (0, 0)),
        ],
        out_specs=pl.BlockSpec((tm_eff, Cp), lambda i: (i, 0)),
        compiler_params=pltpu.CompilerParams(
            dimension_semantics=("parallel",),
            vmem_limit_bytes=_VMEM_LIMIT),
    )(xp, sp, bp)
    return out[:M, :C]


# --------------------------------------------------------------------------
# Glue ops (layout plumbing only; matmul / elementwise math is in Pallas).
# --------------------------------------------------------------------------
def _bn_fold(bn, eps=1e-5):
    scale = bn["gamma"] / jnp.sqrt(bn["var"] + eps)
    shift = bn["beta"] - bn["mean"] * scale
    return scale.astype(jnp.float32), shift.astype(jnp.float32)


def bn_relu(x_nhwc, bn, eps=1e-5):
    """Standalone BN(eval)+ReLU; folds W into the channel axis for lane density."""
    n, h, w, c = x_nhwc.shape
    scale, shift = _bn_fold(bn, eps)
    x2d = x_nhwc.reshape(n * h, w * c)
    y = pallas_bn_relu_2d(x2d, jnp.tile(scale, w), jnp.tile(shift, w))
    return y.reshape(n, h, w, c)


def conv2d(x_nhwc, w_oihw, stride=1, padding=0, scale=None, shift=None,
           relu=False, out_dtype=jnp.bfloat16):
    """PyTorch-semantics conv (cross-correlation, no bias) via im2col + Pallas
    matmul, with an optional fused BN(eval)+ReLU epilogue."""
    cout, cin, kh, kw = w_oihw.shape
    n, h, w, _ = x_nhwc.shape
    xp = jnp.pad(x_nhwc, ((0, 0), (padding, padding), (padding, padding), (0, 0)))
    ho = (h + 2 * padding - kh) // stride + 1
    wo = (w + 2 * padding - kw) // stride + 1
    cols = []
    for i in range(kh):
        for j in range(kw):
            cols.append(xp[:, i:i + stride * (ho - 1) + 1:stride,
                           j:j + stride * (wo - 1) + 1:stride, :])
    patches = jnp.concatenate(cols, axis=-1)              # (N, Ho, Wo, kh*kw*Cin)
    wmat = jnp.transpose(w_oihw, (2, 3, 1, 0)).reshape(kh * kw * cin, cout)
    a = patches.reshape(n * ho * wo, kh * kw * cin)
    out = pallas_matmul_fused(a, wmat, scale=scale, shift=shift, relu=relu,
                              out_dtype=out_dtype)
    return out.reshape(n, ho, wo, cout)


def maxpool_3x3_s2_p1(x):
    n, h, w, c = x.shape
    neg = jnp.finfo(x.dtype).min
    xp = jnp.pad(x, ((0, 0), (1, 1), (1, 1), (0, 0)), constant_values=neg)
    ho = (h + 2 - 3) // 2 + 1
    wo = (w + 2 - 3) // 2 + 1
    out = None
    for i in range(3):
        for j in range(3):
            sl = xp[:, i:i + 2 * ho - 1:2, j:j + 2 * wo - 1:2, :]
            out = sl if out is None else jnp.maximum(out, sl)
    return out


def avgpool_2x2_s2(x):
    n, h, w, c = x.shape
    ho, wo = h // 2, w // 2
    xf = x.astype(jnp.float32)
    s = (xf[:, 0:2 * ho:2, 0:2 * wo:2, :] + xf[:, 1:2 * ho:2, 0:2 * wo:2, :] +
         xf[:, 0:2 * ho:2, 1:2 * wo:2, :] + xf[:, 1:2 * ho:2, 1:2 * wo:2, :])
    return (s * 0.25).astype(x.dtype)


# --------------------------------------------------------------------------
# Deterministic parameter init (DenseNet topology; eval-mode BN statistics).
# --------------------------------------------------------------------------
def _init_conv(key, cout, cin, kh, kw):
    return jax.random.normal(key, (cout, cin, kh, kw), jnp.float32) * 0.1


def _init_bn(key, c):
    k1, k2, k3, k4 = jax.random.split(key, 4)
    return dict(gamma=1.0 + 0.1 * jax.random.normal(k1, (c,), jnp.float32),
                beta=0.1 * jax.random.normal(k2, (c,), jnp.float32),
                mean=0.1 * jax.random.normal(k3, (c,), jnp.float32),
                var=0.5 + jax.random.uniform(k4, (c,), jnp.float32))


def init_densenet(key, growth_rate, block_config, num_init_features,
                  bn_size=4, num_classes=20):
    keys = iter(jax.random.split(key, 1024))
    nk = lambda: next(keys)
    params = {}
    params["conv0"] = _init_conv(nk(), num_init_features, 3, 7, 7)
    params["norm0"] = _init_bn(nk(), num_init_features)
    num_features = num_init_features
    blocks, transitions = [], []
    for bi, nlayers in enumerate(block_config):
        block = []
        for li in range(nlayers):
            cin = num_features + li * growth_rate
            block.append(dict(
                norm1=_init_bn(nk(), cin),
                conv1=_init_conv(nk(), bn_size * growth_rate, cin, 1, 1),
                norm2=_init_bn(nk(), bn_size * growth_rate),
                conv2=_init_conv(nk(), growth_rate, bn_size * growth_rate, 3, 3),
            ))
        blocks.append(block)
        num_features += nlayers * growth_rate
        if bi != len(block_config) - 1:
            cout = num_features // 2
            transitions.append(dict(norm=_init_bn(nk(), num_features),
                                    conv=_init_conv(nk(), cout, num_features, 1, 1)))
            num_features = cout
    params["blocks"] = blocks
    params["transitions"] = transitions
    params["norm5"] = _init_bn(nk(), num_features)
    params["classifier"] = dict(
        w=jax.random.normal(nk(), (num_classes, num_features), jnp.float32) * 0.1,
        b=jax.random.normal(nk(), (num_classes,), jnp.float32) * 0.1)
    return params


# --------------------------------------------------------------------------
# Forward pass (matches torchvision DenseNet.forward with replaced classifier)
# --------------------------------------------------------------------------
def densenet_forward(params, x_nchw):
    x = jnp.transpose(x_nchw, (0, 2, 3, 1)).astype(jnp.bfloat16)   # NCHW -> NHWC

    # features: conv0 + (norm0 + relu0 fused into the matmul epilogue) + pool0
    s0, h0 = _bn_fold(params["norm0"])
    x = conv2d(x, params["conv0"], stride=2, padding=3, scale=s0, shift=h0, relu=True)
    x = maxpool_3x3_s2_p1(x)

    nblocks = len(params["blocks"])
    for bi, block in enumerate(params["blocks"]):
        for layer in block:
            # norm1 + relu1 on the concatenated features (standalone BN kernel,
            # cannot be fused into producers: each consumer has different BN).
            y = bn_relu(x, layer["norm1"])
            # conv1 (1x1 bottleneck) with norm2+relu2 fused into its epilogue.
            s2, h2 = _bn_fold(layer["norm2"])
            y = conv2d(y, layer["conv1"], stride=1, padding=0,
                       scale=s2, shift=h2, relu=True)
            # conv2 (3x3), plain output (bf16), appended to the dense features.
            y = conv2d(y, layer["conv2"], stride=1, padding=1)
            x = jnp.concatenate([x, y], axis=-1)
        if bi != nblocks - 1:
            tr = params["transitions"][bi]
            x = bn_relu(x, tr["norm"])
            x = conv2d(x, tr["conv"], stride=1, padding=0)
            x = avgpool_2x2_s2(x)

    # norm5 (+ the F.relu applied in DenseNet.forward)
    x = bn_relu(x, params["norm5"])
    # adaptive_avg_pool2d((1,1)) + flatten
    x = jnp.mean(x.astype(jnp.float32), axis=(1, 2))                 # (N, C)
    cls = params["classifier"]
    return pallas_matmul_fused(x, cls["w"].T, scale=None, shift=cls["b"],
                               relu=False, out_dtype=jnp.float32)    # (N, classes)


if __name__ == "__main__":
    key = jax.random.PRNGKey(0)
    pkey, xkey = jax.random.split(key)
    # Scaled-down DenseNet config for the demo run.  The true densenet201
    # topology is growth_rate=32, block_config=(6, 12, 48, 32),
    # num_init_features=64 — same code path, just bigger.
    params = init_densenet(pkey, growth_rate=8, block_config=(2, 2, 2, 2),
                           num_init_features=16, bn_size=4, num_classes=20)
    x = jax.random.normal(xkey, (2, 3, 32, 32), jnp.float32)
    fwd = jax.jit(densenet_forward)
    out = jax.block_until_ready(fwd(params, x))
    assert out.shape == (2, 20) and out.dtype == jnp.float32
    print("KERNEL_OK")
</pallas_src>

<mosaic_0001>
module attributes {stable_mosaic.version = 11 : i64} {
  func.func @_matmul_fused_kernel(%arg0: i32, %arg1: memref<256x256xbf16, #tpu.memory_space<vmem>>, %arg2: memref<256x128xbf16, #tpu.memory_space<vmem>>, %arg3: memref<1x128xf32, #tpu.memory_space<vmem>>, %arg4: memref<1x128xf32, #tpu.memory_space<vmem>>, %arg5: memref<256x128xbf16, #tpu.memory_space<vmem>>) attributes {dimension_semantics = [#tpu.dimension_semantics<parallel>], iteration_bounds = array<i64: 2>, scalar_prefetch = 0 : i64, scratch_operands = 0 : i64, tpu.core_type = #tpu.core_type<tc>, window_params = [{transform_indices = @transform_0, window_bounds = array<i64: 256, 256>}, {pipeline_mode = #tpu.pipeline_mode<synchronous>, transform_indices = @transform_1, window_bounds = array<i64: 256, 128>}, {pipeline_mode = #tpu.pipeline_mode<synchronous>, transform_indices = @transform_2, window_bounds = array<i64: 1, 128>}, {pipeline_mode = #tpu.pipeline_mode<synchronous>, transform_indices = @transform_3, window_bounds = array<i64: 1, 128>}, {transform_indices = @transform_4, window_bounds = array<i64: 256, 128>}]} {
    %c0 = arith.constant 0 : index
    %c0_0 = arith.constant 0 : index
    %0 = vector.load %arg1[%c0, %c0_0] : memref<256x256xbf16, #tpu.memory_space<vmem>>, vector<256x256xbf16>
    %c0_1 = arith.constant 0 : index
    %c0_2 = arith.constant 0 : index
    %1 = vector.load %arg2[%c0_1, %c0_2] : memref<256x128xbf16, #tpu.memory_space<vmem>>, vector<256x128xbf16>
    %cst = arith.constant dense<0.000000e+00> : vector<256x128xf32>
    %2 = tpu.matmul %0, %1, %cst {dimension_numbers = #tpu.dot_dimension_numbers<[1], [0], [0], [1], [0, 0, 1, 1], [], []>} : vector<256x256xbf16>, vector<256x128xbf16>, vector<256x128xf32> -> vector<256x128xf32>
    %c0_3 = arith.constant 0 : index
    %c0_4 = arith.constant 0 : index
    %3 = vector.load %arg3[%c0_3, %c0_4] : memref<1x128xf32, #tpu.memory_space<vmem>>, vector<1x128xf32>
    %4 = vector.broadcast %3 : vector<1x128xf32> to vector<256x128xf32>
    %5 = arith.mulf %2, %4 : vector<256x128xf32>
    %c0_5 = arith.constant 0 : index
    %c0_6 = arith.constant 0 : index
    %6 = vector.load %arg4[%c0_5, %c0_6] : memref<1x128xf32, #tpu.memory_space<vmem>>, vector<1x128xf32>
    %7 = vector.broadcast %6 : vector<1x128xf32> to vector<256x128xf32>
    %8 = arith.addf %5, %7 : vector<256x128xf32>
    %cst_7 = arith.constant 0.000000e+00 : f32
    %9 = vector.broadcast %cst_7 : f32 to vector<256x128xf32>
    %10 = arith.maximumf %8, %9 : vector<256x128xf32>
    %11 = arith.truncf %10 : vector<256x128xf32> to vector<256x128xbf16>
    %c0_8 = arith.constant 0 : index
    %c0_9 = arith.constant 0 : index
    %12 = vector.load %arg5[%c0_8, %c0_9] : memref<256x128xbf16, #tpu.memory_space<vmem>>, vector<256x128xbf16>
    tpu.vector_store %arg5[%c0_8, %c0_9], %11 {strides = array<i32>} : memref<256x128xbf16, #tpu.memory_space<vmem>>, vector<256x128xbf16>,
    return
  }
  func.func @transform_0(%arg0: i32) -> (i32, i32) {
    %c0_i32 = arith.constant 0 : i32
    %c0_i32_0 = arith.constant 0 : i32
    return %arg0, %c0_i32 : i32, i32
  }
  func.func @transform_1(%arg0: i32) -> (i32, i32) {
    %c0_i32 = arith.constant 0 : i32
    %c0_i32_0 = arith.constant 0 : i32
    %c0_i32_1 = arith.constant 0 : i32
    return %c0_i32, %c0_i32_0 : i32, i32
  }
  func.func @transform_2(%arg0: i32) -> (i32, i32) {
    %c0_i32 = arith.constant 0 : i32
    %c0_i32_0 = arith.constant 0 : i32
    %c0_i32_1 = arith.constant 0 : i32
    return %c0_i32, %c0_i32_0 : i32, i32
  }
  func.func @transform_3(%arg0: i32) -> (i32, i32) {
    %c0_i32 = arith.constant 0 : i32
    %c0_i32_0 = arith.constant 0 : i32
    %c0_i32_1 = arith.constant 0 : i32
    return %c0_i32, %c0_i32_0 : i32, i32
  }
  func.func @transform_4(%arg0: i32) -> (i32, i32) {
    %c0_i32 = arith.constant 0 : i32
    %c0_i32_0 = arith.constant 0 : i32
    return %arg0, %c0_i32 : i32, i32
  }
}

module attributes {stable_mosaic.version = 11 : i64} {
  func.func @_bn_relu_kernel(%arg0: i32, %arg1: memref<8x128xbf16, #tpu.memory_space<vmem>>, %arg2: memref<1x128xf32, #tpu.memory_space<vmem>>, %arg3: memref<1x128xf32, #tpu.memory_space<vmem>>, %arg4: memref<8x128xbf16, #tpu.memory_space<vmem>>) attributes {dimension_semantics = [#tpu.dimension_semantics<parallel>], iteration_bounds = array<i64: 2>, scalar_prefetch = 0 : i64, scratch_operands = 0 : i64, tpu.core_type = #tpu.core_type<tc>, window_params = [{transform_indices = @transform_0, window_bounds = array<i64: 8, 128>}, {pipeline_mode = #tpu.pipeline_mode<synchronous>, transform_indices = @transform_1, window_bounds = array<i64: 1, 128>}, {pipeline_mode = #tpu.pipeline_mode<synchronous>, transform_indices = @transform_2, window_bounds = array<i64: 1, 128>}, {transform_indices = @transform_3, window_bounds = array<i64: 8, 128>}]} {
    %c0 = arith.constant 0 : index
    %c0_0 = arith.constant 0 : index
    %0 = vector.load %arg1[%c0, %c0_0] : memref<8x128xbf16, #tpu.memory_space<vmem>>, vector<8x128xbf16>
    %1 = arith.extf %0 : vector<8x128xbf16> to vector<8x128xf32>
    %c0_1 = arith.constant 0 : index
    %c0_2 = arith.constant 0 : index
    %2 = vector.load %arg2[%c0_1, %c0_2] : memref<1x128xf32, #tpu.memory_space<vmem>>, vector<1x128xf32>
    %3 = vector.broadcast %2 : vector<1x128xf32> to vector<8x128xf32>
    %4 = arith.mulf %1, %3 : vector<8x128xf32>
    %c0_3 = arith.constant 0 : index
    %c0_4 = arith.constant 0 : index
    %5 = vector.load %arg3[%c0_3, %c0_4] : memref<1x128xf32, #tpu.memory_space<vmem>>, vector<1x128xf32>
    %6 = vector.broadcast %5 : vector<1x128xf32> to vector<8x128xf32>
    %7 = arith.addf %4, %6 : vector<8x128xf32>
    %cst = arith.constant 0.000000e+00 : f32
    %8 = vector.broadcast %cst : f32 to vector<8x128xf32>
    %9 = arith.maximumf %7, %8 : vector<8x128xf32>
    %10 = arith.truncf %9 : vector<8x128xf32> to vector<8x128xbf16>
    %c0_5 = arith.constant 0 : index
    %c0_6 = arith.constant 0 : index
    %11 = vector.load %arg4[%c0_5, %c0_6] : memref<8x128xbf16, #tpu.memory_space<vmem>>, vector<8x128xbf16>
    tpu.vector_store %arg4[%c0_5, %c0_6], %10 {strides = array<i32>} : memref<8x128xbf16, #tpu.memory_space<vmem>>, vector<8x128xbf16>,
    return
  }
  func.func @transform_0(%arg0: i32) -> (i32, i32) {
    %c0_i32 = arith.constant 0 : i32
    %c0_i32_0 = arith.constant 0 : i32
    return %arg0, %c0_i32 : i32, i32
  }
  func.func @transform_1(%arg0: i32) -> (i32, i32) {
    %c0_i32 = arith.constant 0 : i32
    %c0_i32_0 = arith.constant 0 : i32
    %c0_i32_1 = arith.constant 0 : i32
    return %c0_i32, %c0_i32_0 : i32, i32
  }
  func.func @transform_2(%arg0: i32) -> (i32, i32) {
    %c0_i32 = arith.constant 0 : i32
    %c0_i32_0 = arith.constant 0 : i32
    %c0_i32_1 = arith.constant 0 : i32
    return %c0_i32, %c0_i32_0 : i32, i32
  }
  func.func @transform_3(%arg0: i32) -> (i32, i32) {
    %c0_i32 = arith.constant 0 : i32
    %c0_i32_0 = arith.constant 0 : i32
    return %arg0, %c0_i32 : i32, i32
  }
}

module attributes {stable_mosaic.version = 11 : i64} {
  func.func @_matmul_fused_kernel(%arg0: i32, %arg1: memref<64x128xbf16, #tpu.memory_space<vmem>>, %arg2: memref<128x128xbf16, #tpu.memory_space<vmem>>, %arg3: memref<1x128xf32, #tpu.memory_space<vmem>>, %arg4: memref<1x128xf32, #tpu.memory_space<vmem>>, %arg5: memref<64x128xbf16, #tpu.memory_space<vmem>>) attributes {dimension_semantics = [#tpu.dimension_semantics<parallel>], iteration_bounds = array<i64: 2>, scalar_prefetch = 0 : i64, scratch_operands = 0 : i64, tpu.core_type = #tpu.core_type<tc>, window_params = [{transform_indices = @transform_0, window_bounds = array<i64: 64, 128>}, {pipeline_mode = #tpu.pipeline_mode<synchronous>, transform_indices = @transform_1, window_bounds = array<i64: 128, 128>}, {pipeline_mode = #tpu.pipeline_mode<synchronous>, transform_indices = @transform_2, window_bounds = array<i64: 1, 128>}, {pipeline_mode = #tpu.pipeline_mode<synchronous>, transform_indices = @transform_3, window_bounds = array<i64: 1, 128>}, {transform_indices = @transform_4, window_bounds = array<i64: 64, 128>}]} {
    %c0 = arith.constant 0 : index
    %c0_0 = arith.constant 0 : index
    %0 = vector.load %arg1[%c0, %c0_0] : memref<64x128xbf16, #tpu.memory_space<vmem>>, vector<64x128xbf16>
    %c0_1 = arith.constant 0 : index
    %c0_2 = arith.constant 0 : index
    %1 = vector.load %arg2[%c0_1, %c0_2] : memref<128x128xbf16, #tpu.memory_space<vmem>>, vector<128x128xbf16>
    %cst = arith.constant dense<0.000000e+00> : vector<64x128xf32>
    %2 = tpu.matmul %0, %1, %cst {dimension_numbers = #tpu.dot_dimension_numbers<[1], [0], [0], [1], [0, 0, 1, 1], [], []>} : vector<64x128xbf16>, vector<128x128xbf16>, vector<64x128xf32> -> vector<64x128xf32>
    %c0_3 = arith.constant 0 : index
    %c0_4 = arith.constant 0 : index
    %3 = vector.load %arg3[%c0_3, %c0_4] : memref<1x128xf32, #tpu.memory_space<vmem>>, vector<1x128xf32>
    %4 = vector.broadcast %3 : vector<1x128xf32> to vector<64x128xf32>
    %5 = arith.mulf %2, %4 : vector<64x128xf32>
    %c0_5 = arith.constant 0 : index
    %c0_6 = arith.constant 0 : index
    %6 = vector.load %arg4[%c0_5, %c0_6] : memref<1x128xf32, #tpu.memory_space<vmem>>, vector<1x128xf32>
    %7 = vector.broadcast %6 : vector<1x128xf32> to vector<64x128xf32>
    %8 = arith.addf %5, %7 : vector<64x128xf32>
    %cst_7 = arith.constant 0.000000e+00 : f32
    %9 = vector.broadcast %cst_7 : f32 to vector<64x128xf32>
    %10 = arith.maximumf %8, %9 : vector<64x128xf32>
    %11 = arith.truncf %10 : vector<64x128xf32> to vector<64x128xbf16>
    %c0_8 = arith.constant 0 : index
    %c0_9 = arith.constant 0 : index
    %12 = vector.load %arg5[%c0_8, %c0_9] : memref<64x128xbf16, #tpu.memory_space<vmem>>, vector<64x128xbf16>
    tpu.vector_store %arg5[%c0_8, %c0_9], %11 {strides = array<i32>} : memref<64x128xbf16, #tpu.memory_space<vmem>>, vector<64x128xbf16>,
    return
  }
  func.func @transform_0(%arg0: i32) -> (i32, i32) {
    %c0_i32 = arith.constant 0 : i32
    %c0_i32_0 = arith.constant 0 : i32
    return %arg0, %c0_i32 : i32, i32
  }
  func.func @transform_1(%arg0: i32) -> (i32, i32) {
    %c0_i32 = arith.constant 0 : i32
    %c0_i32_0 = arith.constant 0 : i32
    %c0_i32_1 = arith.constant 0 : i32
    return %c0_i32, %c0_i32_0 : i32, i32
  }
  func.func @transform_2(%arg0: i32) -> (i32, i32) {
    %c0_i32 = arith.constant 0 : i32
    %c0_i32_0 = arith.constant 0 : i32
    %c0_i32_1 = arith.constant 0 : i32
    return %c0_i32, %c0_i32_0 : i32, i32
  }
  func.func @transform_3(%arg0: i32) -> (i32, i32) {
    %c0_i32 = arith.constant 0 : i32
    %c0_i32_0 = arith.constant 0 : i32
    %c0_i32_1 = arith.constant 0 : i32
    return %c0_i32, %c0_i32_0 : i32, i32
  }
  func.func @transform_4(%arg0: i32) -> (i32, i32) {
    %c0_i32 = arith.constant 0 : i32
    %c0_i32_0 = arith.constant 0 : i32
    return %arg0, %c0_i32 : i32, i32
  }
}

module attributes {stable_mosaic.version = 11 : i64} {
  func.func @_matmul_fused_kernel(%arg0: i32, %arg1: memref<64x384xbf16, #tpu.memory_space<vmem>>, %arg2: memref<384x128xbf16, #tpu.memory_space<vmem>>, %arg3: memref<1x128xf32, #tpu.memory_space<vmem>>, %arg4: memref<1x128xf32, #tpu.memory_space<vmem>>, %arg5: memref<64x128xbf16, #tpu.memory_space<vmem>>) attributes {dimension_semantics = [#tpu.dimension_semantics<parallel>], iteration_bounds = array<i64: 2>, scalar_prefetch = 0 : i64, scratch_operands = 0 : i64, tpu.core_type = #tpu.core_type<tc>, window_params = [{transform_indices = @transform_0, window_bounds = array<i64: 64, 384>}, {pipeline_mode = #tpu.pipeline_mode<synchronous>, transform_indices = @transform_1, window_bounds = array<i64: 384, 128>}, {pipeline_mode = #tpu.pipeline_mode<synchronous>, transform_indices = @transform_2, window_bounds = array<i64: 1, 128>}, {pipeline_mode = #tpu.pipeline_mode<synchronous>, transform_indices = @transform_3, window_bounds = array<i64: 1, 128>}, {transform_indices = @transform_4, window_bounds = array<i64: 64, 128>}]} {
    %c0 = arith.constant 0 : index
    %c0_0 = arith.constant 0 : index
    %0 = vector.load %arg1[%c0, %c0_0] : memref<64x384xbf16, #tpu.memory_space<vmem>>, vector<64x384xbf16>
    %c0_1 = arith.constant 0 : index
    %c0_2 = arith.constant 0 : index
    %1 = vector.load %arg2[%c0_1, %c0_2] : memref<384x128xbf16, #tpu.memory_space<vmem>>, vector<384x128xbf16>
    %cst = arith.constant dense<0.000000e+00> : vector<64x128xf32>
    %2 = tpu.matmul %0, %1, %cst {dimension_numbers = #tpu.dot_dimension_numbers<[1], [0], [0], [1], [0, 0, 1, 1], [], []>} : vector<64x384xbf16>, vector<384x128xbf16>, vector<64x128xf32> -> vector<64x128xf32>
    %c0_3 = arith.constant 0 : index
    %c0_4 = arith.constant 0 : index
    %3 = vector.load %arg3[%c0_3, %c0_4] : memref<1x128xf32, #tpu.memory_space<vmem>>, vector<1x128xf32>
    %4 = vector.broadcast %3 : vector<1x128xf32> to vector<64x128xf32>
    %5 = arith.mulf %2, %4 : vector<64x128xf32>
    %c0_5 = arith.constant 0 : index
    %c0_6 = arith.constant 0 : index
    %6 = vector.load %arg4[%c0_5, %c0_6] : memref<1x128xf32, #tpu.memory_space<vmem>>, vector<1x128xf32>
    %7 = vector.broadcast %6 : vector<1x128xf32> to vector<64x128xf32>
    %8 = arith.addf %5, %7 : vector<64x128xf32>
    %9 = arith.truncf %8 : vector<64x128xf32> to vector<64x128xbf16>
    %c0_7 = arith.constant 0 : index
    %c0_8 = arith.constant 0 : index
    %10 = vector.load %arg5[%c0_7, %c0_8] : memref<64x128xbf16, #tpu.memory_space<vmem>>, vector<64x128xbf16>
    tpu.vector_store %arg5[%c0_7, %c0_8], %9 {strides = array<i32>} : memref<64x128xbf16, #tpu.memory_space<vmem>>, vector<64x128xbf16>,
    return
  }
  func.func @transform_0(%arg0: i32) -> (i32, i32) {
    %c0_i32 = arith.constant 0 : i32
    %c0_i32_0 = arith.constant 0 : i32
    return %arg0, %c0_i32 : i32, i32
  }
  func.func @transform_1(%arg0: i32) -> (i32, i32) {
    %c0_i32 = arith.constant 0 : i32
    %c0_i32_0 = arith.constant 0 : i32
    %c0_i32_1 = arith.constant 0 : i32
    return %c0_i32, %c0_i32_0 : i32, i32
  }
  func.func @transform_2(%arg0: i32) -> (i32, i32) {
    %c0_i32 = arith.constant 0 : i32
    %c0_i32_0 = arith.constant 0 : i32
    %c0_i32_1 = arith.constant 0 : i32
    return %c0_i32, %c0_i32_0 : i32, i32
  }
  func.func @transform_3(%arg0: i32) -> (i32, i32) {
    %c0_i32 = arith.constant 0 : i32
    %c0_i32_0 = arith.constant 0 : i32
    %c0_i32_1 = arith.constant 0 : i32
    return %c0_i32, %c0_i32_0 : i32, i32
  }
  func.func @transform_4(%arg0: i32) -> (i32, i32) {
    %c0_i32 = arith.constant 0 : i32
    %c0_i32_0 = arith.constant 0 : i32
    return %arg0, %c0_i32 : i32, i32
  }
}

module attributes {stable_mosaic.version = 11 : i64} {
  func.func @_bn_relu_kernel(%arg0: i32, %arg1: memref<8x256xbf16, #tpu.memory_space<vmem>>, %arg2: memref<1x256xf32, #tpu.memory_space<vmem>>, %arg3: memref<1x256xf32, #tpu.memory_space<vmem>>, %arg4: memref<8x256xbf16, #tpu.memory_space<vmem>>) attributes {dimension_semantics = [#tpu.dimension_semantics<parallel>], iteration_bounds = array<i64: 2>, scalar_prefetch = 0 : i64, scratch_operands = 0 : i64, tpu.core_type = #tpu.core_type<tc>, window_params = [{transform_indices = @transform_0, window_bounds = array<i64: 8, 256>}, {pipeline_mode = #tpu.pipeline_mode<synchronous>, transform_indices = @transform_1, window_bounds = array<i64: 1, 256>}, {pipeline_mode = #tpu.pipeline_mode<synchronous>, transform_indices = @transform_2, window_bounds = array<i64: 1, 256>}, {transform_indices = @transform_3, window_bounds = array<i64: 8, 256>}]} {
    %c0 = arith.constant 0 : index
    %c0_0 = arith.constant 0 : index
    %0 = vector.load %arg1[%c0, %c0_0] : memref<8x256xbf16, #tpu.memory_space<vmem>>, vector<8x256xbf16>
    %1 = arith.extf %0 : vector<8x256xbf16> to vector<8x256xf32>
    %c0_1 = arith.constant 0 : index
    %c0_2 = arith.constant 0 : index
    %2 = vector.load %arg2[%c0_1, %c0_2] : memref<1x256xf32, #tpu.memory_space<vmem>>, vector<1x256xf32>
    %3 = vector.broadcast %2 : vector<1x256xf32> to vector<8x256xf32>
    %4 = arith.mulf %1, %3 : vector<8x256xf32>
    %c0_3 = arith.constant 0 : index
    %c0_4 = arith.constant 0 : index
    %5 = vector.load %arg3[%c0_3, %c0_4] : memref<1x256xf32, #tpu.memory_space<vmem>>, vector<1x256xf32>
    %6 = vector.broadcast %5 : vector<1x256xf32> to vector<8x256xf32>
    %7 = arith.addf %4, %6 : vector<8x256xf32>
    %cst = arith.constant 0.000000e+00 : f32
    %8 = vector.broadcast %cst : f32 to vector<8x256xf32>
    %9 = arith.maximumf %7, %8 : vector<8x256xf32>
    %10 = arith.truncf %9 : vector<8x256xf32> to vector<8x256xbf16>
    %c0_5 = arith.constant 0 : index
    %c0_6 = arith.constant 0 : index
    %11 = vector.load %arg4[%c0_5, %c0_6] : memref<8x256xbf16, #tpu.memory_space<vmem>>, vector<8x256xbf16>
    tpu.vector_store %arg4[%c0_5, %c0_6], %10 {strides = array<i32>} : memref<8x256xbf16, #tpu.memory_space<vmem>>, vector<8x256xbf16>,
    return
  }
  func.func @transform_0(%arg0: i32) -> (i32, i32) {
    %c0_i32 = arith.constant 0 : i32
    %c0_i32_0 = arith.constant 0 : i32
    return %arg0, %c0_i32 : i32, i32
  }
  func.func @transform_1(%arg0: i32) -> (i32, i32) {
    %c0_i32 = arith.constant 0 : i32
    %c0_i32_0 = arith.constant 0 : i32
    %c0_i32_1 = arith.constant 0 : i32
    return %c0_i32, %c0_i32_0 : i32, i32
  }
  func.func @transform_2(%arg0: i32) -> (i32, i32) {
    %c0_i32 = arith.constant 0 : i32
    %c0_i32_0 = arith.constant 0 : i32
    %c0_i32_1 = arith.constant 0 : i32
    return %c0_i32, %c0_i32_0 : i32, i32
  }
  func.func @transform_3(%arg0: i32) -> (i32, i32) {
    %c0_i32 = arith.constant 0 : i32
    %c0_i32_0 = arith.constant 0 : i32
    return %arg0, %c0_i32 : i32, i32
  }
}

module attributes {stable_mosaic.version = 11 : i64} {
  func.func @_matmul_fused_kernel(%arg0: i32, %arg1: memref<64x128xbf16, #tpu.memory_space<vmem>>, %arg2: memref<128x128xbf16, #tpu.memory_space<vmem>>, %arg3: memref<1x128xf32, #tpu.memory_space<vmem>>, %arg4: memref<1x128xf32, #tpu.memory_space<vmem>>, %arg5: memref<64x128xbf16, #tpu.memory_space<vmem>>) attributes {dimension_semantics = [#tpu.dimension_semantics<parallel>], iteration_bounds = array<i64: 2>, scalar_prefetch = 0 : i64, scratch_operands = 0 : i64, tpu.core_type = #tpu.core_type<tc>, window_params = [{transform_indices = @transform_0, window_bounds = array<i64: 64, 128>}, {pipeline_mode = #tpu.pipeline_mode<synchronous>, transform_indices = @transform_1, window_bounds = array<i64: 128, 128>}, {pipeline_mode = #tpu.pipeline_mode<synchronous>, transform_indices = @transform_2, window_bounds = array<i64: 1, 128>}, {pipeline_mode = #tpu.pipeline_mode<synchronous>, transform_indices = @transform_3, window_bounds = array<i64: 1, 128>}, {transform_indices = @transform_4, window_bounds = array<i64: 64, 128>}]} {
    %c0 = arith.constant 0 : index
    %c0_0 = arith.constant 0 : index
    %0 = vector.load %arg1[%c0, %c0_0] : memref<64x128xbf16, #tpu.memory_space<vmem>>, vector<64x128xbf16>
    %c0_1 = arith.constant 0 : index
    %c0_2 = arith.constant 0 : index
    %1 = vector.load %arg2[%c0_1, %c0_2] : memref<128x128xbf16, #tpu.memory_space<vmem>>, vector<128x128xbf16>
    %cst = arith.constant dense<0.000000e+00> : vector<64x128xf32>
    %2 = tpu.matmul %0, %1, %cst {dimension_numbers = #tpu.dot_dimension_numbers<[1], [0], [0], [1], [0, 0, 1, 1], [], []>} : vector<64x128xbf16>, vector<128x128xbf16>, vector<64x128xf32> -> vector<64x128xf32>
    %c0_3 = arith.constant 0 : index
    %c0_4 = arith.constant 0 : index
    %3 = vector.load %arg3[%c0_3, %c0_4] : memref<1x128xf32, #tpu.memory_space<vmem>>, vector<1x128xf32>
    %4 = vector.broadcast %3 : vector<1x128xf32> to vector<64x128xf32>
    %5 = arith.mulf %2, %4 : vector<64x128xf32>
    %c0_5 = arith.constant 0 : index
    %c0_6 = arith.constant 0 : index
    %6 = vector.load %arg4[%c0_5, %c0_6] : memref<1x128xf32, #tpu.memory_space<vmem>>, vector<1x128xf32>
    %7 = vector.broadcast %6 : vector<1x128xf32> to vector<64x128xf32>
    %8 = arith.addf %5, %7 : vector<64x128xf32>
    %9 = arith.truncf %8 : vector<64x128xf32> to vector<64x128xbf16>
    %c0_7 = arith.constant 0 : index
    %c0_8 = arith.constant 0 : index
    %10 = vector.load %arg5[%c0_7, %c0_8] : memref<64x128xbf16, #tpu.memory_space<vmem>>, vector<64x128xbf16>
    tpu.vector_store %arg5[%c0_7, %c0_8], %9 {strides = array<i32>} : memref<64x128xbf16, #tpu.memory_space<vmem>>, vector<64x128xbf16>,
    return
  }
  func.func @transform_0(%arg0: i32) -> (i32, i32) {
    %c0_i32 = arith.constant 0 : i32
    %c0_i32_0 = arith.constant 0 : i32
    return %arg0, %c0_i32 : i32, i32
  }
  func.func @transform_1(%arg0: i32) -> (i32, i32) {
    %c0_i32 = arith.constant 0 : i32
    %c0_i32_0 = arith.constant 0 : i32
    %c0_i32_1 = arith.constant 0 : i32
    return %c0_i32, %c0_i32_0 : i32, i32
  }
  func.func @transform_2(%arg0: i32) -> (i32, i32) {
    %c0_i32 = arith.constant 0 : i32
    %c0_i32_0 = arith.constant 0 : i32
    %c0_i32_1 = arith.constant 0 : i32
    return %c0_i32, %c0_i32_0 : i32, i32
  }
  func.func @transform_3(%arg0: i32) -> (i32, i32) {
    %c0_i32 = arith.constant 0 : i32
    %c0_i32_0 = arith.constant 0 : i32
    %c0_i32_1 = arith.constant 0 : i32
    return %c0_i32, %c0_i32_0 : i32, i32
  }
  func.func @transform_4(%arg0: i32) -> (i32, i32) {
    %c0_i32 = arith.constant 0 : i32
    %c0_i32_0 = arith.constant 0 : i32
    return %arg0, %c0_i32 : i32, i32
  }
}

module attributes {stable_mosaic.version = 11 : i64} {
  func.func @_bn_relu_kernel(%arg0: i32, %arg1: memref<8x128xbf16, #tpu.memory_space<vmem>>, %arg2: memref<1x128xf32, #tpu.memory_space<vmem>>, %arg3: memref<1x128xf32, #tpu.memory_space<vmem>>, %arg4: memref<8x128xbf16, #tpu.memory_space<vmem>>) attributes {dimension_semantics = [#tpu.dimension_semantics<parallel>], iteration_bounds = array<i64: 1>, scalar_prefetch = 0 : i64, scratch_operands = 0 : i64, tpu.core_type = #tpu.core_type<tc>, window_params = [{transform_indices = @transform_0, window_bounds = array<i64: 8, 128>}, {pipeline_mode = #tpu.pipeline_mode<synchronous>, transform_indices = @transform_1, window_bounds = array<i64: 1, 128>}, {pipeline_mode = #tpu.pipeline_mode<synchronous>, transform_indices = @transform_2, window_bounds = array<i64: 1, 128>}, {transform_indices = @transform_3, window_bounds = array<i64: 8, 128>}]} {
    %c0 = arith.constant 0 : index
    %c0_0 = arith.constant 0 : index
    %0 = vector.load %arg1[%c0, %c0_0] : memref<8x128xbf16, #tpu.memory_space<vmem>>, vector<8x128xbf16>
    %1 = arith.extf %0 : vector<8x128xbf16> to vector<8x128xf32>
    %c0_1 = arith.constant 0 : index
    %c0_2 = arith.constant 0 : index
    %2 = vector.load %arg2[%c0_1, %c0_2] : memref<1x128xf32, #tpu.memory_space<vmem>>, vector<1x128xf32>
    %3 = vector.broadcast %2 : vector<1x128xf32> to vector<8x128xf32>
    %4 = arith.mulf %1, %3 : vector<8x128xf32>
    %c0_3 = arith.constant 0 : index
    %c0_4 = arith.constant 0 : index
    %5 = vector.load %arg3[%c0_3, %c0_4] : memref<1x128xf32, #tpu.memory_space<vmem>>, vector<1x128xf32>
    %6 = vector.broadcast %5 : vector<1x128xf32> to vector<8x128xf32>
    %7 = arith.addf %4, %6 : vector<8x128xf32>
    %cst = arith.constant 0.000000e+00 : f32
    %8 = vector.broadcast %cst : f32 to vector<8x128xf32>
    %9 = arith.maximumf %7, %8 : vector<8x128xf32>
    %10 = arith.truncf %9 : vector<8x128xf32> to vector<8x128xbf16>
    %c0_5 = arith.constant 0 : index
    %c0_6 = arith.constant 0 : index
    %11 = vector.load %arg4[%c0_5, %c0_6] : memref<8x128xbf16, #tpu.memory_space<vmem>>, vector<8x128xbf16>
    tpu.vector_store %arg4[%c0_5, %c0_6], %10 {strides = array<i32>} : memref<8x128xbf16, #tpu.memory_space<vmem>>, vector<8x128xbf16>,
    return
  }
  func.func @transform_0(%arg0: i32) -> (i32, i32) {
    %c0_i32 = arith.constant 0 : i32
    %c0_i32_0 = arith.constant 0 : i32
    return %arg0, %c0_i32 : i32, i32
  }
  func.func @transform_1(%arg0: i32) -> (i32, i32) {
    %c0_i32 = arith.constant 0 : i32
    %c0_i32_0 = arith.constant 0 : i32
    %c0_i32_1 = arith.constant 0 : i32
    return %c0_i32, %c0_i32_0 : i32, i32
  }
  func.func @transform_2(%arg0: i32) -> (i32, i32) {
    %c0_i32 = arith.constant 0 : i32
    %c0_i32_0 = arith.constant 0 : i32
    %c0_i32_1 = arith.constant 0 : i32
    return %c0_i32, %c0_i32_0 : i32, i32
  }
  func.func @transform_3(%arg0: i32) -> (i32, i32) {
    %c0_i32 = arith.constant 0 : i32
    %c0_i32_0 = arith.constant 0 : i32
    return %arg0, %c0_i32 : i32, i32
  }
}

module attributes {stable_mosaic.version = 11 : i64} {
  func.func @_matmul_fused_kernel(%arg0: i32, %arg1: memref<16x128xbf16, #tpu.memory_space<vmem>>, %arg2: memref<128x128xbf16, #tpu.memory_space<vmem>>, %arg3: memref<1x128xf32, #tpu.memory_space<vmem>>, %arg4: memref<1x128xf32, #tpu.memory_space<vmem>>, %arg5: memref<16x128xbf16, #tpu.memory_space<vmem>>) attributes {dimension_semantics = [#tpu.dimension_semantics<parallel>], iteration_bounds = array<i64: 2>, scalar_prefetch = 0 : i64, scratch_operands = 0 : i64, tpu.core_type = #tpu.core_type<tc>, window_params = [{transform_indices = @transform_0, window_bounds = array<i64: 16, 128>}, {pipeline_mode = #tpu.pipeline_mode<synchronous>, transform_indices = @transform_1, window_bounds = array<i64: 128, 128>}, {pipeline_mode = #tpu.pipeline_mode<synchronous>, transform_indices = @transform_2, window_bounds = array<i64: 1, 128>}, {pipeline_mode = #tpu.pipeline_mode<synchronous>, transform_indices = @transform_3, window_bounds = array<i64: 1, 128>}, {transform_indices = @transform_4, window_bounds = array<i64: 16, 128>}]} {
    %c0 = arith.constant 0 : index
    %c0_0 = arith.constant 0 : index
    %0 = vector.load %arg1[%c0, %c0_0] : memref<16x128xbf16, #tpu.memory_space<vmem>>, vector<16x128xbf16>
    %c0_1 = arith.constant 0 : index
    %c0_2 = arith.constant 0 : index
    %1 = vector.load %arg2[%c0_1, %c0_2] : memref<128x128xbf16, #tpu.memory_space<vmem>>, vector<128x128xbf16>
    %cst = arith.constant dense<0.000000e+00> : vector<16x128xf32>
    %2 = tpu.matmul %0, %1, %cst {dimension_numbers = #tpu.dot_dimension_numbers<[1], [0], [0], [1], [0, 0, 1, 1], [], []>} : vector<16x128xbf16>, vector<128x128xbf16>, vector<16x128xf32> -> vector<16x128xf32>
    %c0_3 = arith.constant 0 : index
    %c0_4 = arith.constant 0 : index
    %3 = vector.load %arg3[%c0_3, %c0_4] : memref<1x128xf32, #tpu.memory_space<vmem>>, vector<1x128xf32>
    %4 = vector.broadcast %3 : vector<1x128xf32> to vector<16x128xf32>
    %5 = arith.mulf %2, %4 : vector<16x128xf32>
    %c0_5 = arith.constant 0 : index
    %c0_6 = arith.constant 0 : index
    %6 = vector.load %arg4[%c0_5, %c0_6] : memref<1x128xf32, #tpu.memory_space<vmem>>, vector<1x128xf32>
    %7 = vector.broadcast %6 : vector<1x128xf32> to vector<16x128xf32>
    %8 = arith.addf %5, %7 : vector<16x128xf32>
    %cst_7 = arith.constant 0.000000e+00 : f32
    %9 = vector.broadcast %cst_7 : f32 to vector<16x128xf32>
    %10 = arith.maximumf %8, %9 : vector<16x128xf32>
    %11 = arith.truncf %10 : vector<16x128xf32> to vector<16x128xbf16>
    %c0_8 = arith.constant 0 : index
    %c0_9 = arith.constant 0 : index
    %12 = vector.load %arg5[%c0_8, %c0_9] : memref<16x128xbf16, #tpu.memory_space<vmem>>, vector<16x128xbf16>
    tpu.vector_store %arg5[%c0_8, %c0_9], %11 {strides = array<i32>} : memref<16x128xbf16, #tpu.memory_space<vmem>>, vector<16x128xbf16>,
    return
  }
  func.func @transform_0(%arg0: i32) -> (i32, i32) {
    %c0_i32 = arith.constant 0 : i32
    %c0_i32_0 = arith.constant 0 : i32
    return %arg0, %c0_i32 : i32, i32
  }
  func.func @transform_1(%arg0: i32) -> (i32, i32) {
    %c0_i32 = arith.constant 0 : i32
    %c0_i32_0 = arith.constant 0 : i32
    %c0_i32_1 = arith.constant 0 : i32
    return %c0_i32, %c0_i32_0 : i32, i32
  }
  func.func @transform_2(%arg0: i32) -> (i32, i32) {
    %c0_i32 = arith.constant 0 : i32
    %c0_i32_0 = arith.constant 0 : i32
    %c0_i32_1 = arith.constant 0 : i32
    return %c0_i32, %c0_i32_0 : i32, i32
  }
  func.func @transform_3(%arg0: i32) -> (i32, i32) {
    %c0_i32 = arith.constant 0 : i32
    %c0_i32_0 = arith.constant 0 : i32
    %c0_i32_1 = arith.constant 0 : i32
    return %c0_i32, %c0_i32_0 : i32, i32
  }
  func.func @transform_4(%arg0: i32) -> (i32, i32) {
    %c0_i32 = arith.constant 0 : i32
    %c0_i32_0 = arith.constant 0 : i32
    return %arg0, %c0_i32 : i32, i32
  }
}

module attributes {stable_mosaic.version = 11 : i64} {
  func.func @_matmul_fused_kernel(%arg0: i32, %arg1: memref<16x384xbf16, #tpu.memory_space<vmem>>, %arg2: memref<384x128xbf16, #tpu.memory_space<vmem>>, %arg3: memref<1x128xf32, #tpu.memory_space<vmem>>, %arg4: memref<1x128xf32, #tpu.memory_space<vmem>>, %arg5: memref<16x128xbf16, #tpu.memory_space<vmem>>) attributes {dimension_semantics = [#tpu.dimension_semantics<parallel>], iteration_bounds = array<i64: 2>, scalar_prefetch = 0 : i64, scratch_operands = 0 : i64, tpu.core_type = #tpu.core_type<tc>, window_params = [{transform_indices = @transform_0, window_bounds = array<i64: 16, 384>}, {pipeline_mode = #tpu.pipeline_mode<synchronous>, transform_indices = @transform_1, window_bounds = array<i64: 384, 128>}, {pipeline_mode = #tpu.pipeline_mode<synchronous>, transform_indices = @transform_2, window_bounds = array<i64: 1, 128>}, {pipeline_mode = #tpu.pipeline_mode<synchronous>, transform_indices = @transform_3, window_bounds = array<i64: 1, 128>}, {transform_indices = @transform_4, window_bounds = array<i64: 16, 128>}]} {
    %c0 = arith.constant 0 : index
    %c0_0 = arith.constant 0 : index
    %0 = vector.load %arg1[%c0, %c0_0] : memref<16x384xbf16, #tpu.memory_space<vmem>>, vector<16x384xbf16>
    %c0_1 = arith.constant 0 : index
    %c0_2 = arith.constant 0 : index
    %1 = vector.load %arg2[%c0_1, %c0_2] : memref<384x128xbf16, #tpu.memory_space<vmem>>, vector<384x128xbf16>
    %cst = arith.constant dense<0.000000e+00> : vector<16x128xf32>
    %2 = tpu.matmul %0, %1, %cst {dimension_numbers = #tpu.dot_dimension_numbers<[1], [0], [0], [1], [0, 0, 1, 1], [], []>} : vector<16x384xbf16>, vector<384x128xbf16>, vector<16x128xf32> -> vector<16x128xf32>
    %c0_3 = arith.constant 0 : index
    %c0_4 = arith.constant 0 : index
    %3 = vector.load %arg3[%c0_3, %c0_4] : memref<1x128xf32, #tpu.memory_space<vmem>>, vector<1x128xf32>
    %4 = vector.broadcast %3 : vector<1x128xf32> to vector<16x128xf32>
    %5 = arith.mulf %2, %4 : vector<16x128xf32>
    %c0_5 = arith.constant 0 : index
    %c0_6 = arith.constant 0 : index
    %6 = vector.load %arg4[%c0_5, %c0_6] : memref<1x128xf32, #tpu.memory_space<vmem>>, vector<1x128xf32>
    %7 = vector.broadcast %6 : vector<1x128xf32> to vector<16x128xf32>
    %8 = arith.addf %5, %7 : vector<16x128xf32>
    %9 = arith.truncf %8 : vector<16x128xf32> to vector<16x128xbf16>
    %c0_7 = arith.constant 0 : index
    %c0_8 = arith.constant 0 : index
    %10 = vector.load %arg5[%c0_7, %c0_8] : memref<16x128xbf16, #tpu.memory_space<vmem>>, vector<16x128xbf16>
    tpu.vector_store %arg5[%c0_7, %c0_8], %9 {strides = array<i32>} : memref<16x128xbf16, #tpu.memory_space<vmem>>, vector<16x128xbf16>,
    return
  }
  func.func @transform_0(%arg0: i32) -> (i32, i32) {
    %c0_i32 = arith.constant 0 : i32
    %c0_i32_0 = arith.constant 0 : i32
    return %arg0, %c0_i32 : i32, i32
  }
  func.func @transform_1(%arg0: i32) -> (i32, i32) {
    %c0_i32 = arith.constant 0 : i32
    %c0_i32_0 = arith.constant 0 : i32
    %c0_i32_1 = arith.constant 0 : i32
    return %c0_i32, %c0_i32_0 : i32, i32
  }
  func.func @transform_2(%arg0: i32) -> (i32, i32) {
    %c0_i32 = arith.constant 0 : i32
    %c0_i32_0 = arith.constant 0 : i32
    %c0_i32_1 = arith.constant 0 : i32
    return %c0_i32, %c0_i32_0 : i32, i32
  }
  func.func @transform_3(%arg0: i32) -> (i32, i32) {
    %c0_i32 = arith.constant 0 : i32
    %c0_i32_0 = arith.constant 0 : i32
    %c0_i32_1 = arith.constant 0 : i32
    return %c0_i32, %c0_i32_0 : i32, i32
  }
  func.func @transform_4(%arg0: i32) -> (i32, i32) {
    %c0_i32 = arith.constant 0 : i32
    %c0_i32_0 = arith.constant 0 : i32
    return %arg0, %c0_i32 : i32, i32
  }
}

module attributes {stable_mosaic.version = 11 : i64} {
  func.func @_matmul_fused_kernel(%arg0: i32, %arg1: memref<16x128xbf16, #tpu.memory_space<vmem>>, %arg2: memref<128x128xbf16, #tpu.memory_space<vmem>>, %arg3: memref<1x128xf32, #tpu.memory_space<vmem>>, %arg4: memref<1x128xf32, #tpu.memory_space<vmem>>, %arg5: memref<16x128xbf16, #tpu.memory_space<vmem>>) attributes {dimension_semantics = [#tpu.dimension_semantics<parallel>], iteration_bounds = array<i64: 2>, scalar_prefetch = 0 : i64, scratch_operands = 0 : i64, tpu.core_type = #tpu.core_type<tc>, window_params = [{transform_indices = @transform_0, window_bounds = array<i64: 16, 128>}, {pipeline_mode = #tpu.pipeline_mode<synchronous>, transform_indices = @transform_1, window_bounds = array<i64: 128, 128>}, {pipeline_mode = #tpu.pipeline_mode<synchronous>, transform_indices = @transform_2, window_bounds = array<i64: 1, 128>}, {pipeline_mode = #tpu.pipeline_mode<synchronous>, transform_indices = @transform_3, window_bounds = array<i64: 1, 128>}, {transform_indices = @transform_4, window_bounds = array<i64: 16, 128>}]} {
    %c0 = arith.constant 0 : index
    %c0_0 = arith.constant 0 : index
    %0 = vector.load %arg1[%c0, %c0_0] : memref<16x128xbf16, #tpu.memory_space<vmem>>, vector<16x128xbf16>
    %c0_1 = arith.constant 0 : index
    %c0_2 = arith.constant 0 : index
    %1 = vector.load %arg2[%c0_1, %c0_2] : memref<128x128xbf16, #tpu.memory_space<vmem>>, vector<128x128xbf16>
    %cst = arith.constant dense<0.000000e+00> : vector<16x128xf32>
    %2 = tpu.matmul %0, %1, %cst {dimension_numbers = #tpu.dot_dimension_numbers<[1], [0], [0], [1], [0, 0, 1, 1], [], []>} : vector<16x128xbf16>, vector<128x128xbf16>, vector<16x128xf32> -> vector<16x128xf32>
    %c0_3 = arith.constant 0 : index
    %c0_4 = arith.constant 0 : index
    %3 = vector.load %arg3[%c0_3, %c0_4] : memref<1x128xf32, #tpu.memory_space<vmem>>, vector<1x128xf32>
    %4 = vector.broadcast %3 : vector<1x128xf32> to vector<16x128xf32>
    %5 = arith.mulf %2, %4 : vector<16x128xf32>
    %c0_5 = arith.constant 0 : index
    %c0_6 = arith.constant 0 : index
    %6 = vector.load %arg4[%c0_5, %c0_6] : memref<1x128xf32, #tpu.memory_space<vmem>>, vector<1x128xf32>
    %7 = vector.broadcast %6 : vector<1x128xf32> to vector<16x128xf32>
    %8 = arith.addf %5, %7 : vector<16x128xf32>
    %9 = arith.truncf %8 : vector<16x128xf32> to vector<16x128xbf16>
    %c0_7 = arith.constant 0 : index
    %c0_8 = arith.constant 0 : index
    %10 = vector.load %arg5[%c0_7, %c0_8] : memref<16x128xbf16, #tpu.memory_space<vmem>>, vector<16x128xbf16>
    tpu.vector_store %arg5[%c0_7, %c0_8], %9 {strides = array<i32>} : memref<16x128xbf16, #tpu.memory_space<vmem>>, vector<16x128xbf16>,
    return
  }
  func.func @transform_0(%arg0: i32) -> (i32, i32) {
    %c0_i32 = arith.constant 0 : i32
    %c0_i32_0 = arith.constant 0 : i32
    return %arg0, %c0_i32 : i32, i32
  }
  func.func @transform_1(%arg0: i32) -> (i32, i32) {
    %c0_i32 = arith.constant 0 : i32
    %c0_i32_0 = arith.constant 0 : i32
    %c0_i32_1 = arith.constant 0 : i32
    return %c0_i32, %c0_i32_0 : i32, i32
  }
  func.func @transform_2(%arg0: i32) -> (i32, i32) {
    %c0_i32 = arith.constant 0 : i32
    %c0_i32_0 = arith.constant 0 : i32
    %c0_i32_1 = arith.constant 0 : i32
    return %c0_i32, %c0_i32_0 : i32, i32
  }
  func.func @transform_3(%arg0: i32) -> (i32, i32) {
    %c0_i32 = arith.constant 0 : i32
    %c0_i32_0 = arith.constant 0 : i32
    %c0_i32_1 = arith.constant 0 : i32
    return %c0_i32, %c0_i32_0 : i32, i32
  }
  func.func @transform_4(%arg0: i32) -> (i32, i32) {
    %c0_i32 = arith.constant 0 : i32
    %c0_i32_0 = arith.constant 0 : i32
    return %arg0, %c0_i32 : i32, i32
  }
}

module attributes {stable_mosaic.version = 11 : i64} {
  func.func @_matmul_fused_kernel(%arg0: i32, %arg1: memref<8x128xbf16, #tpu.memory_space<vmem>>, %arg2: memref<128x128xbf16, #tpu.memory_space<vmem>>, %arg3: memref<1x128xf32, #tpu.memory_space<vmem>>, %arg4: memref<1x128xf32, #tpu.memory_space<vmem>>, %arg5: memref<8x128xbf16, #tpu.memory_space<vmem>>) attributes {dimension_semantics = [#tpu.dimension_semantics<parallel>], iteration_bounds = array<i64: 1>, scalar_prefetch = 0 : i64, scratch_operands = 0 : i64, tpu.core_type = #tpu.core_type<tc>, window_params = [{transform_indices = @transform_0, window_bounds = array<i64: 8, 128>}, {pipeline_mode = #tpu.pipeline_mode<synchronous>, transform_indices = @transform_1, window_bounds = array<i64: 128, 128>}, {pipeline_mode = #tpu.pipeline_mode<synchronous>, transform_indices = @transform_2, window_bounds = array<i64: 1, 128>}, {pipeline_mode = #tpu.pipeline_mode<synchronous>, transform_indices = @transform_3, window_bounds = array<i64: 1, 128>}, {transform_indices = @transform_4, window_bounds = array<i64: 8, 128>}]} {
    %c0 = arith.constant 0 : index
    %c0_0 = arith.constant 0 : index
    %0 = vector.load %arg1[%c0, %c0_0] : memref<8x128xbf16, #tpu.memory_space<vmem>>, vector<8x128xbf16>
    %c0_1 = arith.constant 0 : index
    %c0_2 = arith.constant 0 : index
    %1 = vector.load %arg2[%c0_1, %c0_2] : memref<128x128xbf16, #tpu.memory_space<vmem>>, vector<128x128xbf16>
    %cst = arith.constant dense<0.000000e+00> : vector<8x128xf32>
    %2 = tpu.matmul %0, %1, %cst {dimension_numbers = #tpu.dot_dimension_numbers<[1], [0], [0], [1], [0, 0, 1, 1], [], []>} : vector<8x128xbf16>, vector<128x128xbf16>, vector<8x128xf32> -> vector<8x128xf32>
    %c0_3 = arith.constant 0 : index
    %c0_4 = arith.constant 0 : index
    %3 = vector.load %arg3[%c0_3, %c0_4] : memref<1x128xf32, #tpu.memory_space<vmem>>, vector<1x128xf32>
    %4 = vector.broadcast %3 : vector<1x128xf32> to vector<8x128xf32>
    %5 = arith.mulf %2, %4 : vector<8x128xf32>
    %c0_5 = arith.constant 0 : index
    %c0_6 = arith.constant 0 : index
    %6 = vector.load %arg4[%c0_5, %c0_6] : memref<1x128xf32, #tpu.memory_space<vmem>>, vector<1x128xf32>
    %7 = vector.broadcast %6 : vector<1x128xf32> to vector<8x128xf32>
    %8 = arith.addf %5, %7 : vector<8x128xf32>
    %cst_7 = arith.constant 0.000000e+00 : f32
    %9 = vector.broadcast %cst_7 : f32 to vector<8x128xf32>
    %10 = arith.maximumf %8, %9 : vector<8x128xf32>
    %11 = arith.truncf %10 : vector<8x128xf32> to vector<8x128xbf16>
    %c0_8 = arith.constant 0 : index
    %c0_9 = arith.constant 0 : index
    %12 = vector.load %arg5[%c0_8, %c0_9] : memref<8x128xbf16, #tpu.memory_space<vmem>>, vector<8x128xbf16>
    tpu.vector_store %arg5[%c0_8, %c0_9], %11 {strides = array<i32>} : memref<8x128xbf16, #tpu.memory_space<vmem>>, vector<8x128xbf16>,
    return
  }
  func.func @transform_0(%arg0: i32) -> (i32, i32) {
    %c0_i32 = arith.constant 0 : i32
    %c0_i32_0 = arith.constant 0 : i32
    return %arg0, %c0_i32 : i32, i32
  }
  func.func @transform_1(%arg0: i32) -> (i32, i32) {
    %c0_i32 = arith.constant 0 : i32
    %c0_i32_0 = arith.constant 0 : i32
    %c0_i32_1 = arith.constant 0 : i32
    return %c0_i32, %c0_i32_0 : i32, i32
  }
  func.func @transform_2(%arg0: i32) -> (i32, i32) {
    %c0_i32 = arith.constant 0 : i32
    %c0_i32_0 = arith.constant 0 : i32
    %c0_i32_1 = arith.constant 0 : i32
    return %c0_i32, %c0_i32_0 : i32, i32
  }
  func.func @transform_3(%arg0: i32) -> (i32, i32) {
    %c0_i32 = arith.constant 0 : i32
    %c0_i32_0 = arith.constant 0 : i32
    %c0_i32_1 = arith.constant 0 : i32
    return %c0_i32, %c0_i32_0 : i32, i32
  }
  func.func @transform_4(%arg0: i32) -> (i32, i32) {
    %c0_i32 = arith.constant 0 : i32
    %c0_i32_0 = arith.constant 0 : i32
    return %arg0, %c0_i32 : i32, i32
  }
}

module attributes {stable_mosaic.version = 11 : i64} {
  func.func @_matmul_fused_kernel(%arg0: i32, %arg1: memref<8x384xbf16, #tpu.memory_space<vmem>>, %arg2: memref<384x128xbf16, #tpu.memory_space<vmem>>, %arg3: memref<1x128xf32, #tpu.memory_space<vmem>>, %arg4: memref<1x128xf32, #tpu.memory_space<vmem>>, %arg5: memref<8x128xbf16, #tpu.memory_space<vmem>>) attributes {dimension_semantics = [#tpu.dimension_semantics<parallel>], iteration_bounds = array<i64: 1>, scalar_prefetch = 0 : i64, scratch_operands = 0 : i64, tpu.core_type = #tpu.core_type<tc>, window_params = [{transform_indices = @transform_0, window_bounds = array<i64: 8, 384>}, {pipeline_mode = #tpu.pipeline_mode<synchronous>, transform_indices = @transform_1, window_bounds = array<i64: 384, 128>}, {pipeline_mode = #tpu.pipeline_mode<synchronous>, transform_indices = @transform_2, window_bounds = array<i64: 1, 128>}, {pipeline_mode = #tpu.pipeline_mode<synchronous>, transform_indices = @transform_3, window_bounds = array<i64: 1, 128>}, {transform_indices = @transform_4, window_bounds = array<i64: 8, 128>}]} {
    %c0 = arith.constant 0 : index
    %c0_0 = arith.constant 0 : index
    %0 = vector.load %arg1[%c0, %c0_0] : memref<8x384xbf16, #tpu.memory_space<vmem>>, vector<8x384xbf16>
    %c0_1 = arith.constant 0 : index
    %c0_2 = arith.constant 0 : index
    %1 = vector.load %arg2[%c0_1, %c0_2] : memref<384x128xbf16, #tpu.memory_space<vmem>>, vector<384x128xbf16>
    %cst = arith.constant dense<0.000000e+00> : vector<8x128xf32>
    %2 = tpu.matmul %0, %1, %cst {dimension_numbers = #tpu.dot_dimension_numbers<[1], [0], [0], [1], [0, 0, 1, 1], [], []>} : vector<8x384xbf16>, vector<384x128xbf16>, vector<8x128xf32> -> vector<8x128xf32>
    %c0_3 = arith.constant 0 : index
    %c0_4 = arith.constant 0 : index
    %3 = vector.load %arg3[%c0_3, %c0_4] : memref<1x128xf32, #tpu.memory_space<vmem>>, vector<1x128xf32>
    %4 = vector.broadcast %3 : vector<1x128xf32> to vector<8x128xf32>
    %5 = arith.mulf %2, %4 : vector<8x128xf32>
    %c0_5 = arith.constant 0 : index
    %c0_6 = arith.constant 0 : index
    %6 = vector.load %arg4[%c0_5, %c0_6] : memref<1x128xf32, #tpu.memory_space<vmem>>, vector<1x128xf32>
    %7 = vector.broadcast %6 : vector<1x128xf32> to vector<8x128xf32>
    %8 = arith.addf %5, %7 : vector<8x128xf32>
    %9 = arith.truncf %8 : vector<8x128xf32> to vector<8x128xbf16>
    %c0_7 = arith.constant 0 : index
    %c0_8 = arith.constant 0 : index
    %10 = vector.load %arg5[%c0_7, %c0_8] : memref<8x128xbf16, #tpu.memory_space<vmem>>, vector<8x128xbf16>
    tpu.vector_store %arg5[%c0_7, %c0_8], %9 {strides = array<i32>} : memref<8x128xbf16, #tpu.memory_space<vmem>>, vector<8x128xbf16>,
    return
  }
  func.func @transform_0(%arg0: i32) -> (i32, i32) {
    %c0_i32 = arith.constant 0 : i32
    %c0_i32_0 = arith.constant 0 : i32
    return %arg0, %c0_i32 : i32, i32
  }
  func.func @transform_1(%arg0: i32) -> (i32, i32) {
    %c0_i32 = arith.constant 0 : i32
    %c0_i32_0 = arith.constant 0 : i32
    %c0_i32_1 = arith.constant 0 : i32
    return %c0_i32, %c0_i32_0 : i32, i32
  }
  func.func @transform_2(%arg0: i32) -> (i32, i32) {
    %c0_i32 = arith.constant 0 : i32
    %c0_i32_0 = arith.constant 0 : i32
    %c0_i32_1 = arith.constant 0 : i32
    return %c0_i32, %c0_i32_0 : i32, i32
  }
  func.func @transform_3(%arg0: i32) -> (i32, i32) {
    %c0_i32 = arith.constant 0 : i32
    %c0_i32_0 = arith.constant 0 : i32
    %c0_i32_1 = arith.constant 0 : i32
    return %c0_i32, %c0_i32_0 : i32, i32
  }
  func.func @transform_4(%arg0: i32) -> (i32, i32) {
    %c0_i32 = arith.constant 0 : i32
    %c0_i32_0 = arith.constant 0 : i32
    return %arg0, %c0_i32 : i32, i32
  }
}

module attributes {stable_mosaic.version = 11 : i64} {
  func.func @_matmul_fused_kernel(%arg0: i32, %arg1: memref<8x128xbf16, #tpu.memory_space<vmem>>, %arg2: memref<128x128xbf16, #tpu.memory_space<vmem>>, %arg3: memref<1x128xf32, #tpu.memory_space<vmem>>, %arg4: memref<1x128xf32, #tpu.memory_space<vmem>>, %arg5: memref<8x128xbf16, #tpu.memory_space<vmem>>) attributes {dimension_semantics = [#tpu.dimension_semantics<parallel>], iteration_bounds = array<i64: 1>, scalar_prefetch = 0 : i64, scratch_operands = 0 : i64, tpu.core_type = #tpu.core_type<tc>, window_params = [{transform_indices = @transform_0, window_bounds = array<i64: 8, 128>}, {pipeline_mode = #tpu.pipeline_mode<synchronous>, transform_indices = @transform_1, window_bounds = array<i64: 128, 128>}, {pipeline_mode = #tpu.pipeline_mode<synchronous>, transform_indices = @transform_2, window_bounds = array<i64: 1, 128>}, {pipeline_mode = #tpu.pipeline_mode<synchronous>, transform_indices = @transform_3, window_bounds = array<i64: 1, 128>}, {transform_indices = @transform_4, window_bounds = array<i64: 8, 128>}]} {
    %c0 = arith.constant 0 : index
    %c0_0 = arith.constant 0 : index
    %0 = vector.load %arg1[%c0, %c0_0] : memref<8x128xbf16, #tpu.memory_space<vmem>>, vector<8x128xbf16>
    %c0_1 = arith.constant 0 : index
    %c0_2 = arith.constant 0 : index
    %1 = vector.load %arg2[%c0_1, %c0_2] : memref<128x128xbf16, #tpu.memory_space<vmem>>, vector<128x128xbf16>
    %cst = arith.constant dense<0.000000e+00> : vector<8x128xf32>
    %2 = tpu.matmul %0, %1, %cst {dimension_numbers = #tpu.dot_dimension_numbers<[1], [0], [0], [1], [0, 0, 1, 1], [], []>} : vector<8x128xbf16>, vector<128x128xbf16>, vector<8x128xf32> -> vector<8x128xf32>
    %c0_3 = arith.constant 0 : index
    %c0_4 = arith.constant 0 : index
    %3 = vector.load %arg3[%c0_3, %c0_4] : memref<1x128xf32, #tpu.memory_space<vmem>>, vector<1x128xf32>
    %4 = vector.broadcast %3 : vector<1x128xf32> to vector<8x128xf32>
    %5 = arith.mulf %2, %4 : vector<8x128xf32>
    %c0_5 = arith.constant 0 : index
    %c0_6 = arith.constant 0 : index
    %6 = vector.load %arg4[%c0_5, %c0_6] : memref<1x128xf32, #tpu.memory_space<vmem>>, vector<1x128xf32>
    %7 = vector.broadcast %6 : vector<1x128xf32> to vector<8x128xf32>
    %8 = arith.addf %5, %7 : vector<8x128xf32>
    %9 = arith.truncf %8 : vector<8x128xf32> to vector<8x128xbf16>
    %c0_7 = arith.constant 0 : index
    %c0_8 = arith.constant 0 : index
    %10 = vector.load %arg5[%c0_7, %c0_8] : memref<8x128xbf16, #tpu.memory_space<vmem>>, vector<8x128xbf16>
    tpu.vector_store %arg5[%c0_7, %c0_8], %9 {strides = array<i32>} : memref<8x128xbf16, #tpu.memory_space<vmem>>, vector<8x128xbf16>,
    return
  }
  func.func @transform_0(%arg0: i32) -> (i32, i32) {
    %c0_i32 = arith.constant 0 : i32
    %c0_i32_0 = arith.constant 0 : i32
    return %arg0, %c0_i32 : i32, i32
  }
  func.func @transform_1(%arg0: i32) -> (i32, i32) {
    %c0_i32 = arith.constant 0 : i32
    %c0_i32_0 = arith.constant 0 : i32
    %c0_i32_1 = arith.constant 0 : i32
    return %c0_i32, %c0_i32_0 : i32, i32
  }
  func.func @transform_2(%arg0: i32) -> (i32, i32) {
    %c0_i32 = arith.constant 0 : i32
    %c0_i32_0 = arith.constant 0 : i32
    %c0_i32_1 = arith.constant 0 : i32
    return %c0_i32, %c0_i32_0 : i32, i32
  }
  func.func @transform_3(%arg0: i32) -> (i32, i32) {
    %c0_i32 = arith.constant 0 : i32
    %c0_i32_0 = arith.constant 0 : i32
    %c0_i32_1 = arith.constant 0 : i32
    return %c0_i32, %c0_i32_0 : i32, i32
  }
  func.func @transform_4(%arg0: i32) -> (i32, i32) {
    %c0_i32 = arith.constant 0 : i32
    %c0_i32_0 = arith.constant 0 : i32
    return %arg0, %c0_i32 : i32, i32
  }
}

module attributes {stable_mosaic.version = 11 : i64} {
  func.func @_matmul_fused_kernel(%arg0: i32, %arg1: memref<8x128xbf16, #tpu.memory_space<vmem>>, %arg2: memref<128x128xbf16, #tpu.memory_space<vmem>>, %arg3: memref<1x128xf32, #tpu.memory_space<vmem>>, %arg4: memref<1x128xf32, #tpu.memory_space<vmem>>, %arg5: memref<8x128xf32, #tpu.memory_space<vmem>>) attributes {dimension_semantics = [#tpu.dimension_semantics<parallel>], iteration_bounds = array<i64: 1>, scalar_prefetch = 0 : i64, scratch_operands = 0 : i64, tpu.core_type = #tpu.core_type<tc>, window_params = [{transform_indices = @transform_0, window_bounds = array<i64: 8, 128>}, {pipeline_mode = #tpu.pipeline_mode<synchronous>, transform_indices = @transform_1, window_bounds = array<i64: 128, 128>}, {pipeline_mode = #tpu.pipeline_mode<synchronous>, transform_indices = @transform_2, window_bounds = array<i64: 1, 128>}, {pipeline_mode = #tpu.pipeline_mode<synchronous>, transform_indices = @transform_3, window_bounds = array<i64: 1, 128>}, {transform_indices = @transform_4, window_bounds = array<i64: 8, 128>}]} {
    %c0 = arith.constant 0 : index
    %c0_0 = arith.constant 0 : index
    %0 = vector.load %arg1[%c0, %c0_0] : memref<8x128xbf16, #tpu.memory_space<vmem>>, vector<8x128xbf16>
    %c0_1 = arith.constant 0 : index
    %c0_2 = arith.constant 0 : index
    %1 = vector.load %arg2[%c0_1, %c0_2] : memref<128x128xbf16, #tpu.memory_space<vmem>>, vector<128x128xbf16>
    %cst = arith.constant dense<0.000000e+00> : vector<8x128xf32>
    %2 = tpu.matmul %0, %1, %cst {dimension_numbers = #tpu.dot_dimension_numbers<[1], [0], [0], [1], [0, 0, 1, 1], [], []>} : vector<8x128xbf16>, vector<128x128xbf16>, vector<8x128xf32> -> vector<8x128xf32>
    %c0_3 = arith.constant 0 : index
    %c0_4 = arith.constant 0 : index
    %3 = vector.load %arg3[%c0_3, %c0_4] : memref<1x128xf32, #tpu.memory_space<vmem>>, vector<1x128xf32>
    %4 = vector.broadcast %3 : vector<1x128xf32> to vector<8x128xf32>
    %5 = arith.mulf %2, %4 : vector<8x128xf32>
    %c0_5 = arith.constant 0 : index
    %c0_6 = arith.constant 0 : index
    %6 = vector.load %arg4[%c0_5, %c0_6] : memref<1x128xf32, #tpu.memory_space<vmem>>, vector<1x128xf32>
    %7 = vector.broadcast %6 : vector<1x128xf32> to vector<8x128xf32>
    %8 = arith.addf %5, %7 : vector<8x128xf32>
    %c0_7 = arith.constant 0 : index
    %c0_8 = arith.constant 0 : index
    %9 = vector.load %arg5[%c0_7, %c0_8] : memref<8x128xf32, #tpu.memory_space<vmem>>, vector<8x128xf32>
    tpu.vector_store %arg5[%c0_7, %c0_8], %8 {strides = array<i32>} : memref<8x128xf32, #tpu.memory_space<vmem>>, vector<8x128xf32>,
    return
  }
  func.func @transform_0(%arg0: i32) -> (i32, i32) {
    %c0_i32 = arith.constant 0 : i32
    %c0_i32_0 = arith.constant 0 : i32
    return %arg0, %c0_i32 : i32, i32
  }
  func.func @transform_1(%arg0: i32) -> (i32, i32) {
    %c0_i32 = arith.constant 0 : i32
    %c0_i32_0 = arith.constant 0 : i32
    %c0_i32_1 = arith.constant 0 : i32
    return %c0_i32, %c0_i32_0 : i32, i32
  }
  func.func @transform_2(%arg0: i32) -> (i32, i32) {
    %c0_i32 = arith.constant 0 : i32
    %c0_i32_0 = arith.constant 0 : i32
    %c0_i32_1 = arith.constant 0 : i32
    return %c0_i32, %c0_i32_0 : i32, i32
  }
  func.func @transform_3(%arg0: i32) -> (i32, i32) {
    %c0_i32 = arith.constant 0 : i32
    %c0_i32_0 = arith.constant 0 : i32
    %c0_i32_1 = arith.constant 0 : i32
    return %c0_i32, %c0_i32_0 : i32, i32
  }
  func.func @transform_4(%arg0: i32) -> (i32, i32) {
    %c0_i32 = arith.constant 0 : i32
    %c0_i32_0 = arith.constant 0 : i32
    return %arg0, %c0_i32 : i32, i32
  }
}

</mosaic_0001>

<bundles_post_ra>
// kernel: tile.99
= control target key start
LH: loop header
LB: loop body
LE: loop exit
PB: predicated region body
PF: predicated region fallthrough
CT: control target
= control target key end

     0   :  { %s22_s0 = inlined_call_operand.vmem [shape: f32[16], index: 0, kind: input, shape index: {}]   ;;  %s23_s1 = inlined_call_operand.vmem [shape: f32[8,16], index: 1, kind: output, shape index: {}]  }
   0x1   :  { %v4_v0 = vld [vmem:[%s22_s0] ss:$0 sm:$0xff] }
   0x2   :  { %5 = vst [vmem:[%s23_s1] sm:$0xff] %v4_v0 }

// kernel: tile.104
= control target key start
LH: loop header
LB: loop body
LE: loop exit
PB: predicated region body
PF: predicated region fallthrough
CT: control target
= control target key end

     0   :  { %s103_s10 = smov 112   ;;  %s104_s11 = smov 80   ;;  %vm4_vm0 = vcmask 130048   ;;  %s157_s0 = inlined_call_operand.vmem [shape: f32[8,16], index: 0, kind: input, shape index: {}]   ;;  %s158_s1 = inlined_call_operand.hbm [shape: f32[1,128], index: 1, kind: output, shape index: {}]  }
   0x1   :  { %v64_v0 = vld [vmem:[%s157_s0 + $0x7] sm:$0x1]   ;;  %v66_v1 = vld [vmem:[%s157_s0 + $0x5] sm:$0x1]   ;;  %v65_v2 = vld [vmem:[%s157_s0 + $0x6] sm:$0x1]  }
   0x2   :  { %8 = vrot.lane.b32.xlu0 %v64_v0, %s103_s10  ;;  %20 = vrot.lane.b32.xlu1 %v66_v1, %s104_s11  ;;  %v67_v3 = vld [vmem:[%s157_s0 + $0x4] sm:$0x1]   ;;  %v3_v4 = vld [vmem:[%s157_s0] sm:$0x1]  }
   0x3   :  { %2 = vsyncpa [#allocation1], 0  ;;  %s105_s18 = smov 96   ;;  %s106_s19 = smov 64   ;;  %5 = vst.msk [vmem:[#allocation2] sm:$0x1] %vm4_vm0, %v3_v4  }
   0x4   :  { %v68_v5 = vld [vmem:[%s157_s0 + $0x3] sm:$0x1]   ;;  %v69_v6 = vld [vmem:[%s157_s0 + $0x2] sm:$0x1]   ;;  %s107_s24 = smov 48   ;;  %s108_s25 = smov 32  }
   0x5   :  { %v70_v7 = vld [vmem:[%s157_s0 + $0x1] sm:$0x1]   ;;  %s109_s0 = smov 16   ;;  %vm10_vm1 = vcmask 1048448   ;;  %vm16_vm2 = vcmask 917248   ;;  %vm22_vm3 = vcmask 786048  }
   0x6   :  { %14 = vrot.lane.b32.xlu0 %v65_v2, %s105_s18  ;;  %26 = vrot.lane.b32.xlu1 %v67_v3, %s106_s19  ;;  %vm28_vm4 = vcmask 654848   ;;  %vm34_vm5 = vcmask 523648   ;;  %vm40_vm6 = vcmask 392448   ;;  %vm46_vm7 = vcmask 261248   ;;  %s110_s28 = smov [#allocation0]  }
   0x7   :  { %s58_s29 = sshll.u32 %s110_s28, 4  ;;  %s59_s29 = int_to_ptr.vmem [resolvable:$true] %s58_s29 }
   0x8   :  { %s79_s30 = scalar_lea.vmem %s59_s29, 16  ;;  %s83_s2 = scalar_lea.vmem %s59_s29, 32 }
   0x9   :  { %p80_p0 = scmp.ne.s32.totalorder %s59_s29, %s79_s30  ;;  %p84_p1 = scmp.lt.s32.totalorder %s59_s29, %s59_s29 }
   0xa   :  { %32 = vrot.lane.b32.xlu0 %v68_v5, %s107_s24  ;;  %38 = vrot.lane.b32.xlu1 %v69_v6, %s108_s25  ;;  %p85_p2 = scmp.lt.s32.totalorder %s83_s2, %s79_s30 }
   0xc   :  { %p86_p3 = por %p85_p2, %p84_p1 }
   0xe   :  { %44 = vrot.lane.b32.xlu0 %v70_v7, %s109_s0  ;;  %p87_p4 = pnand %p86_p3, %p80_p0 }
  0x74   :  { %v9_v8 = vpop.permute.xlu0 %8   ;;  %v21_v9 = vpop.permute.xlu1 %20  }
  0x75   :  { %11 = vst.msk [vmem:[#allocation2] sm:$0x1] %vm10_vm1, %v9_v8  }
  0x78   :  { %v15_v10 = vpop.permute.xlu0 %14   ;;  %v27_v11 = vpop.permute.xlu1 %26  }
  0x79   :  { %17 = vst.msk [vmem:[#allocation2] sm:$0x1] %vm16_vm2, %v15_v10  }
  0x7a   :  { %23 = vst.msk [vmem:[#allocation2] sm:$0x1] %vm22_vm3, %v21_v9  }
  0x7b   :  { %29 = vst.msk [vmem:[#allocation2] sm:$0x1] %vm28_vm4, %v27_v11  }
  0x7c   :  { %v33_v12 = vpop.permute.xlu0 %32   ;;  %v39_v13 = vpop.permute.xlu1 %38  }
  0x7d   :  { %35 = vst.msk [vmem:[#allocation2] sm:$0x1] %vm34_vm5, %v33_v12  }
  0x7e   :  { %41 = vst.msk [vmem:[#allocation2] sm:$0x1] %vm40_vm6, %v39_v13  }
  0x80   :  { %v45_v14 = vpop.permute.xlu0 %44  }
  0x81   :  { %47 = vst.msk [vmem:[#allocation2] sm:$0x1] %vm46_vm7, %v45_v14  }
  0x88   :  { %v51_v15 = vld [vmem:[#allocation2] sm:$0x1] }
  0x89   :  { %53 = vst [vmem:[#allocation0] sm:$0x1] %v51_v15 }
  0x8a   :  { %90 = shalt.err (!%p87_p4)
}
  0x8b   :  { %s91_s5 = scalar_lea.hbm %s158_s1, 16 }
  0x8c   :  { %p92_p5 = scmp.ne.s32.totalorder %s158_s1, %s91_s5  ;;  %p95_p6 = scmp.lt.u32.totalorder %s91_s5, %s158_s1 }
  0x8e   :  { %p97_p7 = pnand %p95_p6, %p92_p5 }
  0x90   :  { %100 = shalt.err (!%p97_p7)
}
  0x91   :  { %61 = dma.vmem_to_hbm [thread:$0]  %s59_s29, 16, %s158_s1, [#allocation1]  }
  0x92   :  { %101 = dma.done.wait [#allocation1], 16  }
  0x93   :  { %102 = vsyncadd [#allocation1], 4294967280 }
  0x94   :  { %63 = vsyncpa [#allocation1], 1 }

// kernel: densenet_forward.33
= control target key start
LH: loop header
LB: loop body
LE: loop exit
PB: predicated region body
PF: predicated region fallthrough
CT: control target
= control target key end

     0   :  { %9 = vsyncpa [#allocation3], 0  ;;  %s2243_s0 = inlined_call_operand.hbm [shape: bf16[512,256], index: 0, kind: input, shape index: {}]   ;;  %s2244_s1 = inlined_call_operand.hbm [shape: bf16[256,128], index: 1, kind: input, shape index: {}]   ;;  %s2245_s2 = inlined_call_operand.hbm [shape: f32[1,128], index: 2, kind: input, shape index: {}]   ;;  %s2246_s3 = inlined_call_operand.hbm [shape: f32[1,128], index: 3, kind: input, shape index: {}]   ;;  %s2247_s4 = inlined_call_operand.hbm [shape: bf16[512,128], index: 4, kind: output, shape index: {}]  }
   0x1   :  { %11 = vsyncpa [#allocation3 + $0x1], 0 }
   0x2   :  { %12 = vsyncpa [#allocation6], 0 }
   0x3   :  { %13 = vsyncpa [#allocation9], 0 }
   0x4   :  { %14 = vsyncpa [#allocation4], 0 }
   0x5   :  { %16 = vsyncpa [#allocation4 + $0x1], 0  ;;  %s1861_s15 = smov 0   ;;  %s1863_s16 = smov 0  }
   0x6   :  { %s1865_s17 = smov 0   ;;  %s1867_s18 = smov 0  }
   0x7 LB: > { %s1882_s19 = sadd.s32 4294967295, %s1823_s18   ;;  %s1127_s20 = sadd.s32 4294967294, %s1823_s18   ;;  %s1823_s18 = sphi %s1867_s18, %s2270_s18   ;;  %s1819_s17 = sphi %s1865_s17, %s2269_s17   ;;  %s1815_s16 = sphi %s1863_s16, %s2268_s16   ;;  %s1811_s15 = sphi %s1861_s15, %s2267_s15  }
   0x8   : > { %p42_p0 = scmp.ne.s32.totalorder %s1815_s16, %s1811_s15  ;;  %p2248_p1 = scmp.eq.s32.totalorder %s1882_s19, 0 }
   0x9   : > { %p135_p3 = scmp.eq.s32.totalorder %s1127_s20, 1  ;;  %p1128_p5 = scmp.ge.s32.totalorder %s1823_s18, 1 }
   0xa   : > { %p1891_p4 = por %p2248_p1, %p42_p0  ;;  %p142_p7 = scmp.lt.s32.totalorder %s1823_s18, 3 }
   0xb   : > { %p1896_p6 = por %p135_p3, %p42_p0  ;;  %s1825_s24 = smov [#allocation5]  }
   0xc   : > { %s2251_s21 = scalar_select %p1891_p4, 1, 0 }
   0xd   : > { %s2252_s22 = scalar_select %p1896_p6, 1, 0 }
   0xe   : > { %p1901_p8 = pnand %p1128_p5, %p142_p7  ;;  %s154_s25 = sshll.u32 %s1825_s24, 4  ;;  %s1905_s25 = int_to_ptr.vmem [resolvable:$true] %s154_s25 }
   0xf   : > { %s1826_s27 = smov [#allocation7]   ;;  %s1827_s29 = smov [#allocation8]  }
  0x10   : > { %s2253_s23 = scalar_select %p1901_p8, 1, 0 }
  0x11   : > { %p1504_p9 = pneg %p1901_p8  ;;  %s168_s28 = sshll.u32 %s1826_s27, 4  ;;  %s1916_s28 = int_to_ptr.vmem [resolvable:$true] %s168_s28 }
  0x12   : > { %s1918_s30 = sshll.u32 %s1827_s29, 4  ;;  %s1635_s7 = scalar_lea.hbm %s2244_s1, 2048  ;;  %s180_s30 = int_to_ptr.vmem [resolvable:$true] %s1918_s30 }
  0x13   : > { %p1912_p11 = pnand %p1504_p9, %p2248_p1  ;;  %p1636_p12 = scmp.ne.s32.totalorder %s2244_s1, %s1635_s7 }
  0x14   : > { %p1642_p5 = scmp.lt.u32.totalorder %s1635_s7, %s2244_s1 }
  0x15   : > { %p1928_p13 = pneg %p1912_p11 }
  0x17   : > { %p1638_p0 = pnand %p1928_p13, %p1636_p12 }
  0x19   : > { %p1639_p3 = pneg %p1638_p0 }
  0x1b   : > { %p1644_p7 = pnand %p1642_p5, %p1639_p3 }
  0x1d   : > { %1647 = shalt.err (!%p1644_p7)
}
  0x1e   : > { %s1648_s13 = scalar_lea.vmem %s1905_s25, 2048  ;;  %p1656_p2 = scmp.lt.s32.totalorder %s1905_s25, %s1905_s25 }
  0x1f   : > { %p1649_p9 = scmp.ne.s32.totalorder %s1905_s25, %s1648_s13  ;;  %p1657_p6 = scmp.lt.s32.totalorder %s1648_s13, %s1648_s13 }
  0x21   : > { %p1651_p10 = pnand %p1649_p9, %p1928_p13  ;;  %p1658_p12 = por %p1657_p6, %p1656_p2 }
  0x23   : > { %p1652_p1 = pneg %p1651_p10 }
  0x25   : > { %p1659_p0 = pnand %p1658_p12, %p1652_p1 }
  0x27   : > { %1662 = shalt.err (!%p1659_p0)
}
  0x28   : > { %s1828_s14 = smov 64   ;;  %s1829_s20 = smov 4  }
  0x29   : > { %1507 = dma.hbm_to_vmem [thread:$0]  (!%p1912_p11), %s2244_s1, 2048, %s1905_s25, [#allocation6], %s1828_s14, %s1828_s14, %s1829_s20  }
  0x2a   : > { %s1663_s6 = scalar_lea.hbm %s2245_s2, 16 }
  0x2b   : > { %p1664_p2 = scmp.ne.s32.totalorder %s2245_s2, %s1663_s6  ;;  %p1670_p10 = scmp.lt.u32.totalorder %s1663_s6, %s2245_s2 }
  0x2d   : > { %p1666_p1 = pnand %p1664_p2, %p1928_p13 }
  0x2f   : > { %p1667_p6 = pneg %p1666_p1 }
  0x31   : > { %p1672_p3 = pnand %p1670_p10, %p1667_p6 }
  0x33   : > { %1675 = shalt.err (!%p1672_p3)
}
  0x34   : > { %s1676_s25 = scalar_lea.vmem %s1916_s28, 16  ;;  %s1683_s12 = scalar_lea.vmem %s1916_s28, 32 }
  0x35   : > { %p1677_p5 = scmp.ne.s32.totalorder %s1916_s28, %s1676_s25  ;;  %p1684_p12 = scmp.lt.s32.totalorder %s1916_s28, %s1916_s28 }
  0x36   : > { %p1685_p0 = scmp.lt.s32.totalorder %s1683_s12, %s1676_s25 }
  0x37   : > { %p1679_p7 = pnand %p1677_p5, %p1928_p13 }
  0x38   : > { %p1686_p2 = por %p1685_p0, %p1684_p12 }
  0x39   : > { %p1680_p9 = pneg %p1679_p7 }
  0x3b   : > { %p1687_p1 = pnand %p1686_p2, %p1680_p9 }
  0x3d   : > { %1690 = shalt.err (!%p1687_p1)
}
  0x3e   : > { %1510 = dma.hbm_to_vmem [thread:$0]  (!%p1912_p11), %s2245_s2, 16, %s1916_s28, [#allocation6]  }
  0x3f   : > { %s1691_s27 = scalar_lea.hbm %s2246_s3, 16 }
  0x40   : > { %p1692_p6 = scmp.ne.s32.totalorder %s2246_s3, %s1691_s27  ;;  %p1698_p5 = scmp.lt.u32.totalorder %s1691_s27, %s2246_s3 }
  0x42   : > { %p1694_p10 = pnand %p1692_p6, %p1928_p13 }
  0x44   : > { %p1695_p3 = pneg %p1694_p10 }
  0x46   : > { %p1700_p7 = pnand %p1698_p5, %p1695_p3 }
  0x48   : > { %1703 = shalt.err (!%p1700_p7)
}
  0x49   : > { %s1704_s8 = scalar_lea.vmem %s180_s30, 16  ;;  %s1711_s28 = scalar_lea.vmem %s180_s30, 32 }
  0x4a   : > { %p1705_p9 = scmp.ne.s32.totalorder %s180_s30, %s1704_s8  ;;  %p1712_p2 = scmp.lt.s32.totalorder %s180_s30, %s180_s30 }
  0x4b   : > { %p1713_p1 = scmp.lt.s32.totalorder %s1711_s28, %s1704_s8 }
  0x4c   : > { %p1707_p12 = pnand %p1705_p9, %p1928_p13 }
  0x4d   : > { %p1714_p4 = por %p1713_p1, %p1712_p2 }
  0x4e   : > { %p1708_p0 = pneg %p1707_p12 }
  0x50   : > { %p1715_p8 = pnand %p1714_p4, %p1708_p0 }
  0x52   : > { %1718 = shalt.err (!%p1715_p8)
}
  0x53   : > { %1513 = dma.hbm_to_vmem [thread:$0]  (!%p1912_p11), %s2246_s3, 16, %s180_s30, [#allocation9]  }
  0x54   : > { %s1993_s10 = sadd.s32 1, %s1823_s18   ;;  %s29_s26 = sadd.s32 1, %s1819_s17 }
  0x55   : > { %s26_s25 = ssub.s32 %s1823_s18, %s1993_s10  ;;  %p36_p8 = scmp.ne.s32.totalorder %s1819_s17, %s1815_s16 }
  0x56   : > { %p27_p4 = scmp.eq.s32.totalorder %s26_s25, 0  ;;  %p37_p13 = scmp.eq.s32.totalorder %s1823_s18, 0 }
  0x57   : > { %p1525_p6 = scmp.lt.s32.totalorder %s1823_s18, 2  ;;  %p2256_p3 = scmp.eq.s32.totalorder %s1882_s19, 1 }
  0x58   : > { %s2003_s12 = scalar_select %p27_p4, %s1819_s17, %s29_s26  }
  0x59   : > { %p38_p10 = por %p37_p13, %p36_p8  ;;  %p2007_p5 = por %p2256_p3, %p36_p8 }
  0x5a   : > { %s190_s14 = sand.u32 1, %s1819_s17   ;;  %s1231_s20 = sshll.u32 %s1823_s18, 12 }
  0x5b   : > { %s1133_s30 = sshll.u32 %s190_s14, 8  ;;  %s2016_s29 = scalar_lea.hbm %s2243_s0, %s1231_s20 }
  0x5c   : > { %s194_s5 = scalar_lea.vmem [#allocation2], %s1133_s30  ;;  %p2018_p11 = pnand %p1525_p6, %p38_p10 }
  0x5d   : > { %s202_s6 = sshll.u32 %s194_s5, 4  ;;  %s2024_s8 = scalar_lea.sflag [#allocation3], %s190_s14  ;;  %s2022_s6 = int_to_ptr.vmem [resolvable:$true] %s202_s6 }
  0x5e   : > { %s1719_s28 = scalar_lea.hbm %s2016_s29, 4096  ;;  %p1721_p9 = pneg %p2018_p11 }
  0x5f   : > { %p1720_p7 = scmp.ne.s32.totalorder %s2016_s29, %s1719_s28  ;;  %s1724_s25 = scalar_lea.hbm %s2243_s0, 8192 }
  0x60   : > { %p1725_p2 = scmp.lt.u32.totalorder %s2016_s29, %s2243_s0  ;;  %p1726_p1 = scmp.lt.u32.totalorder %s1724_s25, %s1719_s28 }
  0x61   : > { %p1722_p12 = pnand %p1721_p9, %p1720_p7  ;;  %p1728_p8 = scmp.lt.u32.totalorder %s1719_s28, %s2016_s29 }
  0x62   : > { %p1727_p4 = por %p1726_p1, %p1725_p2 }
  0x63   : > { %p1723_p0 = pneg %p1722_p12 }
  0x64   : > { %p1729_p13 = por %p1728_p8, %p1727_p4 }
  0x66   : > { %p1730_p6 = pnand %p1729_p13, %p1723_p0 }
  0x68   : > { %1733 = shalt.err (!%p1730_p6)
}
  0x69   : > { %s1734_s14 = scalar_lea.vmem %s2022_s6, 4096  ;;  %s1830_s30 = smov [#allocation2]  }
  0x6a   : > { %p1735_p10 = scmp.ne.s32.totalorder %s2022_s6, %s1734_s14  ;;  %s1739_s24 = sshll.u32 %s1830_s30, 4  ;;  %s1740_s24 = int_to_ptr.vmem [resolvable:$false] %s1739_s24 }
  0x6b   : > { %s1741_s27 = scalar_lea.vmem %s1740_s24, 8192  ;;  %p1742_p12 = scmp.lt.s32.totalorder %s2022_s6, %s1740_s24 }
  0x6c   : > { %p1737_p3 = pnand %p1735_p10, %p1721_p9  ;;  %p1743_p2 = scmp.lt.s32.totalorder %s1741_s27, %s1734_s14 }
  0x6e   : > { %p1738_p7 = pneg %p1737_p3  ;;  %p1744_p1 = por %p1743_p2, %p1742_p12 }
  0x70   : > { %p1745_p4 = pnand %p1744_p1, %p1738_p7 }
  0x72   : > { %1748 = shalt.err (!%p1745_p4)
}
  0x73   : > { %s1831_s5 = smov 128   ;;  %s1832_s28 = smov 8  }
  0x74   : > { %1517 = dma.hbm_to_vmem [thread:$0]  (!%p2018_p11), %s2016_s29, 4096, %s2022_s6, %s2024_s8, %s1831_s5, %s1831_s5, %s1832_s28  }
  0x75   : > { %p2259_p9 = scmp.ne.s32.totalorder %s2253_s23, 0 }
  0x76   : > { %s2055_s9 = sand.u32 (!%p2259_p9), 1, %s1815_s16   ;;  %p2260_p0 = scmp.ne.s32.totalorder (!%p2259_p9), %s2251_s21, 0 }
  0x77   : > { %214 = sbr.rel (%p2259_p9) target bundleno = 464 (0x1d0), region = 36  ;;  %s1138_s11 = sshll.u32 (!%p2259_p9), %s2055_s9, 8 }
  0x78   : > { %s217_s25 = scalar_lea.sflag (!%p2259_p9), [#allocation3], %s2055_s9  ;;  %s2059_s26 = scalar_lea.vmem (!%p2259_p9), [#allocation2], %s1138_s11 }
  0x7e   : > { %1794 = dma.done.wait (%p2260_p0), %s217_s25, 4096  }
  0x7f   : > { %1796 = vsyncadd (%p2260_p0), %s217_s25, 4294963200  ;;  %p2261_p11 = scmp.eq.s32.totalorder %s1882_s19, 0 }
  0x81   : > { %1798 = dma.done.wait (%p2261_p11), [#allocation6], 2064   ;;  %p2262_p8 = pmov %p2261_p11 }
  0x83   : > { %1800 = vsyncadd (%p2262_p8), [#allocation6], 4294965232  ;;  %p2263_p13 = pmov %p2262_p8 }
  0x84   : > { %p2264_p6 = pmov %p2262_p8 }
  0x85   : > { %1802 = dma.done.wait (%p2263_p13), [#allocation9], 16  }
  0x86   : > { %1804 = vsyncadd (%p2264_p6), [#allocation9], 4294967280  ;;  %v1571_v0 = vld [vmem:[#allocation5 + $0x40] sm:$0xff]   ;;  %v1573_v2 = vld [vmem:[#allocation5 + $0x48] sm:$0xff]   ;;  %s1142_s21 = sshll.u32 %s2055_s9, 7  ;;  %s1264_s29 = sshll.u32 %s1882_s19, 11 }
  0x87   : > { %v1572_v1 = vld [vmem:[#allocation5] sm:$0xff]   ;;  %1360 = vmatprep.subr.bf16.mxu0 %v1571_v0  ;;  %1472 = vmatprep.subr.bf16.mxu1 %v1571_v0  ;;  %v1574_v3 = vld [vmem:[#allocation5 + $0x8] sm:$0xff]   ;;  %v1575_v4 = vld [vmem:[#allocation5 + $0x50] sm:$0xff]   ;;  %s2120_s23 = scalar_lea.vmem [#allocation10], %s1142_s21  ;;  %s2195_s20 = scalar_lea.hbm %s2247_s4, %s1264_s29 }
  0x88   : > { %1361 = vmatpush3.bf16.msra.mxu0 %v1572_v1  ;;  %1480 = vmatpush3.bf16.msra.mxu1 %v1572_v1  ;;  %v1576_v5 = vld [vmem:[#allocation5 + $0x10] sm:$0xff]   ;;  %v1577_v6 = vld [vmem:[#allocation5 + $0x58] sm:$0xff]   ;;  %v1579_v8 = vld [vmem:[#allocation5 + $0x60] sm:$0xff]   ;;  %s1025_s6 = sshll.u32 %s2120_s23, 4  ;;  %s1012_s19 = scalar_lea.sflag [#allocation4], %s2055_s9  ;;  %s2197_s6 = int_to_ptr.vmem [resolvable:$true] %s1025_s6 }
  0x89   : > { %1362 = vmatprep.subr.bf16.mxu0 %v1573_v2  ;;  %1473 = vmatprep.subr.bf16.mxu1 %v1573_v2  ;;  %v1578_v7 = vld [vmem:[#allocation5 + $0x18] sm:$0xff]   ;;  %v1580_v9 = vld [vmem:[#allocation5 + $0x20] sm:$0xff]   ;;  %v1581_v10 = vld [vmem:[#allocation5 + $0x68] sm:$0xff]   ;;  %s1749_s14 = scalar_lea.vmem %s2197_s6, 2048  ;;  %s1833_s30 = smov [#allocation10]  }
  0x8a   : > { %v1589_v11 = vld [vmem:[%s2059_s26 + $0x4] ss:$8 sps:$4 sm:$0xff]   ;;  %v1583_v14 = vld [vmem:[#allocation5 + $0x70] sm:$0xff]   ;;  %v1585_v16 = vld [vmem:[#allocation5 + $0x78] sm:$0xff]   ;;  %p1750_p10 = scmp.ne.s32.totalorder %s2197_s6, %s1749_s14  ;;  %s1753_s24 = sshll.u32 %s1833_s30, 4  ;;  %s1754_s24 = int_to_ptr.vmem [resolvable:$false] %s1753_s24 }
  0x8b   : > { %v1592_v12 = vld [vmem:[%s2059_s26 + $0x84] ss:$8 sps:$4 sm:$0xff]   ;;  %612 = vmatprep.mubr.bf16.mxu0 %v1589_v11  ;;  %v1584_v15 = vld [vmem:[#allocation5 + $0x30] sm:$0xff]   ;;  %v1586_v17 = vld [vmem:[#allocation5 + $0x38] sm:$0xff]   ;;  %s1755_s27 = scalar_lea.vmem %s1754_s24, 4096  ;;  %p1756_p12 = scmp.lt.s32.totalorder %s2197_s6, %s1754_s24 }
  0x8c   : > { %1363 = vmatpush3.bf16.msra.mxu0 %v1574_v3  ;;  %1481 = vmatpush3.bf16.msra.mxu1 %v1574_v3  ;;  %v1582_v13 = vld [vmem:[#allocation5 + $0x28] sm:$0xff]   ;;  %v1593_v20 = vld [vmem:[%s2059_s26 + $0x14] ss:$8 sps:$4 sm:$0xff]   ;;  %v1597_v22 = vld [vmem:[%s2059_s26 + $0x10] ss:$8 sps:$4 sm:$0xff]   ;;  %p1751_p3 = pnand %p1750_p10, %p2007_p5  ;;  %p1757_p2 = scmp.lt.s32.totalorder %s1755_s27, %s1749_s14 }
  0x8d   : > { %1364 = vmatprep.subr.bf16.mxu0 %v1575_v4  ;;  %1474 = vmatprep.subr.bf16.mxu1 %v1575_v4  ;;  %v1587_v18 = vld [vmem:[%s2059_s26] ss:$8 sps:$4 sm:$0xff]   ;;  %v1595_v21 = vld [vmem:[%s2059_s26 + $0x94] ss:$8 sps:$4 sm:$0xff]   ;;  %v1598_v23 = vld [vmem:[%s2059_s26 + $0x90] ss:$8 sps:$4 sm:$0xff]  }
  0x8e   : > { %676 = vmatprep.mubr.bf16.mxu1 %v1592_v12  ;;  %v1590_v19 = vld [vmem:[%s2059_s26 + $0x80] ss:$8 sps:$4 sm:$0xff]   ;;  %v1599_v24 = vld [vmem:[%s2059_s26 + $0x24] ss:$8 sps:$4 sm:$0xff]   ;;  %v1605_v28 = vld [vmem:[%s2059_s26 + $0x34] ss:$8 sps:$4 sm:$0xff]   ;;  %p1752_p7 = pneg %p1751_p3  ;;  %p1758_p1 = por %p1757_p2, %p1756_p12 }
  0x8f   : > { %v1601_v25 = vld [vmem:[%s2059_s26 + $0xa4] ss:$8 sps:$4 sm:$0xff]   ;;  %v1603_v26 = vld [vmem:[%s2059_s26 + $0x20] ss:$8 sps:$4 sm:$0xff]   ;;  %v1607_v29 = vld [vmem:[%s2059_s26 + $0xb4] ss:$8 sps:$4 sm:$0xff]  }
  0x90   : > { %1365 = vmatpush3.bf16.msra.mxu0 %v1576_v5  ;;  %1482 = vmatpush3.bf16.msra.mxu1 %v1576_v5  ;;  %v1604_v27 = vld [vmem:[%s2059_s26 + $0xa0] ss:$8 sps:$4 sm:$0xff]   ;;  %v1609_v30 = vld [vmem:[%s2059_s26 + $0x30] ss:$8 sps:$4 sm:$0xff]   ;;  %v1611_v32 = vld [vmem:[%s2059_s26 + $0x44] ss:$8 sps:$4 sm:$0xff]   ;;  %p1759_p4 = pnand %p1758_p1, %p1752_p7 }
  0x91   : > { %1366 = vmatprep.subr.bf16.mxu0 %v1577_v6  ;;  %1475 = vmatprep.subr.bf16.mxu1 %v1577_v6  ;;  %v1610_v31 = vld [vmem:[%s2059_s26 + $0xb0] ss:$8 sps:$4 sm:$0xff]   ;;  %v1613_v33 = vld [vmem:[%s2059_s26 + $0xc4] ss:$8 sps:$4 sm:$0xff]   ;;  %v1615_v34 = vld [vmem:[%s2059_s26 + $0x40] ss:$8 sps:$4 sm:$0xff]  }
  0x92   : > { %v1616_v35 = vld [vmem:[%s2059_s26 + $0xc0] ss:$8 sps:$4 sm:$0xff]   ;;  %v1617_v36 = vld [vmem:[%s2059_s26 + $0x54] ss:$8 sps:$4 sm:$0xff]   ;;  %v1621_v38 = vld [vmem:[%s2059_s26 + $0x50] ss:$8 sps:$4 sm:$0xff]  }
  0x93   : > { %v1619_v37 = vld [vmem:[%s2059_s26 + $0xd4] ss:$8 sps:$4 sm:$0xff]   ;;  %v1622_v39 = vld [vmem:[%s2059_s26 + $0xd0] ss:$8 sps:$4 sm:$0xff]   ;;  %v1623_v40 = vld [vmem:[%s2059_s26 + $0x64] ss:$8 sps:$4 sm:$0xff]  }
  0x94   : > { %1367 = vmatpush3.bf16.msra.mxu0 %v1578_v7  ;;  %1483 = vmatpush3.bf16.msra.mxu1 %v1578_v7  ;;  %v1625_v41 = vld [vmem:[%s2059_s26 + $0xe4] ss:$8 sps:$4 sm:$0xff]   ;;  %v1627_v42 = vld [vmem:[%s2059_s26 + $0x60] ss:$8 sps:$4 sm:$0xff]   ;;  %v1629_v44 = vld [vmem:[%s2059_s26 + $0x74] ss:$8 sps:$4 sm:$0xff]  }
  0x95   : > { %1368 = vmatprep.subr.bf16.mxu0 %v1579_v8  ;;  %1476 = vmatprep.subr.bf16.mxu1 %v1579_v8  ;;  %v1628_v43 = vld [vmem:[%s2059_s26 + $0xe0] ss:$8 sps:$4 sm:$0xff]   ;;  %v1631_v45 = vld [vmem:[%s2059_s26 + $0xf4] ss:$8 sps:$4 sm:$0xff]   ;;  %v1633_v46 = vld [vmem:[%s2059_s26 + $0x70] ss:$8 sps:$4 sm:$0xff]  }
  0x96   : > { %v1634_v47 = vld [vmem:[%s2059_s26 + $0xf0] ss:$8 sps:$4 sm:$0xff]   ;;  %v2105_v51 = vld [vmem:[#allocation7] ss:$0 sm:$0xff]  ;;  %v2107_v57 = vld [vmem:[#allocation8] ss:$0 sm:$0xff] }
  0x98   : > { %1369 = vmatpush3.bf16.msra.mxu0 %v1580_v9  ;;  %1484 = vmatpush3.bf16.msra.mxu1 %v1580_v9 }
  0x99   : > { %1370 = vmatprep.subr.bf16.mxu0 %v1581_v10  ;;  %1477 = vmatprep.subr.bf16.mxu1 %v1581_v10 }
  0x9c   : > { %1371 = vmatpush3.bf16.msra.mxu0 %v1582_v13  ;;  %1485 = vmatpush3.bf16.msra.mxu1 %v1582_v13 }
  0x9d   : > { %1372 = vmatprep.subr.bf16.mxu0 %v1583_v14  ;;  %1478 = vmatprep.subr.bf16.mxu1 %v1583_v14 }
  0xa0   : > { %1373 = vmatpush3.bf16.msra.mxu0 %v1584_v15  ;;  %1486 = vmatpush3.bf16.msra.mxu1 %v1584_v15 }
  0xa1   : > { %1374 = vmatprep.subr.bf16.mxu0 %v1585_v16  ;;  %1479 = vmatprep.subr.bf16.mxu1 %v1585_v16 }
  0xa4   : > { %1375 = vmatpush3.bf16.msra.mxu0 %v1586_v17  ;;  %1487 = vmatpush3.bf16.msra.mxu1 %v1586_v17 }
  0xa7   : > { %613 = vmatmul.mubr.bf16.vlgmr.msra.gmra.mrb[0].mxu0 %v1587_v18  ;;  %677 = vmatmul.mubr.bf16.vlgmr.msra.gmra.mrb[0].mxu1 %v1590_v19 }
  0xa8   : > { %620 = vmatprep.mubr.bf16.mxu0 %v1593_v20  ;;  %684 = vmatprep.mubr.bf16.mxu1 %v1595_v21 }
  0xaf   : > { %621 = vmatmul.mubr.bf16.gmra.mrb[4].mxu0 %v1597_v22  ;;  %685 = vmatmul.mubr.bf16.gmra.mrb[4].mxu1 %v1598_v23 }
  0xb0   : > { %628 = vmatprep.mubr.bf16.mxu0 %v1599_v24  ;;  %692 = vmatprep.mubr.bf16.mxu1 %v1601_v25 }
  0xb7   : > { %629 = vmatmul.mubr.bf16.gmra.mrb[8].mxu0 %v1603_v26  ;;  %693 = vmatmul.mubr.bf16.gmra.mrb[8].mxu1 %v1604_v27 }
  0xb8   : > { %636 = vmatprep.mubr.bf16.mxu0 %v1605_v28  ;;  %700 = vmatprep.mubr.bf16.mxu1 %v1607_v29 }
  0xbf   : > { %637 = vmatmul.mubr.bf16.gmra.mrb[12].mxu0 %v1609_v30  ;;  %701 = vmatmul.mubr.bf16.gmra.mrb[12].mxu1 %v1610_v31 }
  0xc0   : > { %644 = vmatprep.mubr.bf16.mxu0 %v1611_v32  ;;  %708 = vmatprep.mubr.bf16.mxu1 %v1613_v33 }
  0xc7   : > { %645 = vmatmul.mubr.bf16.gmra.mrb[16].mxu0 %v1615_v34  ;;  %709 = vmatmul.mubr.bf16.gmra.mrb[16].mxu1 %v1616_v35 }
  0xc8   : > { %652 = vmatprep.mubr.bf16.mxu0 %v1617_v36  ;;  %716 = vmatprep.mubr.bf16.mxu1 %v1619_v37 }
  0xcf   : > { %653 = vmatmul.mubr.bf16.gmra.mrb[20].mxu0 %v1621_v38  ;;  %717 = vmatmul.mubr.bf16.gmra.mrb[20].mxu1 %v1622_v39 }
  0xd0   : > { %660 = vmatprep.mubr.bf16.mxu0 %v1623_v40  ;;  %724 = vmatprep.mubr.bf16.mxu1 %v1625_v41 }
  0xd7   : > { %661 = vmatmul.mubr.bf16.gmra.mrb[24].mxu0 %v1627_v42  ;;  %725 = vmatmul.mubr.bf16.gmra.mrb[24].mxu1 %v1628_v43 }
  0xd8   : > { %668 = vmatprep.mubr.bf16.mxu0 %v1629_v44  ;;  %732 = vmatprep.mubr.bf16.mxu1 %v1631_v45 }
  0xdf   : > { %669 = vmatmul.mubr.bf16.gmra.mrb[28].mxu0 %v1633_v46  ;;  %733 = vmatmul.mubr.bf16.gmra.mrb[28].mxu1 %v1634_v47 }
 0x17a   : > { %v1376_v48 = vpop.f32.mrb[0].mxu0  ;;  %v1424_v49 = vpop.f32.mrb[0].mxu1 }
 0x17b   : > { %v1377_v50 = vpop.f32.mrb[1].mxu0  ;;  %v1425_v52 = vpop.f32.mrb[1].mxu1 }
 0x17c   : > { %v1378_v53 = vadd.f32 %v1377_v50, %v1376_v48  ;;  %v1426_v54 = vadd.f32 %v1425_v52, %v1424_v49  ;;  %v1379_v55 = vpop.f32.mrb[2].mxu0  ;;  %v1427_v56 = vpop.f32.mrb[2].mxu1 }
 0x17d   : > { %v1380_v58 = vpop.f32.mrb[3].mxu0  ;;  %v1428_v59 = vpop.f32.mrb[3].mxu1 }
 0x17e   : > { %v748_v60 = vmul.f32 %v1378_v53, %v2105_v51  ;;  %v764_v61 = vmul.f32 %v1426_v54, %v2105_v51  ;;  %v1381_v62 = vadd.f32 %v1380_v58, %v1379_v55  ;;  %v1429_v63 = vadd.f32 %v1428_v59, %v1427_v56 }
 0x180   : > { %v787_v0 = vadd.f32 %v2107_v57, %v748_v60  ;;  %v803_v1 = vadd.f32 %v2107_v57, %v764_v61  ;;  %v749_v2 = vmul.f32 %v1381_v62, %v2105_v51  ;;  %v765_v3 = vmul.f32 %v1429_v63, %v2105_v51 }
 0x182   : > { %v788_v4 = vadd.f32 %v2107_v57, %v749_v2  ;;  %v804_v5 = vadd.f32 %v2107_v57, %v765_v3  ;;  %v1382_v6 = vpop.f32.mrb[4].mxu0  ;;  %v1430_v7 = vpop.f32.mrb[4].mxu1  ;;  %v819_v8 = vmax.f32 %v787_v0, 0.0  ;;  %v835_v9 = vmax.f32 %v803_v1, 0.0 }
 0x183   : > { %v1383_v10 = vpop.f32.mrb[5].mxu0  ;;  %v1431_v11 = vpop.f32.mrb[5].mxu1 }
 0x184   : > { %v820_v12 = vmax.f32 %v788_v4, 0.0  ;;  %v836_v13 = vmax.f32 %v804_v5, 0.0  ;;  %v1384_v14 = vadd.f32 %v1383_v10, %v1382_v6  ;;  %v1432_v15 = vadd.f32 %v1431_v11, %v1430_v7  ;;  %v1385_v16 = vpop.f32.mrb[6].mxu0  ;;  %v1433_v17 = vpop.f32.mrb[6].mxu1 }
 0x185   : > { %v1386_v18 = vpop.f32.mrb[7].mxu0  ;;  %v1434_v19 = vpop.f32.mrb[7].mxu1 }
 0x186   : > { %v1268_v20 = vpack.c.bf16 %v820_v12, %v819_v8  ;;  %v1308_v21 = vpack.c.bf16 %v836_v13, %v835_v9  ;;  %v750_v22 = vmul.f32 %v1384_v14, %v2105_v51  ;;  %v766_v23 = vmul.f32 %v1432_v15, %v2105_v51 }
 0x187   : > { %v1387_v24 = vadd.f32 %v1386_v18, %v1385_v16  ;;  %v1435_v25 = vadd.f32 %v1434_v19, %v1433_v17 }
 0x188   : > { %1269 = vst [vmem:[%s2120_s23] sm:$0xff] %v1268_v20   ;;  %1352 = vst [vmem:[%s2120_s23 + $0x40] sm:$0xff] %v1308_v21   ;;  %v789_v26 = vadd.f32 %v2107_v57, %v750_v22  ;;  %v805_v27 = vadd.f32 %v2107_v57, %v766_v23 }
 0x189   : > { %v751_v28 = vmul.f32 %v1387_v24, %v2105_v51  ;;  %v767_v29 = vmul.f32 %v1435_v25, %v2105_v51 }
 0x18a   : > { %v1388_v30 = vpop.f32.mrb[8].mxu0  ;;  %v1436_v31 = vpop.f32.mrb[8].mxu1  ;;  %v821_v40 = vmax.f32 %v789_v26, 0.0  ;;  %v837_v41 = vmax.f32 %v805_v27, 0.0 }
 0x18b   : > { %v790_v32 = vadd.f32 %v2107_v57, %v751_v28  ;;  %v806_v33 = vadd.f32 %v2107_v57, %v767_v29  ;;  %v1389_v34 = vpop.f32.mrb[9].mxu0  ;;  %v1437_v35 = vpop.f32.mrb[9].mxu1 }
 0x18c   : > { %v1390_v36 = vadd.f32 %v1389_v34, %v1388_v30  ;;  %v1438_v37 = vadd.f32 %v1437_v35, %v1436_v31  ;;  %v1391_v38 = vpop.f32.mrb[10].mxu0  ;;  %v1439_v39 = vpop.f32.mrb[10].mxu1 }
 0x18d   : > { %v822_v42 = vmax.f32 %v790_v32, 0.0  ;;  %v838_v43 = vmax.f32 %v806_v33, 0.0  ;;  %v1392_v44 = vpop.f32.mrb[11].mxu0  ;;  %v1440_v45 = vpop.f32.mrb[11].mxu1 }
 0x18e   : > { %v752_v46 = vmul.f32 %v1390_v36, %v2105_v51  ;;  %v768_v47 = vmul.f32 %v1438_v37, %v2105_v51  ;;  %v1393_v48 = vadd.f32 %v1392_v44, %v1391_v38  ;;  %v1441_v49 = vadd.f32 %v1440_v45, %v1439_v39 }
 0x18f   : > { %v1273_v50 = vpack.c.bf16 %v822_v42, %v821_v40  ;;  %v1313_v52 = vpack.c.bf16 %v838_v43, %v837_v41 }
 0x190   : > { %v791_v53 = vadd.f32 %v2107_v57, %v752_v46  ;;  %v807_v54 = vadd.f32 %v2107_v57, %v768_v47  ;;  %v753_v55 = vmul.f32 %v1393_v48, %v2105_v51  ;;  %v769_v56 = vmul.f32 %v1441_v49, %v2105_v51 }
 0x191   : > { %1345 = vst [vmem:[%s2120_s23 + $0x8] sm:$0xff] %v1273_v50   ;;  %1353 = vst [vmem:[%s2120_s23 + $0x48] sm:$0xff] %v1313_v52  }
 0x192   : > { %v792_v58 = vadd.f32 %v2107_v57, %v753_v55  ;;  %v808_v59 = vadd.f32 %v2107_v57, %v769_v56  ;;  %v1394_v60 = vpop.f32.mrb[12].mxu0  ;;  %v1442_v61 = vpop.f32.mrb[12].mxu1  ;;  %v823_v62 = vmax.f32 %v791_v53, 0.0  ;;  %v839_v63 = vmax.f32 %v807_v54, 0.0 }
 0x193   : > { %v1395_v0 = vpop.f32.mrb[13].mxu0  ;;  %v1443_v1 = vpop.f32.mrb[13].mxu1 }
 0x194   : > { %v824_v2 = vmax.f32 %v792_v58, 0.0  ;;  %v840_v3 = vmax.f32 %v808_v59, 0.0  ;;  %v1396_v4 = vadd.f32 %v1395_v0, %v1394_v60  ;;  %v1444_v5 = vadd.f32 %v1443_v1, %v1442_v61  ;;  %v1397_v6 = vpop.f32.mrb[14].mxu0  ;;  %v1445_v7 = vpop.f32.mrb[14].mxu1 }
 0x195   : > { %v1398_v8 = vpop.f32.mrb[15].mxu0  ;;  %v1446_v9 = vpop.f32.mrb[15].mxu1 }
 0x196   : > { %v1278_v10 = vpack.c.bf16 %v824_v2, %v823_v62  ;;  %v1318_v11 = vpack.c.bf16 %v840_v3, %v839_v63  ;;  %v754_v12 = vmul.f32 %v1396_v4, %v2105_v51  ;;  %v770_v13 = vmul.f32 %v1444_v5, %v2105_v51 }
 0x197   : > { %v1399_v14 = vadd.f32 %v1398_v8, %v1397_v6  ;;  %v1447_v15 = vadd.f32 %v1446_v9, %v1445_v7 }
 0x198   : > { %1346 = vst [vmem:[%s2120_s23 + $0x10] sm:$0xff] %v1278_v10   ;;  %1354 = vst [vmem:[%s2120_s23 + $0x50] sm:$0xff] %v1318_v11   ;;  %v793_v16 = vadd.f32 %v2107_v57, %v754_v12  ;;  %v809_v17 = vadd.f32 %v2107_v57, %v770_v13 }
 0x199   : > { %v755_v18 = vmul.f32 %v1399_v14, %v2105_v51  ;;  %v771_v19 = vmul.f32 %v1447_v15, %v2105_v51 }
 0x19a   : > { %v1400_v20 = vpop.f32.mrb[16].mxu0  ;;  %v1448_v21 = vpop.f32.mrb[16].mxu1  ;;  %v825_v30 = vmax.f32 %v793_v16, 0.0  ;;  %v841_v31 = vmax.f32 %v809_v17, 0.0 }
 0x19b   : > { %v794_v22 = vadd.f32 %v2107_v57, %v755_v18  ;;  %v810_v23 = vadd.f32 %v2107_v57, %v771_v19  ;;  %v1401_v24 = vpop.f32.mrb[17].mxu0  ;;  %v1449_v25 = vpop.f32.mrb[17].mxu1 }
 0x19c   : > { %v1402_v26 = vadd.f32 %v1401_v24, %v1400_v20  ;;  %v1450_v27 = vadd.f32 %v1449_v25, %v1448_v21  ;;  %v1403_v28 = vpop.f32.mrb[18].mxu0  ;;  %v1451_v29 = vpop.f32.mrb[18].mxu1 }
 0x19d   : > { %v826_v32 = vmax.f32 %v794_v22, 0.0  ;;  %v842_v33 = vmax.f32 %v810_v23, 0.0  ;;  %v1404_v34 = vpop.f32.mrb[19].mxu0  ;;  %v1452_v35 = vpop.f32.mrb[19].mxu1 }
 0x19e   : > { %v756_v36 = vmul.f32 %v1402_v26, %v2105_v51  ;;  %v772_v37 = vmul.f32 %v1450_v27, %v2105_v51  ;;  %v1405_v38 = vadd.f32 %v1404_v34, %v1403_v28  ;;  %v1453_v39 = vadd.f32 %v1452_v35, %v1451_v29 }
 0x19f   : > { %v1283_v40 = vpack.c.bf16 %v826_v32, %v825_v30  ;;  %v1323_v41 = vpack.c.bf16 %v842_v33, %v841_v31 }
 0x1a0   : > { %v795_v42 = vadd.f32 %v2107_v57, %v756_v36  ;;  %v811_v43 = vadd.f32 %v2107_v57, %v772_v37  ;;  %v757_v44 = vmul.f32 %v1405_v38, %v2105_v51  ;;  %v773_v45 = vmul.f32 %v1453_v39, %v2105_v51 }
 0x1a1   : > { %1347 = vst [vmem:[%s2120_s23 + $0x18] sm:$0xff] %v1283_v40   ;;  %1355 = vst [vmem:[%s2120_s23 + $0x58] sm:$0xff] %v1323_v41  }
 0x1a2   : > { %v796_v46 = vadd.f32 %v2107_v57, %v757_v44  ;;  %v812_v47 = vadd.f32 %v2107_v57, %v773_v45  ;;  %v1406_v48 = vpop.f32.mrb[20].mxu0  ;;  %v1454_v49 = vpop.f32.mrb[20].mxu1  ;;  %v827_v50 = vmax.f32 %v795_v42, 0.0  ;;  %v843_v52 = vmax.f32 %v811_v43, 0.0 }
 0x1a3   : > { %v1407_v53 = vpop.f32.mrb[21].mxu0  ;;  %v1455_v54 = vpop.f32.mrb[21].mxu1 }
 0x1a4   : > { %v828_v55 = vmax.f32 %v796_v46, 0.0  ;;  %v844_v56 = vmax.f32 %v812_v47, 0.0  ;;  %v1408_v58 = vadd.f32 %v1407_v53, %v1406_v48  ;;  %v1456_v59 = vadd.f32 %v1455_v54, %v1454_v49  ;;  %v1409_v60 = vpop.f32.mrb[22].mxu0  ;;  %v1457_v61 = vpop.f32.mrb[22].mxu1 }
 0x1a5   : > { %v1410_v62 = vpop.f32.mrb[23].mxu0  ;;  %v1458_v63 = vpop.f32.mrb[23].mxu1 }
 0x1a6   : > { %v1288_v0 = vpack.c.bf16 %v828_v55, %v827_v50  ;;  %v1328_v1 = vpack.c.bf16 %v844_v56, %v843_v52  ;;  %v758_v2 = vmul.f32 %v1408_v58, %v2105_v51  ;;  %v774_v3 = vmul.f32 %v1456_v59, %v2105_v51 }
 0x1a7   : > { %v1411_v4 = vadd.f32 %v1410_v62, %v1409_v60  ;;  %v1459_v5 = vadd.f32 %v1458_v63, %v1457_v61 }
 0x1a8   : > { %1348 = vst [vmem:[%s2120_s23 + $0x20] sm:$0xff] %v1288_v0   ;;  %1356 = vst [vmem:[%s2120_s23 + $0x60] sm:$0xff] %v1328_v1   ;;  %v797_v6 = vadd.f32 %v2107_v57, %v758_v2  ;;  %v813_v7 = vadd.f32 %v2107_v57, %v774_v3 }
 0x1a9   : > { %v759_v8 = vmul.f32 %v1411_v4, %v2105_v51  ;;  %v775_v9 = vmul.f32 %v1459_v5, %v2105_v51 }
 0x1aa   : > { %v1412_v10 = vpop.f32.mrb[24].mxu0  ;;  %v1460_v11 = vpop.f32.mrb[24].mxu1  ;;  %v829_v20 = vmax.f32 %v797_v6, 0.0  ;;  %v845_v21 = vmax.f32 %v813_v7, 0.0 }
 0x1ab   : > { %v798_v12 = vadd.f32 %v2107_v57, %v759_v8  ;;  %v814_v13 = vadd.f32 %v2107_v57, %v775_v9  ;;  %v1413_v14 = vpop.f32.mrb[25].mxu0  ;;  %v1461_v15 = vpop.f32.mrb[25].mxu1 }
 0x1ac   : > { %v1414_v16 = vadd.f32 %v1413_v14, %v1412_v10  ;;  %v1462_v17 = vadd.f32 %v1461_v15, %v1460_v11  ;;  %v1415_v18 = vpop.f32.mrb[26].mxu0  ;;  %v1463_v19 = vpop.f32.mrb[26].mxu1 }
 0x1ad   : > { %v830_v22 = vmax.f32 %v798_v12, 0.0  ;;  %v846_v23 = vmax.f32 %v814_v13, 0.0  ;;  %v1416_v24 = vpop.f32.mrb[27].mxu0  ;;  %v1464_v25 = vpop.f32.mrb[27].mxu1 }
 0x1ae   : > { %v760_v26 = vmul.f32 %v1414_v16, %v2105_v51  ;;  %v776_v27 = vmul.f32 %v1462_v17, %v2105_v51  ;;  %v1417_v28 = vadd.f32 %v1416_v24, %v1415_v18  ;;  %v1465_v29 = vadd.f32 %v1464_v25, %v1463_v19 }
 0x1af   : > { %v1293_v30 = vpack.c.bf16 %v830_v22, %v829_v20  ;;  %v1333_v31 = vpack.c.bf16 %v846_v23, %v845_v21 }
 0x1b0   : > { %v799_v32 = vadd.f32 %v2107_v57, %v760_v26  ;;  %v815_v33 = vadd.f32 %v2107_v57, %v776_v27  ;;  %v761_v34 = vmul.f32 %v1417_v28, %v2105_v51  ;;  %v777_v35 = vmul.f32 %v1465_v29, %v2105_v51 }
 0x1b1   : > { %1349 = vst [vmem:[%s2120_s23 + $0x28] sm:$0xff] %v1293_v30   ;;  %1357 = vst [vmem:[%s2120_s23 + $0x68] sm:$0xff] %v1333_v31  }
 0x1b2   : > { %v800_v36 = vadd.f32 %v2107_v57, %v761_v34  ;;  %v816_v37 = vadd.f32 %v2107_v57, %v777_v35  ;;  %v1418_v38 = vpop.f32.mrb[28].mxu0  ;;  %v1466_v39 = vpop.f32.mrb[28].mxu1  ;;  %v831_v40 = vmax.f32 %v799_v32, 0.0  ;;  %v847_v41 = vmax.f32 %v815_v33, 0.0 }
 0x1b3   : > { %v1419_v42 = vpop.f32.mrb[29].mxu0  ;;  %v1467_v43 = vpop.f32.mrb[29].mxu1 }
 0x1b4   : > { %v832_v44 = vmax.f32 %v800_v36, 0.0  ;;  %v848_v45 = vmax.f32 %v816_v37, 0.0  ;;  %v1420_v46 = vadd.f32 %v1419_v42, %v1418_v38  ;;  %v1468_v47 = vadd.f32 %v1467_v43, %v1466_v39  ;;  %v1421_v48 = vpop.f32.mrb[30].mxu0  ;;  %v1469_v49 = vpop.f32.mrb[30].mxu1 }
 0x1b5   : > { %v1422_v50 = vpop.f32.mrb[31].mxu0  ;;  %v1470_v52 = vpop.f32.mrb[31].mxu1 }
 0x1b6   : > { %v1298_v53 = vpack.c.bf16 %v832_v44, %v831_v40  ;;  %v1338_v54 = vpack.c.bf16 %v848_v45, %v847_v41  ;;  %v762_v55 = vmul.f32 %v1420_v46, %v2105_v51  ;;  %v778_v56 = vmul.f32 %v1468_v47, %v2105_v51 }
 0x1b7   : > { %v1423_v58 = vadd.f32 %v1422_v50, %v1421_v48  ;;  %v1471_v59 = vadd.f32 %v1470_v52, %v1469_v49 }
 0x1b8   : > { %1350 = vst [vmem:[%s2120_s23 + $0x30] sm:$0xff] %v1298_v53   ;;  %1358 = vst [vmem:[%s2120_s23 + $0x70] sm:$0xff] %v1338_v54   ;;  %v801_v60 = vadd.f32 %v2107_v57, %v762_v55  ;;  %v817_v61 = vadd.f32 %v2107_v57, %v778_v56 }
 0x1b9   : > { %v763_v62 = vmul.f32 %v1423_v58, %v2105_v51  ;;  %v779_v63 = vmul.f32 %v1471_v59, %v2105_v51 }
 0x1ba   : > { %v833_v2 = vmax.f32 %v801_v60, 0.0  ;;  %v849_v3 = vmax.f32 %v817_v61, 0.0 }
 0x1bb   : > { %v802_v0 = vadd.f32 %v2107_v57, %v763_v62  ;;  %v818_v1 = vadd.f32 %v2107_v57, %v779_v63 }
 0x1bd   : > { %v834_v4 = vmax.f32 %v802_v0, 0.0  ;;  %v850_v5 = vmax.f32 %v818_v1, 0.0 }
 0x1bf   : > { %v1303_v51 = vpack.c.bf16 %v834_v4, %v833_v2  ;;  %v1343_v6 = vpack.c.bf16 %v850_v5, %v849_v3 }
 0x1c1   : > { %1351 = vst [vmem:[%s2120_s23 + $0x38] sm:$0xff] %v1303_v51   ;;  %1359 = vst [vmem:[%s2120_s23 + $0x78] sm:$0xff] %v1343_v6  }
 0x1c2   : > { %1762 = shalt.err (!%p1759_p4)
}
 0x1c3   : > { %s1763_s5 = scalar_lea.hbm %s2195_s20, 2048  ;;  %s1767_s25 = scalar_lea.hbm %s2247_s4, 4096 }
 0x1c4   : > { %p1764_p9 = scmp.ne.s32.totalorder %s2195_s20, %s1763_s5  ;;  %p1768_p8 = scmp.lt.u32.totalorder %s2195_s20, %s2247_s4 }
 0x1c5   : > { %p1769_p13 = scmp.lt.u32.totalorder %s1767_s25, %s1763_s5  ;;  %p1771_p10 = scmp.lt.u32.totalorder %s1763_s5, %s2195_s20 }
 0x1c6   : > { %p1765_p0 = pnand %p1764_p9, %p2007_p5 }
 0x1c7   : > { %p1770_p6 = por %p1769_p13, %p1768_p8 }
 0x1c8   : > { %p1766_p11 = pneg %p1765_p0 }
 0x1c9   : > { %p1772_p3 = por %p1771_p10, %p1770_p6 }
 0x1cb   : > { %p1773_p7 = pnand %p1772_p3, %p1766_p11 }
 0x1cd   : > { %1776 = shalt.err (!%p1773_p7)
}
 0x1ce   : > { %s1834_s23 = smov 64   ;;  %s1835_s29 = smov 4  }
 0x1cf   : > { %1502 = dma.vmem_to_hbm [thread:$0]  (%p2007_p5), %s2197_s6, 2048, %s2195_s20, %s1012_s19, %s1834_s23, %s1834_s23, %s1835_s29  }
 0x1d0 PF: > { %s1040_s7 = sand.u32 1, %s1811_s15   ;;  %p2265_p12 = scmp.ne.s32.totalorder %s2252_s22, 0 }
 0x1d1   : > { %p2266_p2 = scmp.ge.s32.totalorder %s1823_s18, 2  ;;  %s1041_s8 = scalar_lea.sflag [#allocation4], %s1040_s7 }
 0x1d3   : > { %p1519_p1 = pnand %p2266_p2, %p2265_p12 }
 0x1d5   : > { %1806 = dma.done.wait (!%p1519_p1), %s1041_s8, 2048  }
 0x1d6   : > { %1808 = vsyncadd (!%p1519_p1), %s1041_s8, 4294965248  ;;  %p19_p4 = scmp.ge.s32.totalorder %s1993_s10, 4   ;;  %s2267_s15 = smov %s1815_s16 }
 0x1d7   : > { %s2268_s16 = smov %s1819_s17  ;;  %s2269_s17 = smov %s2003_s12 }
 0x1d8   : > { %s2270_s18 = smov %s1993_s10  ;;  %21 = sbr.rel (!%p19_p4) target bundleno = 7 (0x7), region = 93 }
 0x1df   :  { %1046 = vsyncpa [#allocation3], 1 }
 0x1e0   :  { %1048 = vsyncpa [#allocation3 + $0x1], 1 }
 0x1e1   :  { %1049 = vsyncpa [#allocation6], 1 }
 0x1e2   :  { %1050 = vsyncpa [#allocation9], 1 }
 0x1e3   :  { %1051 = vsyncpa [#allocation4], 1 }
 0x1e4   :  { %1053 = vsyncpa [#allocation4 + $0x1], 1 }

// kernel: densenet_forward.34
= control target key start
LH: loop header
LB: loop body
LE: loop exit
PB: predicated region body
PF: predicated region fallthrough
CT: control target
= control target key end

     0   :  { %8 = vsyncpa [#allocation3], 0  ;;  %s828_s0 = inlined_call_operand.hbm [shape: bf16[16,128], index: 0, kind: input, shape index: {}]   ;;  %s829_s1 = inlined_call_operand.hbm [shape: f32[1,128], index: 1, kind: input, shape index: {}]   ;;  %s830_s2 = inlined_call_operand.hbm [shape: f32[1,128], index: 2, kind: input, shape index: {}]   ;;  %s831_s3 = inlined_call_operand.hbm [shape: bf16[16,128], index: 3, kind: output, shape index: {}]  }
   0x1   :  { %10 = vsyncpa [#allocation3 + $0x1], 0 }
   0x2   :  { %11 = vsyncpa [#allocation6], 0 }
   0x3   :  { %12 = vsyncpa [#allocation4], 0 }
   0x4   :  { %14 = vsyncpa [#allocation4 + $0x1], 0  ;;  %s602_s12 = smov 0   ;;  %s604_s13 = smov 0  }
   0x5   :  { %s606_s14 = smov 0   ;;  %s608_s15 = smov 0  }
   0x6 LB: > { %s623_s16 = sadd.s32 4294967295, %s576_s15   ;;  %s335_s17 = sadd.s32 4294967294, %s576_s15   ;;  %s576_s15 = sphi %s608_s15, %s851_s15   ;;  %s572_s14 = sphi %s606_s14, %s850_s14   ;;  %s568_s13 = sphi %s604_s13, %s849_s13   ;;  %s564_s12 = sphi %s602_s12, %s848_s12  }
   0x7   : > { %p40_p0 = scmp.ne.s32.totalorder %s568_s13, %s564_s12  ;;  %p832_p1 = scmp.eq.s32.totalorder %s623_s16, 0 }
   0x8   : > { %p112_p3 = scmp.eq.s32.totalorder %s335_s17, 1  ;;  %p336_p5 = scmp.ge.s32.totalorder %s576_s15, 1 }
   0x9   : > { %p632_p4 = por %p832_p1, %p40_p0  ;;  %p119_p7 = scmp.lt.s32.totalorder %s576_s15, 3 }
   0xa   : > { %p637_p6 = por %p112_p3, %p40_p0  ;;  %s578_s21 = smov [#allocation5]  }
   0xb   : > { %s835_s18 = scalar_select %p632_p4, 1, 0 }
   0xc   : > { %s836_s19 = scalar_select %p637_p6, 1, 0 }
   0xd   : > { %p642_p8 = pnand %p336_p5, %p119_p7  ;;  %s132_s22 = sshll.u32 %s578_s21, 4  ;;  %s133_s22 = int_to_ptr.vmem [resolvable:$true] %s132_s22 }
   0xe   : > { %s579_s23 = smov [#allocation7]   ;;  %s658_s26 = sadd.s32 1, %s576_s15  }
   0xf   : > { %s837_s20 = scalar_select %p642_p8, 1, 0 }
  0x10   : > { %p365_p10 = pneg %p642_p8  ;;  %s143_s24 = sshll.u32 %s579_s23, 4  ;;  %s655_s24 = int_to_ptr.vmem [resolvable:$true] %s143_s24 }
  0x11   : > { %s24_s27 = ssub.s32 %s576_s15, %s658_s26  ;;  %s420_s30 = scalar_lea.hbm %s829_s1, 16 }
  0x12   : > { %p651_p11 = pnand %p365_p10, %p832_p1  ;;  %p421_p12 = scmp.ne.s32.totalorder %s829_s1, %s420_s30 }
  0x13   : > { %p427_p5 = scmp.lt.u32.totalorder %s420_s30, %s829_s1 }
  0x14   : > { %p422_p13 = pneg %p651_p11 }
  0x16   : > { %p423_p0 = pnand %p422_p13, %p421_p12 }
  0x18   : > { %p424_p3 = pneg %p423_p0 }
  0x1a   : > { %p429_p7 = pnand %p427_p5, %p424_p3 }
  0x1c   : > { %432 = shalt.err (!%p429_p7)
}
  0x1d   : > { %s433_s8 = scalar_lea.vmem %s133_s22, 16  ;;  %s440_s9 = scalar_lea.vmem %s133_s22, 32 }
  0x1e   : > { %p434_p10 = scmp.ne.s32.totalorder %s133_s22, %s433_s8  ;;  %p441_p2 = scmp.lt.s32.totalorder %s133_s22, %s133_s22 }
  0x1f   : > { %p442_p6 = scmp.lt.s32.totalorder %s440_s9, %s433_s8 }
  0x20   : > { %p436_p9 = pnand %p434_p10, %p422_p13 }
  0x21   : > { %p443_p4 = por %p442_p6, %p441_p2 }
  0x22   : > { %p437_p1 = pneg %p436_p9 }
  0x24   : > { %p444_p8 = pnand %p443_p4, %p437_p1 }
  0x26   : > { %447 = shalt.err (!%p444_p8)
}
  0x27   : > { %368 = dma.hbm_to_vmem [thread:$0]  (!%p651_p11), %s829_s1, 16, %s133_s22, [#allocation6]  }
  0x28   : > { %s448_s23 = scalar_lea.hbm %s830_s2, 16 }
  0x29   : > { %p449_p9 = scmp.ne.s32.totalorder %s830_s2, %s448_s23  ;;  %p455_p4 = scmp.lt.u32.totalorder %s448_s23, %s830_s2 }
  0x2b   : > { %p451_p2 = pnand %p449_p9, %p422_p13 }
  0x2d   : > { %p452_p1 = pneg %p451_p2 }
  0x2f   : > { %p457_p6 = pnand %p455_p4, %p452_p1 }
  0x31   : > { %460 = shalt.err (!%p457_p6)
}
  0x32   : > { %s461_s22 = scalar_lea.vmem %s655_s24, 16  ;;  %s468_s5 = scalar_lea.vmem %s655_s24, 32 }
  0x33   : > { %p462_p8 = scmp.ne.s32.totalorder %s655_s24, %s461_s22  ;;  %p469_p3 = scmp.lt.s32.totalorder %s655_s24, %s655_s24 }
  0x34   : > { %p470_p5 = scmp.lt.s32.totalorder %s468_s5, %s461_s22 }
  0x35   : > { %p464_p12 = pnand %p462_p8, %p422_p13 }
  0x36   : > { %p471_p7 = por %p470_p5, %p469_p3 }
  0x37   : > { %p465_p0 = pneg %p464_p12 }
  0x39   : > { %p472_p10 = pnand %p471_p7, %p465_p0 }
  0x3b   : > { %475 = shalt.err (!%p472_p10)
}
  0x3c   : > { %371 = dma.hbm_to_vmem [thread:$0]  (!%p651_p11), %s830_s2, 16, %s655_s24, [#allocation6]  }
  0x3d   : > { %p25_p13 = scmp.eq.s32.totalorder %s24_s27, 0  ;;  %s27_s8 = sadd.s32 1, %s572_s14 }
  0x3e   : > { %p34_p9 = scmp.ne.s32.totalorder %s572_s14, %s568_s13  ;;  %p35_p2 = scmp.eq.s32.totalorder %s576_s15, 0 }
  0x3f   : > { %s718_s25 = scalar_select %p25_p13, %s572_s14, %s27_s8  }
  0x40   : > { %p36_p1 = por %p35_p2, %p34_p9  ;;  %p839_p4 = scmp.eq.s32.totalorder %s623_s16, 1 }
  0x41   : > { %p382_p8 = scmp.lt.s32.totalorder %s576_s15, 2  ;;  %s154_s10 = sand.u32 1, %s572_s14  }
  0x42   : > { %p722_p6 = por %p839_p4, %p34_p9  ;;  %s340_s11 = sshll.u32 %s154_s10, 2 }
  0x43   : > { %s341_s17 = sshll.u32 %s576_s15, 6  ;;  %s158_s27 = scalar_lea.vmem [#allocation2], %s340_s11 }
  0x44   : > { %s732_s24 = scalar_lea.hbm %s828_s0, %s341_s17  ;;  %s165_s28 = sshll.u32 %s158_s27, 4  ;;  %s734_s28 = int_to_ptr.vmem [resolvable:$true] %s165_s28 }
  0x45   : > { %p736_p11 = pnand %p382_p8, %p36_p1  ;;  %s155_s30 = scalar_lea.sflag [#allocation3], %s154_s10 }
  0x46   : > { %s476_s4 = scalar_lea.hbm %s732_s24, 64  ;;  %s481_s6 = scalar_lea.hbm %s828_s0, 128 }
  0x47   : > { %p477_p12 = scmp.ne.s32.totalorder %s732_s24, %s476_s4  ;;  %p478_p0 = pneg %p736_p11 }
  0x48   : > { %p482_p7 = scmp.lt.u32.totalorder %s732_s24, %s828_s0  ;;  %p483_p10 = scmp.lt.u32.totalorder %s481_s6, %s476_s4 }
  0x49   : > { %p479_p3 = pnand %p478_p0, %p477_p12  ;;  %p485_p9 = scmp.lt.u32.totalorder %s476_s4, %s732_s24 }
  0x4a   : > { %p484_p13 = por %p483_p10, %p482_p7 }
  0x4b   : > { %p480_p5 = pneg %p479_p3 }
  0x4c   : > { %p486_p2 = por %p485_p9, %p484_p13 }
  0x4e   : > { %p487_p1 = pnand %p486_p2, %p480_p5 }
  0x50   : > { %490 = shalt.err (!%p487_p1)
}
  0x51   : > { %s491_s10 = scalar_lea.vmem %s734_s28, 64  ;;  %s580_s11 = smov [#allocation2]  }
  0x52   : > { %p492_p4 = scmp.ne.s32.totalorder %s734_s28, %s491_s10  ;;  %s496_s17 = sshll.u32 %s580_s11, 4  ;;  %s497_s17 = int_to_ptr.vmem [resolvable:$false] %s496_s17 }
  0x53   : > { %s498_s21 = scalar_lea.vmem %s497_s17, 128  ;;  %p499_p3 = scmp.lt.s32.totalorder %s734_s28, %s497_s17 }
  0x54   : > { %p494_p8 = pnand %p492_p4, %p478_p0  ;;  %p500_p7 = scmp.lt.s32.totalorder %s498_s21, %s491_s10 }
  0x56   : > { %p495_p12 = pneg %p494_p8  ;;  %p501_p10 = por %p500_p7, %p499_p3 }
  0x58   : > { %p502_p13 = pnand %p501_p10, %p495_p12 }
  0x5a   : > { %505 = shalt.err (!%p502_p13)
}
  0x5b   : > { %375 = dma.hbm_to_vmem [thread:$0]  (!%p736_p11), %s732_s24, 64, %s734_s28, %s155_s30  }
  0x5c   : > { %p842_p5 = scmp.ne.s32.totalorder %s837_s20, 0 }
  0x5d   : > { %s768_s23 = sand.u32 (!%p842_p5), 1, %s568_s13   ;;  %p843_p0 = scmp.ne.s32.totalorder (!%p842_p5), %s835_s18, 0 }
  0x5e   : > { %174 = sbr.rel (%p842_p5) target bundleno = 131 (0x83), region = 32  ;;  %s343_s27 = sshll.u32 (!%p842_p5), %s768_s23, 2 }
  0x5f   : > { %s177_s4 = scalar_lea.sflag (!%p842_p5), [#allocation3], %s768_s23  ;;  %s180_s22 = scalar_lea.vmem (!%p842_p5), [#allocation2], %s343_s27 }
  0x65   : > { %551 = dma.done.wait (%p843_p0), %s177_s4, 64  }
  0x66   : > { %553 = vsyncadd (%p843_p0), %s177_s4, 4294967232  ;;  %p844_p9 = scmp.eq.s32.totalorder %s623_s16, 0 }
  0x68   : > { %555 = dma.done.wait (%p844_p9), [#allocation6], 32   ;;  %p845_p11 = pmov %p844_p9 }
  0x69   : > { %v211_v0 = vld [vmem:[%s180_s22] sm:$0xf]  ;;  %v347_v1 = vld [vmem:[#allocation5] ss:$0 sm:$0xff]  ;;  %v348_v3 = vld [vmem:[#allocation7] ss:$0 sm:$0xff] }
  0x6a   : > { %557 = vsyncadd (%p845_p11), [#allocation6], 4294967264  ;;  %v212_v2 = vunpack.c.l.bf16 %v211_v0  ;;  %s210_s20 = scalar_lea.vmem [#allocation8], %s343_s27  ;;  %s350_s28 = sshll.u32 %s623_s16, 6 }
  0x6b   : > { %s246_s24 = sshll.u32 %s210_s20, 4  ;;  %s786_s30 = scalar_lea.hbm %s831_s3, %s350_s28  ;;  %s781_s24 = int_to_ptr.vmem [resolvable:$true] %s246_s24 }
  0x6c   : > { %v220_v4 = vmul.f32 %v347_v1, %v212_v2  ;;  %s233_s5 = scalar_lea.sflag [#allocation4], %s768_s23  ;;  %s506_s6 = scalar_lea.vmem %s781_s24, 64 }
  0x6d   : > { %p507_p2 = scmp.ne.s32.totalorder %s781_s24, %s506_s6  ;;  %s581_s16 = smov [#allocation8]  }
  0x6e   : > { %v228_v5 = vadd.f32 %v348_v3, %v220_v4  ;;  %s510_s7 = sshll.u32 %s581_s16, 4  ;;  %s511_s7 = int_to_ptr.vmem [resolvable:$false] %s510_s7 }
  0x6f   : > { %p508_p1 = pnand %p507_p2, %p722_p6  ;;  %s512_s8 = scalar_lea.vmem %s511_s7, 128 }
  0x70   : > { %v229_v6 = vmax.f32 %v228_v5, 0.0  ;;  %p513_p8 = scmp.lt.s32.totalorder %s781_s24, %s511_s7  ;;  %p514_p12 = scmp.lt.s32.totalorder %s512_s8, %s506_s6 }
  0x71   : > { %p509_p4 = pneg %p508_p1 }
  0x72   : > { %v230_v7 = vpack.c.bf16 %v229_v6, %v229_v6  ;;  %p515_p3 = por %p514_p12, %p513_p8 }
  0x74   : > { %231 = vst [vmem:[%s210_s20] sm:$0xf] %v230_v7  ;;  %p516_p7 = pnand %p515_p3, %p509_p4 }
  0x76   : > { %519 = shalt.err (!%p516_p7)
}
  0x77   : > { %s520_s10 = scalar_lea.hbm %s786_s30, 64  ;;  %s524_s21 = scalar_lea.hbm %s831_s3, 128 }
  0x78   : > { %p521_p10 = scmp.ne.s32.totalorder %s786_s30, %s520_s10  ;;  %p525_p0 = scmp.lt.u32.totalorder %s786_s30, %s831_s3 }
  0x79   : > { %p526_p9 = scmp.lt.u32.totalorder %s524_s21, %s520_s10  ;;  %p528_p2 = scmp.lt.u32.totalorder %s520_s10, %s786_s30 }
  0x7a   : > { %p522_p13 = pnand %p521_p10, %p722_p6 }
  0x7b   : > { %p527_p11 = por %p526_p9, %p525_p0 }
  0x7c   : > { %p523_p5 = pneg %p522_p13 }
  0x7d   : > { %p529_p1 = por %p528_p2, %p527_p11 }
  0x7f   : > { %p530_p4 = pnand %p529_p1, %p523_p5 }
  0x81   : > { %533 = shalt.err (!%p530_p4)
}
  0x82   : > { %363 = dma.vmem_to_hbm [thread:$0]  (%p722_p6), %s781_s24, 64, %s786_s30, %s233_s5  }
  0x83 PF: > { %s258_s4 = sand.u32 1, %s564_s12   ;;  %p846_p8 = scmp.ne.s32.totalorder %s836_s19, 0 }
  0x84   : > { %p847_p12 = scmp.ge.s32.totalorder %s576_s15, 2  ;;  %s259_s22 = scalar_lea.sflag [#allocation4], %s258_s4 }
  0x86   : > { %p377_p3 = pnand %p847_p12, %p846_p8 }
  0x88   : > { %559 = dma.done.wait (!%p377_p3), %s259_s22, 64  }
  0x89   : > { %561 = vsyncadd (!%p377_p3), %s259_s22, 4294967232  ;;  %p17_p7 = scmp.ge.s32.totalorder %s658_s26, 4   ;;  %s848_s12 = smov %s568_s13 }
  0x8a   : > { %s849_s13 = smov %s572_s14  ;;  %s850_s14 = smov %s718_s25 }
  0x8b   : > { %s851_s15 = smov %s658_s26  ;;  %19 = sbr.rel (!%p17_p7) target bundleno = 6 (0x6), region = 85 }
  0x92   :  { %264 = vsyncpa [#allocation3], 1 }
  0x93   :  { %266 = vsyncpa [#allocation3 + $0x1], 1 }
  0x94   :  { %267 = vsyncpa [#allocation6], 1 }
  0x95   :  { %268 = vsyncpa [#allocation4], 1 }
  0x96   :  { %270 = vsyncpa [#allocation4 + $0x1], 1 }

// kernel: densenet_forward.35
= control target key start
LH: loop header
LB: loop body
LE: loop exit
PB: predicated region body
PF: predicated region fallthrough
CT: control target
= control target key end

     0   :  { %9 = vsyncpa [#allocation3], 0  ;;  %s1334_s0 = inlined_call_operand.hbm [shape: bf16[128,128], index: 0, kind: input, shape index: {}]   ;;  %s1335_s1 = inlined_call_operand.hbm [shape: bf16[128,128], index: 1, kind: input, shape index: {}]   ;;  %s1336_s2 = inlined_call_operand.hbm [shape: f32[1,128], index: 2, kind: input, shape index: {}]   ;;  %s1337_s3 = inlined_call_operand.hbm [shape: f32[1,128], index: 3, kind: input, shape index: {}]   ;;  %s1338_s4 = inlined_call_operand.hbm [shape: bf16[128,128], index: 4, kind: output, shape index: {}]  }
   0x1   :  { %11 = vsyncpa [#allocation3 + $0x1], 0 }
   0x2   :  { %12 = vsyncpa [#allocation6], 0 }
   0x3   :  { %13 = vsyncpa [#allocation9], 0 }
   0x4   :  { %14 = vsyncpa [#allocation4], 0 }
   0x5   :  { %16 = vsyncpa [#allocation4 + $0x1], 0  ;;  %s1058_s15 = smov 0   ;;  %s1060_s16 = smov 0  }
   0x6   :  { %s1062_s17 = smov 0   ;;  %s1064_s18 = smov 0  }
   0x7 LB: > { %s1079_s19 = sadd.s32 4294967295, %s1022_s18   ;;  %s614_s20 = sadd.s32 4294967294, %s1022_s18   ;;  %s1022_s18 = sphi %s1064_s18, %s1361_s18   ;;  %s1018_s17 = sphi %s1062_s17, %s1360_s17   ;;  %s1014_s16 = sphi %s1060_s16, %s1359_s16   ;;  %s1010_s15 = sphi %s1058_s15, %s1358_s15  }
   0x8   : > { %p42_p0 = scmp.ne.s32.totalorder %s1014_s16, %s1010_s15  ;;  %p1339_p1 = scmp.eq.s32.totalorder %s1079_s19, 0 }
   0x9   : > { %p135_p3 = scmp.eq.s32.totalorder %s614_s20, 1  ;;  %p615_p5 = scmp.ge.s32.totalorder %s1022_s18, 1 }
   0xa   : > { %p1088_p4 = por %p1339_p1, %p42_p0  ;;  %p142_p7 = scmp.lt.s32.totalorder %s1022_s18, 3 }
   0xb   : > { %p1093_p6 = por %p135_p3, %p42_p0  ;;  %s1024_s24 = smov [#allocation5]  }
   0xc   : > { %s1342_s21 = scalar_select %p1088_p4, 1, 0 }
   0xd   : > { %s1343_s22 = scalar_select %p1093_p6, 1, 0 }
   0xe   : > { %p1098_p8 = pnand %p615_p5, %p142_p7  ;;  %s154_s25 = sshll.u32 %s1024_s24, 4  ;;  %s1102_s25 = int_to_ptr.vmem [resolvable:$true] %s154_s25 }
   0xf   : > { %s1025_s27 = smov [#allocation7]   ;;  %s1026_s29 = smov [#allocation8]  }
  0x10   : > { %s1344_s23 = scalar_select %p1098_p8, 1, 0 }
  0x11   : > { %p757_p9 = pneg %p1098_p8  ;;  %s168_s28 = sshll.u32 %s1025_s27, 4  ;;  %s1113_s28 = int_to_ptr.vmem [resolvable:$true] %s168_s28 }
  0x12   : > { %s1115_s30 = sshll.u32 %s1026_s29, 4  ;;  %s834_s7 = scalar_lea.hbm %s1335_s1, 1024  ;;  %s180_s30 = int_to_ptr.vmem [resolvable:$true] %s1115_s30 }
  0x13   : > { %p1109_p11 = pnand %p757_p9, %p1339_p1  ;;  %p835_p12 = scmp.ne.s32.totalorder %s1335_s1, %s834_s7 }
  0x14   : > { %p841_p5 = scmp.lt.u32.totalorder %s834_s7, %s1335_s1 }
  0x15   : > { %p1125_p13 = pneg %p1109_p11 }
  0x17   : > { %p837_p0 = pnand %p1125_p13, %p835_p12 }
  0x19   : > { %p838_p3 = pneg %p837_p0 }
  0x1b   : > { %p843_p7 = pnand %p841_p5, %p838_p3 }
  0x1d   : > { %846 = shalt.err (!%p843_p7)
}
  0x1e   : > { %s847_s13 = scalar_lea.vmem %s1102_s25, 1024  ;;  %p855_p2 = scmp.lt.s32.totalorder %s1102_s25, %s1102_s25 }
  0x1f   : > { %p848_p9 = scmp.ne.s32.totalorder %s1102_s25, %s847_s13  ;;  %p856_p6 = scmp.lt.s32.totalorder %s847_s13, %s847_s13 }
  0x21   : > { %p850_p10 = pnand %p848_p9, %p1125_p13  ;;  %p857_p12 = por %p856_p6, %p855_p2 }
  0x23   : > { %p851_p1 = pneg %p850_p10 }
  0x25   : > { %p858_p0 = pnand %p857_p12, %p851_p1 }
  0x27   : > { %861 = shalt.err (!%p858_p0)
}
  0x28   : > { %s1027_s14 = smov 64   ;;  %s1028_s20 = smov 4  }
  0x29   : > { %760 = dma.hbm_to_vmem [thread:$0]  (!%p1109_p11), %s1335_s1, 1024, %s1102_s25, [#allocation6], %s1027_s14, %s1027_s14, %s1028_s20  }
  0x2a   : > { %s862_s6 = scalar_lea.hbm %s1336_s2, 16 }
  0x2b   : > { %p863_p1 = scmp.ne.s32.totalorder %s1336_s2, %s862_s6  ;;  %p869_p10 = scmp.lt.u32.totalorder %s862_s6, %s1336_s2 }
  0x2d   : > { %p865_p2 = pnand %p863_p1, %p1125_p13 }
  0x2f   : > { %p866_p6 = pneg %p865_p2 }
  0x31   : > { %p871_p3 = pnand %p869_p10, %p866_p6 }
  0x33   : > { %874 = shalt.err (!%p871_p3)
}
  0x34   : > { %s875_s25 = scalar_lea.vmem %s1113_s28, 16  ;;  %s882_s12 = scalar_lea.vmem %s1113_s28, 32 }
  0x35   : > { %p876_p5 = scmp.ne.s32.totalorder %s1113_s28, %s875_s25  ;;  %p883_p12 = scmp.lt.s32.totalorder %s1113_s28, %s1113_s28 }
  0x36   : > { %p884_p0 = scmp.lt.s32.totalorder %s882_s12, %s875_s25 }
  0x37   : > { %p878_p7 = pnand %p876_p5, %p1125_p13 }
  0x38   : > { %p885_p1 = por %p884_p0, %p883_p12 }
  0x39   : > { %p879_p9 = pneg %p878_p7 }
  0x3b   : > { %p886_p2 = pnand %p885_p1, %p879_p9 }
  0x3d   : > { %889 = shalt.err (!%p886_p2)
}
  0x3e   : > { %763 = dma.hbm_to_vmem [thread:$0]  (!%p1109_p11), %s1336_s2, 16, %s1113_s28, [#allocation6]  }
  0x3f   : > { %s890_s5 = scalar_lea.hbm %s1337_s3, 16 }
  0x40   : > { %p891_p6 = scmp.ne.s32.totalorder %s1337_s3, %s890_s5  ;;  %p897_p5 = scmp.lt.u32.totalorder %s890_s5, %s1337_s3 }
  0x42   : > { %p893_p10 = pnand %p891_p6, %p1125_p13 }
  0x44   : > { %p894_p3 = pneg %p893_p10 }
  0x46   : > { %p899_p7 = pnand %p897_p5, %p894_p3 }
  0x48   : > { %902 = shalt.err (!%p899_p7)
}
  0x49   : > { %s903_s11 = scalar_lea.vmem %s180_s30, 16  ;;  %s910_s28 = scalar_lea.vmem %s180_s30, 32 }
  0x4a   : > { %p904_p9 = scmp.ne.s32.totalorder %s180_s30, %s903_s11  ;;  %p911_p1 = scmp.lt.s32.totalorder %s180_s30, %s180_s30 }
  0x4b   : > { %p912_p2 = scmp.lt.s32.totalorder %s910_s28, %s903_s11 }
  0x4c   : > { %p906_p12 = pnand %p904_p9, %p1125_p13 }
  0x4d   : > { %p913_p4 = por %p912_p2, %p911_p1 }
  0x4e   : > { %p907_p0 = pneg %p906_p12 }
  0x50   : > { %p914_p8 = pnand %p913_p4, %p907_p0 }
  0x52   : > { %917 = shalt.err (!%p914_p8)
}
  0x53   : > { %766 = dma.hbm_to_vmem [thread:$0]  (!%p1109_p11), %s1337_s3, 16, %s180_s30, [#allocation9]  }
  0x54   : > { %s1193_s10 = sadd.s32 1, %s1022_s18   ;;  %s29_s26 = sadd.s32 1, %s1018_s17 }
  0x55   : > { %s26_s13 = ssub.s32 %s1022_s18, %s1193_s10  ;;  %p36_p8 = scmp.ne.s32.totalorder %s1018_s17, %s1014_s16 }
  0x56   : > { %p27_p4 = scmp.eq.s32.totalorder %s26_s13, 0  ;;  %p37_p13 = scmp.eq.s32.totalorder %s1022_s18, 0 }
  0x57   : > { %p778_p6 = scmp.lt.s32.totalorder %s1022_s18, 2  ;;  %p1347_p3 = scmp.eq.s32.totalorder %s1079_s19, 1 }
  0x58   : > { %s1203_s24 = scalar_select %p27_p4, %s1018_s17, %s29_s26  }
  0x59   : > { %p38_p10 = por %p37_p13, %p36_p8  ;;  %p1207_p5 = por %p1347_p3, %p36_p8 }
  0x5a   : > { %s190_s29 = sand.u32 1, %s1018_s17   ;;  %s656_s5 = sshll.u32 %s1022_s18, 9 }
  0x5b   : > { %s620_s30 = sshll.u32 %s190_s29, 5  ;;  %s1216_s8 = scalar_lea.hbm %s1334_s0, %s656_s5 }
  0x5c   : > { %s194_s9 = scalar_lea.vmem [#allocation2], %s620_s30  ;;  %p1218_p11 = pnand %p778_p6, %p38_p10 }
  0x5d   : > { %s201_s11 = sshll.u32 %s194_s9, 4  ;;  %s1224_s25 = scalar_lea.sflag [#allocation3], %s190_s29  ;;  %s1222_s11 = int_to_ptr.vmem [resolvable:$true] %s201_s11 }
  0x5e   : > { %s918_s12 = scalar_lea.hbm %s1216_s8, 512  ;;  %p920_p9 = pneg %p1218_p11 }
  0x5f   : > { %p919_p7 = scmp.ne.s32.totalorder %s1216_s8, %s918_s12  ;;  %s923_s5 = scalar_lea.hbm %s1334_s0, 1024 }
  0x60   : > { %p924_p1 = scmp.lt.u32.totalorder %s1216_s8, %s1334_s0  ;;  %p925_p2 = scmp.lt.u32.totalorder %s923_s5, %s918_s12 }
  0x61   : > { %p921_p12 = pnand %p920_p9, %p919_p7  ;;  %p927_p8 = scmp.lt.u32.totalorder %s918_s12, %s1216_s8 }
  0x62   : > { %p926_p4 = por %p925_p2, %p924_p1 }
  0x63   : > { %p922_p0 = pneg %p921_p12 }
  0x64   : > { %p928_p13 = por %p927_p8, %p926_p4 }
  0x66   : > { %p929_p6 = pnand %p928_p13, %p922_p0 }
  0x68   : > { %932 = shalt.err (!%p929_p6)
}
  0x69   : > { %s933_s29 = scalar_lea.vmem %s1222_s11, 512  ;;  %s1029_s7 = smov [#allocation2]  }
  0x6a   : > { %p934_p10 = scmp.ne.s32.totalorder %s1222_s11, %s933_s29  ;;  %s938_s9 = sshll.u32 %s1029_s7, 4  ;;  %s939_s9 = int_to_ptr.vmem [resolvable:$false] %s938_s9 }
  0x6b   : > { %s940_s13 = scalar_lea.vmem %s939_s9, 1024  ;;  %p941_p12 = scmp.lt.s32.totalorder %s1222_s11, %s939_s9 }
  0x6c   : > { %p936_p3 = pnand %p934_p10, %p920_p9  ;;  %p942_p1 = scmp.lt.s32.totalorder %s940_s13, %s933_s29 }
  0x6e   : > { %p937_p7 = pneg %p936_p3  ;;  %p943_p2 = por %p942_p1, %p941_p12 }
  0x70   : > { %p944_p4 = pnand %p943_p2, %p937_p7 }
  0x72   : > { %947 = shalt.err (!%p944_p4)
}
  0x73   : > { %770 = dma.hbm_to_vmem [thread:$0]  (!%p1218_p11), %s1216_s8, 512, %s1222_s11, %s1224_s25, %s1027_s14, %s1027_s14, %s1028_s20  }
  0x74   : > { %p1350_p9 = scmp.ne.s32.totalorder %s1344_s23, 0 }
  0x75   : > { %s1258_s12 = sand.u32 (!%p1350_p9), 1, %s1014_s16   ;;  %p1351_p0 = scmp.ne.s32.totalorder (!%p1350_p9), %s1342_s21, 0 }
  0x76   : > { %213 = sbr.rel (%p1350_p9) target bundleno = 404 (0x194), region = 36  ;;  %s624_s26 = sshll.u32 (!%p1350_p9), %s1258_s12, 5 }
  0x77   : > { %s216_s5 = scalar_lea.sflag (!%p1350_p9), [#allocation3], %s1258_s12  ;;  %s1264_s28 = scalar_lea.vmem (!%p1350_p9), [#allocation2], %s624_s26 }
  0x7d   : > { %993 = dma.done.wait (%p1351_p0), %s216_s5, 512  }
  0x7e   : > { %995 = vsyncadd (%p1351_p0), %s216_s5, 4294966784  ;;  %p1352_p11 = scmp.eq.s32.totalorder %s1079_s19, 0 }
  0x80   : > { %997 = dma.done.wait (%p1352_p11), [#allocation6], 1040   ;;  %p1353_p8 = pmov %p1352_p11 }
  0x82   : > { %999 = vsyncadd (%p1353_p8), [#allocation6], 4294966256  ;;  %p1354_p13 = pmov %p1353_p8 }
  0x83   : > { %p1355_p6 = pmov %p1353_p8 }
  0x84   : > { %1001 = dma.done.wait (%p1354_p13), [#allocation9], 16  }
  0x85   : > { %1003 = vsyncadd (%p1355_p6), [#allocation9], 4294967280  ;;  %v822_v0 = vld [vmem:[#allocation5] sm:$0xff]   ;;  %v823_v1 = vld [vmem:[#allocation5 + $0x8] sm:$0xff]   ;;  %s255_s21 = scalar_lea.vmem [#allocation10], %s624_s26  ;;  %s665_s14 = sshll.u32 %s1079_s19, 9 }
  0x86   : > { %701 = vmatprep.subr.bf16.mxu0 %v822_v0  ;;  %725 = vmatprep.subr.bf16.mxu1 %v822_v0  ;;  %v824_v2 = vld [vmem:[#allocation5 + $0x10] sm:$0xff]   ;;  %v825_v3 = vld [vmem:[#allocation5 + $0x18] sm:$0xff]   ;;  %v830_v4 = vld [vmem:[%s1264_s28] sm:$0xff]   ;;  %s512_s23 = sshll.u32 %s255_s21, 4  ;;  %s1290_s19 = scalar_lea.hbm %s1338_s4, %s665_s14  ;;  %s1285_s23 = int_to_ptr.vmem [resolvable:$true] %s512_s23 }
  0x87   : > { %702 = vmatpush3.bf16.msra.mxu0 %v822_v0  ;;  %733 = vmatpush3.bf16.msra.mxu1 %v822_v0  ;;  %v831_v5 = vld [vmem:[%s1264_s28 + $0x10] sm:$0xff]   ;;  %v826_v6 = vld [vmem:[#allocation5 + $0x20] sm:$0xff]   ;;  %v827_v7 = vld [vmem:[#allocation5 + $0x28] sm:$0xff]   ;;  %s499_s11 = scalar_lea.sflag [#allocation4], %s1258_s12  ;;  %s948_s25 = scalar_lea.vmem %s1285_s23, 512 }
  0x88   : > { %703 = vmatprep.subr.bf16.mxu0 %v823_v1  ;;  %726 = vmatprep.subr.bf16.mxu1 %v823_v1  ;;  %v828_v8 = vld [vmem:[#allocation5 + $0x30] sm:$0xff]   ;;  %v829_v9 = vld [vmem:[#allocation5 + $0x38] sm:$0xff]   ;;  %v832_v10 = vld [vmem:[%s1264_s28 + $0x8] sm:$0xff]   ;;  %p949_p10 = scmp.ne.s32.totalorder %s1285_s23, %s948_s25  ;;  %s1030_s30 = smov [#allocation10]  }
  0x89   : > { %717 = vmatprep.mubr.bf16.mxu0 %v830_v4  ;;  %721 = vmatprep.mubr.bf16.mxu1 %v831_v5  ;;  %v833_v11 = vld [vmem:[%s1264_s28 + $0x18] sm:$0xff]   ;;  %v641_v12 = vld [vmem:[#allocation7] ss:$0 sm:$0xff]  ;;  %v642_v14 = vld [vmem:[#allocation8] ss:$0 sm:$0xff]  ;;  %s952_s6 = sshll.u32 %s1030_s30, 4  ;;  %s953_s6 = int_to_ptr.vmem [resolvable:$false] %s952_s6 }
  0x8a   : > { %p950_p3 = pnand %p949_p10, %p1207_p5  ;;  %s954_s29 = scalar_lea.vmem %s953_s6, 1024 }
  0x8b   : > { %704 = vmatpush3.bf16.msra.mxu0 %v823_v1  ;;  %734 = vmatpush3.bf16.msra.mxu1 %v823_v1  ;;  %p955_p12 = scmp.lt.s32.totalorder %s1285_s23, %s953_s6  ;;  %p956_p1 = scmp.lt.s32.totalorder %s954_s29, %s948_s25 }
  0x8c   : > { %705 = vmatprep.subr.bf16.mxu0 %v824_v2  ;;  %727 = vmatprep.subr.bf16.mxu1 %v824_v2  ;;  %p951_p7 = pneg %p950_p3 }
  0x8d   : > { %p957_p2 = por %p956_p1, %p955_p12 }
  0x8f   : > { %706 = vmatpush3.bf16.msra.mxu0 %v824_v2  ;;  %735 = vmatpush3.bf16.msra.mxu1 %v824_v2  ;;  %p958_p4 = pnand %p957_p2, %p951_p7 }
  0x90   : > { %707 = vmatprep.subr.bf16.mxu0 %v825_v3  ;;  %728 = vmatprep.subr.bf16.mxu1 %v825_v3 }
  0x93   : > { %708 = vmatpush3.bf16.msra.mxu0 %v825_v3  ;;  %736 = vmatpush3.bf16.msra.mxu1 %v825_v3 }
  0x94   : > { %709 = vmatprep.subr.bf16.mxu0 %v826_v6  ;;  %729 = vmatprep.subr.bf16.mxu1 %v826_v6 }
  0x97   : > { %710 = vmatpush3.bf16.msra.mxu0 %v826_v6  ;;  %737 = vmatpush3.bf16.msra.mxu1 %v826_v6 }
  0x98   : > { %711 = vmatprep.subr.bf16.mxu0 %v827_v7  ;;  %730 = vmatprep.subr.bf16.mxu1 %v827_v7 }
  0x9b   : > { %712 = vmatpush3.bf16.msra.mxu0 %v827_v7  ;;  %738 = vmatpush3.bf16.msra.mxu1 %v827_v7 }
  0x9c   : > { %713 = vmatprep.subr.bf16.mxu0 %v828_v8  ;;  %731 = vmatprep.subr.bf16.mxu1 %v828_v8 }
  0x9f   : > { %714 = vmatpush3.bf16.msra.mxu0 %v828_v8  ;;  %739 = vmatpush3.bf16.msra.mxu1 %v828_v8 }
  0xa0   : > { %715 = vmatprep.subr.bf16.mxu0 %v829_v9  ;;  %732 = vmatprep.subr.bf16.mxu1 %v829_v9 }
  0xa3   : > { %716 = vmatpush3.bf16.msra.mxu0 %v829_v9  ;;  %740 = vmatpush3.bf16.msra.mxu1 %v829_v9 }
  0xa6   : > { %718 = vmatmul.mubr.bf16.vlgmr.msra.gmra.mrb[0].mxu0 %v832_v10  ;;  %722 = vmatmul.mubr.bf16.vlgmr.msra.gmra.mrb[0].mxu1 %v833_v11 }
 0x179   : > { %v719_v13 = vpop.f32.mrb[0].mxu0  ;;  %v723_v15 = vpop.f32.mrb[0].mxu1 }
 0x17a   : > { %v429_v16 = vmul.f32 %v719_v13, %v641_v12  ;;  %v433_v17 = vmul.f32 %v723_v15, %v641_v12  ;;  %v389_v18 = vpop.f32.mrb[1].mxu0  ;;  %v405_v19 = vpop.f32.mrb[1].mxu1 }
 0x17b   : > { %v427_v20 = vmul.f32 %v641_v12, %v389_v18  ;;  %v431_v21 = vmul.f32 %v641_v12, %v405_v19  ;;  %v720_v22 = vpop.f32.mrb[2].mxu0  ;;  %v724_v23 = vpop.f32.mrb[2].mxu1 }
 0x17c   : > { %v444_v24 = vadd.f32 %v642_v14, %v429_v16  ;;  %v448_v25 = vadd.f32 %v642_v14, %v433_v17  ;;  %v430_v26 = vmul.f32 %v720_v22, %v641_v12  ;;  %v434_v27 = vmul.f32 %v724_v23, %v641_v12  ;;  %v392_v28 = vpop.f32.mrb[3].mxu0  ;;  %v408_v29 = vpop.f32.mrb[3].mxu1 }
 0x17d   : > { %v442_v30 = vadd.f32 %v642_v14, %v427_v20  ;;  %v446_v31 = vadd.f32 %v642_v14, %v431_v21  ;;  %v428_v32 = vmul.f32 %v641_v12, %v392_v28  ;;  %v432_v33 = vmul.f32 %v641_v12, %v408_v29 }
 0x17e   : > { %v445_v34 = vadd.f32 %v642_v14, %v430_v26  ;;  %v449_v35 = vadd.f32 %v642_v14, %v434_v27  ;;  %v452_v38 = vmax.f32 %v444_v24, 0.0  ;;  %v456_v39 = vmax.f32 %v448_v25, 0.0 }
 0x17f   : > { %v443_v36 = vadd.f32 %v642_v14, %v428_v32  ;;  %v447_v37 = vadd.f32 %v642_v14, %v432_v33  ;;  %v450_v42 = vmax.f32 %v442_v30, 0.0  ;;  %v454_v43 = vmax.f32 %v446_v31, 0.0 }
 0x180   : > { %v453_v40 = vmax.f32 %v445_v34, 0.0  ;;  %v457_v41 = vmax.f32 %v449_v35, 0.0 }
 0x181   : > { %v451_v44 = vmax.f32 %v443_v36, 0.0  ;;  %v455_v45 = vmax.f32 %v447_v37, 0.0 }
 0x182   : > { %v674_v46 = vpack.c.bf16 %v453_v40, %v452_v38  ;;  %v684_v47 = vpack.c.bf16 %v457_v41, %v456_v39 }
 0x183   : > { %v669_v48 = vpack.c.bf16 %v451_v44, %v450_v42  ;;  %v679_v49 = vpack.c.bf16 %v455_v45, %v454_v43 }
 0x184   : > { %686 = vst [vmem:[%s255_s21 + $0x8] sm:$0xff] %v674_v46   ;;  %688 = vst [vmem:[%s255_s21 + $0x18] sm:$0xff] %v684_v47  }
 0x185   : > { %670 = vst [vmem:[%s255_s21] sm:$0xff] %v669_v48   ;;  %687 = vst [vmem:[%s255_s21 + $0x10] sm:$0xff] %v679_v49  }
 0x186   : > { %961 = shalt.err (!%p958_p4)
}
 0x187   : > { %s962_s7 = scalar_lea.hbm %s1290_s19, 512  ;;  %s966_s26 = scalar_lea.hbm %s1338_s4, 1024 }
 0x188   : > { %p963_p9 = scmp.ne.s32.totalorder %s1290_s19, %s962_s7  ;;  %p967_p8 = scmp.lt.u32.totalorder %s1290_s19, %s1338_s4 }
 0x189   : > { %p968_p13 = scmp.lt.u32.totalorder %s966_s26, %s962_s7  ;;  %p970_p10 = scmp.lt.u32.totalorder %s962_s7, %s1290_s19 }
 0x18a   : > { %p964_p0 = pnand %p963_p9, %p1207_p5 }
 0x18b   : > { %p969_p6 = por %p968_p13, %p967_p8 }
 0x18c   : > { %p965_p11 = pneg %p964_p0 }
 0x18d   : > { %p971_p3 = por %p970_p10, %p969_p6 }
 0x18f   : > { %p972_p7 = pnand %p971_p3, %p965_p11 }
 0x191   : > { %975 = shalt.err (!%p972_p7)
}
 0x192   : > { %s1031_s21 = smov 64   ;;  %s1032_s14 = smov 4  }
 0x193   : > { %755 = dma.vmem_to_hbm [thread:$0]  (%p1207_p5), %s1285_s23, 512, %s1290_s19, %s499_s11, %s1031_s21, %s1031_s21, %s1032_s14  }
 0x194 PF: > { %s527_s20 = sand.u32 1, %s1010_s15   ;;  %p1356_p12 = scmp.ne.s32.totalorder %s1343_s22, 0 }
 0x195   : > { %p1357_p1 = scmp.ge.s32.totalorder %s1022_s18, 2  ;;  %s528_s8 = scalar_lea.sflag [#allocation4], %s527_s20 }
 0x197   : > { %p772_p2 = pnand %p1357_p1, %p1356_p12 }
 0x199   : > { %1005 = dma.done.wait (!%p772_p2), %s528_s8, 512  }
 0x19a   : > { %1007 = vsyncadd (!%p772_p2), %s528_s8, 4294966784  ;;  %p19_p4 = scmp.ge.s32.totalorder %s1193_s10, 4   ;;  %s1358_s15 = smov %s1014_s16 }
 0x19b   : > { %s1359_s16 = smov %s1018_s17  ;;  %s1360_s17 = smov %s1203_s24 }
 0x19c   : > { %s1361_s18 = smov %s1193_s10  ;;  %21 = sbr.rel (!%p19_p4) target bundleno = 7 (0x7), region = 93 }
 0x1a3   :  { %533 = vsyncpa [#allocation3], 1 }
 0x1a4   :  { %535 = vsyncpa [#allocation3 + $0x1], 1 }
 0x1a5   :  { %536 = vsyncpa [#allocation6], 1 }
 0x1a6   :  { %537 = vsyncpa [#allocation9], 1 }
 0x1a7   :  { %538 = vsyncpa [#allocation4], 1 }
 0x1a8   :  { %540 = vsyncpa [#allocation4 + $0x1], 1 }

// kernel: tile.109
= control target key start
LH: loop header
LB: loop body
LE: loop exit
PB: predicated region body
PF: predicated region fallthrough
CT: control target
= control target key end

     0   :  { %s22_s0 = inlined_call_operand.vmem [shape: f32[24], index: 0, kind: input, shape index: {}]   ;;  %s23_s1 = inlined_call_operand.vmem [shape: f32[8,24], index: 1, kind: output, shape index: {}]  }
   0x1   :  { %v4_v0 = vld [vmem:[%s22_s0] ss:$0 sm:$0xff] }
   0x2   :  { %5 = vst [vmem:[%s23_s1] sm:$0xff] %v4_v0 }

// kernel: tile.114
= control target key start
LH: loop header
LB: loop body
LE: loop exit
PB: predicated region body
PF: predicated region fallthrough
CT: control target
= control target key end

     0   :  { %vm9_vm0 = vcmask 64512   ;;  %s83_s12 = smov 120   ;;  %s84_s13 = smov 72   ;;  %vm3_vm1 = vcmask 195584   ;;  %vm13_vm2 = vcmask 130048   ;;  %vm16_vm3 = vcmask 1048512   ;;  %s133_s0 = inlined_call_operand.vmem [shape: f32[8,24], index: 0, kind: input, shape index: {}]   ;;  %s134_s1 = inlined_call_operand.vmem [shape: f32[1,192], index: 1, kind: output, shape index: {}]  }
   0x1   :  { %v67_v0 = vld [vmem:[%s133_s0 + $0x5] sm:$0x1]   ;;  %v70_v3 = vld [vmem:[%s133_s0 + $0x3] sm:$0x1]   ;;  %v69_v4 = vld [vmem:[%s133_s0 + $0x4] sm:$0x1]  }
   0x2   :  { %v68_v1 = vld [vmem:[%s133_s0 + $0x5] sm:$0x1]   ;;  %26 = vrot.lane.b32.xlu1 %v70_v3, %s84_s13  ;;  %v71_v5 = vld [vmem:[%s133_s0 + $0x2] sm:$0x1]   ;;  %v2_v6 = vld [vmem:[%s133_s0] sm:$0x1]  }
   0x3   :  { %v10_v2 = vsel %vm9_vm0, %v68_v1, %v67_v0  ;;  %4 = vst.msk [vmem:[#allocation0] sm:$0x1] %vm3_vm1, %v2_v6   ;;  %s85_s20 = smov 96   ;;  %s86_s21 = smov 48   ;;  %v72_v7 = vld [vmem:[%s133_s0 + $0x7] sm:$0x1]  }
   0x4   :  { %11 = vrot.lane.b32.xlu0 %v10_v2, %s83_s12  ;;  %v73_v8 = vld [vmem:[%s133_s0 + $0x1] sm:$0x1]   ;;  %s87_s26 = smov 40   ;;  %s88_s27 = smov 24   ;;  %v74_v9 = vld [vmem:[%s133_s0 + $0x6] sm:$0x1]  }
   0x5   :  { %s89_s0 = smov 16   ;;  %vm22_vm4 = vcmask 982784   ;;  %vm28_vm5 = vcmask 785984   ;;  %vm34_vm6 = vcmask 589184   ;;  %vm40_vm7 = vcmask 523584  }
   0x6   :  { %32 = vrot.lane.b32.xlu1 %v71_v5, %s86_s21  ;;  %vm47_vm8 = vcmask 392384   ;;  %vm53_vm9 = vcmask 326784  }
   0x8   :  { %20 = vrot.lane.b32.xlu0 %v69_v4, %s85_s20 }
   0xa   :  { %45 = vrot.lane.b32.xlu1 %v73_v8, %s88_s27 }
   0xc   :  { %38 = vrot.lane.b32.xlu0 %v72_v7, %s87_s26 }
  0x10   :  { %51 = vrot.lane.b32.xlu0 %v74_v9, %s89_s0 }
  0x74   :  { %v27_v11 = vpop.permute.xlu1 %26  }
  0x76   :  { %v12_v10 = vpop.permute.xlu0 %11  }
  0x77   :  { %15 = vst.msk [vmem:[#allocation0 + $0x8] sm:$0x1] %vm13_vm2, %v12_v10  }
  0x78   :  { %17 = vst.msk [vmem:[#allocation0] sm:$0x1] %vm16_vm3, %v12_v10   ;;  %v33_v13 = vpop.permute.xlu1 %32  }
  0x7a   :  { %v21_v12 = vpop.permute.xlu0 %20  }
  0x7b   :  { %23 = vst.msk [vmem:[#allocation0] sm:$0x1] %vm22_vm4, %v21_v12  }
  0x7c   :  { %29 = vst.msk [vmem:[#allocation0] sm:$0x1] %vm28_vm5, %v27_v11   ;;  %v46_v15 = vpop.permute.xlu1 %45  }
  0x7d   :  { %35 = vst.msk [vmem:[#allocation0] sm:$0x1] %vm34_vm6, %v33_v13  }
  0x7e   :  { %v39_v14 = vpop.permute.xlu0 %38   ;;  %48 = vst.msk [vmem:[#allocation0] sm:$0x1] %vm47_vm8, %v46_v15  }
  0x7f   :  { %42 = vst.msk [vmem:[#allocation0 + $0x8] sm:$0x1] %vm40_vm7, %v39_v14  }
  0x82   :  { %v52_v16 = vpop.permute.xlu0 %51  }
  0x83   :  { %55 = vst.msk [vmem:[#allocation0 + $0x8] sm:$0x1] %vm53_vm9, %v52_v16  }
  0x85   :  { %v59_v17 = vld [vmem:[#allocation0] sm:$0x1] }
  0x86   :  { %61 = vst [vmem:[%s134_s1] sm:$0x1] %v59_v17 }
  0x8a   :  { %v63_v18 = vld [vmem:[#allocation0 + $0x8] sm:$0x1] }
  0x8b   :  { %75 = vst [vmem:[%s134_s1 + $0x1] sm:$0x1] %v63_v18 }

// kernel: densenet_forward.36
= control target key start
LH: loop header
LB: loop body
LE: loop exit
PB: predicated region body
PF: predicated region fallthrough
CT: control target
= control target key end

     0   :  { %9 = vsyncpa [#allocation3], 0  ;;  %s1655_s0 = inlined_call_operand.hbm [shape: bf16[128,384], index: 0, kind: input, shape index: {}]   ;;  %s1656_s1 = inlined_call_operand.hbm [shape: bf16[384,128], index: 1, kind: input, shape index: {}]   ;;  %s1657_s2 = inlined_call_operand.hbm [shape: f32[1,128], index: 2, kind: input, shape index: {}]   ;;  %s1658_s3 = inlined_call_operand.hbm [shape: f32[1,128], index: 3, kind: input, shape index: {}]   ;;  %s1659_s4 = inlined_call_operand.hbm [shape: bf16[128,128], index: 4, kind: output, shape index: {}]  }
   0x1   :  { %11 = vsyncpa [#allocation3 + $0x1], 0 }
   0x2   :  { %12 = vsyncpa [#allocation6], 0 }
   0x3   :  { %13 = vsyncpa [#allocation9], 0 }
   0x4   :  { %14 = vsyncpa [#allocation4], 0 }
   0x5   :  { %16 = vsyncpa [#allocation4 + $0x1], 0  ;;  %s1373_s15 = smov 0   ;;  %s1375_s16 = smov 0  }
   0x6   :  { %s1377_s17 = smov 0   ;;  %s1379_s18 = smov 0  }
   0x7 LB: > { %s1394_s19 = sadd.s32 4294967295, %s1335_s18   ;;  %s848_s20 = sadd.s32 4294967294, %s1335_s18   ;;  %s1335_s18 = sphi %s1379_s18, %s1682_s18   ;;  %s1331_s17 = sphi %s1377_s17, %s1681_s17   ;;  %s1327_s16 = sphi %s1375_s16, %s1680_s16   ;;  %s1323_s15 = sphi %s1373_s15, %s1679_s15  }
   0x8   : > { %p42_p0 = scmp.ne.s32.totalorder %s1327_s16, %s1323_s15  ;;  %p1660_p1 = scmp.eq.s32.totalorder %s1394_s19, 0 }
   0x9   : > { %p135_p3 = scmp.eq.s32.totalorder %s848_s20, 1  ;;  %p849_p5 = scmp.ge.s32.totalorder %s1335_s18, 1 }
   0xa   : > { %p1403_p4 = por %p1660_p1, %p42_p0  ;;  %p142_p7 = scmp.lt.s32.totalorder %s1335_s18, 3 }
   0xb   : > { %p1408_p6 = por %p135_p3, %p42_p0  ;;  %s1337_s24 = smov [#allocation5]  }
   0xc   : > { %s1663_s21 = scalar_select %p1403_p4, 1, 0 }
   0xd   : > { %s1664_s22 = scalar_select %p1408_p6, 1, 0 }
   0xe   : > { %p1413_p8 = pnand %p849_p5, %p142_p7  ;;  %s154_s25 = sshll.u32 %s1337_s24, 4  ;;  %s1417_s25 = int_to_ptr.vmem [resolvable:$true] %s154_s25 }
   0xf   : > { %s1338_s27 = smov [#allocation7]   ;;  %s1339_s29 = smov [#allocation8]  }
  0x10   : > { %s1665_s23 = scalar_select %p1413_p8, 1, 0 }
  0x11   : > { %p1040_p9 = pneg %p1413_p8  ;;  %s168_s28 = sshll.u32 %s1338_s27, 4  ;;  %s1428_s28 = int_to_ptr.vmem [resolvable:$true] %s168_s28 }
  0x12   : > { %s1430_s30 = sshll.u32 %s1339_s29, 4  ;;  %s1147_s7 = scalar_lea.hbm %s1656_s1, 3072  ;;  %s180_s30 = int_to_ptr.vmem [resolvable:$true] %s1430_s30 }
  0x13   : > { %p1424_p11 = pnand %p1040_p9, %p1660_p1  ;;  %p1148_p12 = scmp.ne.s32.totalorder %s1656_s1, %s1147_s7 }
  0x14   : > { %p1154_p5 = scmp.lt.u32.totalorder %s1147_s7, %s1656_s1 }
  0x15   : > { %p1440_p13 = pneg %p1424_p11 }
  0x17   : > { %p1150_p0 = pnand %p1440_p13, %p1148_p12 }
  0x19   : > { %p1151_p3 = pneg %p1150_p0 }
  0x1b   : > { %p1156_p7 = pnand %p1154_p5, %p1151_p3 }
  0x1d   : > { %1159 = shalt.err (!%p1156_p7)
}
  0x1e   : > { %s1160_s13 = scalar_lea.vmem %s1417_s25, 3072  ;;  %p1168_p2 = scmp.lt.s32.totalorder %s1417_s25, %s1417_s25 }
  0x1f   : > { %p1161_p9 = scmp.ne.s32.totalorder %s1417_s25, %s1160_s13  ;;  %p1169_p6 = scmp.lt.s32.totalorder %s1160_s13, %s1160_s13 }
  0x21   : > { %p1163_p10 = pnand %p1161_p9, %p1440_p13  ;;  %p1170_p12 = por %p1169_p6, %p1168_p2 }
  0x23   : > { %p1164_p1 = pneg %p1163_p10 }
  0x25   : > { %p1171_p0 = pnand %p1170_p12, %p1164_p1 }
  0x27   : > { %1174 = shalt.err (!%p1171_p0)
}
  0x28   : > { %s1340_s14 = smov 64   ;;  %s1341_s20 = smov 4  }
  0x29   : > { %1043 = dma.hbm_to_vmem [thread:$0]  (!%p1424_p11), %s1656_s1, 3072, %s1417_s25, [#allocation6], %s1340_s14, %s1340_s14, %s1341_s20  }
  0x2a   : > { %s1175_s6 = scalar_lea.hbm %s1657_s2, 16 }
  0x2b   : > { %p1176_p2 = scmp.ne.s32.totalorder %s1657_s2, %s1175_s6  ;;  %p1182_p10 = scmp.lt.u32.totalorder %s1175_s6, %s1657_s2 }
  0x2d   : > { %p1178_p1 = pnand %p1176_p2, %p1440_p13 }
  0x2f   : > { %p1179_p6 = pneg %p1178_p1 }
  0x31   : > { %p1184_p3 = pnand %p1182_p10, %p1179_p6 }
  0x33   : > { %1187 = shalt.err (!%p1184_p3)
}
  0x34   : > { %s1188_s25 = scalar_lea.vmem %s1428_s28, 16  ;;  %s1195_s12 = scalar_lea.vmem %s1428_s28, 32 }
  0x35   : > { %p1189_p5 = scmp.ne.s32.totalorder %s1428_s28, %s1188_s25  ;;  %p1196_p12 = scmp.lt.s32.totalorder %s1428_s28, %s1428_s28 }
  0x36   : > { %p1197_p0 = scmp.lt.s32.totalorder %s1195_s12, %s1188_s25 }
  0x37   : > { %p1191_p7 = pnand %p1189_p5, %p1440_p13 }
  0x38   : > { %p1198_p2 = por %p1197_p0, %p1196_p12 }
  0x39   : > { %p1192_p9 = pneg %p1191_p7 }
  0x3b   : > { %p1199_p1 = pnand %p1198_p2, %p1192_p9 }
  0x3d   : > { %1202 = shalt.err (!%p1199_p1)
}
  0x3e   : > { %1046 = dma.hbm_to_vmem [thread:$0]  (!%p1424_p11), %s1657_s2, 16, %s1428_s28, [#allocation6]  }
  0x3f   : > { %s1203_s27 = scalar_lea.hbm %s1658_s3, 16 }
  0x40   : > { %p1204_p6 = scmp.ne.s32.totalorder %s1658_s3, %s1203_s27  ;;  %p1210_p5 = scmp.lt.u32.totalorder %s1203_s27, %s1658_s3 }
  0x42   : > { %p1206_p10 = pnand %p1204_p6, %p1440_p13 }
  0x44   : > { %p1207_p3 = pneg %p1206_p10 }
  0x46   : > { %p1212_p7 = pnand %p1210_p5, %p1207_p3 }
  0x48   : > { %1215 = shalt.err (!%p1212_p7)
}
  0x49   : > { %s1216_s8 = scalar_lea.vmem %s180_s30, 16  ;;  %s1223_s28 = scalar_lea.vmem %s180_s30, 32 }
  0x4a   : > { %p1217_p9 = scmp.ne.s32.totalorder %s180_s30, %s1216_s8  ;;  %p1224_p2 = scmp.lt.s32.totalorder %s180_s30, %s180_s30 }
  0x4b   : > { %p1225_p1 = scmp.lt.s32.totalorder %s1223_s28, %s1216_s8 }
  0x4c   : > { %p1219_p12 = pnand %p1217_p9, %p1440_p13 }
  0x4d   : > { %p1226_p4 = por %p1225_p1, %p1224_p2 }
  0x4e   : > { %p1220_p0 = pneg %p1219_p12 }
  0x50   : > { %p1227_p8 = pnand %p1226_p4, %p1220_p0 }
  0x52   : > { %1230 = shalt.err (!%p1227_p8)
}
  0x53   : > { %1049 = dma.hbm_to_vmem [thread:$0]  (!%p1424_p11), %s1658_s3, 16, %s180_s30, [#allocation9]  }
  0x54   : > { %s1505_s10 = sadd.s32 1, %s1335_s18   ;;  %s29_s26 = sadd.s32 1, %s1331_s17 }
  0x55   : > { %s26_s25 = ssub.s32 %s1335_s18, %s1505_s10  ;;  %p36_p8 = scmp.ne.s32.totalorder %s1331_s17, %s1327_s16 }
  0x56   : > { %p27_p4 = scmp.eq.s32.totalorder %s26_s25, 0  ;;  %p37_p13 = scmp.eq.s32.totalorder %s1335_s18, 0 }
  0x57   : > { %p1061_p6 = scmp.lt.s32.totalorder %s1335_s18, 2  ;;  %p1668_p3 = scmp.eq.s32.totalorder %s1394_s19, 1 }
  0x58   : > { %s1515_s12 = scalar_select %p27_p4, %s1331_s17, %s29_s26  }
  0x59   : > { %p38_p10 = por %p37_p13, %p36_p8  ;;  %p1519_p5 = por %p1668_p3, %p36_p8 }
  0x5a   : > { %s190_s14 = sand.u32 1, %s1331_s17   ;;  %s1022_s20 = smul.u32 1536, %s1335_s18 }
  0x5b   : > { %s1021_s30 = smul.u32 96, %s190_s14  ;;  %p1530_p11 = pnand %p1061_p6, %p38_p10 }
  0x5c   : > { %s1528_s29 = scalar_lea.hbm %s1655_s0, %s1022_s20  ;;  %s1536_s8 = scalar_lea.sflag [#allocation3], %s190_s14 }
  0x5d   : > { %s194_s6 = scalar_lea.vmem [#allocation2], %s1021_s30  ;;  %s1231_s28 = scalar_lea.hbm %s1528_s29, 1536 }
  0x5e   : > { %s202_s7 = sshll.u32 %s194_s6, 4  ;;  %p1232_p7 = scmp.ne.s32.totalorder %s1528_s29, %s1231_s28  ;;  %s1534_s7 = int_to_ptr.vmem [resolvable:$true] %s202_s7 }
  0x5f   : > { %p1233_p9 = pneg %p1530_p11  ;;  %s1236_s25 = scalar_lea.hbm %s1655_s0, 3072 }
  0x60   : > { %p1237_p2 = scmp.lt.u32.totalorder %s1528_s29, %s1655_s0  ;;  %p1238_p1 = scmp.lt.u32.totalorder %s1236_s25, %s1231_s28 }
  0x61   : > { %p1234_p12 = pnand %p1233_p9, %p1232_p7  ;;  %p1240_p8 = scmp.lt.u32.totalorder %s1231_s28, %s1528_s29 }
  0x62   : > { %p1239_p4 = por %p1238_p1, %p1237_p2 }
  0x63   : > { %p1235_p0 = pneg %p1234_p12 }
  0x64   : > { %p1241_p13 = por %p1240_p8, %p1239_p4 }
  0x66   : > { %p1242_p6 = pnand %p1241_p13, %p1235_p0 }
  0x68   : > { %1245 = shalt.err (!%p1242_p6)
}
  0x69   : > { %s1246_s14 = scalar_lea.vmem %s1534_s7, 1536  ;;  %s1342_s30 = smov [#allocation2]  }
  0x6a   : > { %p1247_p10 = scmp.ne.s32.totalorder %s1534_s7, %s1246_s14  ;;  %s1251_s24 = sshll.u32 %s1342_s30, 4  ;;  %s1252_s24 = int_to_ptr.vmem [resolvable:$false] %s1251_s24 }
  0x6b   : > { %s1253_s27 = scalar_lea.vmem %s1252_s24, 3072  ;;  %p1254_p12 = scmp.lt.s32.totalorder %s1534_s7, %s1252_s24 }
  0x6c   : > { %p1249_p3 = pnand %p1247_p10, %p1233_p9  ;;  %p1255_p2 = scmp.lt.s32.totalorder %s1253_s27, %s1246_s14 }
  0x6e   : > { %p1250_p7 = pneg %p1249_p3  ;;  %p1256_p1 = por %p1255_p2, %p1254_p12 }
  0x70   : > { %p1257_p4 = pnand %p1256_p1, %p1250_p7 }
  0x72   : > { %1260 = shalt.err (!%p1257_p4)
}
  0x73   : > { %s1343_s6 = smov 192   ;;  %s1344_s28 = smov 12  }
  0x74   : > { %1053 = dma.hbm_to_vmem [thread:$0]  (!%p1530_p11), %s1528_s29, 1536, %s1534_s7, %s1536_s8, %s1343_s6, %s1343_s6, %s1344_s28  }
  0x75   : > { %p1671_p9 = scmp.ne.s32.totalorder %s1665_s23, 0 }
  0x76   : > { %s1567_s9 = sand.u32 (!%p1671_p9), 1, %s1327_s16   ;;  %p1672_p0 = scmp.ne.s32.totalorder (!%p1671_p9), %s1663_s21, 0 }
  0x77   : > { %214 = sbr.rel (%p1671_p9) target bundleno = 431 (0x1af), region = 36  ;;  %s217_s25 = scalar_lea.sflag (!%p1671_p9), [#allocation3], %s1567_s9 }
  0x78   : > { %s1023_s11 = smul.u32 (!%p1671_p9), 96, %s1567_s9 }
  0x7a   : > { %s1571_s26 = scalar_lea.vmem (!%p1671_p9), [#allocation2], %s1023_s11 }
  0x7e   : > { %1306 = dma.done.wait (%p1672_p0), %s217_s25, 1536  }
  0x7f   : > { %1308 = vsyncadd (%p1672_p0), %s217_s25, 4294965760  ;;  %p1673_p11 = scmp.eq.s32.totalorder %s1394_s19, 0 }
  0x81   : > { %1310 = dma.done.wait (%p1673_p11), [#allocation6], 3088   ;;  %p1674_p8 = pmov %p1673_p11 }
  0x83   : > { %1312 = vsyncadd (%p1674_p8), [#allocation6], 4294964208  ;;  %p1675_p13 = pmov %p1674_p8 }
  0x84   : > { %p1676_p6 = pmov %p1674_p8 }
  0x85   : > { %1314 = dma.done.wait (%p1675_p13), [#allocation9], 16  }
  0x86   : > { %1316 = vsyncadd (%p1676_p6), [#allocation9], 4294967280  ;;  %v1107_v0 = vld [vmem:[#allocation5 + $0x40] sm:$0xff]   ;;  %v1110_v3 = vld [vmem:[#allocation5 + $0x48] sm:$0xff]   ;;  %s861_s21 = sshll.u32 %s1567_s9, 5  ;;  %s921_s5 = sshll.u32 %s1394_s19, 9 }
  0x87   : > { %v1108_v1 = vld [vmem:[#allocation5] sm:$0xff]   ;;  %945 = vmatprep.subr.bf16.mxu0 %v1107_v0  ;;  %v1111_v4 = vld [vmem:[#allocation5 + $0x8] sm:$0xff]   ;;  %v1113_v6 = vld [vmem:[#allocation5 + $0x50] sm:$0xff]   ;;  %s1598_s23 = scalar_lea.vmem [#allocation10], %s861_s21  ;;  %s1610_s20 = scalar_lea.hbm %s1659_s4, %s921_s5 }
  0x88   : > { %v1109_v2 = vld [vmem:[#allocation5 + $0x80] sm:$0xff]   ;;  %946 = vmatpush3.bf16.msra.mxu0 %v1108_v1  ;;  %v1112_v5 = vld [vmem:[#allocation5 + $0x88] sm:$0xff]   ;;  %v1114_v7 = vld [vmem:[#allocation5 + $0x10] sm:$0xff]   ;;  %s746_s29 = sshll.u32 %s1598_s23, 4  ;;  %s733_s14 = scalar_lea.sflag [#allocation4], %s1567_s9  ;;  %s1605_s29 = int_to_ptr.vmem [resolvable:$true] %s746_s29 }
  0x89   : > { %997 = vmatprep.subr.bf16.mxu1 %v1109_v2  ;;  %947 = vmatprep.subr.bf16.mxu0 %v1110_v3  ;;  %v1115_v8 = vld [vmem:[#allocation5 + $0x90] sm:$0xff]   ;;  %v1116_v9 = vld [vmem:[#allocation5 + $0x58] sm:$0xff]   ;;  %v1119_v12 = vld [vmem:[#allocation5 + $0x60] sm:$0xff]   ;;  %s1261_s30 = scalar_lea.vmem %s1605_s29, 512  ;;  %s1345_s19 = smov [#allocation10]  }
  0x8a   : > { %998 = vmatpush3.bf16.msra.mxu1 %v1109_v2  ;;  %v1117_v10 = vld [vmem:[#allocation5 + $0x18] sm:$0xff]   ;;  %v1121_v13 = vld [vmem:[#allocation5 + $0xa0] sm:$0xff]   ;;  %v1122_v15 = vld [vmem:[#allocation5 + $0x68] sm:$0xff]   ;;  %p1262_p10 = scmp.ne.s32.totalorder %s1605_s29, %s1261_s30  ;;  %s1265_s24 = sshll.u32 %s1345_s19, 4  ;;  %s1266_s24 = int_to_ptr.vmem [resolvable:$false] %s1265_s24 }
  0x8b   : > { %999 = vmatprep.subr.bf16.mxu1 %v1112_v5  ;;  %v1118_v11 = vld [vmem:[#allocation5 + $0x98] sm:$0xff]   ;;  %v1120_v14 = vld [vmem:[#allocation5 + $0x20] sm:$0xff]   ;;  %v1124_v16 = vld [vmem:[#allocation5 + $0xa8] sm:$0xff]   ;;  %s1267_s27 = scalar_lea.vmem %s1266_s24, 1024  ;;  %p1268_p12 = scmp.lt.s32.totalorder %s1605_s29, %s1266_s24 }
  0x8c   : > { %948 = vmatpush3.bf16.msra.mxu0 %v1111_v4  ;;  %v1123_v17 = vld [vmem:[#allocation5 + $0x28] sm:$0xff]   ;;  %v1125_v18 = vld [vmem:[#allocation5 + $0x70] sm:$0xff]   ;;  %v1128_v21 = vld [vmem:[#allocation5 + $0x78] sm:$0xff]   ;;  %p1263_p3 = pnand %p1262_p10, %p1519_p5  ;;  %p1269_p2 = scmp.lt.s32.totalorder %s1267_s27, %s1261_s30 }
  0x8d   : > { %949 = vmatprep.subr.bf16.mxu0 %v1113_v6  ;;  %v1126_v19 = vld [vmem:[#allocation5 + $0x30] sm:$0xff]   ;;  %v1130_v22 = vld [vmem:[#allocation5 + $0xb8] sm:$0xff]   ;;  %v1131_v26 = vld [vmem:[%s1571_s26] ss:$12 sps:$4 sm:$0xff]  }
  0x8e   : > { %1000 = vmatpush3.bf16.msra.mxu1 %v1112_v5  ;;  %v1127_v20 = vld [vmem:[#allocation5 + $0xb0] sm:$0xff]   ;;  %v1129_v25 = vld [vmem:[#allocation5 + $0x38] sm:$0xff]   ;;  %v1135_v28 = vld [vmem:[%s1571_s26 + $0x20] ss:$12 sps:$4 sm:$0xff]   ;;  %p1264_p7 = pneg %p1263_p3  ;;  %p1270_p1 = por %p1269_p2, %p1268_p12 }
  0x8f   : > { %1001 = vmatprep.subr.bf16.mxu1 %v1115_v8  ;;  %v1133_v23 = vld [vmem:[%s1571_s26 + $0x4] ss:$12 sps:$4 sm:$0xff]   ;;  %v1134_v24 = vld [vmem:[%s1571_s26 + $0x8] ss:$12 sps:$4 sm:$0xff]   ;;  %v1144_v34 = vld [vmem:[%s1571_s26 + $0x4c] ss:$12 sps:$4 sm:$0xff]  }
  0x90   : > { %950 = vmatpush3.bf16.msra.mxu0 %v1114_v7  ;;  %564 = vmatprep.mubr.bf16.mxu0 %v1133_v23  ;;  %v1136_v27 = vld [vmem:[%s1571_s26 + $0x1c] ss:$12 sps:$4 sm:$0xff]   ;;  %v1142_v29 = vld [vmem:[%s1571_s26 + $0x38] ss:$12 sps:$4 sm:$0xff]   ;;  %v1139_v31 = vld [vmem:[%s1571_s26 + $0x34] ss:$12 sps:$4 sm:$0xff]   ;;  %p1271_p4 = pnand %p1270_p1, %p1264_p7 }
  0x91   : > { %951 = vmatprep.subr.bf16.mxu0 %v1116_v9  ;;  %1013 = vmatprep.mubr.bf16.mxu1 %v1134_v24  ;;  %v1138_v30 = vld [vmem:[%s1571_s26 + $0x18] ss:$12 sps:$4 sm:$0xff]   ;;  %v1143_v32 = vld [vmem:[%s1571_s26 + $0x50] ss:$12 sps:$4 sm:$0xff]   ;;  %v1146_v35 = vld [vmem:[%s1571_s26 + $0x48] ss:$12 sps:$4 sm:$0xff]  }
  0x92   : > { %1002 = vmatpush3.bf16.msra.mxu1 %v1115_v8  ;;  %v1141_v33 = vld [vmem:[%s1571_s26 + $0x30] ss:$12 sps:$4 sm:$0xff]   ;;  %v898_v43 = vld [vmem:[#allocation7] ss:$0 sm:$0xff]  ;;  %v899_v50 = vld [vmem:[#allocation8] ss:$0 sm:$0xff] }
  0x93   : > { %1003 = vmatprep.subr.bf16.mxu1 %v1118_v11 }
  0x94   : > { %952 = vmatpush3.bf16.msra.mxu0 %v1117_v10 }
  0x95   : > { %953 = vmatprep.subr.bf16.mxu0 %v1119_v12 }
  0x96   : > { %1004 = vmatpush3.bf16.msra.mxu1 %v1118_v11 }
  0x97   : > { %1005 = vmatprep.subr.bf16.mxu1 %v1121_v13 }
  0x98   : > { %954 = vmatpush3.bf16.msra.mxu0 %v1120_v14 }
  0x99   : > { %955 = vmatprep.subr.bf16.mxu0 %v1122_v15 }
  0x9a   : > { %1006 = vmatpush3.bf16.msra.mxu1 %v1121_v13 }
  0x9b   : > { %1007 = vmatprep.subr.bf16.mxu1 %v1124_v16 }
  0x9c   : > { %956 = vmatpush3.bf16.msra.mxu0 %v1123_v17 }
  0x9d   : > { %957 = vmatprep.subr.bf16.mxu0 %v1125_v18 }
  0x9e   : > { %1008 = vmatpush3.bf16.msra.mxu1 %v1124_v16 }
  0x9f   : > { %1009 = vmatprep.subr.bf16.mxu1 %v1127_v20 }
  0xa0   : > { %958 = vmatpush3.bf16.msra.mxu0 %v1126_v19 }
  0xa1   : > { %959 = vmatprep.subr.bf16.mxu0 %v1128_v21 }
  0xa2   : > { %1010 = vmatpush3.bf16.msra.mxu1 %v1127_v20 }
  0xa3   : > { %1011 = vmatprep.subr.bf16.mxu1 %v1130_v22 }
  0xa4   : > { %960 = vmatpush3.bf16.msra.mxu0 %v1129_v25 }
  0xa6   : > { %1012 = vmatpush3.bf16.msra.mxu1 %v1130_v22 }
  0xa7   : > { %565 = vmatmul.mubr.bf16.vlgmr.msra.gmra.mrb[0].mxu0 %v1131_v26 }
  0xa8   : > { %572 = vmatprep.mubr.bf16.mxu0 %v1136_v27 }
  0xa9   : > { %1014 = vmatmul.mubr.bf16.vlgmr.msra.gmra.mrb[0].mxu1 %v1135_v28 }
  0xaa   : > { %1017 = vmatprep.mubr.bf16.mxu1 %v1142_v29 }
  0xaf   : > { %573 = vmatmul.mubr.bf16.gmra.mrb[4].mxu0 %v1138_v30 }
  0xb0   : > { %580 = vmatprep.mubr.bf16.mxu0 %v1139_v31 }
  0xb1   : > { %1018 = vmatmul.mubr.bf16.gmra.mrb[4].mxu1 %v1143_v32 }
  0xb7   : > { %581 = vmatmul.mubr.bf16.gmra.mrb[8].mxu0 %v1141_v33 }
  0xb8   : > { %588 = vmatprep.mubr.bf16.mxu0 %v1144_v34 }
  0xbf   : > { %589 = vmatmul.mubr.bf16.gmra.mrb[12].mxu0 %v1146_v35 }
 0x17a   : > { %v961_v36 = vpop.f32.mrb[0].mxu0 }
 0x17b   : > { %v962_v37 = vpop.f32.mrb[1].mxu0 }
 0x17c   : > { %v963_v38 = vadd.f32 %v962_v37, %v961_v36  ;;  %v964_v39 = vpop.f32.mrb[2].mxu0  ;;  %v1015_v40 = vpop.f32.mrb[0].mxu1 }
 0x17d   : > { %v965_v41 = vpop.f32.mrb[3].mxu0  ;;  %v631_v42 = vpop.f32.mrb[1].mxu1 }
 0x17e   : > { %v966_v44 = vadd.f32 %v965_v41, %v964_v39  ;;  %v632_v45 = vadd.f32 %v963_v38, %v631_v42  ;;  %v1016_v46 = vpop.f32.mrb[2].mxu1 }
 0x17f   : > { %v634_v47 = vpop.f32.mrb[3].mxu1 }
 0x180   : > { %v669_v48 = vmul.f32 %v898_v43, %v632_v45  ;;  %v635_v49 = vadd.f32 %v966_v44, %v634_v47 }
 0x182   : > { %v670_v51 = vmul.f32 %v898_v43, %v635_v49  ;;  %v967_v52 = vpop.f32.mrb[4].mxu0  ;;  %v684_v54 = vadd.f32 %v899_v50, %v669_v48 }
 0x183   : > { %v968_v53 = vpop.f32.mrb[5].mxu0 }
 0x184   : > { %v685_v55 = vadd.f32 %v899_v50, %v670_v51  ;;  %v969_v56 = vadd.f32 %v968_v53, %v967_v52  ;;  %v970_v57 = vpop.f32.mrb[6].mxu0  ;;  %v1019_v58 = vpop.f32.mrb[4].mxu1 }
 0x185   : > { %v971_v59 = vpop.f32.mrb[7].mxu0  ;;  %v647_v60 = vpop.f32.mrb[5].mxu1 }
 0x186   : > { %v925_v61 = vpack.c.bf16 %v685_v55, %v684_v54  ;;  %v640_v62 = vadd.f32 %v1015_v40, %v969_v56  ;;  %v972_v63 = vadd.f32 %v971_v59, %v970_v57  ;;  %v1020_v0 = vpop.f32.mrb[6].mxu1 }
 0x187   : > { %v650_v1 = vpop.f32.mrb[7].mxu1 }
 0x188   : > { %926 = vst [vmem:[%s1598_s23] sm:$0xff] %v925_v61   ;;  %v671_v2 = vmul.f32 %v898_v43, %v640_v62  ;;  %v643_v3 = vadd.f32 %v1016_v46, %v972_v63 }
 0x18a   : > { %v672_v4 = vmul.f32 %v898_v43, %v643_v3  ;;  %v973_v5 = vpop.f32.mrb[8].mxu0  ;;  %v686_v7 = vadd.f32 %v899_v50, %v671_v2 }
 0x18b   : > { %v974_v6 = vpop.f32.mrb[9].mxu0 }
 0x18c   : > { %v687_v8 = vadd.f32 %v899_v50, %v672_v4  ;;  %v975_v9 = vadd.f32 %v974_v6, %v973_v5  ;;  %v976_v10 = vpop.f32.mrb[10].mxu0 }
 0x18d   : > { %v977_v11 = vpop.f32.mrb[11].mxu0 }
 0x18e   : > { %v930_v12 = vpack.c.bf16 %v687_v8, %v686_v7  ;;  %v978_v13 = vadd.f32 %v977_v11, %v976_v10  ;;  %v648_v14 = vadd.f32 %v975_v9, %v647_v60 }
 0x190   : > { %942 = vst [vmem:[%s1598_s23 + $0x8] sm:$0xff] %v930_v12   ;;  %v673_v15 = vmul.f32 %v898_v43, %v648_v14  ;;  %v651_v16 = vadd.f32 %v978_v13, %v650_v1 }
 0x192   : > { %v674_v17 = vmul.f32 %v898_v43, %v651_v16  ;;  %v979_v18 = vpop.f32.mrb[12].mxu0  ;;  %v688_v20 = vadd.f32 %v899_v50, %v673_v15 }
 0x193   : > { %v980_v19 = vpop.f32.mrb[13].mxu0 }
 0x194   : > { %v689_v21 = vadd.f32 %v899_v50, %v674_v17  ;;  %v981_v22 = vadd.f32 %v980_v19, %v979_v18  ;;  %v982_v23 = vpop.f32.mrb[14].mxu0 }
 0x195   : > { %v983_v24 = vpop.f32.mrb[15].mxu0 }
 0x196   : > { %v935_v25 = vpack.c.bf16 %v689_v21, %v688_v20  ;;  %v656_v26 = vadd.f32 %v1019_v58, %v981_v22  ;;  %v984_v27 = vadd.f32 %v983_v24, %v982_v23 }
 0x198   : > { %943 = vst [vmem:[%s1598_s23 + $0x10] sm:$0xff] %v935_v25   ;;  %v675_v28 = vmul.f32 %v898_v43, %v656_v26  ;;  %v659_v29 = vadd.f32 %v1020_v0, %v984_v27 }
 0x19a   : > { %v676_v30 = vmul.f32 %v898_v43, %v659_v29  ;;  %v690_v31 = vadd.f32 %v899_v50, %v675_v28 }
 0x19c   : > { %v691_v32 = vadd.f32 %v899_v50, %v676_v30 }
 0x19e   : > { %v940_v33 = vpack.c.bf16 %v691_v32, %v690_v31 }
 0x1a0   : > { %944 = vst [vmem:[%s1598_s23 + $0x18] sm:$0xff] %v940_v33  }
 0x1a1   : > { %1274 = shalt.err (!%p1271_p4)
}
 0x1a2   : > { %s1275_s6 = scalar_lea.hbm %s1610_s20, 512  ;;  %s1279_s25 = scalar_lea.hbm %s1659_s4, 1024 }
 0x1a3   : > { %p1276_p9 = scmp.ne.s32.totalorder %s1610_s20, %s1275_s6  ;;  %p1280_p8 = scmp.lt.u32.totalorder %s1610_s20, %s1659_s4 }
 0x1a4   : > { %p1281_p13 = scmp.lt.u32.totalorder %s1279_s25, %s1275_s6  ;;  %p1283_p10 = scmp.lt.u32.totalorder %s1275_s6, %s1610_s20 }
 0x1a5   : > { %p1277_p0 = pnand %p1276_p9, %p1519_p5 }
 0x1a6   : > { %p1282_p6 = por %p1281_p13, %p1280_p8 }
 0x1a7   : > { %p1278_p11 = pneg %p1277_p0 }
 0x1a8   : > { %p1284_p3 = por %p1283_p10, %p1282_p6 }
 0x1aa   : > { %p1285_p7 = pnand %p1284_p3, %p1278_p11 }
 0x1ac   : > { %1288 = shalt.err (!%p1285_p7)
}
 0x1ad   : > { %s1346_s23 = smov 64   ;;  %s1347_s5 = smov 4  }
 0x1ae   : > { %1038 = dma.vmem_to_hbm [thread:$0]  (%p1519_p5), %s1605_s29, 512, %s1610_s20, %s733_s14, %s1346_s23, %s1346_s23, %s1347_s5  }
 0x1af PF: > { %s761_s7 = sand.u32 1, %s1323_s15   ;;  %p1677_p12 = scmp.ne.s32.totalorder %s1664_s22, 0 }
 0x1b0   : > { %p1678_p2 = scmp.ge.s32.totalorder %s1335_s18, 2  ;;  %s762_s8 = scalar_lea.sflag [#allocation4], %s761_s7 }
 0x1b2   : > { %p1055_p1 = pnand %p1678_p2, %p1677_p12 }
 0x1b4   : > { %1318 = dma.done.wait (!%p1055_p1), %s762_s8, 512  }
 0x1b5   : > { %1320 = vsyncadd (!%p1055_p1), %s762_s8, 4294966784  ;;  %p19_p4 = scmp.ge.s32.totalorder %s1505_s10, 4   ;;  %s1679_s15 = smov %s1327_s16 }
 0x1b6   : > { %s1680_s16 = smov %s1331_s17  ;;  %s1681_s17 = smov %s1515_s12 }
 0x1b7   : > { %s1682_s18 = smov %s1505_s10  ;;  %21 = sbr.rel (!%p19_p4) target bundleno = 7 (0x7), region = 93 }
 0x1be   :  { %767 = vsyncpa [#allocation3], 1 }
 0x1bf   :  { %769 = vsyncpa [#allocation3 + $0x1], 1 }
 0x1c0   :  { %770 = vsyncpa [#allocation6], 1 }
 0x1c1   :  { %771 = vsyncpa [#allocation9], 1 }
 0x1c2   :  { %772 = vsyncpa [#allocation4], 1 }
 0x1c3   :  { %774 = vsyncpa [#allocation4 + $0x1], 1 }

// kernel: tile.119
= control target key start
LH: loop header
LB: loop body
LE: loop exit
PB: predicated region body
PF: predicated region fallthrough
CT: control target
= control target key end

     0   :  { %s22_s0 = inlined_call_operand.vmem [shape: f32[32], index: 0, kind: input, shape index: {}]   ;;  %s23_s1 = inlined_call_operand.vmem [shape: f32[8,32], index: 1, kind: output, shape index: {}]  }
   0x1   :  { %v4_v0 = vld [vmem:[%s22_s0] ss:$0 sm:$0xff] }
   0x2   :  { %5 = vst [vmem:[%s23_s1] sm:$0xff] %v4_v0 }

// kernel: tile.124
= control target key start
LH: loop header
LB: loop body
LE: loop exit
PB: predicated region body
PF: predicated region fallthrough
CT: control target
= control target key end

     0   :  { %s8_s6 = smov 3  ;;  %s15_s9 = smov 3  ;;  %s118_s0 = inlined_call_operand.vmem [shape: f32[8,32], index: 0, kind: input, shape index: {}]   ;;  %s119_s1 = inlined_call_operand.hbm [shape: f32[1,256], index: 1, kind: output, shape index: {}]  }
   0x1   :  { %v49_v0 = vld [vmem:[%s118_s0 + $0x3] ss:$4 sm:%s8_s6]  }
   0x2   :  { %2 = vsyncpa [#allocation1], 0  ;;  %s80_s10 = smov 96   ;;  %s22_s11 = smov 3  ;;  %vm5_vm0 = vcmask 261120   ;;  %vm12_vm1 = vcmask 1048320  }
   0x3   :  { %10 = vrot.lane.b32.xlu0 %v49_v0, %s80_s10  ;;  %v50_v1 = vld [vmem:[%s118_s0 + $0x2] ss:$4 sm:%s15_s9]   ;;  %s3_s16 = smov 3  ;;  %s81_s17 = smov 32   ;;  %vm19_vm2 = vcmask 785920   ;;  %vm26_vm3 = vcmask 523520  }
   0x4   :  { %v51_v2 = vld [vmem:[%s118_s0 + $0x1] ss:$4 sm:%s22_s11]   ;;  %v4_v3 = vld [vmem:[%s118_s0] ss:$4 sm:%s3_s16]   ;;  %s82_s0 = smov 64   ;;  %s83_s20 = smov [#allocation0]  }
   0x5   :  { %24 = vrot.lane.b32.xlu1 %v51_v2, %s81_s17  ;;  %6 = vst.msk [vmem:[#allocation2] ss:$8 sm:$0x3] %vm5_vm0, %v4_v3   ;;  %s43_s21 = sshll.u32 %s83_s20, 4  ;;  %s44_s21 = int_to_ptr.vmem [resolvable:$true] %s43_s21 }
   0x6   :  { %s56_s22 = scalar_lea.vmem %s44_s21, 32  ;;  %p61_p1 = scmp.lt.s32.totalorder %s44_s21, %s44_s21 }
   0x7   :  { %17 = vrot.lane.b32.xlu0 %v50_v1, %s82_s0  ;;  %p57_p0 = scmp.ne.s32.totalorder %s44_s21, %s56_s22  ;;  %p62_p2 = scmp.lt.s32.totalorder %s56_s22, %s56_s22 }
   0x9   :  { %p63_p3 = por %p62_p2, %p61_p1 }
   0xb   :  { %p64_p4 = pnand %p63_p3, %p57_p0 }
  0x75   :  { %v11_v4 = vpop.permute.xlu0 %10  }
  0x76   :  { %13 = vst.msk [vmem:[#allocation2] ss:$8 sm:$0x3] %vm12_vm1, %v11_v4  }
  0x77   :  { %v25_v5 = vpop.permute.xlu1 %24  }
  0x79   :  { %v18_v6 = vpop.permute.xlu0 %17  }
  0x7a   :  { %20 = vst.msk [vmem:[#allocation2] ss:$8 sm:$0x3] %vm19_vm2, %v18_v6  }
  0x7b   :  { %27 = vst.msk [vmem:[#allocation2] ss:$8 sm:$0x3] %vm26_vm3, %v25_v5  }
  0x82   :  { %v31_v7 = vld [vmem:[#allocation2] sm:$0x1]  ;;  %v35_v8 = vld [vmem:[#allocation2 + $0x8] sm:$0x1] }
  0x83   :  { %33 = vst [vmem:[#allocation0] sm:$0x1] %v31_v7  ;;  %38 = vst [vmem:[#allocation0 + $0x1] sm:$0x1] %v35_v8 }
  0x84   :  { %67 = shalt.err (!%p64_p4)
}
  0x85   :  { %s68_s25 = scalar_lea.hbm %s119_s1, 32 }
  0x86   :  { %p69_p5 = scmp.ne.s32.totalorder %s119_s1, %s68_s25  ;;  %p72_p6 = scmp.lt.u32.totalorder %s68_s25, %s119_s1 }
  0x88   :  { %p74_p7 = pnand %p72_p6, %p69_p5 }
  0x8a   :  { %77 = shalt.err (!%p74_p7)
}
  0x8b   :  { %46 = dma.vmem_to_hbm [thread:$0]  %s44_s21, 32, %s119_s1, [#allocation1]  }
  0x8c   :  { %78 = dma.done.wait [#allocation1], 32  }
  0x8d   :  { %79 = vsyncadd [#allocation1], 4294967264 }
  0x8e   :  { %48 = vsyncpa [#allocation1], 1 }

// kernel: densenet_forward.37
= control target key start
LH: loop header
LB: loop body
LE: loop exit
PB: predicated region body
PF: predicated region fallthrough
CT: control target
= control target key end

     0   :  { %8 = vsyncpa [#allocation3], 0  ;;  %s854_s0 = inlined_call_operand.hbm [shape: bf16[16,256], index: 0, kind: input, shape index: {}]   ;;  %s855_s1 = inlined_call_operand.hbm [shape: f32[1,256], index: 1, kind: input, shape index: {}]   ;;  %s856_s2 = inlined_call_operand.hbm [shape: f32[1,256], index: 2, kind: input, shape index: {}]   ;;  %s857_s3 = inlined_call_operand.hbm [shape: bf16[16,256], index: 3, kind: output, shape index: {}]  }
   0x1   :  { %10 = vsyncpa [#allocation3 + $0x1], 0 }
   0x2   :  { %11 = vsyncpa [#allocation6], 0 }
   0x3   :  { %12 = vsyncpa [#allocation4], 0 }
   0x4   :  { %14 = vsyncpa [#allocation4 + $0x1], 0  ;;  %s629_s12 = smov 0   ;;  %s631_s13 = smov 0  }
   0x5   :  { %s633_s14 = smov 0   ;;  %s635_s15 = smov 0  }
   0x6 LB: > { %s650_s16 = sadd.s32 4294967295, %s603_s15   ;;  %s358_s17 = sadd.s32 4294967294, %s603_s15   ;;  %s603_s15 = sphi %s635_s15, %s877_s15   ;;  %s599_s14 = sphi %s633_s14, %s876_s14   ;;  %s595_s13 = sphi %s631_s13, %s875_s13   ;;  %s591_s12 = sphi %s629_s12, %s874_s12  }
   0x7   : > { %p40_p0 = scmp.ne.s32.totalorder %s595_s13, %s591_s12  ;;  %p858_p1 = scmp.eq.s32.totalorder %s650_s16, 0 }
   0x8   : > { %p112_p3 = scmp.eq.s32.totalorder %s358_s17, 1  ;;  %p359_p5 = scmp.ge.s32.totalorder %s603_s15, 1 }
   0x9   : > { %p659_p4 = por %p858_p1, %p40_p0  ;;  %p119_p7 = scmp.lt.s32.totalorder %s603_s15, 3 }
   0xa   : > { %p664_p6 = por %p112_p3, %p40_p0  ;;  %s605_s21 = smov [#allocation5]  }
   0xb   : > { %s861_s18 = scalar_select %p659_p4, 1, 0 }
   0xc   : > { %s862_s19 = scalar_select %p664_p6, 1, 0 }
   0xd   : > { %p669_p8 = pnand %p359_p5, %p119_p7  ;;  %s132_s22 = sshll.u32 %s605_s21, 4  ;;  %s133_s22 = int_to_ptr.vmem [resolvable:$true] %s132_s22 }
   0xe   : > { %s606_s23 = smov [#allocation7]   ;;  %s685_s26 = sadd.s32 1, %s603_s15  }
   0xf   : > { %s863_s20 = scalar_select %p669_p8, 1, 0 }
  0x10   : > { %p392_p10 = pneg %p669_p8  ;;  %s143_s24 = sshll.u32 %s606_s23, 4  ;;  %s682_s24 = int_to_ptr.vmem [resolvable:$true] %s143_s24 }
  0x11   : > { %s24_s27 = ssub.s32 %s603_s15, %s685_s26  ;;  %s447_s30 = scalar_lea.hbm %s855_s1, 32 }
  0x12   : > { %p678_p11 = pnand %p392_p10, %p858_p1  ;;  %p448_p12 = scmp.ne.s32.totalorder %s855_s1, %s447_s30 }
  0x13   : > { %p454_p5 = scmp.lt.u32.totalorder %s447_s30, %s855_s1 }
  0x14   : > { %p449_p13 = pneg %p678_p11 }
  0x16   : > { %p450_p0 = pnand %p449_p13, %p448_p12 }
  0x18   : > { %p451_p3 = pneg %p450_p0 }
  0x1a   : > { %p456_p7 = pnand %p454_p5, %p451_p3 }
  0x1c   : > { %459 = shalt.err (!%p456_p7)
}
  0x1d   : > { %s460_s8 = scalar_lea.vmem %s133_s22, 32  ;;  %p468_p2 = scmp.lt.s32.totalorder %s133_s22, %s133_s22 }
  0x1e   : > { %p461_p10 = scmp.ne.s32.totalorder %s133_s22, %s460_s8  ;;  %p469_p6 = scmp.lt.s32.totalorder %s460_s8, %s460_s8 }
  0x20   : > { %p463_p9 = pnand %p461_p10, %p449_p13  ;;  %p470_p4 = por %p469_p6, %p468_p2 }
  0x22   : > { %p464_p1 = pneg %p463_p9 }
  0x24   : > { %p471_p8 = pnand %p470_p4, %p464_p1 }
  0x26   : > { %474 = shalt.err (!%p471_p8)
}
  0x27   : > { %395 = dma.hbm_to_vmem [thread:$0]  (!%p678_p11), %s855_s1, 32, %s133_s22, [#allocation6]  }
  0x28   : > { %s475_s21 = scalar_lea.hbm %s856_s2, 32 }
  0x29   : > { %p476_p9 = scmp.ne.s32.totalorder %s856_s2, %s475_s21  ;;  %p482_p4 = scmp.lt.u32.totalorder %s475_s21, %s856_s2 }
  0x2b   : > { %p478_p2 = pnand %p476_p9, %p449_p13 }
  0x2d   : > { %p479_p1 = pneg %p478_p2 }
  0x2f   : > { %p484_p6 = pnand %p482_p4, %p479_p1 }
  0x31   : > { %487 = shalt.err (!%p484_p6)
}
  0x32   : > { %s488_s22 = scalar_lea.vmem %s682_s24, 32  ;;  %p496_p3 = scmp.lt.s32.totalorder %s682_s24, %s682_s24 }
  0x33   : > { %p489_p8 = scmp.ne.s32.totalorder %s682_s24, %s488_s22  ;;  %p497_p5 = scmp.lt.s32.totalorder %s488_s22, %s488_s22 }
  0x35   : > { %p491_p12 = pnand %p489_p8, %p449_p13  ;;  %p498_p7 = por %p497_p5, %p496_p3 }
  0x37   : > { %p492_p0 = pneg %p491_p12 }
  0x39   : > { %p499_p10 = pnand %p498_p7, %p492_p0 }
  0x3b   : > { %502 = shalt.err (!%p499_p10)
}
  0x3c   : > { %398 = dma.hbm_to_vmem [thread:$0]  (!%p678_p11), %s856_s2, 32, %s682_s24, [#allocation6]  }
  0x3d   : > { %p25_p13 = scmp.eq.s32.totalorder %s24_s27, 0  ;;  %s27_s6 = sadd.s32 1, %s599_s14 }
  0x3e   : > { %p34_p9 = scmp.ne.s32.totalorder %s599_s14, %s595_s13  ;;  %p35_p2 = scmp.eq.s32.totalorder %s603_s15, 0 }
  0x3f   : > { %s744_s25 = scalar_select %p25_p13, %s599_s14, %s27_s6  }
  0x40   : > { %p36_p1 = por %p35_p2, %p34_p9  ;;  %p865_p4 = scmp.eq.s32.totalorder %s650_s16, 1 }
  0x41   : > { %p409_p8 = scmp.lt.s32.totalorder %s603_s15, 2  ;;  %s154_s8 = sand.u32 1, %s599_s14  }
  0x42   : > { %p748_p6 = por %p865_p4, %p34_p9  ;;  %s363_s9 = sshll.u32 %s154_s8, 3 }
  0x43   : > { %s377_s10 = sshll.u32 %s603_s15, 7  ;;  %s158_s27 = scalar_lea.vmem [#allocation2], %s363_s9 }
  0x44   : > { %s758_s24 = scalar_lea.hbm %s854_s0, %s377_s10  ;;  %s166_s21 = sshll.u32 %s158_s27, 4  ;;  %s760_s21 = int_to_ptr.vmem [resolvable:$true] %s166_s21 }
  0x45   : > { %p762_p11 = pnand %p409_p8, %p36_p1  ;;  %s155_s28 = scalar_lea.sflag [#allocation3], %s154_s8 }
  0x46   : > { %s503_s29 = scalar_lea.hbm %s758_s24, 128  ;;  %s508_s4 = scalar_lea.hbm %s854_s0, 256 }
  0x47   : > { %p504_p12 = scmp.ne.s32.totalorder %s758_s24, %s503_s29  ;;  %p505_p0 = pneg %p762_p11 }
  0x48   : > { %p509_p7 = scmp.lt.u32.totalorder %s758_s24, %s854_s0  ;;  %p510_p10 = scmp.lt.u32.totalorder %s508_s4, %s503_s29 }
  0x49   : > { %p506_p3 = pnand %p505_p0, %p504_p12  ;;  %p512_p9 = scmp.lt.u32.totalorder %s503_s29, %s758_s24 }
  0x4a   : > { %p511_p13 = por %p510_p10, %p509_p7 }
  0x4b   : > { %p507_p5 = pneg %p506_p3 }
  0x4c   : > { %p513_p2 = por %p512_p9, %p511_p13 }
  0x4e   : > { %p514_p1 = pnand %p513_p2, %p507_p5 }
  0x50   : > { %517 = shalt.err (!%p514_p1)
}
  0x51   : > { %s518_s8 = scalar_lea.vmem %s760_s21, 128  ;;  %s607_s9 = smov [#allocation2]  }
  0x52   : > { %p519_p4 = scmp.ne.s32.totalorder %s760_s21, %s518_s8  ;;  %s523_s10 = sshll.u32 %s607_s9, 4  ;;  %s524_s10 = int_to_ptr.vmem [resolvable:$false] %s523_s10 }
  0x53   : > { %s525_s11 = scalar_lea.vmem %s524_s10, 256  ;;  %p526_p3 = scmp.lt.s32.totalorder %s760_s21, %s524_s10 }
  0x54   : > { %p521_p8 = pnand %p519_p4, %p505_p0  ;;  %p527_p7 = scmp.lt.s32.totalorder %s525_s11, %s518_s8 }
  0x56   : > { %p522_p12 = pneg %p521_p8  ;;  %p528_p10 = por %p527_p7, %p526_p3 }
  0x58   : > { %p529_p13 = pnand %p528_p10, %p522_p12 }
  0x5a   : > { %532 = shalt.err (!%p529_p13)
}
  0x5b   : > { %402 = dma.hbm_to_vmem [thread:$0]  (!%p762_p11), %s758_s24, 128, %s760_s21, %s155_s28  }
  0x5c   : > { %p868_p5 = scmp.ne.s32.totalorder %s863_s20, 0 }
  0x5d   : > { %s794_s17 = sand.u32 (!%p868_p5), 1, %s595_s13   ;;  %p869_p0 = scmp.ne.s32.totalorder (!%p868_p5), %s861_s18, 0 }
  0x5e   : > { %175 = sbr.rel (%p868_p5) target bundleno = 135 (0x87), region = 32  ;;  %s367_s27 = sshll.u32 (!%p868_p5), %s794_s17, 3 }
  0x5f   : > { %s178_s29 = scalar_lea.sflag (!%p868_p5), [#allocation3], %s794_s17  ;;  %s181_s30 = scalar_lea.vmem (!%p868_p5), [#allocation2], %s367_s27 }
  0x65   : > { %578 = dma.done.wait (%p869_p0), %s178_s29, 128  }
  0x66   : > { %580 = vsyncadd (%p869_p0), %s178_s29, 4294967168  ;;  %p870_p9 = scmp.eq.s32.totalorder %s650_s16, 0 }
  0x68   : > { %582 = dma.done.wait (%p870_p9), [#allocation6], 64   ;;  %p871_p11 = pmov %p870_p9 }
  0x69   : > { %v217_v0 = vlaneseq  ;;  %v212_v4 = vld [vmem:[%s181_s30] sm:$0xff]  ;;  %v215_v5 = vld [vmem:[#allocation5] sm:$0x3]  ;;  %v229_v6 = vld [vmem:[#allocation7] sm:$0x3]  ;;  %s211_s18 = scalar_lea.vmem [#allocation8], %s367_s27 }
  0x6a   : > { %584 = vsyncadd (%p871_p11), [#allocation6], 4294967232  ;;  %v213_v7 = vunpack.c.l.bf16 %v212_v4  ;;  %v214_v8 = vunpack.c.h.bf16 %v212_v4  ;;  %s269_s20 = sshll.u32 %s211_s18, 4  ;;  %s379_s24 = sshll.u32 %s650_s16, 7  ;;  %s807_s20 = int_to_ptr.vmem [resolvable:$true] %s269_s20 }
  0x6b   : > { %v218_v1 = vshrl.u32 %v217_v0, 7  ;;  %s812_s28 = scalar_lea.hbm %s857_s3, %s379_s24  ;;  %s255_s22 = scalar_lea.sflag [#allocation4], %s794_s17 }
  0x6c   : > { %s533_s4 = scalar_lea.vmem %s807_s20, 128  ;;  %s608_s16 = smov [#allocation8]  }
  0x6d   : > { %v219_v2 = vsub.s32 0, %v218_v1  ;;  %v223_v3 = vsub.s32 1, %v218_v1  ;;  %p534_p2 = scmp.ne.s32.totalorder %s807_s20, %s533_s4  ;;  %s537_s5 = sshll.u32 %s608_s16, 4  ;;  %s538_s5 = int_to_ptr.vmem [resolvable:$false] %s537_s5 }
  0x6e   : > { %s539_s6 = scalar_lea.vmem %s538_s5, 256  ;;  %p540_p8 = scmp.lt.s32.totalorder %s807_s20, %s538_s5 }
  0x6f   : > { %v220_v9 = vrot.slane %v215_v5, %v219_v2  ;;  %v224_v10 = vrot.slane %v215_v5, %v223_v3  ;;  %v234_v11 = vrot.slane %v229_v6, %v219_v2  ;;  %v238_v12 = vrot.slane %v229_v6, %v223_v3  ;;  %p535_p1 = pnand %p534_p2, %p748_p6  ;;  %p541_p12 = scmp.lt.s32.totalorder %s539_s6, %s533_s4 }
  0x71   : > { %v227_v13 = vmul.f32 %v220_v9, %v213_v7  ;;  %v228_v14 = vmul.f32 %v224_v10, %v214_v8  ;;  %p536_p4 = pneg %p535_p1  ;;  %p542_p3 = por %p541_p12, %p540_p8 }
  0x73   : > { %v241_v15 = vadd.f32 %v234_v11, %v227_v13  ;;  %v242_v16 = vadd.f32 %v238_v12, %v228_v14  ;;  %p543_p7 = pnand %p542_p3, %p536_p4 }
  0x75   : > { %v243_v17 = vmax.f32 %v241_v15, 0.0  ;;  %v244_v18 = vmax.f32 %v242_v16, 0.0 }
  0x77   : > { %v378_v19 = vpack.c.bf16 %v244_v18, %v243_v17 }
  0x79   : > { %253 = vst [vmem:[%s211_s18] sm:$0xff] %v378_v19 }
  0x7a   : > { %546 = shalt.err (!%p543_p7)
}
  0x7b   : > { %s547_s8 = scalar_lea.hbm %s812_s28, 128  ;;  %s551_s11 = scalar_lea.hbm %s857_s3, 256 }
  0x7c   : > { %p548_p10 = scmp.ne.s32.totalorder %s812_s28, %s547_s8  ;;  %p552_p0 = scmp.lt.u32.totalorder %s812_s28, %s857_s3 }
  0x7d   : > { %p553_p9 = scmp.lt.u32.totalorder %s551_s11, %s547_s8  ;;  %p555_p2 = scmp.lt.u32.totalorder %s547_s8, %s812_s28 }
  0x7e   : > { %p549_p13 = pnand %p548_p10, %p748_p6 }
  0x7f   : > { %p554_p11 = por %p553_p9, %p552_p0 }
  0x80   : > { %p550_p5 = pneg %p549_p13 }
  0x81   : > { %p556_p1 = por %p555_p2, %p554_p11 }
  0x83   : > { %p557_p4 = pnand %p556_p1, %p550_p5 }
  0x85   : > { %560 = shalt.err (!%p557_p4)
}
  0x86   : > { %390 = dma.vmem_to_hbm [thread:$0]  (%p748_p6), %s807_s20, 128, %s812_s28, %s255_s22  }
  0x87 PF: > { %s281_s29 = sand.u32 1, %s591_s12   ;;  %p872_p8 = scmp.ne.s32.totalorder %s862_s19, 0 }
  0x88   : > { %p873_p12 = scmp.ge.s32.totalorder %s603_s15, 2  ;;  %s282_s30 = scalar_lea.sflag [#allocation4], %s281_s29 }
  0x8a   : > { %p404_p3 = pnand %p873_p12, %p872_p8 }
  0x8c   : > { %586 = dma.done.wait (!%p404_p3), %s282_s30, 128  }
  0x8d   : > { %588 = vsyncadd (!%p404_p3), %s282_s30, 4294967168  ;;  %p17_p7 = scmp.ge.s32.totalorder %s685_s26, 4   ;;  %s874_s12 = smov %s595_s13 }
  0x8e   : > { %s875_s13 = smov %s599_s14  ;;  %s876_s14 = smov %s744_s25 }
  0x8f   : > { %s877_s15 = smov %s685_s26  ;;  %19 = sbr.rel (!%p17_p7) target bundleno = 6 (0x6), region = 85 }
  0x96   :  { %287 = vsyncpa [#allocation3], 1 }
  0x97   :  { %289 = vsyncpa [#allocation3 + $0x1], 1 }
  0x98   :  { %290 = vsyncpa [#allocation6], 1 }
  0x99   :  { %291 = vsyncpa [#allocation4], 1 }
  0x9a   :  { %293 = vsyncpa [#allocation4 + $0x1], 1 }

// kernel: tile.129
= control target key start
LH: loop header
LB: loop body
LE: loop exit
PB: predicated region body
PF: predicated region fallthrough
CT: control target
= control target key end

     0   :  { %s22_s0 = inlined_call_operand.vmem [shape: f32[16], index: 0, kind: input, shape index: {}]   ;;  %s23_s1 = inlined_call_operand.vmem [shape: f32[4,16], index: 1, kind: output, shape index: {}]  }
   0x1   :  { %v4_v0 = vld [vmem:[%s22_s0] ss:$0 sm:$0xff] }
   0x2   :  { %5 = vst [vmem:[%s23_s1] sm:$0xf] %v4_v0 }

// kernel: tile.134
= control target key start
LH: loop header
LB: loop body
LE: loop exit
PB: predicated region body
PF: predicated region fallthrough
CT: control target
= control target key end

     0   :  { %vm7_vm0 = vcmask 130048   ;;  %s37_s8 = smov 16   ;;  %s38_s9 = smov 32   ;;  %vm13_vm1 = vcmask 523648   ;;  %vm19_vm2 = vcmask 392448   ;;  %vm25_vm3 = vcmask 261248   ;;  %s55_s0 = inlined_call_operand.vmem [shape: f32[4,16], index: 0, kind: input, shape index: {}]   ;;  %s56_s1 = inlined_call_operand.vmem [shape: f32[1,64], index: 1, kind: output, shape index: {}]  }
   0x1   :  { %v4_v0 = vld [vmem:[%s55_s0] sm:$0xf]  ;;  %s36_s0 = smov 48  }
   0x2   :  { %5 = vst [vmem:[#allocation1] sm:$0xf] %v4_v0 }
   0x9   :  { %v10_v1 = vld [vmem:[#allocation1 + $0x3] sm:$0x1]   ;;  %v22_v2 = vld [vmem:[#allocation1 + $0x1] sm:$0x1]   ;;  %v6_v3 = vld [vmem:[#allocation1] sm:$0x1]  }
   0xa   :  { %11 = vrot.lane.b32.xlu0 %v10_v1, %s36_s0  ;;  %23 = vrot.lane.b32.xlu1 %v22_v2, %s37_s8  ;;  %v16_v4 = vld [vmem:[#allocation1 + $0x2] sm:$0x1]   ;;  %8 = vst.msk [vmem:[#allocation0] sm:$0x1] %vm7_vm0, %v6_v3  }
   0xe   :  { %17 = vrot.lane.b32.xlu0 %v16_v4, %s38_s9 }
  0x7c   :  { %v12_v5 = vpop.permute.xlu0 %11   ;;  %v24_v6 = vpop.permute.xlu1 %23  }
  0x7d   :  { %14 = vst.msk [vmem:[#allocation0] sm:$0x1] %vm13_vm1, %v12_v5  }
  0x80   :  { %v18_v7 = vpop.permute.xlu0 %17  }
  0x81   :  { %20 = vst.msk [vmem:[#allocation0] sm:$0x1] %vm19_vm2, %v18_v7  }
  0x82   :  { %26 = vst.msk [vmem:[#allocation0] sm:$0x1] %vm25_vm3, %v24_v6  }
  0x89   :  { %v30_v8 = vld [vmem:[#allocation0] sm:$0x1] }
  0x8a   :  { %32 = vst [vmem:[%s56_s1] sm:$0x1] %v30_v8 }

// kernel: densenet_forward.41
= control target key start
LH: loop header
LB: loop body
LE: loop exit
PB: predicated region body
PF: predicated region fallthrough
CT: control target
= control target key end

     0   :  { %9 = vsyncpa [#allocation3], 0  ;;  %s1326_s0 = inlined_call_operand.hbm [shape: bf16[128,128], index: 0, kind: input, shape index: {}]   ;;  %s1327_s1 = inlined_call_operand.hbm [shape: bf16[128,128], index: 1, kind: input, shape index: {}]   ;;  %s1328_s2 = inlined_call_operand.hbm [shape: f32[1,128], index: 2, kind: input, shape index: {}]   ;;  %s1329_s3 = inlined_call_operand.hbm [shape: f32[1,128], index: 3, kind: input, shape index: {}]   ;;  %s1330_s4 = inlined_call_operand.hbm [shape: bf16[128,128], index: 4, kind: output, shape index: {}]  }
   0x1   :  { %11 = vsyncpa [#allocation3 + $0x1], 0 }
   0x2   :  { %12 = vsyncpa [#allocation6], 0 }
   0x3   :  { %13 = vsyncpa [#allocation9], 0 }
   0x4   :  { %14 = vsyncpa [#allocation4], 0 }
   0x5   :  { %16 = vsyncpa [#allocation4 + $0x1], 0  ;;  %s1050_s15 = smov 0   ;;  %s1052_s16 = smov 0  }
   0x6   :  { %s1054_s17 = smov 0   ;;  %s1056_s18 = smov 0  }
   0x7 LB: > { %s1071_s19 = sadd.s32 4294967295, %s1014_s18   ;;  %s606_s20 = sadd.s32 4294967294, %s1014_s18   ;;  %s1014_s18 = sphi %s1056_s18, %s1353_s18   ;;  %s1010_s17 = sphi %s1054_s17, %s1352_s17   ;;  %s1006_s16 = sphi %s1052_s16, %s1351_s16   ;;  %s1002_s15 = sphi %s1050_s15, %s1350_s15  }
   0x8   : > { %p42_p0 = scmp.ne.s32.totalorder %s1006_s16, %s1002_s15  ;;  %p1331_p1 = scmp.eq.s32.totalorder %s1071_s19, 0 }
   0x9   : > { %p135_p3 = scmp.eq.s32.totalorder %s606_s20, 1  ;;  %p607_p5 = scmp.ge.s32.totalorder %s1014_s18, 1 }
   0xa   : > { %p1080_p4 = por %p1331_p1, %p42_p0  ;;  %p142_p7 = scmp.lt.s32.totalorder %s1014_s18, 3 }
   0xb   : > { %p1085_p6 = por %p135_p3, %p42_p0  ;;  %s1016_s24 = smov [#allocation5]  }
   0xc   : > { %s1334_s21 = scalar_select %p1080_p4, 1, 0 }
   0xd   : > { %s1335_s22 = scalar_select %p1085_p6, 1, 0 }
   0xe   : > { %p1090_p8 = pnand %p607_p5, %p142_p7  ;;  %s154_s25 = sshll.u32 %s1016_s24, 4  ;;  %s1094_s25 = int_to_ptr.vmem [resolvable:$true] %s154_s25 }
   0xf   : > { %s1017_s27 = smov [#allocation7]   ;;  %s1018_s29 = smov [#allocation8]  }
  0x10   : > { %s1336_s23 = scalar_select %p1090_p8, 1, 0 }
  0x11   : > { %p749_p9 = pneg %p1090_p8  ;;  %s168_s28 = sshll.u32 %s1017_s27, 4  ;;  %s1105_s28 = int_to_ptr.vmem [resolvable:$true] %s168_s28 }
  0x12   : > { %s1107_s30 = sshll.u32 %s1018_s29, 4  ;;  %s826_s7 = scalar_lea.hbm %s1327_s1, 1024  ;;  %s180_s30 = int_to_ptr.vmem [resolvable:$true] %s1107_s30 }
  0x13   : > { %p1101_p11 = pnand %p749_p9, %p1331_p1  ;;  %p827_p12 = scmp.ne.s32.totalorder %s1327_s1, %s826_s7 }
  0x14   : > { %p833_p5 = scmp.lt.u32.totalorder %s826_s7, %s1327_s1 }
  0x15   : > { %p1117_p13 = pneg %p1101_p11 }
  0x17   : > { %p829_p0 = pnand %p1117_p13, %p827_p12 }
  0x19   : > { %p830_p3 = pneg %p829_p0 }
  0x1b   : > { %p835_p7 = pnand %p833_p5, %p830_p3 }
  0x1d   : > { %838 = shalt.err (!%p835_p7)
}
  0x1e   : > { %s839_s13 = scalar_lea.vmem %s1094_s25, 1024  ;;  %p847_p2 = scmp.lt.s32.totalorder %s1094_s25, %s1094_s25 }
  0x1f   : > { %p840_p9 = scmp.ne.s32.totalorder %s1094_s25, %s839_s13  ;;  %p848_p6 = scmp.lt.s32.totalorder %s839_s13, %s839_s13 }
  0x21   : > { %p842_p10 = pnand %p840_p9, %p1117_p13  ;;  %p849_p12 = por %p848_p6, %p847_p2 }
  0x23   : > { %p843_p1 = pneg %p842_p10 }
  0x25   : > { %p850_p0 = pnand %p849_p12, %p843_p1 }
  0x27   : > { %853 = shalt.err (!%p850_p0)
}
  0x28   : > { %s1019_s14 = smov 64   ;;  %s1020_s20 = smov 4  }
  0x29   : > { %752 = dma.hbm_to_vmem [thread:$0]  (!%p1101_p11), %s1327_s1, 1024, %s1094_s25, [#allocation6], %s1019_s14, %s1019_s14, %s1020_s20  }
  0x2a   : > { %s854_s6 = scalar_lea.hbm %s1328_s2, 16 }
  0x2b   : > { %p855_p1 = scmp.ne.s32.totalorder %s1328_s2, %s854_s6  ;;  %p861_p10 = scmp.lt.u32.totalorder %s854_s6, %s1328_s2 }
  0x2d   : > { %p857_p2 = pnand %p855_p1, %p1117_p13 }
  0x2f   : > { %p858_p6 = pneg %p857_p2 }
  0x31   : > { %p863_p3 = pnand %p861_p10, %p858_p6 }
  0x33   : > { %866 = shalt.err (!%p863_p3)
}
  0x34   : > { %s867_s25 = scalar_lea.vmem %s1105_s28, 16  ;;  %s874_s12 = scalar_lea.vmem %s1105_s28, 32 }
  0x35   : > { %p868_p5 = scmp.ne.s32.totalorder %s1105_s28, %s867_s25  ;;  %p875_p12 = scmp.lt.s32.totalorder %s1105_s28, %s1105_s28 }
  0x36   : > { %p876_p0 = scmp.lt.s32.totalorder %s874_s12, %s867_s25 }
  0x37   : > { %p870_p7 = pnand %p868_p5, %p1117_p13 }
  0x38   : > { %p877_p1 = por %p876_p0, %p875_p12 }
  0x39   : > { %p871_p9 = pneg %p870_p7 }
  0x3b   : > { %p878_p2 = pnand %p877_p1, %p871_p9 }
  0x3d   : > { %881 = shalt.err (!%p878_p2)
}
  0x3e   : > { %755 = dma.hbm_to_vmem [thread:$0]  (!%p1101_p11), %s1328_s2, 16, %s1105_s28, [#allocation6]  }
  0x3f   : > { %s882_s5 = scalar_lea.hbm %s1329_s3, 16 }
  0x40   : > { %p883_p6 = scmp.ne.s32.totalorder %s1329_s3, %s882_s5  ;;  %p889_p5 = scmp.lt.u32.totalorder %s882_s5, %s1329_s3 }
  0x42   : > { %p885_p10 = pnand %p883_p6, %p1117_p13 }
  0x44   : > { %p886_p3 = pneg %p885_p10 }
  0x46   : > { %p891_p7 = pnand %p889_p5, %p886_p3 }
  0x48   : > { %894 = shalt.err (!%p891_p7)
}
  0x49   : > { %s895_s11 = scalar_lea.vmem %s180_s30, 16  ;;  %s902_s28 = scalar_lea.vmem %s180_s30, 32 }
  0x4a   : > { %p896_p9 = scmp.ne.s32.totalorder %s180_s30, %s895_s11  ;;  %p903_p1 = scmp.lt.s32.totalorder %s180_s30, %s180_s30 }
  0x4b   : > { %p904_p2 = scmp.lt.s32.totalorder %s902_s28, %s895_s11 }
  0x4c   : > { %p898_p12 = pnand %p896_p9, %p1117_p13 }
  0x4d   : > { %p905_p4 = por %p904_p2, %p903_p1 }
  0x4e   : > { %p899_p0 = pneg %p898_p12 }
  0x50   : > { %p906_p8 = pnand %p905_p4, %p899_p0 }
  0x52   : > { %909 = shalt.err (!%p906_p8)
}
  0x53   : > { %758 = dma.hbm_to_vmem [thread:$0]  (!%p1101_p11), %s1329_s3, 16, %s180_s30, [#allocation9]  }
  0x54   : > { %s1185_s10 = sadd.s32 1, %s1014_s18   ;;  %s29_s26 = sadd.s32 1, %s1010_s17 }
  0x55   : > { %s26_s13 = ssub.s32 %s1014_s18, %s1185_s10  ;;  %p36_p8 = scmp.ne.s32.totalorder %s1010_s17, %s1006_s16 }
  0x56   : > { %p27_p4 = scmp.eq.s32.totalorder %s26_s13, 0  ;;  %p37_p13 = scmp.eq.s32.totalorder %s1014_s18, 0 }
  0x57   : > { %p770_p6 = scmp.lt.s32.totalorder %s1014_s18, 2  ;;  %p1339_p3 = scmp.eq.s32.totalorder %s1071_s19, 1 }
  0x58   : > { %s1195_s24 = scalar_select %p27_p4, %s1010_s17, %s29_s26  }
  0x59   : > { %p38_p10 = por %p37_p13, %p36_p8  ;;  %p1199_p5 = por %p1339_p3, %p36_p8 }
  0x5a   : > { %s190_s29 = sand.u32 1, %s1010_s17   ;;  %s648_s5 = sshll.u32 %s1014_s18, 9 }
  0x5b   : > { %s612_s30 = sshll.u32 %s190_s29, 5  ;;  %s1208_s8 = scalar_lea.hbm %s1326_s0, %s648_s5 }
  0x5c   : > { %s194_s9 = scalar_lea.vmem [#allocation2], %s612_s30  ;;  %p1210_p11 = pnand %p770_p6, %p38_p10 }
  0x5d   : > { %s201_s11 = sshll.u32 %s194_s9, 4  ;;  %s1216_s25 = scalar_lea.sflag [#allocation3], %s190_s29  ;;  %s1214_s11 = int_to_ptr.vmem [resolvable:$true] %s201_s11 }
  0x5e   : > { %s910_s12 = scalar_lea.hbm %s1208_s8, 512  ;;  %p912_p9 = pneg %p1210_p11 }
  0x5f   : > { %p911_p7 = scmp.ne.s32.totalorder %s1208_s8, %s910_s12  ;;  %s915_s5 = scalar_lea.hbm %s1326_s0, 1024 }
  0x60   : > { %p916_p1 = scmp.lt.u32.totalorder %s1208_s8, %s1326_s0  ;;  %p917_p2 = scmp.lt.u32.totalorder %s915_s5, %s910_s12 }
  0x61   : > { %p913_p12 = pnand %p912_p9, %p911_p7  ;;  %p919_p8 = scmp.lt.u32.totalorder %s910_s12, %s1208_s8 }
  0x62   : > { %p918_p4 = por %p917_p2, %p916_p1 }
  0x63   : > { %p914_p0 = pneg %p913_p12 }
  0x64   : > { %p920_p13 = por %p919_p8, %p918_p4 }
  0x66   : > { %p921_p6 = pnand %p920_p13, %p914_p0 }
  0x68   : > { %924 = shalt.err (!%p921_p6)
}
  0x69   : > { %s925_s29 = scalar_lea.vmem %s1214_s11, 512  ;;  %s1021_s7 = smov [#allocation2]  }
  0x6a   : > { %p926_p10 = scmp.ne.s32.totalorder %s1214_s11, %s925_s29  ;;  %s930_s9 = sshll.u32 %s1021_s7, 4  ;;  %s931_s9 = int_to_ptr.vmem [resolvable:$false] %s930_s9 }
  0x6b   : > { %s932_s13 = scalar_lea.vmem %s931_s9, 1024  ;;  %p933_p12 = scmp.lt.s32.totalorder %s1214_s11, %s931_s9 }
  0x6c   : > { %p928_p3 = pnand %p926_p10, %p912_p9  ;;  %p934_p1 = scmp.lt.s32.totalorder %s932_s13, %s925_s29 }
  0x6e   : > { %p929_p7 = pneg %p928_p3  ;;  %p935_p2 = por %p934_p1, %p933_p12 }
  0x70   : > { %p936_p4 = pnand %p935_p2, %p929_p7 }
  0x72   : > { %939 = shalt.err (!%p936_p4)
}
  0x73   : > { %762 = dma.hbm_to_vmem [thread:$0]  (!%p1210_p11), %s1208_s8, 512, %s1214_s11, %s1216_s25, %s1019_s14, %s1019_s14, %s1020_s20  }
  0x74   : > { %p1342_p9 = scmp.ne.s32.totalorder %s1336_s23, 0 }
  0x75   : > { %s1250_s12 = sand.u32 (!%p1342_p9), 1, %s1006_s16   ;;  %p1343_p0 = scmp.ne.s32.totalorder (!%p1342_p9), %s1334_s21, 0 }
  0x76   : > { %213 = sbr.rel (%p1342_p9) target bundleno = 402 (0x192), region = 36  ;;  %s616_s26 = sshll.u32 (!%p1342_p9), %s1250_s12, 5 }
  0x77   : > { %s216_s5 = scalar_lea.sflag (!%p1342_p9), [#allocation3], %s1250_s12  ;;  %s1256_s28 = scalar_lea.vmem (!%p1342_p9), [#allocation2], %s616_s26 }
  0x7d   : > { %985 = dma.done.wait (%p1343_p0), %s216_s5, 512  }
  0x7e   : > { %987 = vsyncadd (%p1343_p0), %s216_s5, 4294966784  ;;  %p1344_p11 = scmp.eq.s32.totalorder %s1071_s19, 0 }
  0x80   : > { %989 = dma.done.wait (%p1344_p11), [#allocation6], 1040   ;;  %p1345_p8 = pmov %p1344_p11 }
  0x82   : > { %991 = vsyncadd (%p1345_p8), [#allocation6], 4294966256  ;;  %p1346_p13 = pmov %p1345_p8 }
  0x83   : > { %p1347_p6 = pmov %p1345_p8 }
  0x84   : > { %993 = dma.done.wait (%p1346_p13), [#allocation9], 16  }
  0x85   : > { %995 = vsyncadd (%p1347_p6), [#allocation9], 4294967280  ;;  %v814_v0 = vld [vmem:[#allocation5] sm:$0xff]   ;;  %v815_v1 = vld [vmem:[#allocation5 + $0x8] sm:$0xff]   ;;  %s255_s21 = scalar_lea.vmem [#allocation10], %s616_s26  ;;  %s657_s14 = sshll.u32 %s1071_s19, 9 }
  0x86   : > { %693 = vmatprep.subr.bf16.mxu0 %v814_v0  ;;  %717 = vmatprep.subr.bf16.mxu1 %v814_v0  ;;  %v816_v2 = vld [vmem:[#allocation5 + $0x10] sm:$0xff]   ;;  %v817_v3 = vld [vmem:[#allocation5 + $0x18] sm:$0xff]   ;;  %v822_v4 = vld [vmem:[%s1256_s28] sm:$0xff]   ;;  %s504_s23 = sshll.u32 %s255_s21, 4  ;;  %s1282_s19 = scalar_lea.hbm %s1330_s4, %s657_s14  ;;  %s1277_s23 = int_to_ptr.vmem [resolvable:$true] %s504_s23 }
  0x87   : > { %694 = vmatpush3.bf16.msra.mxu0 %v814_v0  ;;  %725 = vmatpush3.bf16.msra.mxu1 %v814_v0  ;;  %v823_v5 = vld [vmem:[%s1256_s28 + $0x10] sm:$0xff]   ;;  %v818_v6 = vld [vmem:[#allocation5 + $0x20] sm:$0xff]   ;;  %v819_v7 = vld [vmem:[#allocation5 + $0x28] sm:$0xff]   ;;  %s491_s11 = scalar_lea.sflag [#allocation4], %s1250_s12  ;;  %s940_s25 = scalar_lea.vmem %s1277_s23, 512 }
  0x88   : > { %695 = vmatprep.subr.bf16.mxu0 %v815_v1  ;;  %718 = vmatprep.subr.bf16.mxu1 %v815_v1  ;;  %v820_v8 = vld [vmem:[#allocation5 + $0x30] sm:$0xff]   ;;  %v821_v9 = vld [vmem:[#allocation5 + $0x38] sm:$0xff]   ;;  %v824_v10 = vld [vmem:[%s1256_s28 + $0x8] sm:$0xff]   ;;  %p941_p10 = scmp.ne.s32.totalorder %s1277_s23, %s940_s25  ;;  %s1022_s30 = smov [#allocation10]  }
  0x89   : > { %709 = vmatprep.mubr.bf16.mxu0 %v822_v4  ;;  %713 = vmatprep.mubr.bf16.mxu1 %v823_v5  ;;  %v825_v11 = vld [vmem:[%s1256_s28 + $0x18] sm:$0xff]   ;;  %v633_v12 = vld [vmem:[#allocation7] ss:$0 sm:$0xff]  ;;  %v634_v19 = vld [vmem:[#allocation8] ss:$0 sm:$0xff]  ;;  %s944_s6 = sshll.u32 %s1022_s30, 4  ;;  %s945_s6 = int_to_ptr.vmem [resolvable:$false] %s944_s6 }
  0x8a   : > { %p942_p3 = pnand %p941_p10, %p1199_p5  ;;  %s946_s29 = scalar_lea.vmem %s945_s6, 1024 }
  0x8b   : > { %696 = vmatpush3.bf16.msra.mxu0 %v815_v1  ;;  %726 = vmatpush3.bf16.msra.mxu1 %v815_v1  ;;  %p947_p12 = scmp.lt.s32.totalorder %s1277_s23, %s945_s6  ;;  %p948_p1 = scmp.lt.s32.totalorder %s946_s29, %s940_s25 }
  0x8c   : > { %697 = vmatprep.subr.bf16.mxu0 %v816_v2  ;;  %719 = vmatprep.subr.bf16.mxu1 %v816_v2  ;;  %p943_p7 = pneg %p942_p3 }
  0x8d   : > { %p949_p2 = por %p948_p1, %p947_p12 }
  0x8f   : > { %698 = vmatpush3.bf16.msra.mxu0 %v816_v2  ;;  %727 = vmatpush3.bf16.msra.mxu1 %v816_v2  ;;  %p950_p4 = pnand %p949_p2, %p943_p7 }
  0x90   : > { %699 = vmatprep.subr.bf16.mxu0 %v817_v3  ;;  %720 = vmatprep.subr.bf16.mxu1 %v817_v3 }
  0x93   : > { %700 = vmatpush3.bf16.msra.mxu0 %v817_v3  ;;  %728 = vmatpush3.bf16.msra.mxu1 %v817_v3 }
  0x94   : > { %701 = vmatprep.subr.bf16.mxu0 %v818_v6  ;;  %721 = vmatprep.subr.bf16.mxu1 %v818_v6 }
  0x97   : > { %702 = vmatpush3.bf16.msra.mxu0 %v818_v6  ;;  %729 = vmatpush3.bf16.msra.mxu1 %v818_v6 }
  0x98   : > { %703 = vmatprep.subr.bf16.mxu0 %v819_v7  ;;  %722 = vmatprep.subr.bf16.mxu1 %v819_v7 }
  0x9b   : > { %704 = vmatpush3.bf16.msra.mxu0 %v819_v7  ;;  %730 = vmatpush3.bf16.msra.mxu1 %v819_v7 }
  0x9c   : > { %705 = vmatprep.subr.bf16.mxu0 %v820_v8  ;;  %723 = vmatprep.subr.bf16.mxu1 %v820_v8 }
  0x9f   : > { %706 = vmatpush3.bf16.msra.mxu0 %v820_v8  ;;  %731 = vmatpush3.bf16.msra.mxu1 %v820_v8 }
  0xa0   : > { %707 = vmatprep.subr.bf16.mxu0 %v821_v9  ;;  %724 = vmatprep.subr.bf16.mxu1 %v821_v9 }
  0xa3   : > { %708 = vmatpush3.bf16.msra.mxu0 %v821_v9  ;;  %732 = vmatpush3.bf16.msra.mxu1 %v821_v9 }
  0xa6   : > { %710 = vmatmul.mubr.bf16.vlgmr.msra.gmra.mrb[0].mxu0 %v824_v10  ;;  %714 = vmatmul.mubr.bf16.vlgmr.msra.gmra.mrb[0].mxu1 %v825_v11 }
 0x179   : > { %v711_v13 = vpop.f32.mrb[0].mxu0  ;;  %v715_v14 = vpop.f32.mrb[0].mxu1 }
 0x17a   : > { %v429_v15 = vmul.f32 %v711_v13, %v633_v12  ;;  %v433_v16 = vmul.f32 %v715_v14, %v633_v12  ;;  %v389_v17 = vpop.f32.mrb[1].mxu0  ;;  %v405_v18 = vpop.f32.mrb[1].mxu1 }
 0x17b   : > { %v427_v20 = vmul.f32 %v633_v12, %v389_v17  ;;  %v431_v21 = vmul.f32 %v633_v12, %v405_v18  ;;  %v712_v22 = vpop.f32.mrb[2].mxu0  ;;  %v716_v23 = vpop.f32.mrb[2].mxu1 }
 0x17c   : > { %v430_v24 = vmul.f32 %v712_v22, %v633_v12  ;;  %v434_v25 = vmul.f32 %v716_v23, %v633_v12  ;;  %v392_v26 = vpop.f32.mrb[3].mxu0  ;;  %v408_v27 = vpop.f32.mrb[3].mxu1  ;;  %v444_v30 = vadd.f32 %v634_v19, %v429_v15  ;;  %v448_v31 = vadd.f32 %v634_v19, %v433_v16 }
 0x17d   : > { %v428_v28 = vmul.f32 %v633_v12, %v392_v26  ;;  %v432_v29 = vmul.f32 %v633_v12, %v408_v27  ;;  %v442_v34 = vadd.f32 %v634_v19, %v427_v20  ;;  %v446_v35 = vadd.f32 %v634_v19, %v431_v21 }
 0x17e   : > { %v445_v32 = vadd.f32 %v634_v19, %v430_v24  ;;  %v449_v33 = vadd.f32 %v634_v19, %v434_v25 }
 0x17f   : > { %v443_v36 = vadd.f32 %v634_v19, %v428_v28  ;;  %v447_v37 = vadd.f32 %v634_v19, %v432_v29 }
 0x180   : > { %v666_v38 = vpack.c.bf16 %v445_v32, %v444_v30  ;;  %v676_v39 = vpack.c.bf16 %v449_v33, %v448_v31 }
 0x181   : > { %v661_v40 = vpack.c.bf16 %v443_v36, %v442_v34  ;;  %v671_v41 = vpack.c.bf16 %v447_v37, %v446_v35 }
 0x182   : > { %678 = vst [vmem:[%s255_s21 + $0x8] sm:$0xff] %v666_v38   ;;  %680 = vst [vmem:[%s255_s21 + $0x18] sm:$0xff] %v676_v39  }
 0x183   : > { %662 = vst [vmem:[%s255_s21] sm:$0xff] %v661_v40   ;;  %679 = vst [vmem:[%s255_s21 + $0x10] sm:$0xff] %v671_v41  }
 0x184   : > { %953 = shalt.err (!%p950_p4)
}
 0x185   : > { %s954_s7 = scalar_lea.hbm %s1282_s19, 512  ;;  %s958_s26 = scalar_lea.hbm %s1330_s4, 1024 }
 0x186   : > { %p955_p9 = scmp.ne.s32.totalorder %s1282_s19, %s954_s7  ;;  %p959_p8 = scmp.lt.u32.totalorder %s1282_s19, %s1330_s4 }
 0x187   : > { %p960_p13 = scmp.lt.u32.totalorder %s958_s26, %s954_s7  ;;  %p962_p10 = scmp.lt.u32.totalorder %s954_s7, %s1282_s19 }
 0x188   : > { %p956_p0 = pnand %p955_p9, %p1199_p5 }
 0x189   : > { %p961_p6 = por %p960_p13, %p959_p8 }
 0x18a   : > { %p957_p11 = pneg %p956_p0 }
 0x18b   : > { %p963_p3 = por %p962_p10, %p961_p6 }
 0x18d   : > { %p964_p7 = pnand %p963_p3, %p957_p11 }
 0x18f   : > { %967 = shalt.err (!%p964_p7)
}
 0x190   : > { %s1023_s21 = smov 64   ;;  %s1024_s14 = smov 4  }
 0x191   : > { %747 = dma.vmem_to_hbm [thread:$0]  (%p1199_p5), %s1277_s23, 512, %s1282_s19, %s491_s11, %s1023_s21, %s1023_s21, %s1024_s14  }
 0x192 PF: > { %s519_s20 = sand.u32 1, %s1002_s15   ;;  %p1348_p12 = scmp.ne.s32.totalorder %s1335_s22, 0 }
 0x193   : > { %p1349_p1 = scmp.ge.s32.totalorder %s1014_s18, 2  ;;  %s520_s8 = scalar_lea.sflag [#allocation4], %s519_s20 }
 0x195   : > { %p764_p2 = pnand %p1349_p1, %p1348_p12 }
 0x197   : > { %997 = dma.done.wait (!%p764_p2), %s520_s8, 512  }
 0x198   : > { %999 = vsyncadd (!%p764_p2), %s520_s8, 4294966784  ;;  %p19_p4 = scmp.ge.s32.totalorder %s1185_s10, 4   ;;  %s1350_s15 = smov %s1006_s16 }
 0x199   : > { %s1351_s16 = smov %s1010_s17  ;;  %s1352_s17 = smov %s1195_s24 }
 0x19a   : > { %s1353_s18 = smov %s1185_s10  ;;  %21 = sbr.rel (!%p19_p4) target bundleno = 7 (0x7), region = 93 }
 0x1a1   :  { %525 = vsyncpa [#allocation3], 1 }
 0x1a2   :  { %527 = vsyncpa [#allocation3 + $0x1], 1 }
 0x1a3   :  { %528 = vsyncpa [#allocation6], 1 }
 0x1a4   :  { %529 = vsyncpa [#allocation9], 1 }
 0x1a5   :  { %530 = vsyncpa [#allocation4], 1 }
 0x1a6   :  { %532 = vsyncpa [#allocation4 + $0x1], 1 }

// kernel: densenet_forward.42
= control target key start
LH: loop header
LB: loop body
LE: loop exit
PB: predicated region body
PF: predicated region fallthrough
CT: control target
= control target key end

     0   :  { %8 = vsyncpa [#allocation3], 0  ;;  %s259_s0 = inlined_call_operand.hbm [shape: bf16[8,128], index: 0, kind: input, shape index: {}]   ;;  %s260_s1 = inlined_call_operand.hbm [shape: f32[1,128], index: 1, kind: input, shape index: {}]   ;;  %s261_s2 = inlined_call_operand.hbm [shape: f32[1,128], index: 2, kind: input, shape index: {}]   ;;  %s262_s3 = inlined_call_operand.hbm [shape: bf16[8,128], index: 3, kind: output, shape index: {}]  }
   0x1   :  { %9 = vsyncpa [#allocation6], 0 }
   0x2   :  { %10 = vsyncpa [#allocation4], 0  ;;  %s187_s12 = smov [#allocation5]   ;;  %s188_s14 = smov [#allocation2]  }
   0x3   :  { %s27_s13 = sshll.u32 %s187_s12, 4  ;;  %s17_s15 = sshll.u32 %s188_s14, 4  ;;  %s28_s13 = int_to_ptr.vmem [resolvable:$true] %s27_s13  ;;  %s18_s15 = int_to_ptr.vmem [resolvable:$true] %s17_s15 }
   0x4   :  { %s93_s18 = scalar_lea.hbm %s260_s1, 16 }
   0x5   :  { %p94_p0 = scmp.ne.s32.totalorder %s260_s1, %s93_s18  ;;  %p97_p1 = scmp.lt.u32.totalorder %s93_s18, %s260_s1 }
   0x7   :  { %p99_p2 = pnand %p97_p1, %p94_p0 }
   0x9   :  { %102 = shalt.err (!%p99_p2)
}
   0xa   :  { %s103_s23 = scalar_lea.vmem %s28_s13, 16  ;;  %s107_s24 = scalar_lea.vmem %s28_s13, 32 }
   0xb   :  { %p104_p3 = scmp.ne.s32.totalorder %s28_s13, %s103_s23  ;;  %p108_p4 = scmp.lt.s32.totalorder %s28_s13, %s28_s13 }
   0xc   :  { %p109_p5 = scmp.lt.s32.totalorder %s107_s24, %s103_s23 }
   0xe   :  { %p110_p6 = por %p109_p5, %p108_p4 }
  0x10   :  { %p111_p7 = pnand %p110_p6, %p104_p3 }
  0x12   :  { %114 = shalt.err (!%p111_p7)
}
  0x13   :  { %30 = dma.hbm_to_vmem [thread:$0]  %s260_s1, 16, %s28_s13, [#allocation6]  }
  0x14   :  { %s115_s29 = scalar_lea.hbm %s259_s0, 64 }
  0x15   :  { %p116_p8 = scmp.ne.s32.totalorder %s259_s0, %s115_s29  ;;  %p119_p9 = scmp.lt.u32.totalorder %s115_s29, %s259_s0 }
  0x17   :  { %p121_p10 = pnand %p119_p9, %p116_p8 }
  0x19   :  { %124 = shalt.err (!%p121_p10)
}
  0x1a   :  { %s125_s7 = scalar_lea.vmem %s18_s15, 64  ;;  %p130_p12 = scmp.lt.s32.totalorder %s18_s15, %s18_s15 }
  0x1b   :  { %p126_p11 = scmp.ne.s32.totalorder %s18_s15, %s125_s7  ;;  %p131_p13 = scmp.lt.s32.totalorder %s125_s7, %s125_s7 }
  0x1d   :  { %p132_p0 = por %p131_p13, %p130_p12 }
  0x1f   :  { %p133_p1 = pnand %p132_p0, %p126_p11 }
  0x21   :  { %136 = shalt.err (!%p133_p1)
}
  0x22   :  { %20 = dma.hbm_to_vmem [thread:$0]  %s259_s0, 64, %s18_s15, [#allocation3]  }
  0x23   :  { %s189_s9 = smov [#allocation7]   ;;  %s137_s13 = scalar_lea.hbm %s261_s2, 16 }
  0x24   :  { %s37_s10 = sshll.u32 %s189_s9, 4  ;;  %p138_p2 = scmp.ne.s32.totalorder %s261_s2, %s137_s13  ;;  %s38_s10 = int_to_ptr.vmem [resolvable:$true] %s37_s10 }
  0x25   :  { %p141_p3 = scmp.lt.u32.totalorder %s137_s13, %s261_s2 }
  0x27   :  { %p143_p4 = pnand %p141_p3, %p138_p2 }
  0x29   :  { %146 = shalt.err (!%p143_p4)
}
  0x2a   :  { %s147_s19 = scalar_lea.vmem %s38_s10, 16  ;;  %s151_s0 = scalar_lea.vmem %s38_s10, 32 }
  0x2b   :  { %p148_p5 = scmp.ne.s32.totalorder %s38_s10, %s147_s19  ;;  %p152_p6 = scmp.lt.s32.totalorder %s38_s10, %s38_s10 }
  0x2c   :  { %p153_p7 = scmp.lt.s32.totalorder %s151_s0, %s147_s19 }
  0x2e   :  { %p154_p8 = por %p153_p7, %p152_p6 }
  0x30   :  { %p155_p9 = pnand %p154_p8, %p148_p5 }
  0x32   :  { %158 = shalt.err (!%p155_p9)
}
  0x33   :  { %40 = dma.hbm_to_vmem [thread:$0]  %s261_s2, 16, %s38_s10, [#allocation6]  }
  0x34   :  { %181 = dma.done.wait [#allocation3], 64  }
  0x35   :  { %182 = vsyncadd [#allocation3], 4294967232 }
  0x36   :  { %183 = dma.done.wait [#allocation6], 32  }
  0x37   :  { %184 = vsyncadd [#allocation6], 4294967264  ;;  %v50_v0 = vld [vmem:[#allocation2] sm:$0xf]  ;;  %v87_v1 = vld [vmem:[#allocation5] ss:$0 sm:$0xff] }
  0x38   :  { %v51_v2 = vunpack.c.l.bf16 %v50_v0  ;;  %v88_v3 = vld [vmem:[#allocation7] ss:$0 sm:$0xff]  ;;  %s190_s21 = smov [#allocation8]  }
  0x39   :  { %s77_s22 = sshll.u32 %s190_s21, 4  ;;  %s78_s22 = int_to_ptr.vmem [resolvable:$true] %s77_s22 }
  0x3a   :  { %v59_v4 = vmul.f32 %v87_v1, %v51_v2  ;;  %s159_s23 = scalar_lea.vmem %s78_s22, 64  ;;  %p164_p11 = scmp.lt.s32.totalorder %s78_s22, %s78_s22 }
  0x3b   :  { %p160_p10 = scmp.ne.s32.totalorder %s78_s22, %s159_s23  ;;  %p165_p12 = scmp.lt.s32.totalorder %s159_s23, %s159_s23 }
  0x3c   :  { %v67_v5 = vadd.f32 %v88_v3, %v59_v4 }
  0x3d   :  { %p166_p13 = por %p165_p12, %p164_p11 }
  0x3e   :  { %v68_v6 = vmax.f32 %v67_v5, 0.0 }
  0x3f   :  { %p167_p0 = pnand %p166_p13, %p160_p10 }
  0x40   :  { %v69_v7 = vpack.c.bf16 %v68_v6, %v68_v6 }
  0x42   :  { %70 = vst [vmem:[#allocation8] sm:$0xf] %v69_v7 }
  0x43   :  { %170 = shalt.err (!%p167_p0)
}
  0x44   :  { %s171_s25 = scalar_lea.hbm %s262_s3, 64 }
  0x45   :  { %p172_p1 = scmp.ne.s32.totalorder %s262_s3, %s171_s25  ;;  %p175_p2 = scmp.lt.u32.totalorder %s171_s25, %s262_s3 }
  0x47   :  { %p177_p3 = pnand %p175_p2, %p172_p1 }
  0x49   :  { %180 = shalt.err (!%p177_p3)
}
  0x4a   :  { %80 = dma.vmem_to_hbm [thread:$0]  %s78_s22, 64, %s262_s3, [#allocation4]  }
  0x4b   :  { %185 = dma.done.wait [#allocation4], 64  }
  0x4c   :  { %186 = vsyncadd [#allocation4], 4294967232 }
  0x4d   :  { %84 = vsyncpa [#allocation3], 1 }
  0x4e   :  { %85 = vsyncpa [#allocation6], 1 }
  0x4f   :  { %86 = vsyncpa [#allocation4], 1 }

// kernel: densenet_forward.43
= control target key start
LH: loop header
LB: loop body
LE: loop exit
PB: predicated region body
PF: predicated region fallthrough
CT: control target
= control target key end

     0   :  { %9 = vsyncpa [#allocation3], 0  ;;  %s1180_s0 = inlined_call_operand.hbm [shape: bf16[32,128], index: 0, kind: input, shape index: {}]   ;;  %s1181_s1 = inlined_call_operand.hbm [shape: bf16[128,128], index: 1, kind: input, shape index: {}]   ;;  %s1182_s2 = inlined_call_operand.hbm [shape: f32[1,128], index: 2, kind: input, shape index: {}]   ;;  %s1183_s3 = inlined_call_operand.hbm [shape: f32[1,128], index: 3, kind: input, shape index: {}]   ;;  %s1184_s4 = inlined_call_operand.hbm [shape: bf16[32,128], index: 4, kind: output, shape index: {}]  }
   0x1   :  { %11 = vsyncpa [#allocation3 + $0x1], 0 }
   0x2   :  { %12 = vsyncpa [#allocation6], 0 }
   0x3   :  { %13 = vsyncpa [#allocation9], 0 }
   0x4   :  { %14 = vsyncpa [#allocation4], 0 }
   0x5   :  { %16 = vsyncpa [#allocation4 + $0x1], 0  ;;  %s907_s15 = smov 0   ;;  %s909_s16 = smov 0  }
   0x6   :  { %s911_s17 = smov 0   ;;  %s913_s18 = smov 0  }
   0x7 LB: > { %s928_s19 = sadd.s32 4294967295, %s869_s18   ;;  %s518_s20 = sadd.s32 4294967294, %s869_s18   ;;  %s869_s18 = sphi %s913_s18, %s1207_s18   ;;  %s865_s17 = sphi %s911_s17, %s1206_s17   ;;  %s861_s16 = sphi %s909_s16, %s1205_s16   ;;  %s857_s15 = sphi %s907_s15, %s1204_s15  }
   0x8   : > { %p42_p0 = scmp.ne.s32.totalorder %s861_s16, %s857_s15  ;;  %p1185_p1 = scmp.eq.s32.totalorder %s928_s19, 0 }
   0x9   : > { %p135_p3 = scmp.eq.s32.totalorder %s518_s20, 1  ;;  %p519_p5 = scmp.ge.s32.totalorder %s869_s18, 1 }
   0xa   : > { %p937_p4 = por %p1185_p1, %p42_p0  ;;  %p142_p7 = scmp.lt.s32.totalorder %s869_s18, 3 }
   0xb   : > { %p942_p6 = por %p135_p3, %p42_p0  ;;  %s871_s24 = smov [#allocation5]  }
   0xc   : > { %s1188_s21 = scalar_select %p937_p4, 1, 0 }
   0xd   : > { %s1189_s22 = scalar_select %p942_p6, 1, 0 }
   0xe   : > { %p947_p8 = pnand %p519_p5, %p142_p7  ;;  %s154_s25 = sshll.u32 %s871_s24, 4  ;;  %s951_s25 = int_to_ptr.vmem [resolvable:$true] %s154_s25 }
   0xf   : > { %s872_s27 = smov [#allocation7]   ;;  %s873_s29 = smov [#allocation8]  }
  0x10   : > { %s1190_s23 = scalar_select %p947_p8, 1, 0 }
  0x11   : > { %p605_p9 = pneg %p947_p8  ;;  %s168_s28 = sshll.u32 %s872_s27, 4  ;;  %s962_s28 = int_to_ptr.vmem [resolvable:$true] %s168_s28 }
  0x12   : > { %s964_s30 = sshll.u32 %s873_s29, 4  ;;  %s681_s7 = scalar_lea.hbm %s1181_s1, 1024  ;;  %s180_s30 = int_to_ptr.vmem [resolvable:$true] %s964_s30 }
  0x13   : > { %p958_p11 = pnand %p605_p9, %p1185_p1  ;;  %p682_p12 = scmp.ne.s32.totalorder %s1181_s1, %s681_s7 }
  0x14   : > { %p688_p5 = scmp.lt.u32.totalorder %s681_s7, %s1181_s1 }
  0x15   : > { %p974_p13 = pneg %p958_p11 }
  0x17   : > { %p684_p0 = pnand %p974_p13, %p682_p12 }
  0x19   : > { %p685_p3 = pneg %p684_p0 }
  0x1b   : > { %p690_p7 = pnand %p688_p5, %p685_p3 }
  0x1d   : > { %693 = shalt.err (!%p690_p7)
}
  0x1e   : > { %s694_s13 = scalar_lea.vmem %s951_s25, 1024  ;;  %p702_p2 = scmp.lt.s32.totalorder %s951_s25, %s951_s25 }
  0x1f   : > { %p695_p9 = scmp.ne.s32.totalorder %s951_s25, %s694_s13  ;;  %p703_p6 = scmp.lt.s32.totalorder %s694_s13, %s694_s13 }
  0x21   : > { %p697_p10 = pnand %p695_p9, %p974_p13  ;;  %p704_p12 = por %p703_p6, %p702_p2 }
  0x23   : > { %p698_p1 = pneg %p697_p10 }
  0x25   : > { %p705_p0 = pnand %p704_p12, %p698_p1 }
  0x27   : > { %708 = shalt.err (!%p705_p0)
}
  0x28   : > { %s874_s14 = smov 64   ;;  %s875_s20 = smov 4  }
  0x29   : > { %608 = dma.hbm_to_vmem [thread:$0]  (!%p958_p11), %s1181_s1, 1024, %s951_s25, [#allocation6], %s874_s14, %s874_s14, %s875_s20  }
  0x2a   : > { %s709_s6 = scalar_lea.hbm %s1182_s2, 16 }
  0x2b   : > { %p710_p1 = scmp.ne.s32.totalorder %s1182_s2, %s709_s6  ;;  %p716_p10 = scmp.lt.u32.totalorder %s709_s6, %s1182_s2 }
  0x2d   : > { %p712_p2 = pnand %p710_p1, %p974_p13 }
  0x2f   : > { %p713_p6 = pneg %p712_p2 }
  0x31   : > { %p718_p3 = pnand %p716_p10, %p713_p6 }
  0x33   : > { %721 = shalt.err (!%p718_p3)
}
  0x34   : > { %s722_s25 = scalar_lea.vmem %s962_s28, 16  ;;  %s729_s12 = scalar_lea.vmem %s962_s28, 32 }
  0x35   : > { %p723_p5 = scmp.ne.s32.totalorder %s962_s28, %s722_s25  ;;  %p730_p12 = scmp.lt.s32.totalorder %s962_s28, %s962_s28 }
  0x36   : > { %p731_p0 = scmp.lt.s32.totalorder %s729_s12, %s722_s25 }
  0x37   : > { %p725_p7 = pnand %p723_p5, %p974_p13 }
  0x38   : > { %p732_p1 = por %p731_p0, %p730_p12 }
  0x39   : > { %p726_p9 = pneg %p725_p7 }
  0x3b   : > { %p733_p2 = pnand %p732_p1, %p726_p9 }
  0x3d   : > { %736 = shalt.err (!%p733_p2)
}
  0x3e   : > { %611 = dma.hbm_to_vmem [thread:$0]  (!%p958_p11), %s1182_s2, 16, %s962_s28, [#allocation6]  }
  0x3f   : > { %s737_s5 = scalar_lea.hbm %s1183_s3, 16 }
  0x40   : > { %p738_p6 = scmp.ne.s32.totalorder %s1183_s3, %s737_s5  ;;  %p744_p5 = scmp.lt.u32.totalorder %s737_s5, %s1183_s3 }
  0x42   : > { %p740_p10 = pnand %p738_p6, %p974_p13 }
  0x44   : > { %p741_p3 = pneg %p740_p10 }
  0x46   : > { %p746_p7 = pnand %p744_p5, %p741_p3 }
  0x48   : > { %749 = shalt.err (!%p746_p7)
}
  0x49   : > { %s750_s11 = scalar_lea.vmem %s180_s30, 16  ;;  %s757_s28 = scalar_lea.vmem %s180_s30, 32 }
  0x4a   : > { %p751_p9 = scmp.ne.s32.totalorder %s180_s30, %s750_s11  ;;  %p758_p1 = scmp.lt.s32.totalorder %s180_s30, %s180_s30 }
  0x4b   : > { %p759_p2 = scmp.lt.s32.totalorder %s757_s28, %s750_s11 }
  0x4c   : > { %p753_p12 = pnand %p751_p9, %p974_p13 }
  0x4d   : > { %p760_p4 = por %p759_p2, %p758_p1 }
  0x4e   : > { %p754_p0 = pneg %p753_p12 }
  0x50   : > { %p761_p8 = pnand %p760_p4, %p754_p0 }
  0x52   : > { %764 = shalt.err (!%p761_p8)
}
  0x53   : > { %614 = dma.hbm_to_vmem [thread:$0]  (!%p958_p11), %s1183_s3, 16, %s180_s30, [#allocation9]  }
  0x54   : > { %s1042_s10 = sadd.s32 1, %s869_s18   ;;  %s29_s26 = sadd.s32 1, %s865_s17 }
  0x55   : > { %s26_s13 = ssub.s32 %s869_s18, %s1042_s10  ;;  %p36_p8 = scmp.ne.s32.totalorder %s865_s17, %s861_s16 }
  0x56   : > { %p27_p4 = scmp.eq.s32.totalorder %s26_s13, 0  ;;  %p37_p13 = scmp.eq.s32.totalorder %s869_s18, 0 }
  0x57   : > { %p626_p6 = scmp.lt.s32.totalorder %s869_s18, 2  ;;  %p1193_p3 = scmp.eq.s32.totalorder %s928_s19, 1 }
  0x58   : > { %s1052_s24 = scalar_select %p27_p4, %s865_s17, %s29_s26  }
  0x59   : > { %p38_p10 = por %p37_p13, %p36_p8  ;;  %p1056_p5 = por %p1193_p3, %p36_p8 }
  0x5a   : > { %s190_s29 = sand.u32 1, %s865_s17   ;;  %s551_s5 = sshll.u32 %s869_s18, 7 }
  0x5b   : > { %s524_s30 = sshll.u32 %s190_s29, 3  ;;  %s1065_s8 = scalar_lea.hbm %s1180_s0, %s551_s5 }
  0x5c   : > { %s194_s9 = scalar_lea.vmem [#allocation2], %s524_s30  ;;  %p1067_p11 = pnand %p626_p6, %p38_p10 }
  0x5d   : > { %s201_s11 = sshll.u32 %s194_s9, 4  ;;  %s1073_s25 = scalar_lea.sflag [#allocation3], %s190_s29  ;;  %s1071_s11 = int_to_ptr.vmem [resolvable:$true] %s201_s11 }
  0x5e   : > { %s765_s12 = scalar_lea.hbm %s1065_s8, 128  ;;  %p767_p9 = pneg %p1067_p11 }
  0x5f   : > { %p766_p7 = scmp.ne.s32.totalorder %s1065_s8, %s765_s12  ;;  %s770_s5 = scalar_lea.hbm %s1180_s0, 256 }
  0x60   : > { %p771_p1 = scmp.lt.u32.totalorder %s1065_s8, %s1180_s0  ;;  %p772_p2 = scmp.lt.u32.totalorder %s770_s5, %s765_s12 }
  0x61   : > { %p768_p12 = pnand %p767_p9, %p766_p7  ;;  %p774_p8 = scmp.lt.u32.totalorder %s765_s12, %s1065_s8 }
  0x62   : > { %p773_p4 = por %p772_p2, %p771_p1 }
  0x63   : > { %p769_p0 = pneg %p768_p12 }
  0x64   : > { %p775_p13 = por %p774_p8, %p773_p4 }
  0x66   : > { %p776_p6 = pnand %p775_p13, %p769_p0 }
  0x68   : > { %779 = shalt.err (!%p776_p6)
}
  0x69   : > { %s780_s29 = scalar_lea.vmem %s1071_s11, 128  ;;  %s876_s7 = smov [#allocation2]  }
  0x6a   : > { %p781_p10 = scmp.ne.s32.totalorder %s1071_s11, %s780_s29  ;;  %s785_s9 = sshll.u32 %s876_s7, 4  ;;  %s786_s9 = int_to_ptr.vmem [resolvable:$false] %s785_s9 }
  0x6b   : > { %s787_s13 = scalar_lea.vmem %s786_s9, 256  ;;  %p788_p12 = scmp.lt.s32.totalorder %s1071_s11, %s786_s9 }
  0x6c   : > { %p783_p3 = pnand %p781_p10, %p767_p9  ;;  %p789_p1 = scmp.lt.s32.totalorder %s787_s13, %s780_s29 }
  0x6e   : > { %p784_p7 = pneg %p783_p3  ;;  %p790_p2 = por %p789_p1, %p788_p12 }
  0x70   : > { %p791_p4 = pnand %p790_p2, %p784_p7 }
  0x72   : > { %794 = shalt.err (!%p791_p4)
}
  0x73   : > { %618 = dma.hbm_to_vmem [thread:$0]  (!%p1067_p11), %s1065_s8, 128, %s1071_s11, %s1073_s25, %s874_s14, %s874_s14, %s875_s20  }
  0x74   : > { %p1196_p9 = scmp.ne.s32.totalorder %s1190_s23, 0 }
  0x75   : > { %s1107_s12 = sand.u32 (!%p1196_p9), 1, %s861_s16   ;;  %p1197_p0 = scmp.ne.s32.totalorder (!%p1196_p9), %s1188_s21, 0 }
  0x76   : > { %213 = sbr.rel (%p1196_p9) target bundleno = 403 (0x193), region = 36  ;;  %s528_s26 = sshll.u32 (!%p1196_p9), %s1107_s12, 3 }
  0x77   : > { %s216_s5 = scalar_lea.sflag (!%p1196_p9), [#allocation3], %s1107_s12  ;;  %s1113_s28 = scalar_lea.vmem (!%p1196_p9), [#allocation2], %s528_s26 }
  0x7d   : > { %840 = dma.done.wait (%p1197_p0), %s216_s5, 128  }
  0x7e   : > { %842 = vsyncadd (%p1197_p0), %s216_s5, 4294967168  ;;  %p1198_p11 = scmp.eq.s32.totalorder %s928_s19, 0 }
  0x80   : > { %844 = dma.done.wait (%p1198_p11), [#allocation6], 1040   ;;  %p1199_p8 = pmov %p1198_p11 }
  0x82   : > { %846 = vsyncadd (%p1199_p8), [#allocation6], 4294966256  ;;  %p1200_p13 = pmov %p1199_p8 }
  0x83   : > { %p1201_p6 = pmov %p1199_p8 }
  0x84   : > { %848 = dma.done.wait (%p1200_p13), [#allocation9], 16  }
  0x85   : > { %850 = vsyncadd (%p1201_p6), [#allocation9], 4294967280  ;;  %v877_v0 = vmov 0.0   ;;  %vm878_vm0 = vmmov 0   ;;  %v672_v1 = vld [vmem:[#allocation5] sm:$0xff]   ;;  %v673_v2 = vld [vmem:[#allocation5 + $0x8] sm:$0xff]  }
  0x86   : > { %569 = vmatprep.subr.bf16.mxu0 %v877_v0  ;;  %585 = vmatprep.mubr.msk.bf16.mxu0 %vm878_vm0, %v877_v0  ;;  %v674_v3 = vld [vmem:[#allocation5 + $0x10] sm:$0xff]   ;;  %v675_v4 = vld [vmem:[#allocation5 + $0x18] sm:$0xff]   ;;  %v676_v5 = vld [vmem:[#allocation5 + $0x20] sm:$0xff]   ;;  %s554_s21 = sshll.u32 %s928_s19, 7  ;;  %s255_s23 = scalar_lea.vmem [#allocation10], %s528_s26 }
  0x87   : > { %570 = vmatpush3.bf16.msra.mxu0 %v672_v1  ;;  %v677_v6 = vld [vmem:[#allocation5 + $0x28] sm:$0xff]   ;;  %v678_v7 = vld [vmem:[#allocation5 + $0x30] sm:$0xff]   ;;  %v679_v8 = vld [vmem:[#allocation5 + $0x38] sm:$0xff]   ;;  %s416_s14 = sshll.u32 %s255_s23, 4  ;;  %s1134_s11 = scalar_lea.hbm %s1184_s4, %s554_s21  ;;  %s1136_s14 = int_to_ptr.vmem [resolvable:$true] %s416_s14 }
  0x88   : > { %571 = vmatprep.subr.bf16.mxu0 %v877_v0  ;;  %v680_v9 = vld [vmem:[%s1113_s28] sm:$0xff]   ;;  %v542_v10 = vld [vmem:[#allocation7] ss:$0 sm:$0xff]  ;;  %v543_v12 = vld [vmem:[#allocation8] ss:$0 sm:$0xff]  ;;  %s403_s25 = scalar_lea.sflag [#allocation4], %s1107_s12 }
  0x89   : > { %s795_s30 = scalar_lea.vmem %s1136_s14, 128  ;;  %s879_s19 = smov [#allocation10]  }
  0x8a   : > { %p796_p10 = scmp.ne.s32.totalorder %s1136_s14, %s795_s30  ;;  %s799_s6 = sshll.u32 %s879_s19, 4  ;;  %s800_s6 = int_to_ptr.vmem [resolvable:$false] %s799_s6 }
  0x8b   : > { %572 = vmatpush3.bf16.msra.mxu0 %v673_v2  ;;  %s801_s29 = scalar_lea.vmem %s800_s6, 256  ;;  %p802_p12 = scmp.lt.s32.totalorder %s1136_s14, %s800_s6 }
  0x8c   : > { %573 = vmatprep.subr.bf16.mxu0 %v877_v0  ;;  %p797_p3 = pnand %p796_p10, %p1056_p5  ;;  %p803_p1 = scmp.lt.s32.totalorder %s801_s29, %s795_s30 }
  0x8e   : > { %p798_p7 = pneg %p797_p3  ;;  %p804_p2 = por %p803_p1, %p802_p12 }
  0x8f   : > { %574 = vmatpush3.bf16.msra.mxu0 %v674_v3 }
  0x90   : > { %575 = vmatprep.subr.bf16.mxu0 %v877_v0  ;;  %p805_p4 = pnand %p804_p2, %p798_p7 }
  0x93   : > { %576 = vmatpush3.bf16.msra.mxu0 %v675_v4 }
  0x94   : > { %577 = vmatprep.subr.bf16.mxu0 %v877_v0 }
  0x97   : > { %578 = vmatpush3.bf16.msra.mxu0 %v676_v5 }
  0x98   : > { %579 = vmatprep.subr.bf16.mxu0 %v877_v0 }
  0x9b   : > { %580 = vmatpush3.bf16.msra.mxu0 %v677_v6 }
  0x9c   : > { %581 = vmatprep.subr.bf16.mxu0 %v877_v0 }
  0x9f   : > { %582 = vmatpush3.bf16.msra.mxu0 %v678_v7 }
  0xa0   : > { %583 = vmatprep.subr.bf16.mxu0 %v877_v0 }
  0xa3   : > { %584 = vmatpush3.bf16.msra.mxu0 %v679_v8 }
  0xa6   : > { %586 = vmatmul.mubr.bf16.vlgmr.msra.gmra.mrb[0].mxu0 %v680_v9 }
 0x179   : > { %v365_v11 = vpop.f32.mrb[0].mxu0 }
 0x17a   : > { %v379_v13 = vmul.f32 %v542_v10, %v365_v11  ;;  %v587_v14 = vpop.f32.mrb[1].mxu0 }
 0x17b   : > { %v368_v15 = vpop.f32.mrb[2].mxu0 }
 0x17c   : > { %v388_v16 = vadd.f32 %v543_v12, %v379_v13  ;;  %v380_v17 = vmul.f32 %v542_v10, %v368_v15  ;;  %v588_v18 = vpop.f32.mrb[3].mxu0 }
 0x17e   : > { %v389_v19 = vadd.f32 %v543_v12, %v380_v17  ;;  %v390_v20 = vmax.f32 %v388_v16, 0.0 }
 0x180   : > { %v391_v21 = vmax.f32 %v389_v19, 0.0 }
 0x182   : > { %v558_v22 = vpack.c.bf16 %v391_v21, %v390_v20 }
 0x184   : > { %559 = vst [vmem:[%s255_s23] sm:$0xff] %v558_v22  }
 0x185   : > { %808 = shalt.err (!%p805_p4)
}
 0x186   : > { %s809_s7 = scalar_lea.hbm %s1134_s11, 128  ;;  %s813_s26 = scalar_lea.hbm %s1184_s4, 256 }
 0x187   : > { %p810_p9 = scmp.ne.s32.totalorder %s1134_s11, %s809_s7  ;;  %p814_p8 = scmp.lt.u32.totalorder %s1134_s11, %s1184_s4 }
 0x188   : > { %p815_p13 = scmp.lt.u32.totalorder %s813_s26, %s809_s7  ;;  %p817_p10 = scmp.lt.u32.totalorder %s809_s7, %s1134_s11 }
 0x189   : > { %p811_p0 = pnand %p810_p9, %p1056_p5 }
 0x18a   : > { %p816_p6 = por %p815_p13, %p814_p8 }
 0x18b   : > { %p812_p11 = pneg %p811_p0 }
 0x18c   : > { %p818_p3 = por %p817_p10, %p816_p6 }
 0x18e   : > { %p819_p7 = pnand %p818_p3, %p812_p11 }
 0x190   : > { %822 = shalt.err (!%p819_p7)
}
 0x191   : > { %s880_s21 = smov 64   ;;  %s881_s23 = smov 4  }
 0x192   : > { %603 = dma.vmem_to_hbm [thread:$0]  (%p1056_p5), %s1136_s14, 128, %s1134_s11, %s403_s25, %s880_s21, %s880_s21, %s881_s23  }
 0x193 PF: > { %s431_s20 = sand.u32 1, %s857_s15   ;;  %p1202_p12 = scmp.ne.s32.totalorder %s1189_s22, 0 }
 0x194   : > { %p1203_p1 = scmp.ge.s32.totalorder %s869_s18, 2  ;;  %s432_s8 = scalar_lea.sflag [#allocation4], %s431_s20 }
 0x196   : > { %p620_p2 = pnand %p1203_p1, %p1202_p12 }
 0x198   : > { %852 = dma.done.wait (!%p620_p2), %s432_s8, 128  }
 0x199   : > { %854 = vsyncadd (!%p620_p2), %s432_s8, 4294967168  ;;  %p19_p4 = scmp.ge.s32.totalorder %s1042_s10, 4   ;;  %s1204_s15 = smov %s861_s16 }
 0x19a   : > { %s1205_s16 = smov %s865_s17  ;;  %s1206_s17 = smov %s1052_s24 }
 0x19b   : > { %s1207_s18 = smov %s1042_s10  ;;  %21 = sbr.rel (!%p19_p4) target bundleno = 7 (0x7), region = 93 }
 0x1a2   :  { %437 = vsyncpa [#allocation3], 1 }
 0x1a3   :  { %439 = vsyncpa [#allocation3 + $0x1], 1 }
 0x1a4   :  { %440 = vsyncpa [#allocation6], 1 }
 0x1a5   :  { %441 = vsyncpa [#allocation9], 1 }
 0x1a6   :  { %442 = vsyncpa [#allocation4], 1 }
 0x1a7   :  { %444 = vsyncpa [#allocation4 + $0x1], 1 }

// kernel: tile.139
= control target key start
LH: loop header
LB: loop body
LE: loop exit
PB: predicated region body
PF: predicated region fallthrough
CT: control target
= control target key end

     0   :  { %s22_s0 = inlined_call_operand.vmem [shape: f32[24], index: 0, kind: input, shape index: {}]   ;;  %s23_s1 = inlined_call_operand.vmem [shape: f32[4,24], index: 1, kind: output, shape index: {}]  }
   0x1   :  { %v4_v0 = vld [vmem:[%s22_s0] ss:$0 sm:$0xff] }
   0x2   :  { %5 = vst [vmem:[%s23_s1] sm:$0xf] %v4_v0 }

// kernel: tile.144
= control target key start
LH: loop header
LB: loop body
LE: loop exit
PB: predicated region body
PF: predicated region fallthrough
CT: control target
= control target key end

     0   :  { %vm7_vm0 = vcmask 195584   ;;  %s37_s8 = smov 24   ;;  %s38_s9 = smov 48   ;;  %vm13_vm1 = vcmask 785984   ;;  %vm19_vm2 = vcmask 589184   ;;  %vm25_vm3 = vcmask 392384   ;;  %s55_s0 = inlined_call_operand.vmem [shape: f32[4,24], index: 0, kind: input, shape index: {}]   ;;  %s56_s1 = inlined_call_operand.vmem [shape: f32[1,96], index: 1, kind: output, shape index: {}]  }
   0x1   :  { %v4_v0 = vld [vmem:[%s55_s0] sm:$0xf]  ;;  %s36_s0 = smov 72  }
   0x2   :  { %5 = vst [vmem:[#allocation1] sm:$0xf] %v4_v0 }
   0x9   :  { %v10_v1 = vld [vmem:[#allocation1 + $0x3] sm:$0x1]   ;;  %v22_v2 = vld [vmem:[#allocation1 + $0x1] sm:$0x1]   ;;  %v6_v3 = vld [vmem:[#allocation1] sm:$0x1]  }
   0xa   :  { %11 = vrot.lane.b32.xlu0 %v10_v1, %s36_s0  ;;  %23 = vrot.lane.b32.xlu1 %v22_v2, %s37_s8  ;;  %v16_v4 = vld [vmem:[#allocation1 + $0x2] sm:$0x1]   ;;  %8 = vst.msk [vmem:[#allocation0] sm:$0x1] %vm7_vm0, %v6_v3  }
   0xe   :  { %17 = vrot.lane.b32.xlu0 %v16_v4, %s38_s9 }
  0x7c   :  { %v12_v5 = vpop.permute.xlu0 %11   ;;  %v24_v6 = vpop.permute.xlu1 %23  }
  0x7d   :  { %14 = vst.msk [vmem:[#allocation0] sm:$0x1] %vm13_vm1, %v12_v5  }
  0x80   :  { %v18_v7 = vpop.permute.xlu0 %17  }
  0x81   :  { %20 = vst.msk [vmem:[#allocation0] sm:$0x1] %vm19_vm2, %v18_v7  }
  0x82   :  { %26 = vst.msk [vmem:[#allocation0] sm:$0x1] %vm25_vm3, %v24_v6  }
  0x89   :  { %v30_v8 = vld [vmem:[#allocation0] sm:$0x1] }
  0x8a   :  { %32 = vst [vmem:[%s56_s1] sm:$0x1] %v30_v8 }

// kernel: tile.149
= control target key start
LH: loop header
LB: loop body
LE: loop exit
PB: predicated region body
PF: predicated region fallthrough
CT: control target
= control target key end

     0   :  { %s22_s0 = inlined_call_operand.vmem [shape: f32[32], index: 0, kind: input, shape index: {}]   ;;  %s23_s1 = inlined_call_operand.vmem [shape: f32[4,32], index: 1, kind: output, shape index: {}]  }
   0x1   :  { %v4_v0 = vld [vmem:[%s22_s0] ss:$0 sm:$0xff] }
   0x2   :  { %5 = vst [vmem:[%s23_s1] sm:$0xf] %v4_v0 }

// kernel: tile.154
= control target key start
LH: loop header
LB: loop body
LE: loop exit
PB: predicated region body
PF: predicated region fallthrough
CT: control target
= control target key end

     0   :  { %s101_s0 = inlined_call_operand.vmem [shape: f32[4,32], index: 0, kind: input, shape index: {}]   ;;  %s102_s1 = inlined_call_operand.hbm [shape: f32[1,128], index: 1, kind: output, shape index: {}]  }
   0x1   :  { %v5_v0 = vld [vmem:[%s101_s0] sm:$0xf] }
   0x2   :  { %6 = vst [vmem:[#allocation3] sm:$0xf] %v5_v0 }
   0x3   :  { %2 = vsyncpa [#allocation1], 0  ;;  %vm8_vm0 = vcmask 261120   ;;  %s72_s0 = smov 96   ;;  %s73_s8 = smov 32   ;;  %vm14_vm1 = vcmask 1048320  }
   0x4   :  { %s74_s9 = smov 64   ;;  %vm20_vm2 = vcmask 785920   ;;  %vm26_vm3 = vcmask 523520   ;;  %s75_s10 = smov [#allocation0]  }
   0x5   :  { %s38_s11 = sshll.u32 %s75_s10, 4  ;;  %s39_s11 = int_to_ptr.vmem [resolvable:$true] %s38_s11 }
   0x6   :  { %s48_s12 = scalar_lea.vmem %s39_s11, 16  ;;  %s52_s13 = scalar_lea.vmem %s39_s11, 32 }
   0x7   :  { %p49_p0 = scmp.ne.s32.totalorder %s39_s11, %s48_s12  ;;  %p53_p1 = scmp.lt.s32.totalorder %s39_s11, %s39_s11 }
   0x8   :  { %p54_p2 = scmp.lt.s32.totalorder %s52_s13, %s48_s12 }
   0x9   :  { %v11_v1 = vld [vmem:[#allocation3 + $0x3] sm:$0x1]   ;;  %v23_v2 = vld [vmem:[#allocation3 + $0x1] sm:$0x1]   ;;  %v7_v3 = vld [vmem:[#allocation3] sm:$0x1]  }
   0xa   :  { %12 = vrot.lane.b32.xlu0 %v11_v1, %s72_s0  ;;  %24 = vrot.lane.b32.xlu1 %v23_v2, %s73_s8  ;;  %v17_v4 = vld [vmem:[#allocation3 + $0x2] sm:$0x1]   ;;  %9 = vst.msk [vmem:[#allocation2] sm:$0x1] %vm8_vm0, %v7_v3   ;;  %p55_p3 = por %p54_p2, %p53_p1 }
   0xc   :  { %p56_p4 = pnand %p55_p3, %p49_p0 }
   0xe   :  { %18 = vrot.lane.b32.xlu0 %v17_v4, %s74_s9 }
  0x7c   :  { %v13_v5 = vpop.permute.xlu0 %12   ;;  %v25_v6 = vpop.permute.xlu1 %24  }
  0x7d   :  { %15 = vst.msk [vmem:[#allocation2] sm:$0x1] %vm14_vm1, %v13_v5  }
  0x80   :  { %v19_v7 = vpop.permute.xlu0 %18  }
  0x81   :  { %21 = vst.msk [vmem:[#allocation2] sm:$0x1] %vm20_vm2, %v19_v7  }
  0x82   :  { %27 = vst.msk [vmem:[#allocation2] sm:$0x1] %vm26_vm3, %v25_v6  }
  0x89   :  { %v31_v8 = vld [vmem:[#allocation2] sm:$0x1] }
  0x8a   :  { %33 = vst [vmem:[#allocation0] sm:$0x1] %v31_v8 }
  0x8b   :  { %59 = shalt.err (!%p56_p4)
}
  0x8c   :  { %s60_s16 = scalar_lea.hbm %s102_s1, 16 }
  0x8d   :  { %p61_p5 = scmp.ne.s32.totalorder %s102_s1, %s60_s16  ;;  %p64_p6 = scmp.lt.u32.totalorder %s60_s16, %s102_s1 }
  0x8f   :  { %p66_p7 = pnand %p64_p6, %p61_p5 }
  0x91   :  { %69 = shalt.err (!%p66_p7)
}
  0x92   :  { %41 = dma.vmem_to_hbm [thread:$0]  %s39_s11, 16, %s102_s1, [#allocation1]  }
  0x93   :  { %70 = dma.done.wait [#allocation1], 16  }
  0x94   :  { %71 = vsyncadd [#allocation1], 4294967280 }
  0x95   :  { %43 = vsyncpa [#allocation1], 1 }

// kernel: tile.159
= control target key start
LH: loop header
LB: loop body
LE: loop exit
PB: predicated region body
PF: predicated region fallthrough
CT: control target
= control target key end

     0   :  { %s22_s0 = inlined_call_operand.vmem [shape: f32[16], index: 0, kind: input, shape index: {}]   ;;  %s23_s1 = inlined_call_operand.vmem [shape: f32[2,16], index: 1, kind: output, shape index: {}]  }
   0x1   :  { %v4_v0 = vld [vmem:[%s22_s0] ss:$0 sm:$0xff] }
   0x2   :  { %5 = vst [vmem:[%s23_s1] sm:$0x3] %v4_v0 }

// kernel: tile.164
= control target key start
LH: loop header
LB: loop body
LE: loop exit
PB: predicated region body
PF: predicated region fallthrough
CT: control target
= control target key end

     0   :  { %vm7_vm0 = vcmask 130048   ;;  %vm13_vm1 = vcmask 261248   ;;  %s39_s0 = inlined_call_operand.vmem [shape: f32[2,16], index: 0, kind: input, shape index: {}]   ;;  %s40_s1 = inlined_call_operand.vmem [shape: f32[1,32], index: 1, kind: output, shape index: {}]  }
   0x1   :  { %v4_v0 = vld [vmem:[%s39_s0] sm:$0x3]  ;;  %s22_s0 = smov 16  }
   0x2   :  { %5 = vst [vmem:[#allocation1] sm:$0x3] %v4_v0 }
   0x9   :  { %v10_v1 = vld [vmem:[#allocation1 + $0x1] sm:$0x1]   ;;  %v6_v2 = vld [vmem:[#allocation1] sm:$0x1]  }
   0xa   :  { %11 = vrot.lane.b32.xlu0 %v10_v1, %s22_s0  ;;  %8 = vst.msk [vmem:[#allocation0] sm:$0x1] %vm7_vm0, %v6_v2  }
  0x7c   :  { %v12_v3 = vpop.permute.xlu0 %11  }
  0x7d   :  { %14 = vst.msk [vmem:[#allocation0] sm:$0x1] %vm13_vm1, %v12_v3  }
  0x84   :  { %v18_v4 = vld [vmem:[#allocation0] sm:$0x1] }
  0x85   :  { %20 = vst [vmem:[%s40_s1] sm:$0x1] %v18_v4 }

// kernel: densenet_forward.44
= control target key start
LH: loop header
LB: loop body
LE: loop exit
PB: predicated region body
PF: predicated region fallthrough
CT: control target
= control target key end

     0   :  { %9 = vsyncpa [#allocation3], 0  ;;  %s1417_s0 = inlined_call_operand.hbm [shape: bf16[32,384], index: 0, kind: input, shape index: {}]   ;;  %s1418_s1 = inlined_call_operand.hbm [shape: bf16[384,128], index: 1, kind: input, shape index: {}]   ;;  %s1419_s2 = inlined_call_operand.hbm [shape: f32[1,128], index: 2, kind: input, shape index: {}]   ;;  %s1420_s3 = inlined_call_operand.hbm [shape: f32[1,128], index: 3, kind: input, shape index: {}]   ;;  %s1421_s4 = inlined_call_operand.hbm [shape: bf16[32,128], index: 4, kind: output, shape index: {}]  }
   0x1   :  { %11 = vsyncpa [#allocation3 + $0x1], 0 }
   0x2   :  { %12 = vsyncpa [#allocation6], 0 }
   0x3   :  { %13 = vsyncpa [#allocation9], 0 }
   0x4   :  { %14 = vsyncpa [#allocation4], 0 }
   0x5   :  { %16 = vsyncpa [#allocation4 + $0x1], 0  ;;  %s1151_s15 = smov 0   ;;  %s1153_s16 = smov 0  }
   0x6   :  { %s1155_s17 = smov 0   ;;  %s1157_s18 = smov 0  }
   0x7 LB: > { %s1172_s19 = sadd.s32 4294967295, %s1111_s18   ;;  %s698_s20 = sadd.s32 4294967294, %s1111_s18   ;;  %s1111_s18 = sphi %s1157_s18, %s1444_s18   ;;  %s1107_s17 = sphi %s1155_s17, %s1443_s17   ;;  %s1103_s16 = sphi %s1153_s16, %s1442_s16   ;;  %s1099_s15 = sphi %s1151_s15, %s1441_s15  }
   0x8   : > { %p42_p0 = scmp.ne.s32.totalorder %s1103_s16, %s1099_s15  ;;  %p1422_p1 = scmp.eq.s32.totalorder %s1172_s19, 0 }
   0x9   : > { %p135_p3 = scmp.eq.s32.totalorder %s698_s20, 1  ;;  %p699_p5 = scmp.ge.s32.totalorder %s1111_s18, 1 }
   0xa   : > { %p1181_p4 = por %p1422_p1, %p42_p0  ;;  %p142_p7 = scmp.lt.s32.totalorder %s1111_s18, 3 }
   0xb   : > { %p1186_p6 = por %p135_p3, %p42_p0  ;;  %s1113_s24 = smov [#allocation5]  }
   0xc   : > { %s1425_s21 = scalar_select %p1181_p4, 1, 0 }
   0xd   : > { %s1426_s22 = scalar_select %p1186_p6, 1, 0 }
   0xe   : > { %p1191_p8 = pnand %p699_p5, %p142_p7  ;;  %s154_s25 = sshll.u32 %s1113_s24, 4  ;;  %s1195_s25 = int_to_ptr.vmem [resolvable:$true] %s154_s25 }
   0xf   : > { %s1114_s27 = smov [#allocation7]   ;;  %s1115_s29 = smov [#allocation8]  }
  0x10   : > { %s1427_s23 = scalar_select %p1191_p8, 1, 0 }
  0x11   : > { %p826_p9 = pneg %p1191_p8  ;;  %s168_s28 = sshll.u32 %s1114_s27, 4  ;;  %s1206_s28 = int_to_ptr.vmem [resolvable:$true] %s168_s28 }
  0x12   : > { %s1208_s30 = sshll.u32 %s1115_s29, 4  ;;  %s923_s7 = scalar_lea.hbm %s1418_s1, 3072  ;;  %s180_s30 = int_to_ptr.vmem [resolvable:$true] %s1208_s30 }
  0x13   : > { %p1202_p11 = pnand %p826_p9, %p1422_p1  ;;  %p924_p12 = scmp.ne.s32.totalorder %s1418_s1, %s923_s7 }
  0x14   : > { %p930_p5 = scmp.lt.u32.totalorder %s923_s7, %s1418_s1 }
  0x15   : > { %p1218_p13 = pneg %p1202_p11 }
  0x17   : > { %p926_p0 = pnand %p1218_p13, %p924_p12 }
  0x19   : > { %p927_p3 = pneg %p926_p0 }
  0x1b   : > { %p932_p7 = pnand %p930_p5, %p927_p3 }
  0x1d   : > { %935 = shalt.err (!%p932_p7)
}
  0x1e   : > { %s936_s13 = scalar_lea.vmem %s1195_s25, 3072  ;;  %p944_p2 = scmp.lt.s32.totalorder %s1195_s25, %s1195_s25 }
  0x1f   : > { %p937_p9 = scmp.ne.s32.totalorder %s1195_s25, %s936_s13  ;;  %p945_p6 = scmp.lt.s32.totalorder %s936_s13, %s936_s13 }
  0x21   : > { %p939_p10 = pnand %p937_p9, %p1218_p13  ;;  %p946_p12 = por %p945_p6, %p944_p2 }
  0x23   : > { %p940_p1 = pneg %p939_p10 }
  0x25   : > { %p947_p0 = pnand %p946_p12, %p940_p1 }
  0x27   : > { %950 = shalt.err (!%p947_p0)
}
  0x28   : > { %s1116_s14 = smov 64   ;;  %s1117_s20 = smov 4  }
  0x29   : > { %829 = dma.hbm_to_vmem [thread:$0]  (!%p1202_p11), %s1418_s1, 3072, %s1195_s25, [#allocation6], %s1116_s14, %s1116_s14, %s1117_s20  }
  0x2a   : > { %s951_s6 = scalar_lea.hbm %s1419_s2, 16 }
  0x2b   : > { %p952_p2 = scmp.ne.s32.totalorder %s1419_s2, %s951_s6  ;;  %p958_p10 = scmp.lt.u32.totalorder %s951_s6, %s1419_s2 }
  0x2d   : > { %p954_p1 = pnand %p952_p2, %p1218_p13 }
  0x2f   : > { %p955_p6 = pneg %p954_p1 }
  0x31   : > { %p960_p3 = pnand %p958_p10, %p955_p6 }
  0x33   : > { %963 = shalt.err (!%p960_p3)
}
  0x34   : > { %s964_s25 = scalar_lea.vmem %s1206_s28, 16  ;;  %s971_s12 = scalar_lea.vmem %s1206_s28, 32 }
  0x35   : > { %p965_p5 = scmp.ne.s32.totalorder %s1206_s28, %s964_s25  ;;  %p972_p12 = scmp.lt.s32.totalorder %s1206_s28, %s1206_s28 }
  0x36   : > { %p973_p0 = scmp.lt.s32.totalorder %s971_s12, %s964_s25 }
  0x37   : > { %p967_p7 = pnand %p965_p5, %p1218_p13 }
  0x38   : > { %p974_p2 = por %p973_p0, %p972_p12 }
  0x39   : > { %p968_p9 = pneg %p967_p7 }
  0x3b   : > { %p975_p1 = pnand %p974_p2, %p968_p9 }
  0x3d   : > { %978 = shalt.err (!%p975_p1)
}
  0x3e   : > { %832 = dma.hbm_to_vmem [thread:$0]  (!%p1202_p11), %s1419_s2, 16, %s1206_s28, [#allocation6]  }
  0x3f   : > { %s979_s27 = scalar_lea.hbm %s1420_s3, 16 }
  0x40   : > { %p980_p6 = scmp.ne.s32.totalorder %s1420_s3, %s979_s27  ;;  %p986_p5 = scmp.lt.u32.totalorder %s979_s27, %s1420_s3 }
  0x42   : > { %p982_p10 = pnand %p980_p6, %p1218_p13 }
  0x44   : > { %p983_p3 = pneg %p982_p10 }
  0x46   : > { %p988_p7 = pnand %p986_p5, %p983_p3 }
  0x48   : > { %991 = shalt.err (!%p988_p7)
}
  0x49   : > { %s992_s8 = scalar_lea.vmem %s180_s30, 16  ;;  %s999_s28 = scalar_lea.vmem %s180_s30, 32 }
  0x4a   : > { %p993_p9 = scmp.ne.s32.totalorder %s180_s30, %s992_s8  ;;  %p1000_p2 = scmp.lt.s32.totalorder %s180_s30, %s180_s30 }
  0x4b   : > { %p1001_p1 = scmp.lt.s32.totalorder %s999_s28, %s992_s8 }
  0x4c   : > { %p995_p12 = pnand %p993_p9, %p1218_p13 }
  0x4d   : > { %p1002_p4 = por %p1001_p1, %p1000_p2 }
  0x4e   : > { %p996_p0 = pneg %p995_p12 }
  0x50   : > { %p1003_p8 = pnand %p1002_p4, %p996_p0 }
  0x52   : > { %1006 = shalt.err (!%p1003_p8)
}
  0x53   : > { %835 = dma.hbm_to_vmem [thread:$0]  (!%p1202_p11), %s1420_s3, 16, %s180_s30, [#allocation9]  }
  0x54   : > { %s1283_s10 = sadd.s32 1, %s1111_s18   ;;  %s29_s26 = sadd.s32 1, %s1107_s17 }
  0x55   : > { %s26_s25 = ssub.s32 %s1111_s18, %s1283_s10  ;;  %p36_p8 = scmp.ne.s32.totalorder %s1107_s17, %s1103_s16 }
  0x56   : > { %p27_p4 = scmp.eq.s32.totalorder %s26_s25, 0  ;;  %p37_p13 = scmp.eq.s32.totalorder %s1111_s18, 0 }
  0x57   : > { %p847_p6 = scmp.lt.s32.totalorder %s1111_s18, 2  ;;  %p1430_p3 = scmp.eq.s32.totalorder %s1172_s19, 1 }
  0x58   : > { %s1293_s12 = scalar_select %p27_p4, %s1107_s17, %s29_s26  }
  0x59   : > { %p38_p10 = por %p37_p13, %p36_p8  ;;  %p1297_p5 = por %p1430_p3, %p36_p8 }
  0x5a   : > { %s190_s14 = sand.u32 1, %s1107_s17   ;;  %s808_s20 = smul.u32 384, %s1111_s18 }
  0x5b   : > { %s807_s30 = smul.u32 24, %s190_s14  ;;  %p1308_p11 = pnand %p847_p6, %p38_p10 }
  0x5c   : > { %s1306_s29 = scalar_lea.hbm %s1417_s0, %s808_s20  ;;  %s1314_s8 = scalar_lea.sflag [#allocation3], %s190_s14 }
  0x5d   : > { %s194_s6 = scalar_lea.vmem [#allocation2], %s807_s30  ;;  %s1007_s28 = scalar_lea.hbm %s1306_s29, 384 }
  0x5e   : > { %s202_s7 = sshll.u32 %s194_s6, 4  ;;  %p1008_p7 = scmp.ne.s32.totalorder %s1306_s29, %s1007_s28  ;;  %s1312_s7 = int_to_ptr.vmem [resolvable:$true] %s202_s7 }
  0x5f   : > { %p1009_p9 = pneg %p1308_p11  ;;  %s1012_s25 = scalar_lea.hbm %s1417_s0, 768 }
  0x60   : > { %p1013_p2 = scmp.lt.u32.totalorder %s1306_s29, %s1417_s0  ;;  %p1014_p1 = scmp.lt.u32.totalorder %s1012_s25, %s1007_s28 }
  0x61   : > { %p1010_p12 = pnand %p1009_p9, %p1008_p7  ;;  %p1016_p8 = scmp.lt.u32.totalorder %s1007_s28, %s1306_s29 }
  0x62   : > { %p1015_p4 = por %p1014_p1, %p1013_p2 }
  0x63   : > { %p1011_p0 = pneg %p1010_p12 }
  0x64   : > { %p1017_p13 = por %p1016_p8, %p1015_p4 }
  0x66   : > { %p1018_p6 = pnand %p1017_p13, %p1011_p0 }
  0x68   : > { %1021 = shalt.err (!%p1018_p6)
}
  0x69   : > { %s1022_s14 = scalar_lea.vmem %s1312_s7, 384  ;;  %s1118_s30 = smov [#allocation2]  }
  0x6a   : > { %p1023_p10 = scmp.ne.s32.totalorder %s1312_s7, %s1022_s14  ;;  %s1027_s24 = sshll.u32 %s1118_s30, 4  ;;  %s1028_s24 = int_to_ptr.vmem [resolvable:$false] %s1027_s24 }
  0x6b   : > { %s1029_s27 = scalar_lea.vmem %s1028_s24, 768  ;;  %p1030_p12 = scmp.lt.s32.totalorder %s1312_s7, %s1028_s24 }
  0x6c   : > { %p1025_p3 = pnand %p1023_p10, %p1009_p9  ;;  %p1031_p2 = scmp.lt.s32.totalorder %s1029_s27, %s1022_s14 }
  0x6e   : > { %p1026_p7 = pneg %p1025_p3  ;;  %p1032_p1 = por %p1031_p2, %p1030_p12 }
  0x70   : > { %p1033_p4 = pnand %p1032_p1, %p1026_p7 }
  0x72   : > { %1036 = shalt.err (!%p1033_p4)
}
  0x73   : > { %s1119_s6 = smov 192   ;;  %s1120_s28 = smov 12  }
  0x74   : > { %839 = dma.hbm_to_vmem [thread:$0]  (!%p1308_p11), %s1306_s29, 384, %s1312_s7, %s1314_s8, %s1119_s6, %s1119_s6, %s1120_s28  }
  0x75   : > { %p1433_p9 = scmp.ne.s32.totalorder %s1427_s23, 0 }
  0x76   : > { %s1345_s9 = sand.u32 (!%p1433_p9), 1, %s1103_s16   ;;  %p1434_p0 = scmp.ne.s32.totalorder (!%p1433_p9), %s1425_s21, 0 }
  0x77   : > { %214 = sbr.rel (%p1433_p9) target bundleno = 408 (0x198), region = 36  ;;  %s217_s25 = scalar_lea.sflag (!%p1433_p9), [#allocation3], %s1345_s9 }
  0x78   : > { %s809_s11 = smul.u32 (!%p1433_p9), 24, %s1345_s9 }
  0x7a   : > { %s1349_s26 = scalar_lea.vmem (!%p1433_p9), [#allocation2], %s809_s11 }
  0x7e   : > { %1082 = dma.done.wait (%p1434_p0), %s217_s25, 384  }
  0x7f   : > { %1084 = vsyncadd (%p1434_p0), %s217_s25, 4294966912  ;;  %p1435_p11 = scmp.eq.s32.totalorder %s1172_s19, 0 }
  0x81   : > { %1086 = dma.done.wait (%p1435_p11), [#allocation6], 3088   ;;  %p1436_p8 = pmov %p1435_p11 }
  0x83   : > { %1088 = vsyncadd (%p1436_p8), [#allocation6], 4294964208  ;;  %p1437_p13 = pmov %p1436_p8 }
  0x84   : > { %p1438_p6 = pmov %p1436_p8 }
  0x85   : > { %1090 = dma.done.wait (%p1437_p13), [#allocation9], 16  }
  0x86   : > { %1092 = vsyncadd (%p1438_p6), [#allocation9], 4294967280  ;;  %v1121_v0 = vmov 0.0   ;;  %vm1122_vm0 = vmmov 0   ;;  %v895_v1 = vld [vmem:[#allocation5 + $0x40] sm:$0xff]   ;;  %v898_v4 = vld [vmem:[#allocation5 + $0x48] sm:$0xff]  }
  0x87   : > { %787 = vmatprep.subr.bf16.mxu1 %v1121_v0  ;;  %803 = vmatprep.mubr.msk.bf16.mxu1 %vm1122_vm0, %v1121_v0  ;;  %v896_v2 = vld [vmem:[#allocation5] sm:$0xff]   ;;  %v899_v5 = vld [vmem:[#allocation5 + $0x8] sm:$0xff]   ;;  %v901_v7 = vld [vmem:[#allocation5 + $0x50] sm:$0xff]   ;;  %s711_s21 = sshll.u32 %s1345_s9, 3  ;;  %s750_s23 = sshll.u32 %s1172_s19, 7 }
  0x88   : > { %756 = vmatprep.subr.bf16.mxu0 %v895_v1  ;;  %v897_v3 = vld [vmem:[#allocation5 + $0x80] sm:$0xff]   ;;  %v900_v6 = vld [vmem:[#allocation5 + $0x88] sm:$0xff]   ;;  %v902_v8 = vld [vmem:[#allocation5 + $0x10] sm:$0xff]   ;;  %s256_s29 = scalar_lea.vmem [#allocation10], %s711_s21  ;;  %s1371_s20 = scalar_lea.hbm %s1421_s4, %s750_s23 }
  0x89   : > { %757 = vmatpush3.bf16.msra.mxu0 %v896_v2  ;;  %788 = vmatpush3.bf16.msra.mxu1 %v897_v3  ;;  %v903_v9 = vld [vmem:[#allocation5 + $0x90] sm:$0xff]   ;;  %v904_v10 = vld [vmem:[#allocation5 + $0x58] sm:$0xff]   ;;  %v907_v13 = vld [vmem:[#allocation5 + $0x60] sm:$0xff]   ;;  %s596_s5 = sshll.u32 %s256_s29, 4  ;;  %s583_s14 = scalar_lea.sflag [#allocation4], %s1345_s9  ;;  %s1373_s5 = int_to_ptr.vmem [resolvable:$true] %s596_s5 }
  0x8a   : > { %758 = vmatprep.subr.bf16.mxu0 %v898_v4  ;;  %789 = vmatprep.subr.bf16.mxu1 %v1121_v0  ;;  %v905_v11 = vld [vmem:[#allocation5 + $0x18] sm:$0xff]   ;;  %v908_v14 = vld [vmem:[#allocation5 + $0x20] sm:$0xff]   ;;  %v910_v16 = vld [vmem:[#allocation5 + $0x68] sm:$0xff]   ;;  %s1037_s30 = scalar_lea.vmem %s1373_s5, 128  ;;  %s1123_s19 = smov [#allocation10]  }
  0x8b   : > { %v906_v12 = vld [vmem:[#allocation5 + $0x98] sm:$0xff]   ;;  %v909_v15 = vld [vmem:[#allocation5 + $0xa0] sm:$0xff]   ;;  %v911_v17 = vld [vmem:[#allocation5 + $0x28] sm:$0xff]   ;;  %p1038_p10 = scmp.ne.s32.totalorder %s1373_s5, %s1037_s30  ;;  %s1041_s24 = sshll.u32 %s1123_s19, 4  ;;  %s1042_s24 = int_to_ptr.vmem [resolvable:$false] %s1041_s24 }
  0x8c   : > { %v912_v18 = vld [vmem:[#allocation5 + $0xa8] sm:$0xff]   ;;  %v913_v19 = vld [vmem:[#allocation5 + $0x70] sm:$0xff]   ;;  %v916_v22 = vld [vmem:[#allocation5 + $0x78] sm:$0xff]   ;;  %s1043_s27 = scalar_lea.vmem %s1042_s24, 256  ;;  %p1044_p12 = scmp.lt.s32.totalorder %s1373_s5, %s1042_s24 }
  0x8d   : > { %759 = vmatpush3.bf16.msra.mxu0 %v899_v5  ;;  %790 = vmatpush3.bf16.msra.mxu1 %v900_v6  ;;  %v914_v20 = vld [vmem:[#allocation5 + $0x30] sm:$0xff]   ;;  %v917_v24 = vld [vmem:[#allocation5 + $0x38] sm:$0xff]   ;;  %v739_v34 = vld [vmem:[#allocation7] ss:$0 sm:$0xff]  ;;  %p1039_p3 = pnand %p1038_p10, %p1297_p5  ;;  %p1045_p2 = scmp.lt.s32.totalorder %s1043_s27, %s1037_s30 }
  0x8e   : > { %760 = vmatprep.subr.bf16.mxu0 %v901_v7  ;;  %791 = vmatprep.subr.bf16.mxu1 %v1121_v0  ;;  %v915_v21 = vld [vmem:[#allocation5 + $0xb0] sm:$0xff]   ;;  %v918_v25 = vld [vmem:[#allocation5 + $0xb8] sm:$0xff]   ;;  %v740_v42 = vld [vmem:[#allocation8] ss:$0 sm:$0xff] }
  0x8f   : > { %v921_v23 = vld [vmem:[%s1349_s26 + $0x4] ss:$12 sps:$4 sm:$0xff]   ;;  %v919_v26 = vld [vmem:[%s1349_s26] ss:$12 sps:$4 sm:$0xff]   ;;  %v922_v27 = vld [vmem:[%s1349_s26 + $0x8] ss:$12 sps:$4 sm:$0xff]   ;;  %p1040_p7 = pneg %p1039_p3  ;;  %p1046_p1 = por %p1045_p2, %p1044_p12 }
  0x90   : > { %504 = vmatprep.mubr.bf16.mxu0 %v921_v23 }
  0x91   : > { %761 = vmatpush3.bf16.msra.mxu0 %v902_v8  ;;  %792 = vmatpush3.bf16.msra.mxu1 %v903_v9  ;;  %p1047_p4 = pnand %p1046_p1, %p1040_p7 }
  0x92   : > { %762 = vmatprep.subr.bf16.mxu0 %v904_v10  ;;  %793 = vmatprep.subr.bf16.mxu1 %v1121_v0 }
  0x95   : > { %763 = vmatpush3.bf16.msra.mxu0 %v905_v11  ;;  %794 = vmatpush3.bf16.msra.mxu1 %v906_v12 }
  0x96   : > { %764 = vmatprep.subr.bf16.mxu0 %v907_v13  ;;  %795 = vmatprep.subr.bf16.mxu1 %v1121_v0 }
  0x99   : > { %765 = vmatpush3.bf16.msra.mxu0 %v908_v14  ;;  %796 = vmatpush3.bf16.msra.mxu1 %v909_v15 }
  0x9a   : > { %766 = vmatprep.subr.bf16.mxu0 %v910_v16  ;;  %797 = vmatprep.subr.bf16.mxu1 %v1121_v0 }
  0x9d   : > { %767 = vmatpush3.bf16.msra.mxu0 %v911_v17  ;;  %798 = vmatpush3.bf16.msra.mxu1 %v912_v18 }
  0x9e   : > { %768 = vmatprep.subr.bf16.mxu0 %v913_v19  ;;  %799 = vmatprep.subr.bf16.mxu1 %v1121_v0 }
  0xa1   : > { %769 = vmatpush3.bf16.msra.mxu0 %v914_v20  ;;  %800 = vmatpush3.bf16.msra.mxu1 %v915_v21 }
  0xa2   : > { %770 = vmatprep.subr.bf16.mxu0 %v916_v22  ;;  %801 = vmatprep.subr.bf16.mxu1 %v1121_v0 }
  0xa5   : > { %771 = vmatpush3.bf16.msra.mxu0 %v917_v24  ;;  %802 = vmatpush3.bf16.msra.mxu1 %v918_v25 }
  0xa8   : > { %505 = vmatmul.mubr.bf16.vlgmr.msra.gmra.mrb[0].mxu0 %v919_v26  ;;  %804 = vmatmul.mubr.bf16.vlgmr.msra.gmra.mrb[0].mxu1 %v922_v27 }
 0x17b   : > { %v772_v28 = vpop.f32.mrb[0].mxu0  ;;  %v547_v29 = vpop.f32.mrb[0].mxu1 }
 0x17c   : > { %v773_v30 = vpop.f32.mrb[1].mxu0  ;;  %v805_v32 = vpop.f32.mrb[1].mxu1 }
 0x17d   : > { %v774_v31 = vadd.f32 %v773_v30, %v772_v28  ;;  %v775_v33 = vpop.f32.mrb[2].mxu0  ;;  %v550_v35 = vpop.f32.mrb[2].mxu1 }
 0x17e   : > { %v776_v36 = vpop.f32.mrb[3].mxu0  ;;  %v806_v39 = vpop.f32.mrb[3].mxu1 }
 0x17f   : > { %v548_v37 = vadd.f32 %v774_v31, %v547_v29  ;;  %v777_v38 = vadd.f32 %v776_v36, %v775_v33 }
 0x181   : > { %v561_v40 = vmul.f32 %v739_v34, %v548_v37  ;;  %v551_v41 = vadd.f32 %v777_v38, %v550_v35 }
 0x183   : > { %v562_v43 = vmul.f32 %v739_v34, %v551_v41  ;;  %v570_v44 = vadd.f32 %v740_v42, %v561_v40 }
 0x185   : > { %v571_v45 = vadd.f32 %v740_v42, %v562_v43 }
 0x187   : > { %v754_v46 = vpack.c.bf16 %v571_v45, %v570_v44 }
 0x189   : > { %755 = vst [vmem:[%s256_s29] sm:$0xff] %v754_v46  }
 0x18a   : > { %1050 = shalt.err (!%p1047_p4)
}
 0x18b   : > { %s1051_s6 = scalar_lea.hbm %s1371_s20, 128  ;;  %s1055_s25 = scalar_lea.hbm %s1421_s4, 256 }
 0x18c   : > { %p1052_p9 = scmp.ne.s32.totalorder %s1371_s20, %s1051_s6  ;;  %p1056_p8 = scmp.lt.u32.totalorder %s1371_s20, %s1421_s4 }
 0x18d   : > { %p1057_p13 = scmp.lt.u32.totalorder %s1055_s25, %s1051_s6  ;;  %p1059_p10 = scmp.lt.u32.totalorder %s1051_s6, %s1371_s20 }
 0x18e   : > { %p1053_p0 = pnand %p1052_p9, %p1297_p5 }
 0x18f   : > { %p1058_p6 = por %p1057_p13, %p1056_p8 }
 0x190   : > { %p1054_p11 = pneg %p1053_p0 }
 0x191   : > { %p1060_p3 = por %p1059_p10, %p1058_p6 }
 0x193   : > { %p1061_p7 = pnand %p1060_p3, %p1054_p11 }
 0x195   : > { %1064 = shalt.err (!%p1061_p7)
}
 0x196   : > { %s1124_s23 = smov 64   ;;  %s1125_s29 = smov 4  }
 0x197   : > { %824 = dma.vmem_to_hbm [thread:$0]  (%p1297_p5), %s1373_s5, 128, %s1371_s20, %s583_s14, %s1124_s23, %s1124_s23, %s1125_s29  }
 0x198 PF: > { %s611_s7 = sand.u32 1, %s1099_s15   ;;  %p1439_p12 = scmp.ne.s32.totalorder %s1426_s22, 0 }
 0x199   : > { %p1440_p2 = scmp.ge.s32.totalorder %s1111_s18, 2  ;;  %s612_s8 = scalar_lea.sflag [#allocation4], %s611_s7 }
 0x19b   : > { %p841_p1 = pnand %p1440_p2, %p1439_p12 }
 0x19d   : > { %1094 = dma.done.wait (!%p841_p1), %s612_s8, 128  }
 0x19e   : > { %1096 = vsyncadd (!%p841_p1), %s612_s8, 4294967168  ;;  %p19_p4 = scmp.ge.s32.totalorder %s1283_s10, 4   ;;  %s1441_s15 = smov %s1103_s16 }
 0x19f   : > { %s1442_s16 = smov %s1107_s17  ;;  %s1443_s17 = smov %s1293_s12 }
 0x1a0   : > { %s1444_s18 = smov %s1283_s10  ;;  %21 = sbr.rel (!%p19_p4) target bundleno = 7 (0x7), region = 93 }
 0x1a7   :  { %617 = vsyncpa [#allocation3], 1 }
 0x1a8   :  { %619 = vsyncpa [#allocation3 + $0x1], 1 }
 0x1a9   :  { %620 = vsyncpa [#allocation6], 1 }
 0x1aa   :  { %621 = vsyncpa [#allocation9], 1 }
 0x1ab   :  { %622 = vsyncpa [#allocation4], 1 }
 0x1ac   :  { %624 = vsyncpa [#allocation4 + $0x1], 1 }

// kernel: densenet_forward.49
= control target key start
LH: loop header
LB: loop body
LE: loop exit
PB: predicated region body
PF: predicated region fallthrough
CT: control target
= control target key end

     0   :  { %9 = vsyncpa [#allocation3], 0  ;;  %s1178_s0 = inlined_call_operand.hbm [shape: bf16[32,128], index: 0, kind: input, shape index: {}]   ;;  %s1179_s1 = inlined_call_operand.hbm [shape: bf16[128,128], index: 1, kind: input, shape index: {}]   ;;  %s1180_s2 = inlined_call_operand.hbm [shape: f32[1,128], index: 2, kind: input, shape index: {}]   ;;  %s1181_s3 = inlined_call_operand.hbm [shape: f32[1,128], index: 3, kind: input, shape index: {}]   ;;  %s1182_s4 = inlined_call_operand.hbm [shape: bf16[32,128], index: 4, kind: output, shape index: {}]  }
   0x1   :  { %11 = vsyncpa [#allocation3 + $0x1], 0 }
   0x2   :  { %12 = vsyncpa [#allocation6], 0 }
   0x3   :  { %13 = vsyncpa [#allocation9], 0 }
   0x4   :  { %14 = vsyncpa [#allocation4], 0 }
   0x5   :  { %16 = vsyncpa [#allocation4 + $0x1], 0  ;;  %s905_s15 = smov 0   ;;  %s907_s16 = smov 0  }
   0x6   :  { %s909_s17 = smov 0   ;;  %s911_s18 = smov 0  }
   0x7 LB: > { %s926_s19 = sadd.s32 4294967295, %s867_s18   ;;  %s516_s20 = sadd.s32 4294967294, %s867_s18   ;;  %s867_s18 = sphi %s911_s18, %s1205_s18   ;;  %s863_s17 = sphi %s909_s17, %s1204_s17   ;;  %s859_s16 = sphi %s907_s16, %s1203_s16   ;;  %s855_s15 = sphi %s905_s15, %s1202_s15  }
   0x8   : > { %p42_p0 = scmp.ne.s32.totalorder %s859_s16, %s855_s15  ;;  %p1183_p1 = scmp.eq.s32.totalorder %s926_s19, 0 }
   0x9   : > { %p135_p3 = scmp.eq.s32.totalorder %s516_s20, 1  ;;  %p517_p5 = scmp.ge.s32.totalorder %s867_s18, 1 }
   0xa   : > { %p935_p4 = por %p1183_p1, %p42_p0  ;;  %p142_p7 = scmp.lt.s32.totalorder %s867_s18, 3 }
   0xb   : > { %p940_p6 = por %p135_p3, %p42_p0  ;;  %s869_s24 = smov [#allocation5]  }
   0xc   : > { %s1186_s21 = scalar_select %p935_p4, 1, 0 }
   0xd   : > { %s1187_s22 = scalar_select %p940_p6, 1, 0 }
   0xe   : > { %p945_p8 = pnand %p517_p5, %p142_p7  ;;  %s154_s25 = sshll.u32 %s869_s24, 4  ;;  %s949_s25 = int_to_ptr.vmem [resolvable:$true] %s154_s25 }
   0xf   : > { %s870_s27 = smov [#allocation7]   ;;  %s871_s29 = smov [#allocation8]  }
  0x10   : > { %s1188_s23 = scalar_select %p945_p8, 1, 0 }
  0x11   : > { %p603_p9 = pneg %p945_p8  ;;  %s168_s28 = sshll.u32 %s870_s27, 4  ;;  %s960_s28 = int_to_ptr.vmem [resolvable:$true] %s168_s28 }
  0x12   : > { %s962_s30 = sshll.u32 %s871_s29, 4  ;;  %s679_s7 = scalar_lea.hbm %s1179_s1, 1024  ;;  %s180_s30 = int_to_ptr.vmem [resolvable:$true] %s962_s30 }
  0x13   : > { %p956_p11 = pnand %p603_p9, %p1183_p1  ;;  %p680_p12 = scmp.ne.s32.totalorder %s1179_s1, %s679_s7 }
  0x14   : > { %p686_p5 = scmp.lt.u32.totalorder %s679_s7, %s1179_s1 }
  0x15   : > { %p972_p13 = pneg %p956_p11 }
  0x17   : > { %p682_p0 = pnand %p972_p13, %p680_p12 }
  0x19   : > { %p683_p3 = pneg %p682_p0 }
  0x1b   : > { %p688_p7 = pnand %p686_p5, %p683_p3 }
  0x1d   : > { %691 = shalt.err (!%p688_p7)
}
  0x1e   : > { %s692_s13 = scalar_lea.vmem %s949_s25, 1024  ;;  %p700_p2 = scmp.lt.s32.totalorder %s949_s25, %s949_s25 }
  0x1f   : > { %p693_p9 = scmp.ne.s32.totalorder %s949_s25, %s692_s13  ;;  %p701_p6 = scmp.lt.s32.totalorder %s692_s13, %s692_s13 }
  0x21   : > { %p695_p10 = pnand %p693_p9, %p972_p13  ;;  %p702_p12 = por %p701_p6, %p700_p2 }
  0x23   : > { %p696_p1 = pneg %p695_p10 }
  0x25   : > { %p703_p0 = pnand %p702_p12, %p696_p1 }
  0x27   : > { %706 = shalt.err (!%p703_p0)
}
  0x28   : > { %s872_s14 = smov 64   ;;  %s873_s20 = smov 4  }
  0x29   : > { %606 = dma.hbm_to_vmem [thread:$0]  (!%p956_p11), %s1179_s1, 1024, %s949_s25, [#allocation6], %s872_s14, %s872_s14, %s873_s20  }
  0x2a   : > { %s707_s6 = scalar_lea.hbm %s1180_s2, 16 }
  0x2b   : > { %p708_p1 = scmp.ne.s32.totalorder %s1180_s2, %s707_s6  ;;  %p714_p10 = scmp.lt.u32.totalorder %s707_s6, %s1180_s2 }
  0x2d   : > { %p710_p2 = pnand %p708_p1, %p972_p13 }
  0x2f   : > { %p711_p6 = pneg %p710_p2 }
  0x31   : > { %p716_p3 = pnand %p714_p10, %p711_p6 }
  0x33   : > { %719 = shalt.err (!%p716_p3)
}
  0x34   : > { %s720_s25 = scalar_lea.vmem %s960_s28, 16  ;;  %s727_s12 = scalar_lea.vmem %s960_s28, 32 }
  0x35   : > { %p721_p5 = scmp.ne.s32.totalorder %s960_s28, %s720_s25  ;;  %p728_p12 = scmp.lt.s32.totalorder %s960_s28, %s960_s28 }
  0x36   : > { %p729_p0 = scmp.lt.s32.totalorder %s727_s12, %s720_s25 }
  0x37   : > { %p723_p7 = pnand %p721_p5, %p972_p13 }
  0x38   : > { %p730_p1 = por %p729_p0, %p728_p12 }
  0x39   : > { %p724_p9 = pneg %p723_p7 }
  0x3b   : > { %p731_p2 = pnand %p730_p1, %p724_p9 }
  0x3d   : > { %734 = shalt.err (!%p731_p2)
}
  0x3e   : > { %609 = dma.hbm_to_vmem [thread:$0]  (!%p956_p11), %s1180_s2, 16, %s960_s28, [#allocation6]  }
  0x3f   : > { %s735_s5 = scalar_lea.hbm %s1181_s3, 16 }
  0x40   : > { %p736_p6 = scmp.ne.s32.totalorder %s1181_s3, %s735_s5  ;;  %p742_p5 = scmp.lt.u32.totalorder %s735_s5, %s1181_s3 }
  0x42   : > { %p738_p10 = pnand %p736_p6, %p972_p13 }
  0x44   : > { %p739_p3 = pneg %p738_p10 }
  0x46   : > { %p744_p7 = pnand %p742_p5, %p739_p3 }
  0x48   : > { %747 = shalt.err (!%p744_p7)
}
  0x49   : > { %s748_s11 = scalar_lea.vmem %s180_s30, 16  ;;  %s755_s28 = scalar_lea.vmem %s180_s30, 32 }
  0x4a   : > { %p749_p9 = scmp.ne.s32.totalorder %s180_s30, %s748_s11  ;;  %p756_p1 = scmp.lt.s32.totalorder %s180_s30, %s180_s30 }
  0x4b   : > { %p757_p2 = scmp.lt.s32.totalorder %s755_s28, %s748_s11 }
  0x4c   : > { %p751_p12 = pnand %p749_p9, %p972_p13 }
  0x4d   : > { %p758_p4 = por %p757_p2, %p756_p1 }
  0x4e   : > { %p752_p0 = pneg %p751_p12 }
  0x50   : > { %p759_p8 = pnand %p758_p4, %p752_p0 }
  0x52   : > { %762 = shalt.err (!%p759_p8)
}
  0x53   : > { %612 = dma.hbm_to_vmem [thread:$0]  (!%p956_p11), %s1181_s3, 16, %s180_s30, [#allocation9]  }
  0x54   : > { %s1040_s10 = sadd.s32 1, %s867_s18   ;;  %s29_s26 = sadd.s32 1, %s863_s17 }
  0x55   : > { %s26_s13 = ssub.s32 %s867_s18, %s1040_s10  ;;  %p36_p8 = scmp.ne.s32.totalorder %s863_s17, %s859_s16 }
  0x56   : > { %p27_p4 = scmp.eq.s32.totalorder %s26_s13, 0  ;;  %p37_p13 = scmp.eq.s32.totalorder %s867_s18, 0 }
  0x57   : > { %p624_p6 = scmp.lt.s32.totalorder %s867_s18, 2  ;;  %p1191_p3 = scmp.eq.s32.totalorder %s926_s19, 1 }
  0x58   : > { %s1050_s24 = scalar_select %p27_p4, %s863_s17, %s29_s26  }
  0x59   : > { %p38_p10 = por %p37_p13, %p36_p8  ;;  %p1054_p5 = por %p1191_p3, %p36_p8 }
  0x5a   : > { %s190_s29 = sand.u32 1, %s863_s17   ;;  %s549_s5 = sshll.u32 %s867_s18, 7 }
  0x5b   : > { %s522_s30 = sshll.u32 %s190_s29, 3  ;;  %s1063_s8 = scalar_lea.hbm %s1178_s0, %s549_s5 }
  0x5c   : > { %s194_s9 = scalar_lea.vmem [#allocation2], %s522_s30  ;;  %p1065_p11 = pnand %p624_p6, %p38_p10 }
  0x5d   : > { %s201_s11 = sshll.u32 %s194_s9, 4  ;;  %s1071_s25 = scalar_lea.sflag [#allocation3], %s190_s29  ;;  %s1069_s11 = int_to_ptr.vmem [resolvable:$true] %s201_s11 }
  0x5e   : > { %s763_s12 = scalar_lea.hbm %s1063_s8, 128  ;;  %p765_p9 = pneg %p1065_p11 }
  0x5f   : > { %p764_p7 = scmp.ne.s32.totalorder %s1063_s8, %s763_s12  ;;  %s768_s5 = scalar_lea.hbm %s1178_s0, 256 }
  0x60   : > { %p769_p1 = scmp.lt.u32.totalorder %s1063_s8, %s1178_s0  ;;  %p770_p2 = scmp.lt.u32.totalorder %s768_s5, %s763_s12 }
  0x61   : > { %p766_p12 = pnand %p765_p9, %p764_p7  ;;  %p772_p8 = scmp.lt.u32.totalorder %s763_s12, %s1063_s8 }
  0x62   : > { %p771_p4 = por %p770_p2, %p769_p1 }
  0x63   : > { %p767_p0 = pneg %p766_p12 }
  0x64   : > { %p773_p13 = por %p772_p8, %p771_p4 }
  0x66   : > { %p774_p6 = pnand %p773_p13, %p767_p0 }
  0x68   : > { %777 = shalt.err (!%p774_p6)
}
  0x69   : > { %s778_s29 = scalar_lea.vmem %s1069_s11, 128  ;;  %s874_s7 = smov [#allocation2]  }
  0x6a   : > { %p779_p10 = scmp.ne.s32.totalorder %s1069_s11, %s778_s29  ;;  %s783_s9 = sshll.u32 %s874_s7, 4  ;;  %s784_s9 = int_to_ptr.vmem [resolvable:$false] %s783_s9 }
  0x6b   : > { %s785_s13 = scalar_lea.vmem %s784_s9, 256  ;;  %p786_p12 = scmp.lt.s32.totalorder %s1069_s11, %s784_s9 }
  0x6c   : > { %p781_p3 = pnand %p779_p10, %p765_p9  ;;  %p787_p1 = scmp.lt.s32.totalorder %s785_s13, %s778_s29 }
  0x6e   : > { %p782_p7 = pneg %p781_p3  ;;  %p788_p2 = por %p787_p1, %p786_p12 }
  0x70   : > { %p789_p4 = pnand %p788_p2, %p782_p7 }
  0x72   : > { %792 = shalt.err (!%p789_p4)
}
  0x73   : > { %616 = dma.hbm_to_vmem [thread:$0]  (!%p1065_p11), %s1063_s8, 128, %s1069_s11, %s1071_s25, %s872_s14, %s872_s14, %s873_s20  }
  0x74   : > { %p1194_p9 = scmp.ne.s32.totalorder %s1188_s23, 0 }
  0x75   : > { %s1105_s12 = sand.u32 (!%p1194_p9), 1, %s859_s16   ;;  %p1195_p0 = scmp.ne.s32.totalorder (!%p1194_p9), %s1186_s21, 0 }
  0x76   : > { %213 = sbr.rel (%p1194_p9) target bundleno = 401 (0x191), region = 36  ;;  %s526_s26 = sshll.u32 (!%p1194_p9), %s1105_s12, 3 }
  0x77   : > { %s216_s5 = scalar_lea.sflag (!%p1194_p9), [#allocation3], %s1105_s12  ;;  %s1111_s28 = scalar_lea.vmem (!%p1194_p9), [#allocation2], %s526_s26 }
  0x7d   : > { %838 = dma.done.wait (%p1195_p0), %s216_s5, 128  }
  0x7e   : > { %840 = vsyncadd (%p1195_p0), %s216_s5, 4294967168  ;;  %p1196_p11 = scmp.eq.s32.totalorder %s926_s19, 0 }
  0x80   : > { %842 = dma.done.wait (%p1196_p11), [#allocation6], 1040   ;;  %p1197_p8 = pmov %p1196_p11 }
  0x82   : > { %844 = vsyncadd (%p1197_p8), [#allocation6], 4294966256  ;;  %p1198_p13 = pmov %p1197_p8 }
  0x83   : > { %p1199_p6 = pmov %p1197_p8 }
  0x84   : > { %846 = dma.done.wait (%p1198_p13), [#allocation9], 16  }
  0x85   : > { %848 = vsyncadd (%p1199_p6), [#allocation9], 4294967280  ;;  %v875_v0 = vmov 0.0   ;;  %vm876_vm0 = vmmov 0   ;;  %v670_v1 = vld [vmem:[#allocation5] sm:$0xff]   ;;  %v671_v2 = vld [vmem:[#allocation5 + $0x8] sm:$0xff]  }
  0x86   : > { %567 = vmatprep.subr.bf16.mxu0 %v875_v0  ;;  %583 = vmatprep.mubr.msk.bf16.mxu0 %vm876_vm0, %v875_v0  ;;  %v672_v3 = vld [vmem:[#allocation5 + $0x10] sm:$0xff]   ;;  %v673_v4 = vld [vmem:[#allocation5 + $0x18] sm:$0xff]   ;;  %v674_v5 = vld [vmem:[#allocation5 + $0x20] sm:$0xff]   ;;  %s552_s21 = sshll.u32 %s926_s19, 7  ;;  %s255_s23 = scalar_lea.vmem [#allocation10], %s526_s26 }
  0x87   : > { %568 = vmatpush3.bf16.msra.mxu0 %v670_v1  ;;  %v675_v6 = vld [vmem:[#allocation5 + $0x28] sm:$0xff]   ;;  %v676_v7 = vld [vmem:[#allocation5 + $0x30] sm:$0xff]   ;;  %v677_v8 = vld [vmem:[#allocation5 + $0x38] sm:$0xff]   ;;  %s414_s14 = sshll.u32 %s255_s23, 4  ;;  %s1132_s11 = scalar_lea.hbm %s1182_s4, %s552_s21  ;;  %s1134_s14 = int_to_ptr.vmem [resolvable:$true] %s414_s14 }
  0x88   : > { %569 = vmatprep.subr.bf16.mxu0 %v875_v0  ;;  %v678_v9 = vld [vmem:[%s1111_s28] sm:$0xff]   ;;  %v540_v10 = vld [vmem:[#allocation7] ss:$0 sm:$0xff]  ;;  %v541_v14 = vld [vmem:[#allocation8] ss:$0 sm:$0xff]  ;;  %s401_s25 = scalar_lea.sflag [#allocation4], %s1105_s12 }
  0x89   : > { %s793_s30 = scalar_lea.vmem %s1134_s14, 128  ;;  %s877_s19 = smov [#allocation10]  }
  0x8a   : > { %p794_p10 = scmp.ne.s32.totalorder %s1134_s14, %s793_s30  ;;  %s797_s6 = sshll.u32 %s877_s19, 4  ;;  %s798_s6 = int_to_ptr.vmem [resolvable:$false] %s797_s6 }
  0x8b   : > { %570 = vmatpush3.bf16.msra.mxu0 %v671_v2  ;;  %s799_s29 = scalar_lea.vmem %s798_s6, 256  ;;  %p800_p12 = scmp.lt.s32.totalorder %s1134_s14, %s798_s6 }
  0x8c   : > { %571 = vmatprep.subr.bf16.mxu0 %v875_v0  ;;  %p795_p3 = pnand %p794_p10, %p1054_p5  ;;  %p801_p1 = scmp.lt.s32.totalorder %s799_s29, %s793_s30 }
  0x8e   : > { %p796_p7 = pneg %p795_p3  ;;  %p802_p2 = por %p801_p1, %p800_p12 }
  0x8f   : > { %572 = vmatpush3.bf16.msra.mxu0 %v672_v3 }
  0x90   : > { %573 = vmatprep.subr.bf16.mxu0 %v875_v0  ;;  %p803_p4 = pnand %p802_p2, %p796_p7 }
  0x93   : > { %574 = vmatpush3.bf16.msra.mxu0 %v673_v4 }
  0x94   : > { %575 = vmatprep.subr.bf16.mxu0 %v875_v0 }
  0x97   : > { %576 = vmatpush3.bf16.msra.mxu0 %v674_v5 }
  0x98   : > { %577 = vmatprep.subr.bf16.mxu0 %v875_v0 }
  0x9b   : > { %578 = vmatpush3.bf16.msra.mxu0 %v675_v6 }
  0x9c   : > { %579 = vmatprep.subr.bf16.mxu0 %v875_v0 }
  0x9f   : > { %580 = vmatpush3.bf16.msra.mxu0 %v676_v7 }
  0xa0   : > { %581 = vmatprep.subr.bf16.mxu0 %v875_v0 }
  0xa3   : > { %582 = vmatpush3.bf16.msra.mxu0 %v677_v8 }
  0xa6   : > { %584 = vmatmul.mubr.bf16.vlgmr.msra.gmra.mrb[0].mxu0 %v678_v9 }
 0x179   : > { %v365_v11 = vpop.f32.mrb[0].mxu0 }
 0x17a   : > { %v379_v12 = vmul.f32 %v540_v10, %v365_v11  ;;  %v585_v13 = vpop.f32.mrb[1].mxu0 }
 0x17b   : > { %v368_v15 = vpop.f32.mrb[2].mxu0 }
 0x17c   : > { %v380_v16 = vmul.f32 %v540_v10, %v368_v15  ;;  %v586_v17 = vpop.f32.mrb[3].mxu0  ;;  %v388_v18 = vadd.f32 %v541_v14, %v379_v12 }
 0x17e   : > { %v389_v19 = vadd.f32 %v541_v14, %v380_v16 }
 0x180   : > { %v556_v20 = vpack.c.bf16 %v389_v19, %v388_v18 }
 0x182   : > { %557 = vst [vmem:[%s255_s23] sm:$0xff] %v556_v20  }
 0x183   : > { %806 = shalt.err (!%p803_p4)
}
 0x184   : > { %s807_s7 = scalar_lea.hbm %s1132_s11, 128  ;;  %s811_s26 = scalar_lea.hbm %s1182_s4, 256 }
 0x185   : > { %p808_p9 = scmp.ne.s32.totalorder %s1132_s11, %s807_s7  ;;  %p812_p8 = scmp.lt.u32.totalorder %s1132_s11, %s1182_s4 }
 0x186   : > { %p813_p13 = scmp.lt.u32.totalorder %s811_s26, %s807_s7  ;;  %p815_p10 = scmp.lt.u32.totalorder %s807_s7, %s1132_s11 }
 0x187   : > { %p809_p0 = pnand %p808_p9, %p1054_p5 }
 0x188   : > { %p814_p6 = por %p813_p13, %p812_p8 }
 0x189   : > { %p810_p11 = pneg %p809_p0 }
 0x18a   : > { %p816_p3 = por %p815_p10, %p814_p6 }
 0x18c   : > { %p817_p7 = pnand %p816_p3, %p810_p11 }
 0x18e   : > { %820 = shalt.err (!%p817_p7)
}
 0x18f   : > { %s878_s21 = smov 64   ;;  %s879_s23 = smov 4  }
 0x190   : > { %601 = dma.vmem_to_hbm [thread:$0]  (%p1054_p5), %s1134_s14, 128, %s1132_s11, %s401_s25, %s878_s21, %s878_s21, %s879_s23  }
 0x191 PF: > { %s429_s20 = sand.u32 1, %s855_s15   ;;  %p1200_p12 = scmp.ne.s32.totalorder %s1187_s22, 0 }
 0x192   : > { %p1201_p1 = scmp.ge.s32.totalorder %s867_s18, 2  ;;  %s430_s8 = scalar_lea.sflag [#allocation4], %s429_s20 }
 0x194   : > { %p618_p2 = pnand %p1201_p1, %p1200_p12 }
 0x196   : > { %850 = dma.done.wait (!%p618_p2), %s430_s8, 128  }
 0x197   : > { %852 = vsyncadd (!%p618_p2), %s430_s8, 4294967168  ;;  %p19_p4 = scmp.ge.s32.totalorder %s1040_s10, 4   ;;  %s1202_s15 = smov %s859_s16 }
 0x198   : > { %s1203_s16 = smov %s863_s17  ;;  %s1204_s17 = smov %s1050_s24 }
 0x199   : > { %s1205_s18 = smov %s1040_s10  ;;  %21 = sbr.rel (!%p19_p4) target bundleno = 7 (0x7), region = 93 }
 0x1a0   :  { %435 = vsyncpa [#allocation3], 1 }
 0x1a1   :  { %437 = vsyncpa [#allocation3 + $0x1], 1 }
 0x1a2   :  { %438 = vsyncpa [#allocation6], 1 }
 0x1a3   :  { %439 = vsyncpa [#allocation9], 1 }
 0x1a4   :  { %440 = vsyncpa [#allocation4], 1 }
 0x1a5   :  { %442 = vsyncpa [#allocation4 + $0x1], 1 }

// kernel: tile.169
= control target key start
LH: loop header
LB: loop body
LE: loop exit
PB: predicated region body
PF: predicated region fallthrough
CT: control target
= control target key end

     0   :  { %s22_s0 = inlined_call_operand.vmem [shape: f32[24], index: 0, kind: input, shape index: {}]   ;;  %s23_s1 = inlined_call_operand.vmem [shape: f32[2,24], index: 1, kind: output, shape index: {}]  }
   0x1   :  { %v4_v0 = vld [vmem:[%s22_s0] ss:$0 sm:$0xff] }
   0x2   :  { %5 = vst [vmem:[%s23_s1] sm:$0x3] %v4_v0 }

// kernel: tile.174
= control target key start
LH: loop header
LB: loop body
LE: loop exit
PB: predicated region body
PF: predicated region fallthrough
CT: control target
= control target key end

     0   :  { %vm7_vm0 = vcmask 195584   ;;  %vm13_vm1 = vcmask 392384   ;;  %s39_s0 = inlined_call_operand.vmem [shape: f32[2,24], index: 0, kind: input, shape index: {}]   ;;  %s40_s1 = inlined_call_operand.vmem [shape: f32[1,48], index: 1, kind: output, shape index: {}]  }
   0x1   :  { %v4_v0 = vld [vmem:[%s39_s0] sm:$0x3]  ;;  %s22_s0 = smov 24  }
   0x2   :  { %5 = vst [vmem:[#allocation1] sm:$0x3] %v4_v0 }
   0x9   :  { %v10_v1 = vld [vmem:[#allocation1 + $0x1] sm:$0x1]   ;;  %v6_v2 = vld [vmem:[#allocation1] sm:$0x1]  }
   0xa   :  { %11 = vrot.lane.b32.xlu0 %v10_v1, %s22_s0  ;;  %8 = vst.msk [vmem:[#allocation0] sm:$0x1] %vm7_vm0, %v6_v2  }
  0x7c   :  { %v12_v3 = vpop.permute.xlu0 %11  }
  0x7d   :  { %14 = vst.msk [vmem:[#allocation0] sm:$0x1] %vm13_vm1, %v12_v3  }
  0x84   :  { %v18_v4 = vld [vmem:[#allocation0] sm:$0x1] }
  0x85   :  { %20 = vst [vmem:[%s40_s1] sm:$0x1] %v18_v4 }

// kernel: tile.179
= control target key start
LH: loop header
LB: loop body
LE: loop exit
PB: predicated region body
PF: predicated region fallthrough
CT: control target
= control target key end

     0   :  { %s22_s0 = inlined_call_operand.vmem [shape: f32[32], index: 0, kind: input, shape index: {}]   ;;  %s23_s1 = inlined_call_operand.vmem [shape: f32[2,32], index: 1, kind: output, shape index: {}]  }
   0x1   :  { %v4_v0 = vld [vmem:[%s22_s0] ss:$0 sm:$0xff] }
   0x2   :  { %5 = vst [vmem:[%s23_s1] sm:$0x3] %v4_v0 }

// kernel: tile.184
= control target key start
LH: loop header
LB: loop body
LE: loop exit
PB: predicated region body
PF: predicated region fallthrough
CT: control target
= control target key end

     0   :  { %vm7_vm0 = vcmask 261120   ;;  %vm13_vm1 = vcmask 523520   ;;  %s39_s0 = inlined_call_operand.vmem [shape: f32[2,32], index: 0, kind: input, shape index: {}]   ;;  %s40_s1 = inlined_call_operand.vmem [shape: f32[1,64], index: 1, kind: output, shape index: {}]  }
   0x1   :  { %v4_v0 = vld [vmem:[%s39_s0] sm:$0x3]  ;;  %s22_s0 = smov 32  }
   0x2   :  { %5 = vst [vmem:[#allocation1] sm:$0x3] %v4_v0 }
   0x9   :  { %v10_v1 = vld [vmem:[#allocation1 + $0x1] sm:$0x1]   ;;  %v6_v2 = vld [vmem:[#allocation1] sm:$0x1]  }
   0xa   :  { %11 = vrot.lane.b32.xlu0 %v10_v1, %s22_s0  ;;  %8 = vst.msk [vmem:[#allocation0] sm:$0x1] %vm7_vm0, %v6_v2  }
  0x7c   :  { %v12_v3 = vpop.permute.xlu0 %11  }
  0x7d   :  { %14 = vst.msk [vmem:[#allocation0] sm:$0x1] %vm13_vm1, %v12_v3  }
  0x84   :  { %v18_v4 = vld [vmem:[#allocation0] sm:$0x1] }
  0x85   :  { %20 = vst [vmem:[%s40_s1] sm:$0x1] %v18_v4 }

// kernel: densenet_forward.51
= control target key start
LH: loop header
LB: loop body
LE: loop exit
PB: predicated region body
PF: predicated region fallthrough
CT: control target
= control target key end

     0   :  { %9 = vsyncpa [#allocation3], 0  ;;  %s477_s0 = inlined_call_operand.hbm [shape: bf16[8,128], index: 0, kind: input, shape index: {}]   ;;  %s478_s1 = inlined_call_operand.hbm [shape: bf16[128,128], index: 1, kind: input, shape index: {}]   ;;  %s479_s2 = inlined_call_operand.hbm [shape: f32[1,128], index: 2, kind: input, shape index: {}]   ;;  %s480_s3 = inlined_call_operand.hbm [shape: f32[1,128], index: 3, kind: input, shape index: {}]   ;;  %s481_s4 = inlined_call_operand.hbm [shape: bf16[8,128], index: 4, kind: output, shape index: {}]  }
   0x1   :  { %10 = vsyncpa [#allocation6], 0 }
   0x2   :  { %11 = vsyncpa [#allocation9], 0 }
   0x3   :  { %12 = vsyncpa [#allocation4], 0  ;;  %s383_s15 = smov [#allocation5]   ;;  %s265_s19 = scalar_lea.hbm %s478_s1, 1024 }
   0x4   :  { %s28_s16 = sshll.u32 %s383_s15, 4  ;;  %p266_p0 = scmp.ne.s32.totalorder %s478_s1, %s265_s19  ;;  %s29_s16 = int_to_ptr.vmem [resolvable:$true] %s28_s16 }
   0x5   :  { %p269_p1 = scmp.lt.u32.totalorder %s265_s19, %s478_s1 }
   0x7   :  { %p271_p2 = pnand %p269_p1, %p266_p0 }
   0x9   :  { %274 = shalt.err (!%p271_p2)
}
   0xa   :  { %s275_s24 = scalar_lea.vmem %s29_s16, 1024  ;;  %p280_p4 = scmp.lt.s32.totalorder %s29_s16, %s29_s16 }
   0xb   :  { %p276_p3 = scmp.ne.s32.totalorder %s29_s16, %s275_s24  ;;  %p281_p5 = scmp.lt.s32.totalorder %s275_s24, %s275_s24 }
   0xd   :  { %p282_p6 = por %p281_p5, %p280_p4 }
   0xf   :  { %p283_p7 = pnand %p282_p6, %p276_p3 }
  0x11   :  { %286 = shalt.err (!%p283_p7)
}
  0x12   :  { %s384_s25 = smov 64   ;;  %s385_s26 = smov 4  }
  0x13   :  { %34 = dma.hbm_to_vmem [thread:$0]  %s478_s1, 1024, %s29_s16, [#allocation6], %s384_s25, %s384_s25, %s385_s26  }
  0x14   :  { %s386_s29 = smov [#allocation2]   ;;  %s387_s5 = smov [#allocation7]  }
  0x15   :  { %s19_s30 = sshll.u32 %s386_s29, 4  ;;  %s41_s6 = sshll.u32 %s387_s5, 4  ;;  %s20_s30 = int_to_ptr.vmem [resolvable:$true] %s19_s30  ;;  %s42_s6 = int_to_ptr.vmem [resolvable:$true] %s41_s6 }
  0x16   :  { %s287_s9 = scalar_lea.hbm %s477_s0, 64 }
  0x17   :  { %p288_p8 = scmp.ne.s32.totalorder %s477_s0, %s287_s9  ;;  %p291_p9 = scmp.lt.u32.totalorder %s287_s9, %s477_s0 }
  0x19   :  { %p293_p10 = pnand %p291_p9, %p288_p8 }
  0x1b   :  { %296 = shalt.err (!%p293_p10)
}
  0x1c   :  { %s297_s1 = scalar_lea.vmem %s20_s30, 64  ;;  %p302_p12 = scmp.lt.s32.totalorder %s20_s30, %s20_s30 }
  0x1d   :  { %p298_p11 = scmp.ne.s32.totalorder %s20_s30, %s297_s1  ;;  %p303_p13 = scmp.lt.s32.totalorder %s297_s1, %s297_s1 }
  0x1f   :  { %p304_p0 = por %p303_p13, %p302_p12 }
  0x21   :  { %p305_p1 = pnand %p304_p0, %p298_p11 }
  0x23   :  { %308 = shalt.err (!%p305_p1)
}
  0x24   :  { %22 = dma.hbm_to_vmem [thread:$0]  %s477_s0, 64, %s20_s30, [#allocation3]  }
  0x25   :  { %s309_s18 = scalar_lea.hbm %s479_s2, 16 }
  0x26   :  { %p310_p2 = scmp.ne.s32.totalorder %s479_s2, %s309_s18  ;;  %p313_p3 = scmp.lt.u32.totalorder %s309_s18, %s479_s2 }
  0x28   :  { %p315_p4 = pnand %p313_p3, %p310_p2 }
  0x2a   :  { %318 = shalt.err (!%p315_p4)
}
  0x2b   :  { %s319_s23 = scalar_lea.vmem %s42_s6, 16  ;;  %s323_s24 = scalar_lea.vmem %s42_s6, 32 }
  0x2c   :  { %p320_p5 = scmp.ne.s32.totalorder %s42_s6, %s319_s23  ;;  %p324_p6 = scmp.lt.s32.totalorder %s42_s6, %s42_s6 }
  0x2d   :  { %p325_p7 = scmp.lt.s32.totalorder %s323_s24, %s319_s23 }
  0x2f   :  { %p326_p8 = por %p325_p7, %p324_p6 }
  0x31   :  { %p327_p9 = pnand %p326_p8, %p320_p5 }
  0x33   :  { %330 = shalt.err (!%p327_p9)
}
  0x34   :  { %44 = dma.hbm_to_vmem [thread:$0]  %s479_s2, 16, %s42_s6, [#allocation6]  }
  0x35   :  { %s388_s26 = smov [#allocation8]   ;;  %s331_s30 = scalar_lea.hbm %s480_s3, 16 }
  0x36   :  { %s51_s27 = sshll.u32 %s388_s26, 4  ;;  %p332_p10 = scmp.ne.s32.totalorder %s480_s3, %s331_s30  ;;  %s52_s27 = int_to_ptr.vmem [resolvable:$true] %s51_s27 }
  0x37   :  { %p335_p11 = scmp.lt.u32.totalorder %s331_s30, %s480_s3 }
  0x39   :  { %p337_p12 = pnand %p335_p11, %p332_p10 }
  0x3b   :  { %340 = shalt.err (!%p337_p12)
}
  0x3c   :  { %s341_s10 = scalar_lea.vmem %s52_s27, 16  ;;  %s345_s2 = scalar_lea.vmem %s52_s27, 32 }
  0x3d   :  { %p342_p13 = scmp.ne.s32.totalorder %s52_s27, %s341_s10  ;;  %p346_p0 = scmp.lt.s32.totalorder %s52_s27, %s52_s27 }
  0x3e   :  { %p347_p1 = scmp.lt.s32.totalorder %s345_s2, %s341_s10 }
  0x40   :  { %p348_p2 = por %p347_p1, %p346_p0 }
  0x42   :  { %p349_p3 = pnand %p348_p2, %p342_p13 }
  0x44   :  { %352 = shalt.err (!%p349_p3)
}
  0x45   :  { %54 = dma.hbm_to_vmem [thread:$0]  %s480_s3, 16, %s52_s27, [#allocation9]  }
  0x46   :  { %375 = dma.done.wait [#allocation3], 64  }
  0x47   :  { %376 = vsyncadd [#allocation3], 4294967232 }
  0x48   :  { %377 = dma.done.wait [#allocation6], 1040  }
  0x49   :  { %378 = vsyncadd [#allocation6], 4294966256 }
  0x4a   :  { %379 = dma.done.wait [#allocation9], 16  }
  0x4b   :  { %380 = vsyncadd [#allocation9], 4294967280  ;;  %v389_v0 = vmov 0.0   ;;  %vm390_vm0 = vmmov 0   ;;  %v257_v1 = vld [vmem:[#allocation5] sm:$0xff]   ;;  %v258_v2 = vld [vmem:[#allocation5 + $0x8] sm:$0xff]  }
  0x4c   :  { %228 = vmatprep.subr.bf16.mxu0 %v389_v0  ;;  %244 = vmatprep.mubr.msk.bf16.mxu0 %vm390_vm0, %v389_v0  ;;  %v259_v3 = vld [vmem:[#allocation5 + $0x10] sm:$0xff]   ;;  %v260_v4 = vld [vmem:[#allocation5 + $0x18] sm:$0xff]   ;;  %v261_v5 = vld [vmem:[#allocation5 + $0x20] sm:$0xff]   ;;  %s391_s3 = smov [#allocation10]  }
  0x4d   :  { %229 = vmatpush3.bf16.msra.mxu0 %v257_v1  ;;  %v262_v6 = vld [vmem:[#allocation5 + $0x28] sm:$0xff]   ;;  %v263_v7 = vld [vmem:[#allocation5 + $0x30] sm:$0xff]   ;;  %v264_v8 = vld [vmem:[#allocation5 + $0x38] sm:$0xff]   ;;  %s198_s12 = sshll.u32 %s391_s3, 4  ;;  %s199_s12 = int_to_ptr.vmem [resolvable:$true] %s198_s12 }
  0x4e   :  { %230 = vmatprep.subr.bf16.mxu0 %v389_v0  ;;  %v68_v9 = vld [vmem:[#allocation2] sm:$0xf]  ;;  %v217_v10 = vld [vmem:[#allocation7] ss:$0 sm:$0xff]  ;;  %v218_v12 = vld [vmem:[#allocation8] ss:$0 sm:$0xff]  ;;  %p358_p5 = scmp.lt.s32.totalorder %s199_s12, %s199_s12 }
  0x4f   :  { %s353_s13 = scalar_lea.vmem %s199_s12, 64 }
  0x50   :  { %p354_p4 = scmp.ne.s32.totalorder %s199_s12, %s353_s13  ;;  %p359_p6 = scmp.lt.s32.totalorder %s353_s13, %s353_s13 }
  0x51   :  { %231 = vmatpush3.bf16.msra.mxu0 %v258_v2 }
  0x52   :  { %232 = vmatprep.subr.bf16.mxu0 %v389_v0  ;;  %p360_p7 = por %p359_p6, %p358_p5 }
  0x54   :  { %p361_p8 = pnand %p360_p7, %p354_p4 }
  0x55   :  { %233 = vmatpush3.bf16.msra.mxu0 %v259_v3 }
  0x56   :  { %234 = vmatprep.subr.bf16.mxu0 %v389_v0 }
  0x59   :  { %235 = vmatpush3.bf16.msra.mxu0 %v260_v4 }
  0x5a   :  { %236 = vmatprep.subr.bf16.mxu0 %v389_v0 }
  0x5d   :  { %237 = vmatpush3.bf16.msra.mxu0 %v261_v5 }
  0x5e   :  { %238 = vmatprep.subr.bf16.mxu0 %v389_v0 }
  0x61   :  { %239 = vmatpush3.bf16.msra.mxu0 %v262_v6 }
  0x62   :  { %240 = vmatprep.subr.bf16.mxu0 %v389_v0 }
  0x65   :  { %241 = vmatpush3.bf16.msra.mxu0 %v263_v7 }
  0x66   :  { %242 = vmatprep.subr.bf16.mxu0 %v389_v0 }
  0x69   :  { %243 = vmatpush3.bf16.msra.mxu0 %v264_v8 }
  0x6c   :  { %245 = vmatmul.mubr.bf16.vlgmr.msra.gmra.mrb[0].mxu0 %v68_v9 }
 0x13f   :  { %v167_v11 = vpop.f32.mrb[0].mxu0 }
 0x140   :  { %v180_v13 = vmul.f32 %v217_v10, %v167_v11  ;;  %v246_v14 = vpop.f32.mrb[1].mxu0 }
 0x141   :  { %v170_v15 = vpop.f32.mrb[2].mxu0 }
 0x142   :  { %v188_v16 = vadd.f32 %v218_v12, %v180_v13  ;;  %v247_v17 = vpop.f32.mrb[3].mxu0 }
 0x144   :  { %v189_v18 = vmax.f32 %v188_v16, 0.0 }
 0x146   :  { %v190_v19 = vpack.c.bf16 %v189_v18, %v189_v18 }
 0x148   :  { %191 = vst [vmem:[#allocation10] sm:$0xf] %v190_v19 }
 0x149   :  { %364 = shalt.err (!%p361_p8)
}
 0x14a   :  { %s365_s15 = scalar_lea.hbm %s481_s4, 64 }
 0x14b   :  { %p366_p9 = scmp.ne.s32.totalorder %s481_s4, %s365_s15  ;;  %p369_p10 = scmp.lt.u32.totalorder %s365_s15, %s481_s4 }
 0x14d   :  { %p371_p11 = pnand %p369_p10, %p366_p9 }
 0x14f   :  { %374 = shalt.err (!%p371_p11)
}
 0x150   :  { %201 = dma.vmem_to_hbm [thread:$0]  %s199_s12, 64, %s481_s4, [#allocation4]  }
 0x151   :  { %381 = dma.done.wait [#allocation4], 64  }
 0x152   :  { %382 = vsyncadd [#allocation4], 4294967232 }
 0x153   :  { %205 = vsyncpa [#allocation3], 1 }
 0x154   :  { %206 = vsyncpa [#allocation6], 1 }
 0x155   :  { %207 = vsyncpa [#allocation9], 1 }
 0x156   :  { %208 = vsyncpa [#allocation4], 1 }

// kernel: densenet_forward.52
= control target key start
LH: loop header
LB: loop body
LE: loop exit
PB: predicated region body
PF: predicated region fallthrough
CT: control target
= control target key end

     0   :  { %9 = vsyncpa [#allocation3], 0  ;;  %s716_s0 = inlined_call_operand.hbm [shape: bf16[8,384], index: 0, kind: input, shape index: {}]   ;;  %s717_s1 = inlined_call_operand.hbm [shape: bf16[384,128], index: 1, kind: input, shape index: {}]   ;;  %s718_s2 = inlined_call_operand.hbm [shape: f32[1,128], index: 2, kind: input, shape index: {}]   ;;  %s719_s3 = inlined_call_operand.hbm [shape: f32[1,128], index: 3, kind: input, shape index: {}]   ;;  %s720_s4 = inlined_call_operand.hbm [shape: bf16[8,128], index: 4, kind: output, shape index: {}]  }
   0x1   :  { %10 = vsyncpa [#allocation6], 0 }
   0x2   :  { %11 = vsyncpa [#allocation9], 0 }
   0x3   :  { %12 = vsyncpa [#allocation4], 0  ;;  %s622_s15 = smov [#allocation5]   ;;  %s504_s19 = scalar_lea.hbm %s717_s1, 3072 }
   0x4   :  { %s28_s16 = sshll.u32 %s622_s15, 4  ;;  %p505_p0 = scmp.ne.s32.totalorder %s717_s1, %s504_s19  ;;  %s29_s16 = int_to_ptr.vmem [resolvable:$true] %s28_s16 }
   0x5   :  { %p508_p1 = scmp.lt.u32.totalorder %s504_s19, %s717_s1 }
   0x7   :  { %p510_p2 = pnand %p508_p1, %p505_p0 }
   0x9   :  { %513 = shalt.err (!%p510_p2)
}
   0xa   :  { %s514_s24 = scalar_lea.vmem %s29_s16, 3072  ;;  %p519_p4 = scmp.lt.s32.totalorder %s29_s16, %s29_s16 }
   0xb   :  { %p515_p3 = scmp.ne.s32.totalorder %s29_s16, %s514_s24  ;;  %p520_p5 = scmp.lt.s32.totalorder %s514_s24, %s514_s24 }
   0xd   :  { %p521_p6 = por %p520_p5, %p519_p4 }
   0xf   :  { %p522_p7 = pnand %p521_p6, %p515_p3 }
  0x11   :  { %525 = shalt.err (!%p522_p7)
}
  0x12   :  { %s623_s25 = smov 64   ;;  %s624_s26 = smov 4  }
  0x13   :  { %34 = dma.hbm_to_vmem [thread:$0]  %s717_s1, 3072, %s29_s16, [#allocation6], %s623_s25, %s623_s25, %s624_s26  }
  0x14   :  { %s625_s29 = smov [#allocation2]   ;;  %s626_s5 = smov [#allocation7]  }
  0x15   :  { %s19_s30 = sshll.u32 %s625_s29, 4  ;;  %s41_s6 = sshll.u32 %s626_s5, 4  ;;  %s20_s30 = int_to_ptr.vmem [resolvable:$true] %s19_s30  ;;  %s42_s6 = int_to_ptr.vmem [resolvable:$true] %s41_s6 }
  0x16   :  { %s526_s9 = scalar_lea.hbm %s716_s0, 192 }
  0x17   :  { %p527_p8 = scmp.ne.s32.totalorder %s716_s0, %s526_s9  ;;  %p530_p9 = scmp.lt.u32.totalorder %s526_s9, %s716_s0 }
  0x19   :  { %p532_p10 = pnand %p530_p9, %p527_p8 }
  0x1b   :  { %535 = shalt.err (!%p532_p10)
}
  0x1c   :  { %s536_s1 = scalar_lea.vmem %s20_s30, 192  ;;  %p541_p12 = scmp.lt.s32.totalorder %s20_s30, %s20_s30 }
  0x1d   :  { %p537_p11 = scmp.ne.s32.totalorder %s20_s30, %s536_s1  ;;  %p542_p13 = scmp.lt.s32.totalorder %s536_s1, %s536_s1 }
  0x1f   :  { %p543_p0 = por %p542_p13, %p541_p12 }
  0x21   :  { %p544_p1 = pnand %p543_p0, %p537_p11 }
  0x23   :  { %547 = shalt.err (!%p544_p1)
}
  0x24   :  { %22 = dma.hbm_to_vmem [thread:$0]  %s716_s0, 192, %s20_s30, [#allocation3]  }
  0x25   :  { %s548_s18 = scalar_lea.hbm %s718_s2, 16 }
  0x26   :  { %p549_p2 = scmp.ne.s32.totalorder %s718_s2, %s548_s18  ;;  %p552_p3 = scmp.lt.u32.totalorder %s548_s18, %s718_s2 }
  0x28   :  { %p554_p4 = pnand %p552_p3, %p549_p2 }
  0x2a   :  { %557 = shalt.err (!%p554_p4)
}
  0x2b   :  { %s558_s23 = scalar_lea.vmem %s42_s6, 16  ;;  %s562_s24 = scalar_lea.vmem %s42_s6, 32 }
  0x2c   :  { %p559_p5 = scmp.ne.s32.totalorder %s42_s6, %s558_s23  ;;  %p563_p6 = scmp.lt.s32.totalorder %s42_s6, %s42_s6 }
  0x2d   :  { %p564_p7 = scmp.lt.s32.totalorder %s562_s24, %s558_s23 }
  0x2f   :  { %p565_p8 = por %p564_p7, %p563_p6 }
  0x31   :  { %p566_p9 = pnand %p565_p8, %p559_p5 }
  0x33   :  { %569 = shalt.err (!%p566_p9)
}
  0x34   :  { %44 = dma.hbm_to_vmem [thread:$0]  %s718_s2, 16, %s42_s6, [#allocation6]  }
  0x35   :  { %s627_s26 = smov [#allocation8]   ;;  %s570_s30 = scalar_lea.hbm %s719_s3, 16 }
  0x36   :  { %s51_s27 = sshll.u32 %s627_s26, 4  ;;  %p571_p10 = scmp.ne.s32.totalorder %s719_s3, %s570_s30  ;;  %s52_s27 = int_to_ptr.vmem [resolvable:$true] %s51_s27 }
  0x37   :  { %p574_p11 = scmp.lt.u32.totalorder %s570_s30, %s719_s3 }
  0x39   :  { %p576_p12 = pnand %p574_p11, %p571_p10 }
  0x3b   :  { %579 = shalt.err (!%p576_p12)
}
  0x3c   :  { %s580_s10 = scalar_lea.vmem %s52_s27, 16  ;;  %s584_s2 = scalar_lea.vmem %s52_s27, 32 }
  0x3d   :  { %p581_p13 = scmp.ne.s32.totalorder %s52_s27, %s580_s10  ;;  %p585_p0 = scmp.lt.s32.totalorder %s52_s27, %s52_s27 }
  0x3e   :  { %p586_p1 = scmp.lt.s32.totalorder %s584_s2, %s580_s10 }
  0x40   :  { %p587_p2 = por %p586_p1, %p585_p0 }
  0x42   :  { %p588_p3 = pnand %p587_p2, %p581_p13 }
  0x44   :  { %591 = shalt.err (!%p588_p3)
}
  0x45   :  { %54 = dma.hbm_to_vmem [thread:$0]  %s719_s3, 16, %s52_s27, [#allocation9]  }
  0x46   :  { %614 = dma.done.wait [#allocation3], 192  }
  0x47   :  { %615 = vsyncadd [#allocation3], 4294967104 }
  0x48   :  { %616 = dma.done.wait [#allocation6], 3088  }
  0x49   :  { %617 = vsyncadd [#allocation6], 4294964208 }
  0x4a   :  { %618 = dma.done.wait [#allocation9], 16  }
  0x4b   :  { %619 = vsyncadd [#allocation9], 4294967280  ;;  %v628_v0 = vmov 0.0   ;;  %vm629_vm0 = vmmov 0   ;;  %v477_v1 = vld [vmem:[#allocation5 + $0x40] sm:$0xff]   ;;  %v480_v4 = vld [vmem:[#allocation5 + $0x48] sm:$0xff]  }
  0x4c   :  { %448 = vmatprep.subr.bf16.mxu1 %v628_v0  ;;  %464 = vmatprep.mubr.msk.bf16.mxu1 %vm629_vm0, %v628_v0  ;;  %v478_v2 = vld [vmem:[#allocation5] sm:$0xff]   ;;  %v481_v5 = vld [vmem:[#allocation5 + $0x8] sm:$0xff]   ;;  %v483_v7 = vld [vmem:[#allocation5 + $0x50] sm:$0xff]   ;;  %s630_s3 = smov [#allocation10]  }
  0x4d   :  { %417 = vmatprep.subr.bf16.mxu0 %v477_v1  ;;  %v479_v3 = vld [vmem:[#allocation5 + $0x80] sm:$0xff]   ;;  %v482_v6 = vld [vmem:[#allocation5 + $0x88] sm:$0xff]   ;;  %v484_v8 = vld [vmem:[#allocation5 + $0x10] sm:$0xff]   ;;  %s377_s12 = sshll.u32 %s630_s3, 4  ;;  %s378_s12 = int_to_ptr.vmem [resolvable:$true] %s377_s12 }
  0x4e   :  { %418 = vmatpush3.bf16.msra.mxu0 %v478_v2  ;;  %449 = vmatpush3.bf16.msra.mxu1 %v479_v3  ;;  %v485_v9 = vld [vmem:[#allocation5 + $0x90] sm:$0xff]   ;;  %v486_v10 = vld [vmem:[#allocation5 + $0x58] sm:$0xff]   ;;  %v489_v13 = vld [vmem:[#allocation5 + $0x60] sm:$0xff]   ;;  %s592_s13 = scalar_lea.vmem %s378_s12, 64  ;;  %p597_p5 = scmp.lt.s32.totalorder %s378_s12, %s378_s12 }
  0x4f   :  { %419 = vmatprep.subr.bf16.mxu0 %v480_v4  ;;  %450 = vmatprep.subr.bf16.mxu1 %v628_v0  ;;  %v487_v11 = vld [vmem:[#allocation5 + $0x18] sm:$0xff]   ;;  %v490_v14 = vld [vmem:[#allocation5 + $0x20] sm:$0xff]   ;;  %v492_v16 = vld [vmem:[#allocation5 + $0x68] sm:$0xff]   ;;  %p593_p4 = scmp.ne.s32.totalorder %s378_s12, %s592_s13  ;;  %p598_p6 = scmp.lt.s32.totalorder %s592_s13, %s592_s13 }
  0x50   :  { %v488_v12 = vld [vmem:[#allocation5 + $0x98] sm:$0xff]   ;;  %v491_v15 = vld [vmem:[#allocation5 + $0xa0] sm:$0xff]   ;;  %v493_v17 = vld [vmem:[#allocation5 + $0x28] sm:$0xff]  }
  0x51   :  { %v494_v18 = vld [vmem:[#allocation5 + $0xa8] sm:$0xff]   ;;  %v495_v19 = vld [vmem:[#allocation5 + $0x70] sm:$0xff]   ;;  %v498_v22 = vld [vmem:[#allocation5 + $0x78] sm:$0xff]   ;;  %p599_p7 = por %p598_p6, %p597_p5 }
  0x52   :  { %420 = vmatpush3.bf16.msra.mxu0 %v481_v5  ;;  %451 = vmatpush3.bf16.msra.mxu1 %v482_v6  ;;  %v496_v20 = vld [vmem:[#allocation5 + $0x30] sm:$0xff]   ;;  %v499_v25 = vld [vmem:[#allocation5 + $0x38] sm:$0xff]   ;;  %v415_v35 = vld [vmem:[#allocation7] ss:$0 sm:$0xff] }
  0x53   :  { %421 = vmatprep.subr.bf16.mxu0 %v483_v7  ;;  %452 = vmatprep.subr.bf16.mxu1 %v628_v0  ;;  %v497_v21 = vld [vmem:[#allocation5 + $0xb0] sm:$0xff]   ;;  %v500_v26 = vld [vmem:[#allocation5 + $0xb8] sm:$0xff]   ;;  %v416_v40 = vld [vmem:[#allocation8] ss:$0 sm:$0xff]  ;;  %p600_p8 = pnand %p599_p7, %p593_p4 }
  0x54   :  { %v68_v23 = vld [vmem:[#allocation2] sm:$0xff]  ;;  %v503_v28 = vld [vmem:[#allocation2 + $0x8] ss:$0 sps:$4 sm:$0xff]  }
  0x55   :  { %v389_v24 = vcombine.high %v68_v23, %v68_v23  ;;  %v388_v27 = vcombine.low %v68_v23, %v68_v23 }
  0x56   :  { %422 = vmatpush3.bf16.msra.mxu0 %v484_v8  ;;  %453 = vmatpush3.bf16.msra.mxu1 %v485_v9 }
  0x57   :  { %423 = vmatprep.subr.bf16.mxu0 %v486_v10  ;;  %454 = vmatprep.subr.bf16.mxu1 %v628_v0 }
  0x58   :  { %305 = vmatprep.mubr.bf16.mxu0 %v389_v24 }
  0x5a   :  { %424 = vmatpush3.bf16.msra.mxu0 %v487_v11  ;;  %455 = vmatpush3.bf16.msra.mxu1 %v488_v12 }
  0x5b   :  { %425 = vmatprep.subr.bf16.mxu0 %v489_v13  ;;  %456 = vmatprep.subr.bf16.mxu1 %v628_v0 }
  0x5e   :  { %426 = vmatpush3.bf16.msra.mxu0 %v490_v14  ;;  %457 = vmatpush3.bf16.msra.mxu1 %v491_v15 }
  0x5f   :  { %427 = vmatprep.subr.bf16.mxu0 %v492_v16  ;;  %458 = vmatprep.subr.bf16.mxu1 %v628_v0 }
  0x62   :  { %428 = vmatpush3.bf16.msra.mxu0 %v493_v17  ;;  %459 = vmatpush3.bf16.msra.mxu1 %v494_v18 }
  0x63   :  { %429 = vmatprep.subr.bf16.mxu0 %v495_v19  ;;  %460 = vmatprep.subr.bf16.mxu1 %v628_v0 }
  0x66   :  { %430 = vmatpush3.bf16.msra.mxu0 %v496_v20  ;;  %461 = vmatpush3.bf16.msra.mxu1 %v497_v21 }
  0x67   :  { %431 = vmatprep.subr.bf16.mxu0 %v498_v22  ;;  %462 = vmatprep.subr.bf16.mxu1 %v628_v0 }
  0x6a   :  { %432 = vmatpush3.bf16.msra.mxu0 %v499_v25  ;;  %463 = vmatpush3.bf16.msra.mxu1 %v500_v26 }
  0x6d   :  { %306 = vmatmul.mubr.bf16.vlgmr.msra.gmra.mrb[0].mxu0 %v388_v27  ;;  %465 = vmatmul.mubr.bf16.vlgmr.msra.gmra.mrb[0].mxu1 %v503_v28 }
 0x140   :  { %v433_v29 = vpop.f32.mrb[0].mxu0  ;;  %v347_v30 = vpop.f32.mrb[0].mxu1 }
 0x141   :  { %v434_v31 = vpop.f32.mrb[1].mxu0  ;;  %v466_v33 = vpop.f32.mrb[1].mxu1 }
 0x142   :  { %v435_v32 = vadd.f32 %v434_v31, %v433_v29  ;;  %v436_v34 = vpop.f32.mrb[2].mxu0  ;;  %v350_v36 = vpop.f32.mrb[2].mxu1 }
 0x143   :  { %v437_v37 = vpop.f32.mrb[3].mxu0  ;;  %v467_v39 = vpop.f32.mrb[3].mxu1 }
 0x144   :  { %v348_v38 = vadd.f32 %v435_v32, %v347_v30 }
 0x146   :  { %v360_v41 = vmul.f32 %v415_v35, %v348_v38 }
 0x148   :  { %v368_v42 = vadd.f32 %v416_v40, %v360_v41 }
 0x14a   :  { %v369_v43 = vpack.c.bf16 %v368_v42, %v368_v42 }
 0x14c   :  { %370 = vst [vmem:[#allocation10] sm:$0xf] %v369_v43 }
 0x14d   :  { %603 = shalt.err (!%p600_p8)
}
 0x14e   :  { %s604_s15 = scalar_lea.hbm %s720_s4, 64 }
 0x14f   :  { %p605_p9 = scmp.ne.s32.totalorder %s720_s4, %s604_s15  ;;  %p608_p10 = scmp.lt.u32.totalorder %s604_s15, %s720_s4 }
 0x151   :  { %p610_p11 = pnand %p608_p10, %p605_p9 }
 0x153   :  { %613 = shalt.err (!%p610_p11)
}
 0x154   :  { %380 = dma.vmem_to_hbm [thread:$0]  %s378_s12, 64, %s720_s4, [#allocation4]  }
 0x155   :  { %620 = dma.done.wait [#allocation4], 64  }
 0x156   :  { %621 = vsyncadd [#allocation4], 4294967232 }
 0x157   :  { %384 = vsyncpa [#allocation3], 1 }
 0x158   :  { %385 = vsyncpa [#allocation6], 1 }
 0x159   :  { %386 = vsyncpa [#allocation9], 1 }
 0x15a   :  { %387 = vsyncpa [#allocation4], 1 }

// kernel: densenet_forward.57
= control target key start
LH: loop header
LB: loop body
LE: loop exit
PB: predicated region body
PF: predicated region fallthrough
CT: control target
= control target key end

     0   :  { %9 = vsyncpa [#allocation3], 0  ;;  %s476_s0 = inlined_call_operand.hbm [shape: bf16[8,128], index: 0, kind: input, shape index: {}]   ;;  %s477_s1 = inlined_call_operand.hbm [shape: bf16[128,128], index: 1, kind: input, shape index: {}]   ;;  %s478_s2 = inlined_call_operand.hbm [shape: f32[1,128], index: 2, kind: input, shape index: {}]   ;;  %s479_s3 = inlined_call_operand.hbm [shape: f32[1,128], index: 3, kind: input, shape index: {}]   ;;  %s480_s4 = inlined_call_operand.hbm [shape: bf16[8,128], index: 4, kind: output, shape index: {}]  }
   0x1   :  { %10 = vsyncpa [#allocation6], 0 }
   0x2   :  { %11 = vsyncpa [#allocation9], 0 }
   0x3   :  { %12 = vsyncpa [#allocation4], 0  ;;  %s382_s15 = smov [#allocation5]   ;;  %s264_s19 = scalar_lea.hbm %s477_s1, 1024 }
   0x4   :  { %s28_s16 = sshll.u32 %s382_s15, 4  ;;  %p265_p0 = scmp.ne.s32.totalorder %s477_s1, %s264_s19  ;;  %s29_s16 = int_to_ptr.vmem [resolvable:$true] %s28_s16 }
   0x5   :  { %p268_p1 = scmp.lt.u32.totalorder %s264_s19, %s477_s1 }
   0x7   :  { %p270_p2 = pnand %p268_p1, %p265_p0 }
   0x9   :  { %273 = shalt.err (!%p270_p2)
}
   0xa   :  { %s274_s24 = scalar_lea.vmem %s29_s16, 1024  ;;  %p279_p4 = scmp.lt.s32.totalorder %s29_s16, %s29_s16 }
   0xb   :  { %p275_p3 = scmp.ne.s32.totalorder %s29_s16, %s274_s24  ;;  %p280_p5 = scmp.lt.s32.totalorder %s274_s24, %s274_s24 }
   0xd   :  { %p281_p6 = por %p280_p5, %p279_p4 }
   0xf   :  { %p282_p7 = pnand %p281_p6, %p275_p3 }
  0x11   :  { %285 = shalt.err (!%p282_p7)
}
  0x12   :  { %s383_s25 = smov 64   ;;  %s384_s26 = smov 4  }
  0x13   :  { %34 = dma.hbm_to_vmem [thread:$0]  %s477_s1, 1024, %s29_s16, [#allocation6], %s383_s25, %s383_s25, %s384_s26  }
  0x14   :  { %s385_s29 = smov [#allocation2]   ;;  %s386_s5 = smov [#allocation7]  }
  0x15   :  { %s19_s30 = sshll.u32 %s385_s29, 4  ;;  %s41_s6 = sshll.u32 %s386_s5, 4  ;;  %s20_s30 = int_to_ptr.vmem [resolvable:$true] %s19_s30  ;;  %s42_s6 = int_to_ptr.vmem [resolvable:$true] %s41_s6 }
  0x16   :  { %s286_s9 = scalar_lea.hbm %s476_s0, 64 }
  0x17   :  { %p287_p8 = scmp.ne.s32.totalorder %s476_s0, %s286_s9  ;;  %p290_p9 = scmp.lt.u32.totalorder %s286_s9, %s476_s0 }
  0x19   :  { %p292_p10 = pnand %p290_p9, %p287_p8 }
  0x1b   :  { %295 = shalt.err (!%p292_p10)
}
  0x1c   :  { %s296_s1 = scalar_lea.vmem %s20_s30, 64  ;;  %p301_p12 = scmp.lt.s32.totalorder %s20_s30, %s20_s30 }
  0x1d   :  { %p297_p11 = scmp.ne.s32.totalorder %s20_s30, %s296_s1  ;;  %p302_p13 = scmp.lt.s32.totalorder %s296_s1, %s296_s1 }
  0x1f   :  { %p303_p0 = por %p302_p13, %p301_p12 }
  0x21   :  { %p304_p1 = pnand %p303_p0, %p297_p11 }
  0x23   :  { %307 = shalt.err (!%p304_p1)
}
  0x24   :  { %22 = dma.hbm_to_vmem [thread:$0]  %s476_s0, 64, %s20_s30, [#allocation3]  }
  0x25   :  { %s308_s18 = scalar_lea.hbm %s478_s2, 16 }
  0x26   :  { %p309_p2 = scmp.ne.s32.totalorder %s478_s2, %s308_s18  ;;  %p312_p3 = scmp.lt.u32.totalorder %s308_s18, %s478_s2 }
  0x28   :  { %p314_p4 = pnand %p312_p3, %p309_p2 }
  0x2a   :  { %317 = shalt.err (!%p314_p4)
}
  0x2b   :  { %s318_s23 = scalar_lea.vmem %s42_s6, 16  ;;  %s322_s24 = scalar_lea.vmem %s42_s6, 32 }
  0x2c   :  { %p319_p5 = scmp.ne.s32.totalorder %s42_s6, %s318_s23  ;;  %p323_p6 = scmp.lt.s32.totalorder %s42_s6, %s42_s6 }
  0x2d   :  { %p324_p7 = scmp.lt.s32.totalorder %s322_s24, %s318_s23 }
  0x2f   :  { %p325_p8 = por %p324_p7, %p323_p6 }
  0x31   :  { %p326_p9 = pnand %p325_p8, %p319_p5 }
  0x33   :  { %329 = shalt.err (!%p326_p9)
}
  0x34   :  { %44 = dma.hbm_to_vmem [thread:$0]  %s478_s2, 16, %s42_s6, [#allocation6]  }
  0x35   :  { %s387_s26 = smov [#allocation8]   ;;  %s330_s30 = scalar_lea.hbm %s479_s3, 16 }
  0x36   :  { %s51_s27 = sshll.u32 %s387_s26, 4  ;;  %p331_p10 = scmp.ne.s32.totalorder %s479_s3, %s330_s30  ;;  %s52_s27 = int_to_ptr.vmem [resolvable:$true] %s51_s27 }
  0x37   :  { %p334_p11 = scmp.lt.u32.totalorder %s330_s30, %s479_s3 }
  0x39   :  { %p336_p12 = pnand %p334_p11, %p331_p10 }
  0x3b   :  { %339 = shalt.err (!%p336_p12)
}
  0x3c   :  { %s340_s10 = scalar_lea.vmem %s52_s27, 16  ;;  %s344_s2 = scalar_lea.vmem %s52_s27, 32 }
  0x3d   :  { %p341_p13 = scmp.ne.s32.totalorder %s52_s27, %s340_s10  ;;  %p345_p0 = scmp.lt.s32.totalorder %s52_s27, %s52_s27 }
  0x3e   :  { %p346_p1 = scmp.lt.s32.totalorder %s344_s2, %s340_s10 }
  0x40   :  { %p347_p2 = por %p346_p1, %p345_p0 }
  0x42   :  { %p348_p3 = pnand %p347_p2, %p341_p13 }
  0x44   :  { %351 = shalt.err (!%p348_p3)
}
  0x45   :  { %54 = dma.hbm_to_vmem [thread:$0]  %s479_s3, 16, %s52_s27, [#allocation9]  }
  0x46   :  { %374 = dma.done.wait [#allocation3], 64  }
  0x47   :  { %375 = vsyncadd [#allocation3], 4294967232 }
  0x48   :  { %376 = dma.done.wait [#allocation6], 1040  }
  0x49   :  { %377 = vsyncadd [#allocation6], 4294966256 }
  0x4a   :  { %378 = dma.done.wait [#allocation9], 16  }
  0x4b   :  { %379 = vsyncadd [#allocation9], 4294967280  ;;  %v388_v0 = vmov 0.0   ;;  %vm389_vm0 = vmmov 0   ;;  %v256_v1 = vld [vmem:[#allocation5] sm:$0xff]   ;;  %v257_v2 = vld [vmem:[#allocation5 + $0x8] sm:$0xff]  }
  0x4c   :  { %227 = vmatprep.subr.bf16.mxu0 %v388_v0  ;;  %243 = vmatprep.mubr.msk.bf16.mxu0 %vm389_vm0, %v388_v0  ;;  %v258_v3 = vld [vmem:[#allocation5 + $0x10] sm:$0xff]   ;;  %v259_v4 = vld [vmem:[#allocation5 + $0x18] sm:$0xff]   ;;  %v260_v5 = vld [vmem:[#allocation5 + $0x20] sm:$0xff]   ;;  %s390_s3 = smov [#allocation10]  }
  0x4d   :  { %228 = vmatpush3.bf16.msra.mxu0 %v256_v1  ;;  %v261_v6 = vld [vmem:[#allocation5 + $0x28] sm:$0xff]   ;;  %v262_v7 = vld [vmem:[#allocation5 + $0x30] sm:$0xff]   ;;  %v263_v8 = vld [vmem:[#allocation5 + $0x38] sm:$0xff]   ;;  %s197_s12 = sshll.u32 %s390_s3, 4  ;;  %s198_s12 = int_to_ptr.vmem [resolvable:$true] %s197_s12 }
  0x4e   :  { %229 = vmatprep.subr.bf16.mxu0 %v388_v0  ;;  %v68_v9 = vld [vmem:[#allocation2] sm:$0xf]  ;;  %v216_v10 = vld [vmem:[#allocation7] ss:$0 sm:$0xff]  ;;  %v217_v12 = vld [vmem:[#allocation8] ss:$0 sm:$0xff]  ;;  %p357_p5 = scmp.lt.s32.totalorder %s198_s12, %s198_s12 }
  0x4f   :  { %s352_s13 = scalar_lea.vmem %s198_s12, 64 }
  0x50   :  { %p353_p4 = scmp.ne.s32.totalorder %s198_s12, %s352_s13  ;;  %p358_p6 = scmp.lt.s32.totalorder %s352_s13, %s352_s13 }
  0x51   :  { %230 = vmatpush3.bf16.msra.mxu0 %v257_v2 }
  0x52   :  { %231 = vmatprep.subr.bf16.mxu0 %v388_v0  ;;  %p359_p7 = por %p358_p6, %p357_p5 }
  0x54   :  { %p360_p8 = pnand %p359_p7, %p353_p4 }
  0x55   :  { %232 = vmatpush3.bf16.msra.mxu0 %v258_v3 }
  0x56   :  { %233 = vmatprep.subr.bf16.mxu0 %v388_v0 }
  0x59   :  { %234 = vmatpush3.bf16.msra.mxu0 %v259_v4 }
  0x5a   :  { %235 = vmatprep.subr.bf16.mxu0 %v388_v0 }
  0x5d   :  { %236 = vmatpush3.bf16.msra.mxu0 %v260_v5 }
  0x5e   :  { %237 = vmatprep.subr.bf16.mxu0 %v388_v0 }
  0x61   :  { %238 = vmatpush3.bf16.msra.mxu0 %v261_v6 }
  0x62   :  { %239 = vmatprep.subr.bf16.mxu0 %v388_v0 }
  0x65   :  { %240 = vmatpush3.bf16.msra.mxu0 %v262_v7 }
  0x66   :  { %241 = vmatprep.subr.bf16.mxu0 %v388_v0 }
  0x69   :  { %242 = vmatpush3.bf16.msra.mxu0 %v263_v8 }
  0x6c   :  { %244 = vmatmul.mubr.bf16.vlgmr.msra.gmra.mrb[0].mxu0 %v68_v9 }
 0x13f   :  { %v167_v11 = vpop.f32.mrb[0].mxu0 }
 0x140   :  { %v180_v13 = vmul.f32 %v216_v10, %v167_v11  ;;  %v245_v14 = vpop.f32.mrb[1].mxu0 }
 0x141   :  { %v170_v15 = vpop.f32.mrb[2].mxu0 }
 0x142   :  { %v188_v16 = vadd.f32 %v217_v12, %v180_v13  ;;  %v246_v17 = vpop.f32.mrb[3].mxu0 }
 0x144   :  { %v189_v18 = vpack.c.bf16 %v188_v16, %v188_v16 }
 0x146   :  { %190 = vst [vmem:[#allocation10] sm:$0xf] %v189_v18 }
 0x147   :  { %363 = shalt.err (!%p360_p8)
}
 0x148   :  { %s364_s15 = scalar_lea.hbm %s480_s4, 64 }
 0x149   :  { %p365_p9 = scmp.ne.s32.totalorder %s480_s4, %s364_s15  ;;  %p368_p10 = scmp.lt.u32.totalorder %s364_s15, %s480_s4 }
 0x14b   :  { %p370_p11 = pnand %p368_p10, %p365_p9 }
 0x14d   :  { %373 = shalt.err (!%p370_p11)
}
 0x14e   :  { %200 = dma.vmem_to_hbm [thread:$0]  %s198_s12, 64, %s480_s4, [#allocation4]  }
 0x14f   :  { %380 = dma.done.wait [#allocation4], 64  }
 0x150   :  { %381 = vsyncadd [#allocation4], 4294967232 }
 0x151   :  { %204 = vsyncpa [#allocation3], 1 }
 0x152   :  { %205 = vsyncpa [#allocation6], 1 }
 0x153   :  { %206 = vsyncpa [#allocation9], 1 }
 0x154   :  { %207 = vsyncpa [#allocation4], 1 }

// kernel: densenet_forward.65
= control target key start
LH: loop header
LB: loop body
LE: loop exit
PB: predicated region body
PF: predicated region fallthrough
CT: control target
= control target key end

     0   :  { %9 = vsyncpa [#allocation3], 0  ;;  %s475_s0 = inlined_call_operand.hbm [shape: bf16[8,128], index: 0, kind: input, shape index: {}]   ;;  %s476_s1 = inlined_call_operand.hbm [shape: bf16[128,128], index: 1, kind: input, shape index: {}]   ;;  %s477_s2 = inlined_call_operand.hbm [shape: f32[1,128], index: 2, kind: input, shape index: {}]   ;;  %s478_s3 = inlined_call_operand.hbm [shape: f32[1,128], index: 3, kind: input, shape index: {}]   ;;  %s479_s4 = inlined_call_operand.hbm [shape: f32[8,128], index: 4, kind: output, shape index: {}]  }
   0x1   :  { %10 = vsyncpa [#allocation6], 0 }
   0x2   :  { %11 = vsyncpa [#allocation9], 0 }
   0x3   :  { %12 = vsyncpa [#allocation4], 0  ;;  %s381_s15 = smov [#allocation5]   ;;  %s263_s19 = scalar_lea.hbm %s476_s1, 1024 }
   0x4   :  { %s28_s16 = sshll.u32 %s381_s15, 4  ;;  %p264_p0 = scmp.ne.s32.totalorder %s476_s1, %s263_s19  ;;  %s29_s16 = int_to_ptr.vmem [resolvable:$true] %s28_s16 }
   0x5   :  { %p267_p1 = scmp.lt.u32.totalorder %s263_s19, %s476_s1 }
   0x7   :  { %p269_p2 = pnand %p267_p1, %p264_p0 }
   0x9   :  { %272 = shalt.err (!%p269_p2)
}
   0xa   :  { %s273_s24 = scalar_lea.vmem %s29_s16, 1024  ;;  %p278_p4 = scmp.lt.s32.totalorder %s29_s16, %s29_s16 }
   0xb   :  { %p274_p3 = scmp.ne.s32.totalorder %s29_s16, %s273_s24  ;;  %p279_p5 = scmp.lt.s32.totalorder %s273_s24, %s273_s24 }
   0xd   :  { %p280_p6 = por %p279_p5, %p278_p4 }
   0xf   :  { %p281_p7 = pnand %p280_p6, %p274_p3 }
  0x11   :  { %284 = shalt.err (!%p281_p7)
}
  0x12   :  { %s382_s25 = smov 64   ;;  %s383_s26 = smov 4  }
  0x13   :  { %34 = dma.hbm_to_vmem [thread:$0]  %s476_s1, 1024, %s29_s16, [#allocation6], %s382_s25, %s382_s25, %s383_s26  }
  0x14   :  { %s384_s29 = smov [#allocation2]   ;;  %s385_s5 = smov [#allocation7]  }
  0x15   :  { %s19_s30 = sshll.u32 %s384_s29, 4  ;;  %s41_s6 = sshll.u32 %s385_s5, 4  ;;  %s20_s30 = int_to_ptr.vmem [resolvable:$true] %s19_s30  ;;  %s42_s6 = int_to_ptr.vmem [resolvable:$true] %s41_s6 }
  0x16   :  { %s285_s9 = scalar_lea.hbm %s475_s0, 64 }
  0x17   :  { %p286_p8 = scmp.ne.s32.totalorder %s475_s0, %s285_s9  ;;  %p289_p9 = scmp.lt.u32.totalorder %s285_s9, %s475_s0 }
  0x19   :  { %p291_p10 = pnand %p289_p9, %p286_p8 }
  0x1b   :  { %294 = shalt.err (!%p291_p10)
}
  0x1c   :  { %s295_s1 = scalar_lea.vmem %s20_s30, 64  ;;  %p300_p12 = scmp.lt.s32.totalorder %s20_s30, %s20_s30 }
  0x1d   :  { %p296_p11 = scmp.ne.s32.totalorder %s20_s30, %s295_s1  ;;  %p301_p13 = scmp.lt.s32.totalorder %s295_s1, %s295_s1 }
  0x1f   :  { %p302_p0 = por %p301_p13, %p300_p12 }
  0x21   :  { %p303_p1 = pnand %p302_p0, %p296_p11 }
  0x23   :  { %306 = shalt.err (!%p303_p1)
}
  0x24   :  { %22 = dma.hbm_to_vmem [thread:$0]  %s475_s0, 64, %s20_s30, [#allocation3]  }
  0x25   :  { %s307_s18 = scalar_lea.hbm %s477_s2, 16 }
  0x26   :  { %p308_p2 = scmp.ne.s32.totalorder %s477_s2, %s307_s18  ;;  %p311_p3 = scmp.lt.u32.totalorder %s307_s18, %s477_s2 }
  0x28   :  { %p313_p4 = pnand %p311_p3, %p308_p2 }
  0x2a   :  { %316 = shalt.err (!%p313_p4)
}
  0x2b   :  { %s317_s23 = scalar_lea.vmem %s42_s6, 16  ;;  %s321_s24 = scalar_lea.vmem %s42_s6, 32 }
  0x2c   :  { %p318_p5 = scmp.ne.s32.totalorder %s42_s6, %s317_s23  ;;  %p322_p6 = scmp.lt.s32.totalorder %s42_s6, %s42_s6 }
  0x2d   :  { %p323_p7 = scmp.lt.s32.totalorder %s321_s24, %s317_s23 }
  0x2f   :  { %p324_p8 = por %p323_p7, %p322_p6 }
  0x31   :  { %p325_p9 = pnand %p324_p8, %p318_p5 }
  0x33   :  { %328 = shalt.err (!%p325_p9)
}
  0x34   :  { %44 = dma.hbm_to_vmem [thread:$0]  %s477_s2, 16, %s42_s6, [#allocation6]  }
  0x35   :  { %s386_s26 = smov [#allocation8]   ;;  %s329_s30 = scalar_lea.hbm %s478_s3, 16 }
  0x36   :  { %s51_s27 = sshll.u32 %s386_s26, 4  ;;  %p330_p10 = scmp.ne.s32.totalorder %s478_s3, %s329_s30  ;;  %s52_s27 = int_to_ptr.vmem [resolvable:$true] %s51_s27 }
  0x37   :  { %p333_p11 = scmp.lt.u32.totalorder %s329_s30, %s478_s3 }
  0x39   :  { %p335_p12 = pnand %p333_p11, %p330_p10 }
  0x3b   :  { %338 = shalt.err (!%p335_p12)
}
  0x3c   :  { %s339_s10 = scalar_lea.vmem %s52_s27, 16  ;;  %s343_s2 = scalar_lea.vmem %s52_s27, 32 }
  0x3d   :  { %p340_p13 = scmp.ne.s32.totalorder %s52_s27, %s339_s10  ;;  %p344_p0 = scmp.lt.s32.totalorder %s52_s27, %s52_s27 }
  0x3e   :  { %p345_p1 = scmp.lt.s32.totalorder %s343_s2, %s339_s10 }
  0x40   :  { %p346_p2 = por %p345_p1, %p344_p0 }
  0x42   :  { %p347_p3 = pnand %p346_p2, %p340_p13 }
  0x44   :  { %350 = shalt.err (!%p347_p3)
}
  0x45   :  { %54 = dma.hbm_to_vmem [thread:$0]  %s478_s3, 16, %s52_s27, [#allocation9]  }
  0x46   :  { %373 = dma.done.wait [#allocation3], 64  }
  0x47   :  { %374 = vsyncadd [#allocation3], 4294967232 }
  0x48   :  { %375 = dma.done.wait [#allocation6], 1040  }
  0x49   :  { %376 = vsyncadd [#allocation6], 4294966256 }
  0x4a   :  { %377 = dma.done.wait [#allocation9], 16  }
  0x4b   :  { %378 = vsyncadd [#allocation9], 4294967280  ;;  %v387_v0 = vmov 0.0   ;;  %vm388_vm0 = vmmov 0   ;;  %v255_v1 = vld [vmem:[#allocation5] sm:$0xff]   ;;  %v256_v2 = vld [vmem:[#allocation5 + $0x8] sm:$0xff]  }
  0x4c   :  { %226 = vmatprep.subr.bf16.mxu0 %v387_v0  ;;  %242 = vmatprep.mubr.msk.bf16.mxu0 %vm388_vm0, %v387_v0  ;;  %v257_v3 = vld [vmem:[#allocation5 + $0x10] sm:$0xff]   ;;  %v258_v4 = vld [vmem:[#allocation5 + $0x18] sm:$0xff]   ;;  %v259_v5 = vld [vmem:[#allocation5 + $0x20] sm:$0xff]   ;;  %s389_s3 = smov [#allocation10]  }
  0x4d   :  { %227 = vmatpush3.bf16.msra.mxu0 %v255_v1  ;;  %v260_v6 = vld [vmem:[#allocation5 + $0x28] sm:$0xff]   ;;  %v261_v7 = vld [vmem:[#allocation5 + $0x30] sm:$0xff]   ;;  %v262_v8 = vld [vmem:[#allocation5 + $0x38] sm:$0xff]   ;;  %s196_s12 = sshll.u32 %s389_s3, 4  ;;  %s197_s12 = int_to_ptr.vmem [resolvable:$true] %s196_s12 }
  0x4e   :  { %228 = vmatprep.subr.bf16.mxu0 %v387_v0  ;;  %v68_v9 = vld [vmem:[#allocation2] sm:$0xf]  ;;  %v215_v10 = vld [vmem:[#allocation7] ss:$0 sm:$0xff]  ;;  %v216_v12 = vld [vmem:[#allocation8] ss:$0 sm:$0xff]  ;;  %p356_p5 = scmp.lt.s32.totalorder %s197_s12, %s197_s12 }
  0x4f   :  { %s351_s13 = scalar_lea.vmem %s197_s12, 128 }
  0x50   :  { %p352_p4 = scmp.ne.s32.totalorder %s197_s12, %s351_s13  ;;  %p357_p6 = scmp.lt.s32.totalorder %s351_s13, %s351_s13 }
  0x51   :  { %229 = vmatpush3.bf16.msra.mxu0 %v256_v2 }
  0x52   :  { %230 = vmatprep.subr.bf16.mxu0 %v387_v0  ;;  %p358_p7 = por %p357_p6, %p356_p5 }
  0x54   :  { %p359_p8 = pnand %p358_p7, %p352_p4 }
  0x55   :  { %231 = vmatpush3.bf16.msra.mxu0 %v257_v3 }
  0x56   :  { %232 = vmatprep.subr.bf16.mxu0 %v387_v0 }
  0x59   :  { %233 = vmatpush3.bf16.msra.mxu0 %v258_v4 }
  0x5a   :  { %234 = vmatprep.subr.bf16.mxu0 %v387_v0 }
  0x5d   :  { %235 = vmatpush3.bf16.msra.mxu0 %v259_v5 }
  0x5e   :  { %236 = vmatprep.subr.bf16.mxu0 %v387_v0 }
  0x61   :  { %237 = vmatpush3.bf16.msra.mxu0 %v260_v6 }
  0x62   :  { %238 = vmatprep.subr.bf16.mxu0 %v387_v0 }
  0x65   :  { %239 = vmatpush3.bf16.msra.mxu0 %v261_v7 }
  0x66   :  { %240 = vmatprep.subr.bf16.mxu0 %v387_v0 }
  0x69   :  { %241 = vmatpush3.bf16.msra.mxu0 %v262_v8 }
  0x6c   :  { %243 = vmatmul.mubr.bf16.vlgmr.msra.gmra.mrb[0].mxu0 %v68_v9 }
 0x13f   :  { %v167_v11 = vpop.f32.mrb[0].mxu0 }
 0x140   :  { %v180_v13 = vmul.f32 %v215_v10, %v167_v11  ;;  %v244_v14 = vpop.f32.mrb[1].mxu0 }
 0x141   :  { %v170_v15 = vpop.f32.mrb[2].mxu0 }
 0x142   :  { %v188_v16 = vadd.f32 %v216_v12, %v180_v13  ;;  %v245_v17 = vpop.f32.mrb[3].mxu0 }
 0x144   :  { %189 = vst [vmem:[#allocation10] sm:$0xff] %v188_v16 }
 0x145   :  { %362 = shalt.err (!%p359_p8)
}
 0x146   :  { %s363_s15 = scalar_lea.hbm %s479_s4, 128 }
 0x147   :  { %p364_p9 = scmp.ne.s32.totalorder %s479_s4, %s363_s15  ;;  %p367_p10 = scmp.lt.u32.totalorder %s363_s15, %s479_s4 }
 0x149   :  { %p369_p11 = pnand %p367_p10, %p364_p9 }
 0x14b   :  { %372 = shalt.err (!%p369_p11)
}
 0x14c   :  { %199 = dma.vmem_to_hbm [thread:$0]  %s197_s12, 128, %s479_s4, [#allocation4]  }
 0x14d   :  { %379 = dma.done.wait [#allocation4], 128  }
 0x14e   :  { %380 = vsyncadd [#allocation4], 4294967168 }
 0x14f   :  { %203 = vsyncpa [#allocation3], 1 }
 0x150   :  { %204 = vsyncpa [#allocation6], 1 }
 0x151   :  { %205 = vsyncpa [#allocation9], 1 }
 0x152   :  { %206 = vsyncpa [#allocation4], 1 }

</bundles_post_ra>
